<compile_context>
chip_gen: v7x
topology: tpu7x:2x2x1
jax: 0.10.0
libtpu: 0.0.40
codegen_flags: <defaults>
</compile_context>

<pallas_src>
import functools
import numpy as np
import jax
import jax.numpy as jnp
from jax import lax
from jax.experimental import pallas as pl
from jax.experimental.pallas import tpu as pltpu

# ----- module defaults (DecoderLayer(n_heads=8, d_model=256, d_ff=512, d_k=64, d_v=64)) -----
D_MODEL = 256
N_HEADS = 8
D_K = 64
D_V = 64
D_FF = 512
EPS = 1e-5          # nn.LayerNorm default eps
NEG_INF = -1e9      # masked_fill value used by NoneLinear0inWorker0


# ---------------------------------------------------------------------------
# In-kernel helpers (traced inside the Pallas kernel)
# ---------------------------------------------------------------------------
def _layer_norm(y, gamma, beta):
    mean = jnp.mean(y, axis=-1, keepdims=True)
    c = y - mean
    var = jnp.mean(c * c, axis=-1, keepdims=True)
    return c * lax.rsqrt(var + EPS) * gamma + beta


def _softmax_lastdim(s):
    m = jnp.max(s, axis=-1, keepdims=True)
    e = jnp.exp(s - m)
    denom = jnp.sum(e, axis=-1, keepdims=True)
    # approx reciprocal runs on the EUP slot; ~1e-3 rel. deviation vs exact divide.
    return e * pl.reciprocal(denom, approx=True)


def _attn_core(residual, q, k, v, mask_add, wo, gamma, beta, d_k):
    """Multi-head attention + out-proj + residual + LayerNorm.

    residual : (B, Sq, D)       f32
    q        : (B, Sq, H, d_k)  f32
    k, v     : (B, Sk, H, d_*)  f32
    mask_add : (B, Sq, Sk)      f32 additive mask (0 or -1e9)
    wo       : (H*d_v, D)       bf16
    """
    b, sq, h, _ = q.shape
    sk = k.shape[1]
    dv = v.shape[-1]
    dm = residual.shape[-1]
    scale = 1.0 / np.sqrt(d_k)

    # head-major views for single-batch-dim batched matmuls
    qh = q.transpose(0, 2, 1, 3).reshape(b * h, sq, d_k)
    kh = k.transpose(0, 2, 1, 3).reshape(b * h, sk, d_k)
    vh = v.transpose(0, 2, 1, 3).reshape(b * h, sk, dv)

    s = jnp.einsum('gqd,gkd->gqk',
                   qh.astype(jnp.bfloat16), kh.astype(jnp.bfloat16),
                   preferred_element_type=jnp.float32) * scale        # (B*H, Sq, Sk)
    s = s.reshape(b, h, sq, sk) + mask_add[:, None, :, :]
    attn = _softmax_lastdim(s)                                        # (B, H, Sq, Sk) f32

    ctx = jnp.einsum('gqk,gkd->gqd',
                     attn.reshape(b * h, sq, sk).astype(jnp.bfloat16),
                     vh.astype(jnp.bfloat16),
                     preferred_element_type=jnp.float32)              # (B*H, Sq, dv)
    # fold head reduction into one (B*Sq, H*dv) x (H*dv, D) matmul
    ctx = ctx.reshape(b, h, sq, dv).transpose(0, 2, 1, 3).reshape(b * sq, h * dv)
    proj = jnp.dot(ctx.astype(jnp.bfloat16), wo,
                   preferred_element_type=jnp.float32)                # (B*Sq, D)
    out = _layer_norm(residual.reshape(b * sq, dm) + proj, gamma, beta)
    return out.reshape(b, sq, dm), attn


# ---------------------------------------------------------------------------
# Fused DecoderLayer kernel (one grid step per batch block)
# ---------------------------------------------------------------------------
def _decoder_layer_kernel(
        dec_ref, enc_ref, smask_ref, cmask_ref,
        wqkv_s_ref, wo_s_ref, g1_ref, b1_ref,
        wq_c_ref, wkv_c_ref, wo_c_ref, g2_ref, b2_ref,
        w1_ref, c1b_ref, w2_ref, c2b_ref, g3_ref, b3_ref,
        out_ref, sattn_ref, cattn_ref,
        *, n_heads, d_k, d_v):
    bblk, sd, dm = dec_ref.shape
    se = enc_ref.shape[1]
    h = n_heads
    hk = h * d_k

    x = dec_ref[...]                                      # (Bblk, Sd, D) f32
    enc = enc_ref[...]                                    # (Bblk, Se, D) f32

    # ---- decoder self-attention: one fused lane-dense QKV projection ----
    xf = x.reshape(bblk * sd, dm).astype(jnp.bfloat16)
    qkv = jnp.dot(xf, wqkv_s_ref[...],
                  preferred_element_type=jnp.float32)     # (Bblk*Sd, 3*H*dk)
    q = qkv[:, :hk].reshape(bblk, sd, h, d_k)
    k = qkv[:, hk:2 * hk].reshape(bblk, sd, h, d_k)
    v = qkv[:, 2 * hk:].reshape(bblk, sd, h, d_v)
    x, self_attn = _attn_core(x, q, k, v, smask_ref[...], wo_s_ref[...],
                              g1_ref[...], b1_ref[...], d_k)
    # lane-dense store: (Bblk, Sd, H*Sd)
    sattn_ref[...] = self_attn.transpose(0, 2, 1, 3).reshape(bblk, sd, h * sd)

    # ---- encoder-decoder cross-attention: fused lane-dense KV projection ----
    ef = enc.reshape(bblk * se, dm).astype(jnp.bfloat16)
    kv = jnp.dot(ef, wkv_c_ref[...],
                 preferred_element_type=jnp.float32)      # (Bblk*Se, H*(dk+dv))
    k2 = kv[:, :hk].reshape(bblk, se, h, d_k)
    v2 = kv[:, hk:].reshape(bblk, se, h, d_v)
    xf2 = x.reshape(bblk * sd, dm).astype(jnp.bfloat16)
    q2 = jnp.dot(xf2, wq_c_ref[...],
                 preferred_element_type=jnp.float32).reshape(bblk, sd, h, d_k)
    x, cross_attn = _attn_core(x, q2, k2, v2, cmask_ref[...], wo_c_ref[...],
                               g2_ref[...], b2_ref[...], d_k)
    cattn_ref[...] = cross_attn.transpose(0, 2, 1, 3).reshape(bblk, sd, h * se)

    # ---- FFN: Conv1d(k=1) -> ReLU -> Conv1d(k=1) + residual + LayerNorm ----
    xf3 = x.reshape(bblk * sd, dm)
    h1 = jnp.dot(xf3.astype(jnp.bfloat16), w1_ref[...],
                 preferred_element_type=jnp.float32) + c1b_ref[...]
    h1 = jnp.maximum(h1, 0.0)
    y = jnp.dot(h1.astype(jnp.bfloat16), w2_ref[...],
                preferred_element_type=jnp.float32) + c2b_ref[...]
    out_ref[...] = _layer_norm(xf3 + y, g3_ref[...], b3_ref[...]).reshape(bblk, sd, dm)


# ---------------------------------------------------------------------------
# Wrapper (single pallas_call for the whole DecoderLayer)
# ---------------------------------------------------------------------------
def _full_spec(arr):
    nd = arr.ndim
    return pl.BlockSpec(arr.shape, lambda b, _n=nd: (0,) * _n)


def _pick_block_b(batch, target=32):
    # largest divisor of `batch` not exceeding `target` (fills the MXU M dim)
    for bb in range(min(batch, target), 0, -1):
        if batch % bb == 0:
            return bb
    return 1


def decoder_layer_forward(dec_in, enc_out, self_mask, cross_mask, p, block_b=None):
    B, Sd, D = dec_in.shape
    Se = enc_out.shape[1]
    H = N_HEADS
    if block_b is None:
        block_b = _pick_block_b(B)
    assert B % block_b == 0

    # additive masks precomputed on host (replaces per-head compare+select in-kernel)
    smask_add = self_mask.astype(jnp.float32) * NEG_INF
    cmask_add = cross_mask.astype(jnp.float32) * NEG_INF

    weights = (p['wqkv_s'], p['wo_s'], p['ln1_g'], p['ln1_b'],
               p['wq_c'], p['wkv_c'], p['wo_c'], p['ln2_g'], p['ln2_b'],
               p['w1'], p['b1'], p['w2'], p['b2'], p['ln3_g'], p['ln3_b'])

    kern = functools.partial(_decoder_layer_kernel,
                             n_heads=N_HEADS, d_k=D_K, d_v=D_V)

    out, sattn_ld, cattn_ld = pl.pallas_call(
        kern,
        out_shape=(jax.ShapeDtypeStruct((B, Sd, D), jnp.float32),
                   jax.ShapeDtypeStruct((B, Sd, H * Sd), jnp.float32),   # lane-dense
                   jax.ShapeDtypeStruct((B, Sd, H * Se), jnp.float32)),  # lane-dense
        grid=(B // block_b,),
        in_specs=[
            pl.BlockSpec((block_b, Sd, D), lambda b: (b, 0, 0)),     # decoder input
            pl.BlockSpec((block_b, Se, D), lambda b: (b, 0, 0)),     # encoder output
            pl.BlockSpec((block_b, Sd, Sd), lambda b: (b, 0, 0)),    # additive self mask
            pl.BlockSpec((block_b, Sd, Se), lambda b: (b, 0, 0)),    # additive cross mask
        ] + [_full_spec(w) for w in weights],
        out_specs=(pl.BlockSpec((block_b, Sd, D), lambda b: (b, 0, 0)),
                   pl.BlockSpec((block_b, Sd, H * Sd), lambda b: (b, 0, 0)),
                   pl.BlockSpec((block_b, Sd, H * Se), lambda b: (b, 0, 0))),
        compiler_params=pltpu.CompilerParams(
            dimension_semantics=("parallel",)),   # batch blocks independent (v7x megacore)
    )(dec_in, enc_out, smask_add, cmask_add, *weights)

    # cheap host-side layout plumbing back to the reference (B, H, Sq, Sk) maps
    self_attn = sattn_ld.reshape(B, Sd, H, Sd).transpose(0, 2, 1, 3)
    cross_attn = cattn_ld.reshape(B, Sd, H, Se).transpose(0, 2, 1, 3)
    return out, self_attn, cross_attn


# ---------------------------------------------------------------------------
# Parameter init (PyTorch-style uniform init; weights stored (in, out), bf16)
# ---------------------------------------------------------------------------
def _uniform(key, shape, fan_in):
    bound = 1.0 / np.sqrt(fan_in)
    return jax.random.uniform(key, shape, jnp.float32, -bound, bound)


def init_params(key):
    ks = jax.random.split(key, 12)
    lin = lambda k, din, dout: _uniform(k, (din, dout), din)   # stored pre-transposed: y = x @ W

    wq_s = lin(ks[0], D_MODEL, N_HEADS * D_K)
    wk_s = lin(ks[1], D_MODEL, N_HEADS * D_K)
    wv_s = lin(ks[2], D_MODEL, N_HEADS * D_V)
    wo_s = lin(ks[3], N_HEADS * D_V, D_MODEL)
    wq_c = lin(ks[4], D_MODEL, N_HEADS * D_K)
    wk_c = lin(ks[5], D_MODEL, N_HEADS * D_K)
    wv_c = lin(ks[6], D_MODEL, N_HEADS * D_V)
    wo_c = lin(ks[7], N_HEADS * D_V, D_MODEL)
    # Conv1d(kernel=1) == per-position linear: weight [out,in,1] -> (in,out), bias kept
    w1 = lin(ks[8], D_MODEL, D_FF)
    b1 = _uniform(ks[9], (1, D_FF), D_MODEL)
    w2 = lin(ks[10], D_FF, D_MODEL)
    b2 = _uniform(ks[11], (1, D_MODEL), D_FF)

    bf16 = jnp.bfloat16
    # TODO(synk): on v7x an fp8 (v5e/v6e: int8) weight copy would halve the weight DMA floor.
    return dict(
        # self-attn: column-grouped [all-Q | all-K | all-V] -> (D, 3*H*dk) = (256, 1536)
        wqkv_s=jnp.concatenate([wq_s, wk_s, wv_s], axis=-1).astype(bf16),
        wo_s=wo_s.astype(bf16),                                  # (H*dv, D)
        ln1_g=jnp.ones((1, D_MODEL), jnp.float32),
        ln1_b=jnp.zeros((1, D_MODEL), jnp.float32),
        # cross-attn: Q weight (D, H*dk), column-grouped [all-K | all-V] -> (D, H*(dk+dv))
        wq_c=wq_c.astype(bf16),
        wkv_c=jnp.concatenate([wk_c, wv_c], axis=-1).astype(bf16),
        wo_c=wo_c.astype(bf16),
        ln2_g=jnp.ones((1, D_MODEL), jnp.float32),
        ln2_b=jnp.zeros((1, D_MODEL), jnp.float32),
        # FFN
        w1=w1.astype(bf16), b1=b1,
        w2=w2.astype(bf16), b2=b2,
        ln3_g=jnp.ones((1, D_MODEL), jnp.float32),
        ln3_b=jnp.zeros((1, D_MODEL), jnp.float32),
    )


if __name__ == "__main__":
    B, S_DEC, S_ENC = 2, 8, 16
    key = jax.random.PRNGKey(0)
    k1, k2, k3 = jax.random.split(key, 3)

    dec_in = jax.random.normal(k1, (B, S_DEC, D_MODEL), jnp.float32)
    enc_out = jax.random.normal(k2, (B, S_ENC, D_MODEL), jnp.float32)
    params = init_params(k3)

    # decoder self mask: causal (no attending to future) + trailing pad positions
    causal = jnp.triu(jnp.ones((S_DEC, S_DEC), jnp.int32), k=1)
    dec_pad = jnp.zeros((B, S_DEC), jnp.int32).at[0, 6:].set(1).at[1, 7:].set(1)
    self_mask = jnp.maximum(causal[None, :, :], dec_pad[:, None, :]).astype(jnp.int32)
    # decoder-encoder mask: padded encoder key positions
    enc_pad = jnp.zeros((B, S_ENC), jnp.int32).at[0, 12:].set(1).at[1, 14:].set(1)
    cross_mask = jnp.broadcast_to(enc_pad[:, None, :], (B, S_DEC, S_ENC)).astype(jnp.int32)

    out, self_attn, cross_attn = decoder_layer_forward(
        dec_in, enc_out, self_mask, cross_mask, params)
    out = jax.block_until_ready(out)
    jax.block_until_ready(self_attn)
    jax.block_until_ready(cross_attn)

    assert out.shape == (B, S_DEC, D_MODEL)
    assert self_attn.shape == (B, N_HEADS, S_DEC, S_DEC)
    assert cross_attn.shape == (B, N_HEADS, S_DEC, S_ENC)
    assert bool(jnp.all(jnp.isfinite(out)))
    assert bool(jnp.all(jnp.isfinite(self_attn)))
    assert bool(jnp.all(jnp.isfinite(cross_attn)))
    print("KERNEL_OK")
</pallas_src>

<mosaic_0001>
module attributes {stable_mosaic.version = 11 : i64} {
  func.func @_decoder_layer_kernel(%arg0: i32, %arg1: memref<2x8x256xf32, #tpu.memory_space<vmem>>, %arg2: memref<2x16x256xf32, #tpu.memory_space<vmem>>, %arg3: memref<2x8x8xf32, #tpu.memory_space<vmem>>, %arg4: memref<2x8x16xf32, #tpu.memory_space<vmem>>, %arg5: memref<256x1536xbf16, #tpu.memory_space<vmem>>, %arg6: memref<512x256xbf16, #tpu.memory_space<vmem>>, %arg7: memref<1x256xf32, #tpu.memory_space<vmem>>, %arg8: memref<1x256xf32, #tpu.memory_space<vmem>>, %arg9: memref<256x512xbf16, #tpu.memory_space<vmem>>, %arg10: memref<256x1024xbf16, #tpu.memory_space<vmem>>, %arg11: memref<512x256xbf16, #tpu.memory_space<vmem>>, %arg12: memref<1x256xf32, #tpu.memory_space<vmem>>, %arg13: memref<1x256xf32, #tpu.memory_space<vmem>>, %arg14: memref<256x512xbf16, #tpu.memory_space<vmem>>, %arg15: memref<1x512xf32, #tpu.memory_space<vmem>>, %arg16: memref<512x256xbf16, #tpu.memory_space<vmem>>, %arg17: memref<1x256xf32, #tpu.memory_space<vmem>>, %arg18: memref<1x256xf32, #tpu.memory_space<vmem>>, %arg19: memref<1x256xf32, #tpu.memory_space<vmem>>, %arg20: memref<2x8x256xf32, #tpu.memory_space<vmem>>, %arg21: memref<2x8x64xf32, #tpu.memory_space<vmem>>, %arg22: memref<2x8x128xf32, #tpu.memory_space<vmem>>) attributes {dimension_semantics = [#tpu.dimension_semantics<parallel>], iteration_bounds = array<i64: 1>, scalar_prefetch = 0 : i64, scratch_operands = 0 : i64, tpu.core_type = #tpu.core_type<tc>, window_params = [{transform_indices = @transform_0, window_bounds = array<i64: 2, 8, 256>}, {transform_indices = @transform_1, window_bounds = array<i64: 2, 16, 256>}, {transform_indices = @transform_2, window_bounds = array<i64: 2, 8, 8>}, {transform_indices = @transform_3, window_bounds = array<i64: 2, 8, 16>}, {pipeline_mode = #tpu.pipeline_mode<synchronous>, transform_indices = @transform_4, window_bounds = array<i64: 256, 1536>}, {pipeline_mode = #tpu.pipeline_mode<synchronous>, transform_indices = @transform_5, window_bounds = array<i64: 512, 256>}, {pipeline_mode = #tpu.pipeline_mode<synchronous>, transform_indices = @transform_6, window_bounds = array<i64: 1, 256>}, {pipeline_mode = #tpu.pipeline_mode<synchronous>, transform_indices = @transform_7, window_bounds = array<i64: 1, 256>}, {pipeline_mode = #tpu.pipeline_mode<synchronous>, transform_indices = @transform_8, window_bounds = array<i64: 256, 512>}, {pipeline_mode = #tpu.pipeline_mode<synchronous>, transform_indices = @transform_9, window_bounds = array<i64: 256, 1024>}, {pipeline_mode = #tpu.pipeline_mode<synchronous>, transform_indices = @transform_10, window_bounds = array<i64: 512, 256>}, {pipeline_mode = #tpu.pipeline_mode<synchronous>, transform_indices = @transform_11, window_bounds = array<i64: 1, 256>}, {pipeline_mode = #tpu.pipeline_mode<synchronous>, transform_indices = @transform_12, window_bounds = array<i64: 1, 256>}, {pipeline_mode = #tpu.pipeline_mode<synchronous>, transform_indices = @transform_13, window_bounds = array<i64: 256, 512>}, {pipeline_mode = #tpu.pipeline_mode<synchronous>, transform_indices = @transform_14, window_bounds = array<i64: 1, 512>}, {pipeline_mode = #tpu.pipeline_mode<synchronous>, transform_indices = @transform_15, window_bounds = array<i64: 512, 256>}, {pipeline_mode = #tpu.pipeline_mode<synchronous>, transform_indices = @transform_16, window_bounds = array<i64: 1, 256>}, {pipeline_mode = #tpu.pipeline_mode<synchronous>, transform_indices = @transform_17, window_bounds = array<i64: 1, 256>}, {pipeline_mode = #tpu.pipeline_mode<synchronous>, transform_indices = @transform_18, window_bounds = array<i64: 1, 256>}, {transform_indices = @transform_19, window_bounds = array<i64: 2, 8, 256>}, {transform_indices = @transform_20, window_bounds = array<i64: 2, 8, 64>}, {transform_indices = @transform_21, window_bounds = array<i64: 2, 8, 128>}]} {
    %c0 = arith.constant 0 : index
    %c0_0 = arith.constant 0 : index
    %c0_1 = arith.constant 0 : index
    %0 = vector.load %arg1[%c0, %c0_0, %c0_1] : memref<2x8x256xf32, #tpu.memory_space<vmem>>, vector<2x8x256xf32>
    %c0_2 = arith.constant 0 : index
    %c0_3 = arith.constant 0 : index
    %c0_4 = arith.constant 0 : index
    %1 = vector.load %arg2[%c0_2, %c0_3, %c0_4] : memref<2x16x256xf32, #tpu.memory_space<vmem>>, vector<2x16x256xf32>
    %2 = vector.shape_cast %0 : vector<2x8x256xf32> to vector<16x256xf32>
    %3 = arith.truncf %2 : vector<16x256xf32> to vector<16x256xbf16>
    %c0_5 = arith.constant 0 : index
    %c0_6 = arith.constant 0 : index
    %4 = vector.load %arg5[%c0_5, %c0_6] : memref<256x1536xbf16, #tpu.memory_space<vmem>>, vector<256x1536xbf16>
    %cst = arith.constant dense<0.000000e+00> : vector<16x1536xf32>
    %5 = tpu.matmul %3, %4, %cst {dimension_numbers = #tpu.dot_dimension_numbers<[1], [0], [0], [1], [0, 0, 1, 1], [], []>} : vector<16x256xbf16>, vector<256x1536xbf16>, vector<16x1536xf32> -> vector<16x1536xf32>
    %6 = vector.extract_strided_slice %5 {offsets = [0, 0], sizes = [16, 512], strides = [1, 1]} : vector<16x1536xf32> to vector<16x512xf32>
    %7 = vector.shape_cast %6 : vector<16x512xf32> to vector<2x8x8x64xf32>
    %8 = vector.extract_strided_slice %5 {offsets = [0, 512], sizes = [16, 512], strides = [1, 1]} : vector<16x1536xf32> to vector<16x512xf32>
    %9 = vector.shape_cast %8 : vector<16x512xf32> to vector<2x8x8x64xf32>
    %10 = vector.extract_strided_slice %5 {offsets = [0, 1024], sizes = [16, 512], strides = [1, 1]} : vector<16x1536xf32> to vector<16x512xf32>
    %11 = vector.shape_cast %10 : vector<16x512xf32> to vector<2x8x8x64xf32>
    %c0_7 = arith.constant 0 : index
    %c0_8 = arith.constant 0 : index
    %c0_9 = arith.constant 0 : index
    %12 = vector.load %arg3[%c0_7, %c0_8, %c0_9] : memref<2x8x8xf32, #tpu.memory_space<vmem>>, vector<2x8x8xf32>
    %c0_10 = arith.constant 0 : index
    %c0_11 = arith.constant 0 : index
    %13 = vector.load %arg6[%c0_10, %c0_11] : memref<512x256xbf16, #tpu.memory_space<vmem>>, vector<512x256xbf16>
    %c0_12 = arith.constant 0 : index
    %c0_13 = arith.constant 0 : index
    %14 = vector.load %arg7[%c0_12, %c0_13] : memref<1x256xf32, #tpu.memory_space<vmem>>, vector<1x256xf32>
    %c0_14 = arith.constant 0 : index
    %c0_15 = arith.constant 0 : index
    %15 = vector.load %arg8[%c0_14, %c0_15] : memref<1x256xf32, #tpu.memory_space<vmem>>, vector<1x256xf32>
    %16 = tpu.transpose %7, [0, 2, 1, 3] : vector<2x8x8x64xf32> -> vector<2x8x8x64xf32>
    %17 = vector.shape_cast %16 : vector<2x8x8x64xf32> to vector<16x8x64xf32>
    %18 = tpu.transpose %9, [0, 2, 1, 3] : vector<2x8x8x64xf32> -> vector<2x8x8x64xf32>
    %19 = vector.shape_cast %18 : vector<2x8x8x64xf32> to vector<16x8x64xf32>
    %20 = tpu.transpose %11, [0, 2, 1, 3] : vector<2x8x8x64xf32> -> vector<2x8x8x64xf32>
    %21 = vector.shape_cast %20 : vector<2x8x8x64xf32> to vector<16x8x64xf32>
    %22 = arith.truncf %17 : vector<16x8x64xf32> to vector<16x8x64xbf16>
    %23 = arith.truncf %19 : vector<16x8x64xf32> to vector<16x8x64xbf16>
    "tpu.trace_start"() <{level = 10 : i32, message = "gqd,gkd->gqk"}> : () -> ()
    %cst_16 = arith.constant dense<0.000000e+00> : vector<16x8x8xf32>
    %24 = tpu.matmul %22, %23, %cst_16 {dimension_numbers = #tpu.dot_dimension_numbers<[2], [2], [1], [1], [0, 0, 0, 1, 1, 1], [0], [0]>} : vector<16x8x64xbf16>, vector<16x8x64xbf16>, vector<16x8x8xf32> -> vector<16x8x8xf32>
    "tpu.trace_stop"() : () -> ()
    %cst_17 = arith.constant 1.250000e-01 : f32
    %25 = vector.broadcast %cst_17 : f32 to vector<16x8x8xf32>
    %26 = arith.mulf %24, %25 : vector<16x8x8xf32>
    %27 = vector.shape_cast %26 : vector<16x8x8xf32> to vector<2x8x8x8xf32>
    %28 = vector.shape_cast %12 : vector<2x8x8xf32> to vector<2x1x8x8xf32>
    %29 = vector.broadcast %28 : vector<2x1x8x8xf32> to vector<2x8x8x8xf32>
    %30 = arith.addf %27, %29 : vector<2x8x8x8xf32>
    %cst_18 = arith.constant dense<0xFF800000> : vector<2x8x8xf32>
    %31 = vector.multi_reduction <maximumf>, %30, %cst_18 [3] : vector<2x8x8x8xf32> to vector<2x8x8xf32>
    %32 = vector.shape_cast %31 : vector<2x8x8xf32> to vector<2x8x8x1xf32>
    %33 = vector.broadcast %32 : vector<2x8x8x1xf32> to vector<2x8x8x8xf32>
    %34 = arith.subf %30, %33 : vector<2x8x8x8xf32>
    %35 = math.exp %34 : vector<2x8x8x8xf32>
    %cst_19 = arith.constant dense<0.000000e+00> : vector<2x8x8xf32>
    %36 = vector.multi_reduction <add>, %35, %cst_19 [3] : vector<2x8x8x8xf32> to vector<2x8x8xf32>
    %37 = vector.shape_cast %36 : vector<2x8x8xf32> to vector<2x8x8x1xf32>
    %38 = tpu.reciprocal %37 {approx = true} : vector<2x8x8x1xf32> -> vector<2x8x8x1xf32>
    %39 = vector.broadcast %38 : vector<2x8x8x1xf32> to vector<2x8x8x8xf32>
    %40 = arith.mulf %35, %39 : vector<2x8x8x8xf32>
    %41 = vector.shape_cast %40 : vector<2x8x8x8xf32> to vector<16x8x8xf32>
    %42 = arith.truncf %41 : vector<16x8x8xf32> to vector<16x8x8xbf16>
    %43 = arith.truncf %21 : vector<16x8x64xf32> to vector<16x8x64xbf16>
    "tpu.trace_start"() <{level = 10 : i32, message = "gqk,gkd->gqd"}> : () -> ()
    %cst_20 = arith.constant dense<0.000000e+00> : vector<16x8x64xf32>
    %44 = tpu.matmul %42, %43, %cst_20 {dimension_numbers = #tpu.dot_dimension_numbers<[2], [1], [1], [2], [0, 0, 0, 1, 1, 2], [0], [0]>} : vector<16x8x8xbf16>, vector<16x8x64xbf16>, vector<16x8x64xf32> -> vector<16x8x64xf32>
    "tpu.trace_stop"() : () -> ()
    %45 = vector.shape_cast %44 : vector<16x8x64xf32> to vector<2x8x8x64xf32>
    %46 = tpu.transpose %45, [0, 2, 1, 3] : vector<2x8x8x64xf32> -> vector<2x8x8x64xf32>
    %47 = vector.shape_cast %46 : vector<2x8x8x64xf32> to vector<16x512xf32>
    %48 = arith.truncf %47 : vector<16x512xf32> to vector<16x512xbf16>
    %cst_21 = arith.constant dense<0.000000e+00> : vector<16x256xf32>
    %49 = tpu.matmul %48, %13, %cst_21 {dimension_numbers = #tpu.dot_dimension_numbers<[1], [0], [0], [1], [0, 0, 1, 1], [], []>} : vector<16x512xbf16>, vector<512x256xbf16>, vector<16x256xf32> -> vector<16x256xf32>
    %50 = vector.shape_cast %0 : vector<2x8x256xf32> to vector<16x256xf32>
    %51 = arith.addf %50, %49 : vector<16x256xf32>
    %cst_22 = arith.constant dense<0.000000e+00> : vector<16xf32>
    %52 = vector.multi_reduction <add>, %51, %cst_22 [1] : vector<16x256xf32> to vector<16xf32>
    %53 = vector.shape_cast %52 : vector<16xf32> to vector<16x1xf32>
    %cst_23 = arith.constant 2.560000e+02 : f32
    %54 = vector.broadcast %cst_23 : f32 to vector<16x1xf32>
    %55 = arith.divf %53, %54 : vector<16x1xf32>
    %56 = vector.broadcast %55 : vector<16x1xf32> to vector<16x256xf32>
    %57 = arith.subf %51, %56 : vector<16x256xf32>
    %58 = arith.mulf %57, %57 : vector<16x256xf32>
    %cst_24 = arith.constant dense<0.000000e+00> : vector<16xf32>
    %59 = vector.multi_reduction <add>, %58, %cst_24 [1] : vector<16x256xf32> to vector<16xf32>
    %60 = vector.shape_cast %59 : vector<16xf32> to vector<16x1xf32>
    %cst_25 = arith.constant 2.560000e+02 : f32
    %61 = vector.broadcast %cst_25 : f32 to vector<16x1xf32>
    %62 = arith.divf %60, %61 : vector<16x1xf32>
    %cst_26 = arith.constant 9.99999974E-6 : f32
    %63 = vector.broadcast %cst_26 : f32 to vector<16x1xf32>
    %64 = arith.addf %62, %63 : vector<16x1xf32>
    %65 = math.rsqrt %64 : vector<16x1xf32>
    %66 = vector.broadcast %65 : vector<16x1xf32> to vector<16x256xf32>
    %67 = arith.mulf %57, %66 : vector<16x256xf32>
    %68 = vector.broadcast %14 : vector<1x256xf32> to vector<16x256xf32>
    %69 = arith.mulf %67, %68 : vector<16x256xf32>
    %70 = vector.broadcast %15 : vector<1x256xf32> to vector<16x256xf32>
    %71 = arith.addf %69, %70 : vector<16x256xf32>
    %72 = vector.shape_cast %71 : vector<16x256xf32> to vector<2x8x256xf32>
    %73 = tpu.transpose %40, [0, 2, 1, 3] : vector<2x8x8x8xf32> -> vector<2x8x8x8xf32>
    %74 = vector.shape_cast %73 : vector<2x8x8x8xf32> to vector<2x8x64xf32>
    %c0_27 = arith.constant 0 : index
    %c0_28 = arith.constant 0 : index
    %c0_29 = arith.constant 0 : index
    %75 = vector.load %arg21[%c0_27, %c0_28, %c0_29] : memref<2x8x64xf32, #tpu.memory_space<vmem>>, vector<2x8x64xf32>
    tpu.vector_store %arg21[%c0_27, %c0_28, %c0_29], %74 {strides = array<i32>} : memref<2x8x64xf32, #tpu.memory_space<vmem>>, vector<2x8x64xf32>,
    %76 = vector.shape_cast %1 : vector<2x16x256xf32> to vector<32x256xf32>
    %77 = arith.truncf %76 : vector<32x256xf32> to vector<32x256xbf16>
    %c0_30 = arith.constant 0 : index
    %c0_31 = arith.constant 0 : index
    %78 = vector.load %arg10[%c0_30, %c0_31] : memref<256x1024xbf16, #tpu.memory_space<vmem>>, vector<256x1024xbf16>
    %cst_32 = arith.constant dense<0.000000e+00> : vector<32x1024xf32>
    %79 = tpu.matmul %77, %78, %cst_32 {dimension_numbers = #tpu.dot_dimension_numbers<[1], [0], [0], [1], [0, 0, 1, 1], [], []>} : vector<32x256xbf16>, vector<256x1024xbf16>, vector<32x1024xf32> -> vector<32x1024xf32>
    %80 = vector.extract_strided_slice %79 {offsets = [0, 0], sizes = [32, 512], strides = [1, 1]} : vector<32x1024xf32> to vector<32x512xf32>
    %81 = vector.shape_cast %80 : vector<32x512xf32> to vector<2x16x8x64xf32>
    %82 = vector.extract_strided_slice %79 {offsets = [0, 512], sizes = [32, 512], strides = [1, 1]} : vector<32x1024xf32> to vector<32x512xf32>
    %83 = vector.shape_cast %82 : vector<32x512xf32> to vector<2x16x8x64xf32>
    %84 = vector.shape_cast %72 : vector<2x8x256xf32> to vector<16x256xf32>
    %85 = arith.truncf %84 : vector<16x256xf32> to vector<16x256xbf16>
    %c0_33 = arith.constant 0 : index
    %c0_34 = arith.constant 0 : index
    %86 = vector.load %arg9[%c0_33, %c0_34] : memref<256x512xbf16, #tpu.memory_space<vmem>>, vector<256x512xbf16>
    %cst_35 = arith.constant dense<0.000000e+00> : vector<16x512xf32>
    %87 = tpu.matmul %85, %86, %cst_35 {dimension_numbers = #tpu.dot_dimension_numbers<[1], [0], [0], [1], [0, 0, 1, 1], [], []>} : vector<16x256xbf16>, vector<256x512xbf16>, vector<16x512xf32> -> vector<16x512xf32>
    %88 = vector.shape_cast %87 : vector<16x512xf32> to vector<2x8x8x64xf32>
    %c0_36 = arith.constant 0 : index
    %c0_37 = arith.constant 0 : index
    %c0_38 = arith.constant 0 : index
    %89 = vector.load %arg4[%c0_36, %c0_37, %c0_38] : memref<2x8x16xf32, #tpu.memory_space<vmem>>, vector<2x8x16xf32>
    %c0_39 = arith.constant 0 : index
    %c0_40 = arith.constant 0 : index
    %90 = vector.load %arg11[%c0_39, %c0_40] : memref<512x256xbf16, #tpu.memory_space<vmem>>, vector<512x256xbf16>
    %c0_41 = arith.constant 0 : index
    %c0_42 = arith.constant 0 : index
    %91 = vector.load %arg12[%c0_41, %c0_42] : memref<1x256xf32, #tpu.memory_space<vmem>>, vector<1x256xf32>
    %c0_43 = arith.constant 0 : index
    %c0_44 = arith.constant 0 : index
    %92 = vector.load %arg13[%c0_43, %c0_44] : memref<1x256xf32, #tpu.memory_space<vmem>>, vector<1x256xf32>
    %93 = tpu.transpose %88, [0, 2, 1, 3] : vector<2x8x8x64xf32> -> vector<2x8x8x64xf32>
    %94 = vector.shape_cast %93 : vector<2x8x8x64xf32> to vector<16x8x64xf32>
    %95 = tpu.transpose %81, [0, 2, 1, 3] : vector<2x16x8x64xf32> -> vector<2x8x16x64xf32>
    %96 = vector.shape_cast %95 : vector<2x8x16x64xf32> to vector<16x16x64xf32>
    %97 = tpu.transpose %83, [0, 2, 1, 3] : vector<2x16x8x64xf32> -> vector<2x8x16x64xf32>
    %98 = vector.shape_cast %97 : vector<2x8x16x64xf32> to vector<16x16x64xf32>
    %99 = arith.truncf %94 : vector<16x8x64xf32> to vector<16x8x64xbf16>
    %100 = arith.truncf %96 : vector<16x16x64xf32> to vector<16x16x64xbf16>
    "tpu.trace_start"() <{level = 10 : i32, message = "gqd,gkd->gqk"}> : () -> ()
    %cst_45 = arith.constant dense<0.000000e+00> : vector<16x8x16xf32>
    %101 = tpu.matmul %99, %100, %cst_45 {dimension_numbers = #tpu.dot_dimension_numbers<[2], [2], [1], [1], [0, 0, 0, 1, 1, 1], [0], [0]>} : vector<16x8x64xbf16>, vector<16x16x64xbf16>, vector<16x8x16xf32> -> vector<16x8x16xf32>
    "tpu.trace_stop"() : () -> ()
    %cst_46 = arith.constant 1.250000e-01 : f32
    %102 = vector.broadcast %cst_46 : f32 to vector<16x8x16xf32>
    %103 = arith.mulf %101, %102 : vector<16x8x16xf32>
    %104 = vector.shape_cast %103 : vector<16x8x16xf32> to vector<2x8x8x16xf32>
    %105 = vector.shape_cast %89 : vector<2x8x16xf32> to vector<2x1x8x16xf32>
    %106 = vector.broadcast %105 : vector<2x1x8x16xf32> to vector<2x8x8x16xf32>
    %107 = arith.addf %104, %106 : vector<2x8x8x16xf32>
    %cst_47 = arith.constant dense<0xFF800000> : vector<2x8x8xf32>
    %108 = vector.multi_reduction <maximumf>, %107, %cst_47 [3] : vector<2x8x8x16xf32> to vector<2x8x8xf32>
    %109 = vector.shape_cast %108 : vector<2x8x8xf32> to vector<2x8x8x1xf32>
    %110 = vector.broadcast %109 : vector<2x8x8x1xf32> to vector<2x8x8x16xf32>
    %111 = arith.subf %107, %110 : vector<2x8x8x16xf32>
    %112 = math.exp %111 : vector<2x8x8x16xf32>
    %cst_48 = arith.constant dense<0.000000e+00> : vector<2x8x8xf32>
    %113 = vector.multi_reduction <add>, %112, %cst_48 [3] : vector<2x8x8x16xf32> to vector<2x8x8xf32>
    %114 = vector.shape_cast %113 : vector<2x8x8xf32> to vector<2x8x8x1xf32>
    %115 = tpu.reciprocal %114 {approx = true} : vector<2x8x8x1xf32> -> vector<2x8x8x1xf32>
    %116 = vector.broadcast %115 : vector<2x8x8x1xf32> to vector<2x8x8x16xf32>
    %117 = arith.mulf %112, %116 : vector<2x8x8x16xf32>
    %118 = vector.shape_cast %117 : vector<2x8x8x16xf32> to vector<16x8x16xf32>
    %119 = arith.truncf %118 : vector<16x8x16xf32> to vector<16x8x16xbf16>
    %120 = arith.truncf %98 : vector<16x16x64xf32> to vector<16x16x64xbf16>
    "tpu.trace_start"() <{level = 10 : i32, message = "gqk,gkd->gqd"}> : () -> ()
    %cst_49 = arith.constant dense<0.000000e+00> : vector<16x8x64xf32>
    %121 = tpu.matmul %119, %120, %cst_49 {dimension_numbers = #tpu.dot_dimension_numbers<[2], [1], [1], [2], [0, 0, 0, 1, 1, 2], [0], [0]>} : vector<16x8x16xbf16>, vector<16x16x64xbf16>, vector<16x8x64xf32> -> vector<16x8x64xf32>
    "tpu.trace_stop"() : () -> ()
    %122 = vector.shape_cast %121 : vector<16x8x64xf32> to vector<2x8x8x64xf32>
    %123 = tpu.transpose %122, [0, 2, 1, 3] : vector<2x8x8x64xf32> -> vector<2x8x8x64xf32>
    %124 = vector.shape_cast %123 : vector<2x8x8x64xf32> to vector<16x512xf32>
    %125 = arith.truncf %124 : vector<16x512xf32> to vector<16x512xbf16>
    %cst_50 = arith.constant dense<0.000000e+00> : vector<16x256xf32>
    %126 = tpu.matmul %125, %90, %cst_50 {dimension_numbers = #tpu.dot_dimension_numbers<[1], [0], [0], [1], [0, 0, 1, 1], [], []>} : vector<16x512xbf16>, vector<512x256xbf16>, vector<16x256xf32> -> vector<16x256xf32>
    %127 = vector.shape_cast %72 : vector<2x8x256xf32> to vector<16x256xf32>
    %128 = arith.addf %127, %126 : vector<16x256xf32>
    %cst_51 = arith.constant dense<0.000000e+00> : vector<16xf32>
    %129 = vector.multi_reduction <add>, %128, %cst_51 [1] : vector<16x256xf32> to vector<16xf32>
    %130 = vector.shape_cast %129 : vector<16xf32> to vector<16x1xf32>
    %cst_52 = arith.constant 2.560000e+02 : f32
    %131 = vector.broadcast %cst_52 : f32 to vector<16x1xf32>
    %132 = arith.divf %130, %131 : vector<16x1xf32>
    %133 = vector.broadcast %132 : vector<16x1xf32> to vector<16x256xf32>
    %134 = arith.subf %128, %133 : vector<16x256xf32>
    %135 = arith.mulf %134, %134 : vector<16x256xf32>
    %cst_53 = arith.constant dense<0.000000e+00> : vector<16xf32>
    %136 = vector.multi_reduction <add>, %135, %cst_53 [1] : vector<16x256xf32> to vector<16xf32>
    %137 = vector.shape_cast %136 : vector<16xf32> to vector<16x1xf32>
    %cst_54 = arith.constant 2.560000e+02 : f32
    %138 = vector.broadcast %cst_54 : f32 to vector<16x1xf32>
    %139 = arith.divf %137, %138 : vector<16x1xf32>
    %cst_55 = arith.constant 9.99999974E-6 : f32
    %140 = vector.broadcast %cst_55 : f32 to vector<16x1xf32>
    %141 = arith.addf %139, %140 : vector<16x1xf32>
    %142 = math.rsqrt %141 : vector<16x1xf32>
    %143 = vector.broadcast %142 : vector<16x1xf32> to vector<16x256xf32>
    %144 = arith.mulf %134, %143 : vector<16x256xf32>
    %145 = vector.broadcast %91 : vector<1x256xf32> to vector<16x256xf32>
    %146 = arith.mulf %144, %145 : vector<16x256xf32>
    %147 = vector.broadcast %92 : vector<1x256xf32> to vector<16x256xf32>
    %148 = arith.addf %146, %147 : vector<16x256xf32>
    %149 = vector.shape_cast %148 : vector<16x256xf32> to vector<2x8x256xf32>
    %150 = tpu.transpose %117, [0, 2, 1, 3] : vector<2x8x8x16xf32> -> vector<2x8x8x16xf32>
    %151 = vector.shape_cast %150 : vector<2x8x8x16xf32> to vector<2x8x128xf32>
    %c0_56 = arith.constant 0 : index
    %c0_57 = arith.constant 0 : index
    %c0_58 = arith.constant 0 : index
    %152 = vector.load %arg22[%c0_56, %c0_57, %c0_58] : memref<2x8x128xf32, #tpu.memory_space<vmem>>, vector<2x8x128xf32>
    tpu.vector_store %arg22[%c0_56, %c0_57, %c0_58], %151 {strides = array<i32>} : memref<2x8x128xf32, #tpu.memory_space<vmem>>, vector<2x8x128xf32>,
    %153 = vector.shape_cast %149 : vector<2x8x256xf32> to vector<16x256xf32>
    %154 = arith.truncf %153 : vector<16x256xf32> to vector<16x256xbf16>
    %c0_59 = arith.constant 0 : index
    %c0_60 = arith.constant 0 : index
    %155 = vector.load %arg14[%c0_59, %c0_60] : memref<256x512xbf16, #tpu.memory_space<vmem>>, vector<256x512xbf16>
    %cst_61 = arith.constant dense<0.000000e+00> : vector<16x512xf32>
    %156 = tpu.matmul %154, %155, %cst_61 {dimension_numbers = #tpu.dot_dimension_numbers<[1], [0], [0], [1], [0, 0, 1, 1], [], []>} : vector<16x256xbf16>, vector<256x512xbf16>, vector<16x512xf32> -> vector<16x512xf32>
    %c0_62 = arith.constant 0 : index
    %c0_63 = arith.constant 0 : index
    %157 = vector.load %arg15[%c0_62, %c0_63] : memref<1x512xf32, #tpu.memory_space<vmem>>, vector<1x512xf32>
    %158 = vector.broadcast %157 : vector<1x512xf32> to vector<16x512xf32>
    %159 = arith.addf %156, %158 : vector<16x512xf32>
    %cst_64 = arith.constant 0.000000e+00 : f32
    %160 = vector.broadcast %cst_64 : f32 to vector<16x512xf32>
    %161 = arith.maximumf %159, %160 : vector<16x512xf32>
    %162 = arith.truncf %161 : vector<16x512xf32> to vector<16x512xbf16>
    %c0_65 = arith.constant 0 : index
    %c0_66 = arith.constant 0 : index
    %163 = vector.load %arg16[%c0_65, %c0_66] : memref<512x256xbf16, #tpu.memory_space<vmem>>, vector<512x256xbf16>
    %cst_67 = arith.constant dense<0.000000e+00> : vector<16x256xf32>
    %164 = tpu.matmul %162, %163, %cst_67 {dimension_numbers = #tpu.dot_dimension_numbers<[1], [0], [0], [1], [0, 0, 1, 1], [], []>} : vector<16x512xbf16>, vector<512x256xbf16>, vector<16x256xf32> -> vector<16x256xf32>
    %c0_68 = arith.constant 0 : index
    %c0_69 = arith.constant 0 : index
    %165 = vector.load %arg17[%c0_68, %c0_69] : memref<1x256xf32, #tpu.memory_space<vmem>>, vector<1x256xf32>
    %166 = vector.broadcast %165 : vector<1x256xf32> to vector<16x256xf32>
    %167 = arith.addf %164, %166 : vector<16x256xf32>
    %168 = arith.addf %153, %167 : vector<16x256xf32>
    %c0_70 = arith.constant 0 : index
    %c0_71 = arith.constant 0 : index
    %169 = vector.load %arg18[%c0_70, %c0_71] : memref<1x256xf32, #tpu.memory_space<vmem>>, vector<1x256xf32>
    %c0_72 = arith.constant 0 : index
    %c0_73 = arith.constant 0 : index
    %170 = vector.load %arg19[%c0_72, %c0_73] : memref<1x256xf32, #tpu.memory_space<vmem>>, vector<1x256xf32>
    %cst_74 = arith.constant dense<0.000000e+00> : vector<16xf32>
    %171 = vector.multi_reduction <add>, %168, %cst_74 [1] : vector<16x256xf32> to vector<16xf32>
    %172 = vector.shape_cast %171 : vector<16xf32> to vector<16x1xf32>
    %cst_75 = arith.constant 2.560000e+02 : f32
    %173 = vector.broadcast %cst_75 : f32 to vector<16x1xf32>
    %174 = arith.divf %172, %173 : vector<16x1xf32>
    %175 = vector.broadcast %174 : vector<16x1xf32> to vector<16x256xf32>
    %176 = arith.subf %168, %175 : vector<16x256xf32>
    %177 = arith.mulf %176, %176 : vector<16x256xf32>
    %cst_76 = arith.constant dense<0.000000e+00> : vector<16xf32>
    %178 = vector.multi_reduction <add>, %177, %cst_76 [1] : vector<16x256xf32> to vector<16xf32>
    %179 = vector.shape_cast %178 : vector<16xf32> to vector<16x1xf32>
    %cst_77 = arith.constant 2.560000e+02 : f32
    %180 = vector.broadcast %cst_77 : f32 to vector<16x1xf32>
    %181 = arith.divf %179, %180 : vector<16x1xf32>
    %cst_78 = arith.constant 9.99999974E-6 : f32
    %182 = vector.broadcast %cst_78 : f32 to vector<16x1xf32>
    %183 = arith.addf %181, %182 : vector<16x1xf32>
    %184 = math.rsqrt %183 : vector<16x1xf32>
    %185 = vector.broadcast %184 : vector<16x1xf32> to vector<16x256xf32>
    %186 = arith.mulf %176, %185 : vector<16x256xf32>
    %187 = vector.broadcast %169 : vector<1x256xf32> to vector<16x256xf32>
    %188 = arith.mulf %186, %187 : vector<16x256xf32>
    %189 = vector.broadcast %170 : vector<1x256xf32> to vector<16x256xf32>
    %190 = arith.addf %188, %189 : vector<16x256xf32>
    %191 = vector.shape_cast %190 : vector<16x256xf32> to vector<2x8x256xf32>
    %c0_79 = arith.constant 0 : index
    %c0_80 = arith.constant 0 : index
    %c0_81 = arith.constant 0 : index
    %192 = vector.load %arg20[%c0_79, %c0_80, %c0_81] : memref<2x8x256xf32, #tpu.memory_space<vmem>>, vector<2x8x256xf32>
    tpu.vector_store %arg20[%c0_79, %c0_80, %c0_81], %191 {strides = array<i32>} : memref<2x8x256xf32, #tpu.memory_space<vmem>>, vector<2x8x256xf32>,
    return
  }
  func.func @transform_0(%arg0: i32) -> (i32, i32, i32) {
    %c0_i32 = arith.constant 0 : i32
    %c0_i32_0 = arith.constant 0 : i32
    %c0_i32_1 = arith.constant 0 : i32
    return %arg0, %c0_i32, %c0_i32_0 : i32, i32, i32
  }
  func.func @transform_1(%arg0: i32) -> (i32, i32, i32) {
    %c0_i32 = arith.constant 0 : i32
    %c0_i32_0 = arith.constant 0 : i32
    %c0_i32_1 = arith.constant 0 : i32
    return %arg0, %c0_i32, %c0_i32_0 : i32, i32, i32
  }
  func.func @transform_2(%arg0: i32) -> (i32, i32, i32) {
    %c0_i32 = arith.constant 0 : i32
    %c0_i32_0 = arith.constant 0 : i32
    %c0_i32_1 = arith.constant 0 : i32
    return %arg0, %c0_i32, %c0_i32_0 : i32, i32, i32
  }
  func.func @transform_3(%arg0: i32) -> (i32, i32, i32) {
    %c0_i32 = arith.constant 0 : i32
    %c0_i32_0 = arith.constant 0 : i32
    %c0_i32_1 = arith.constant 0 : i32
    return %arg0, %c0_i32, %c0_i32_0 : i32, i32, i32
  }
  func.func @transform_4(%arg0: i32) -> (i32, i32) {
    %c0_i32 = arith.constant 0 : i32
    %c0_i32_0 = arith.constant 0 : i32
    %c0_i32_1 = arith.constant 0 : i32
    return %c0_i32, %c0_i32_0 : i32, i32
  }
  func.func @transform_5(%arg0: i32) -> (i32, i32) {
    %c0_i32 = arith.constant 0 : i32
    %c0_i32_0 = arith.constant 0 : i32
    %c0_i32_1 = arith.constant 0 : i32
    return %c0_i32, %c0_i32_0 : i32, i32
  }
  func.func @transform_6(%arg0: i32) -> (i32, i32) {
    %c0_i32 = arith.constant 0 : i32
    %c0_i32_0 = arith.constant 0 : i32
    %c0_i32_1 = arith.constant 0 : i32
    return %c0_i32, %c0_i32_0 : i32, i32
  }
  func.func @transform_7(%arg0: i32) -> (i32, i32) {
    %c0_i32 = arith.constant 0 : i32
    %c0_i32_0 = arith.constant 0 : i32
    %c0_i32_1 = arith.constant 0 : i32
    return %c0_i32, %c0_i32_0 : i32, i32
  }
  func.func @transform_8(%arg0: i32) -> (i32, i32) {
    %c0_i32 = arith.constant 0 : i32
    %c0_i32_0 = arith.constant 0 : i32
    %c0_i32_1 = arith.constant 0 : i32
    return %c0_i32, %c0_i32_0 : i32, i32
  }
  func.func @transform_9(%arg0: i32) -> (i32, i32) {
    %c0_i32 = arith.constant 0 : i32
    %c0_i32_0 = arith.constant 0 : i32
    %c0_i32_1 = arith.constant 0 : i32
    return %c0_i32, %c0_i32_0 : i32, i32
  }
  func.func @transform_10(%arg0: i32) -> (i32, i32) {
    %c0_i32 = arith.constant 0 : i32
    %c0_i32_0 = arith.constant 0 : i32
    %c0_i32_1 = arith.constant 0 : i32
    return %c0_i32, %c0_i32_0 : i32, i32
  }
  func.func @transform_11(%arg0: i32) -> (i32, i32) {
    %c0_i32 = arith.constant 0 : i32
    %c0_i32_0 = arith.constant 0 : i32
    %c0_i32_1 = arith.constant 0 : i32
    return %c0_i32, %c0_i32_0 : i32, i32
  }
  func.func @transform_12(%arg0: i32) -> (i32, i32) {
    %c0_i32 = arith.constant 0 : i32
    %c0_i32_0 = arith.constant 0 : i32
    %c0_i32_1 = arith.constant 0 : i32
    return %c0_i32, %c0_i32_0 : i32, i32
  }
  func.func @transform_13(%arg0: i32) -> (i32, i32) {
    %c0_i32 = arith.constant 0 : i32
    %c0_i32_0 = arith.constant 0 : i32
    %c0_i32_1 = arith.constant 0 : i32
    return %c0_i32, %c0_i32_0 : i32, i32
  }
  func.func @transform_14(%arg0: i32) -> (i32, i32) {
    %c0_i32 = arith.constant 0 : i32
    %c0_i32_0 = arith.constant 0 : i32
    %c0_i32_1 = arith.constant 0 : i32
    return %c0_i32, %c0_i32_0 : i32, i32
  }
  func.func @transform_15(%arg0: i32) -> (i32, i32) {
    %c0_i32 = arith.constant 0 : i32
    %c0_i32_0 = arith.constant 0 : i32
    %c0_i32_1 = arith.constant 0 : i32
    return %c0_i32, %c0_i32_0 : i32, i32
  }
  func.func @transform_16(%arg0: i32) -> (i32, i32) {
    %c0_i32 = arith.constant 0 : i32
    %c0_i32_0 = arith.constant 0 : i32
    %c0_i32_1 = arith.constant 0 : i32
    return %c0_i32, %c0_i32_0 : i32, i32
  }
  func.func @transform_17(%arg0: i32) -> (i32, i32) {
    %c0_i32 = arith.constant 0 : i32
    %c0_i32_0 = arith.constant 0 : i32
    %c0_i32_1 = arith.constant 0 : i32
    return %c0_i32, %c0_i32_0 : i32, i32
  }
  func.func @transform_18(%arg0: i32) -> (i32, i32) {
    %c0_i32 = arith.constant 0 : i32
    %c0_i32_0 = arith.constant 0 : i32
    %c0_i32_1 = arith.constant 0 : i32
    return %c0_i32, %c0_i32_0 : i32, i32
  }
  func.func @transform_19(%arg0: i32) -> (i32, i32, i32) {
    %c0_i32 = arith.constant 0 : i32
    %c0_i32_0 = arith.constant 0 : i32
    %c0_i32_1 = arith.constant 0 : i32
    return %arg0, %c0_i32, %c0_i32_0 : i32, i32, i32
  }
  func.func @transform_20(%arg0: i32) -> (i32, i32, i32) {
    %c0_i32 = arith.constant 0 : i32
    %c0_i32_0 = arith.constant 0 : i32
    %c0_i32_1 = arith.constant 0 : i32
    return %arg0, %c0_i32, %c0_i32_0 : i32, i32, i32
  }
  func.func @transform_21(%arg0: i32) -> (i32, i32, i32) {
    %c0_i32 = arith.constant 0 : i32
    %c0_i32_0 = arith.constant 0 : i32
    %c0_i32_1 = arith.constant 0 : i32
    return %arg0, %c0_i32, %c0_i32_0 : i32, i32, i32
  }
}

</mosaic_0001>

<bundles_post_ra>
// kernel: tpu_custom_call.1
= control target key start
LH: loop header
LB: loop body
LE: loop exit
PB: predicated region body
PF: predicated region fallthrough
CT: control target
= control target key end

     0   :  { %s22263_s0 = inlined_call_operand.hbm [shape: f32[2,8,256], index: 0, kind: input, shape index: {}]   ;;  %s22264_s1 = inlined_call_operand.hbm [shape: f32[2,16,256], index: 1, kind: input, shape index: {}]   ;;  %s22265_s2 = inlined_call_operand.hbm [shape: f32[2,8,8], index: 2, kind: input, shape index: {}]   ;;  %s22266_s3 = inlined_call_operand.hbm [shape: f32[2,8,16], index: 3, kind: input, shape index: {}]   ;;  %s22267_s4 = inlined_call_operand.hbm [shape: bf16[256,1536], index: 4, kind: input, shape index: {}]   ;;  %s22268_s5 = inlined_call_operand.hbm [shape: bf16[512,256], index: 5, kind: input, shape index: {}]   ;;  %s22269_s6 = inlined_call_operand.vmem [shape: f32[1,256], index: 6, kind: input, shape index: {}]   ;;  %s22270_s7 = inlined_call_operand.vmem [shape: f32[1,256], index: 7, kind: input, shape index: {}]   ;;  %s22271_s8 = inlined_call_operand.hbm [shape: bf16[256,512], index: 8, kind: input, shape index: {}]   ;;  %s22272_s9 = inlined_call_operand.hbm [shape: bf16[256,1024], index: 9, kind: input, shape index: {}]   ;;  %s22273_s10 = inlined_call_operand.hbm [shape: bf16[512,256], index: 10, kind: input, shape index: {}]   ;;  %s22274_s11 = inlined_call_operand.vmem [shape: f32[1,256], index: 11, kind: input, shape index: {}]   ;;  %s22275_s12 = inlined_call_operand.vmem [shape: f32[1,256], index: 12, kind: input, shape index: {}]   ;;  %s22276_s13 = inlined_call_operand.hbm [shape: bf16[256,512], index: 13, kind: input, shape index: {}]   ;;  %s22277_s14 = inlined_call_operand.vmem [shape: f32[1,512], index: 14, kind: input, shape index: {}]   ;;  %s22278_s15 = inlined_call_operand.hbm [shape: bf16[512,256], index: 15, kind: input, shape index: {}]   ;;  %s22279_s16 = inlined_call_operand.vmem [shape: f32[1,256], index: 16, kind: input, shape index: {}]   ;;  %s22280_s17 = inlined_call_operand.vmem [shape: f32[1,256], index: 17, kind: input, shape index: {}]   ;;  %s22281_s18 = inlined_call_operand.vmem [shape: f32[1,256], index: 18, kind: input, shape index: {}]   ;;  %s22282_s19 = inlined_call_operand.hbm [shape: f32[2,8,256], index: 19, kind: output, shape index: {0}]   ;;  %s22283_s20 = inlined_call_operand.hbm [shape: f32[2,8,64], index: 20, kind: output, shape index: {1}]   ;;  %s22284_s21 = inlined_call_operand.hbm [shape: f32[2,8,128], index: 21, kind: output, shape index: {2}]  }
   0x1   :  { %22363 = sst [smem:[#allocation64_spill]] %s22263_s0 }
   0x2   :  { %22364 = sst [smem:[#allocation65_spill]] %s22264_s1 }
   0x3   :  { %22365 = sst [smem:[#allocation66_spill]] %s22265_s2 }
   0x4   :  { %22366 = sst [smem:[#allocation67_spill]] %s22266_s3 }
   0x5   :  { %22367 = sst [smem:[#allocation68_spill]] %s22267_s4 }
   0x6   :  { %22368 = sst [smem:[#allocation69_spill]] %s22268_s5 }
   0x7   :  { %22369 = sst [smem:[#allocation70_spill]] %s22281_s18 }
   0x8   :  { %22370 = sst [smem:[#allocation71_spill]] %s22282_s19 }
   0x9   :  { %22371 = sst [smem:[#allocation72_spill]] %s22284_s21 }
   0xa   :  { %27 = vsyncpa [#allocation3], 0 }
   0xb   :  { %28 = vsyncpa [#allocation6], 0 }
   0xc   :  { %29 = vsyncpa [#allocation9], 0 }
   0xd   :  { %30 = vsyncpa [#allocation12], 0 }
   0xe   :  { %31 = vsyncpa [#allocation15], 0 }
   0xf   :  { %32 = vsyncpa [#allocation18], 0 }
  0x10   :  { %33 = vsyncpa [#allocation4], 0 }
  0x11   :  { %34 = vsyncpa [#allocation22], 0  ;;  %s18492_s2 = smov [#allocation5]   ;;  %s22372_s3 = sld [smem:[#allocation65_spill]] }
  0x12   :  { %s52_s25 = sshll.u32 %s18492_s2, 4  ;;  %s53_s25 = int_to_ptr.vmem [resolvable:$true] %s52_s25 }
  0x17   :  { %s18168_s28 = scalar_lea.hbm %s22372_s3, 1024 }
  0x18   :  { %p18169_p0 = scmp.ne.s32.totalorder %s22372_s3, %s18168_s28  ;;  %p18172_p1 = scmp.lt.u32.totalorder %s18168_s28, %s22372_s3 }
  0x1a   :  { %p18174_p2 = pnand %p18172_p1, %p18169_p0 }
  0x1c   :  { %18177 = shalt.err (!%p18174_p2)
}
  0x1d   :  { %s18178_s5 = scalar_lea.vmem %s53_s25, 1024  ;;  %p18183_p4 = scmp.lt.s32.totalorder %s53_s25, %s53_s25 }
  0x1e   :  { %p18179_p3 = scmp.ne.s32.totalorder %s53_s25, %s18178_s5  ;;  %p18184_p5 = scmp.lt.s32.totalorder %s18178_s5, %s18178_s5 }
  0x20   :  { %p18185_p6 = por %p18184_p5, %p18183_p4 }
  0x22   :  { %p18186_p7 = pnand %p18185_p6, %p18179_p3 }
  0x24   :  { %18189 = shalt.err (!%p18186_p7)
}
  0x25   :  { %s22299_s22 = smov 256   ;;  %s18494_s23 = smov 16  }
  0x26   :  { %58 = dma.hbm_to_vmem [thread:$0]  %s22372_s3, 1024, %s53_s25, [#allocation6], %s22299_s22, %s22299_s22, %s18494_s23  }
  0x27   :  { %s18495_s2 = smov [#allocation8]   ;;  %s18496_s27 = smov [#allocation11]  }
  0x28   :  { %s76_s26 = sshll.u32 %s18495_s2, 4  ;;  %s100_s28 = sshll.u32 %s18496_s27, 4  ;;  %s77_s26 = int_to_ptr.vmem [resolvable:$true] %s76_s26  ;;  %s101_s28 = int_to_ptr.vmem [resolvable:$true] %s100_s28 }
  0x29   :  { %s22373_s4 = sld [smem:[#allocation67_spill]] }
  0x2f   :  { %s18190_s30 = scalar_lea.hbm %s22373_s4, 256 }
  0x30   :  { %p18191_p8 = scmp.ne.s32.totalorder %s22373_s4, %s18190_s30  ;;  %p18194_p9 = scmp.lt.u32.totalorder %s18190_s30, %s22373_s4 }
  0x32   :  { %p18196_p10 = pnand %p18194_p9, %p18191_p8 }
  0x34   :  { %18199 = shalt.err (!%p18196_p10)
}
  0x35   :  { %s18200_s25 = scalar_lea.vmem %s77_s26, 256  ;;  %p18205_p12 = scmp.lt.s32.totalorder %s77_s26, %s77_s26 }
  0x36   :  { %p18201_p11 = scmp.ne.s32.totalorder %s77_s26, %s18200_s25  ;;  %p18206_p13 = scmp.lt.s32.totalorder %s18200_s25, %s18200_s25 }
  0x38   :  { %p18207_p0 = por %p18206_p13, %p18205_p12 }
  0x3a   :  { %p18208_p1 = pnand %p18207_p0, %p18201_p11 }
  0x3c   :  { %18211 = shalt.err (!%p18208_p1)
}
  0x3d   :  { %s22293_s3 = smov 128   ;;  %s22295_s1 = smov 8  }
  0x3e   :  { %82 = dma.hbm_to_vmem [thread:$0]  %s22373_s4, 256, %s77_s26, [#allocation9], %s22293_s3, %s22293_s3, %s22295_s1  }
  0x3f   :  { %s22374_s2 = sld [smem:[#allocation69_spill]] }
  0x45   :  { %s18212_s27 = scalar_lea.hbm %s22374_s2, 8192 }
  0x46   :  { %p18213_p2 = scmp.ne.s32.totalorder %s22374_s2, %s18212_s27  ;;  %p18216_p3 = scmp.lt.u32.totalorder %s18212_s27, %s22374_s2 }
  0x48   :  { %p18218_p4 = pnand %p18216_p3, %p18213_p2 }
  0x4a   :  { %18221 = shalt.err (!%p18218_p4)
}
  0x4b   :  { %s18222_s25 = scalar_lea.vmem %s101_s28, 8192  ;;  %p18227_p6 = scmp.lt.s32.totalorder %s101_s28, %s101_s28 }
  0x4c   :  { %p18223_p5 = scmp.ne.s32.totalorder %s101_s28, %s18222_s25  ;;  %p18228_p7 = scmp.lt.s32.totalorder %s18222_s25, %s18222_s25 }
  0x4e   :  { %p18229_p8 = por %p18228_p7, %p18227_p6 }
  0x50   :  { %p18230_p9 = pnand %p18229_p8, %p18223_p5 }
  0x52   :  { %18233 = shalt.err (!%p18230_p9)
}
  0x53   :  { %106 = dma.hbm_to_vmem [thread:$0]  %s22374_s2, 8192, %s101_s28, [#allocation12], %s22293_s3, %s22293_s3, %s22295_s1  }
  0x54   :  { %s18499_s19 = smov [#allocation14]   ;;  %s18234_s27 = scalar_lea.hbm %s22272_s9, 16384 }
  0x55   :  { %s128_s24 = sshll.u32 %s18499_s19, 4  ;;  %p18235_p10 = scmp.ne.s32.totalorder %s22272_s9, %s18234_s27  ;;  %s129_s24 = int_to_ptr.vmem [resolvable:$true] %s128_s24 }
  0x56   :  { %p18238_p11 = scmp.lt.u32.totalorder %s18234_s27, %s22272_s9 }
  0x58   :  { %p18240_p12 = pnand %p18238_p11, %p18235_p10 }
  0x5a   :  { %18243 = shalt.err (!%p18240_p12)
}
  0x5b   :  { %s18244_s25 = scalar_lea.vmem %s129_s24, 16384  ;;  %p18249_p0 = scmp.lt.s32.totalorder %s129_s24, %s129_s24 }
  0x5c   :  { %p18245_p13 = scmp.ne.s32.totalorder %s129_s24, %s18244_s25  ;;  %p18250_p1 = scmp.lt.s32.totalorder %s18244_s25, %s18244_s25 }
  0x5e   :  { %p18251_p2 = por %p18250_p1, %p18249_p0 }
  0x60   :  { %p18252_p3 = pnand %p18251_p2, %p18245_p13 }
  0x62   :  { %18255 = shalt.err (!%p18252_p3)
}
  0x63   :  { %s18500_s28 = smov 512   ;;  %s22297_s2 = smov 32  }
  0x64   :  { %134 = dma.hbm_to_vmem [thread:$0]  %s22272_s9, 16384, %s129_s24, [#allocation15], %s18500_s28, %s18500_s28, %s22297_s2  }
  0x65   :  { %s18502_s19 = smov [#allocation17]   ;;  %s18503_s21 = smov [#allocation2]  }
  0x66   :  { %s156_s18 = sshll.u32 %s18502_s19, 4  ;;  %s40_s27 = sshll.u32 %s18503_s21, 4  ;;  %s157_s18 = int_to_ptr.vmem [resolvable:$true] %s156_s18  ;;  %s18693_s27 = int_to_ptr.vmem [resolvable:$true] %s40_s27 }
  0x67   :  { %s18256_s30 = scalar_lea.hbm %s22276_s13, 8192 }
  0x68   :  { %p18257_p4 = scmp.ne.s32.totalorder %s22276_s13, %s18256_s30  ;;  %p18260_p5 = scmp.lt.u32.totalorder %s18256_s30, %s22276_s13 }
  0x6a   :  { %p18262_p6 = pnand %p18260_p5, %p18257_p4 }
  0x6c   :  { %18265 = shalt.err (!%p18262_p6)
}
  0x6d   :  { %s18266_s9 = scalar_lea.vmem %s157_s18, 8192  ;;  %p18271_p8 = scmp.lt.s32.totalorder %s157_s18, %s157_s18 }
  0x6e   :  { %p18267_p7 = scmp.ne.s32.totalorder %s157_s18, %s18266_s9  ;;  %p18272_p9 = scmp.lt.s32.totalorder %s18266_s9, %s18266_s9 }
  0x70   :  { %p18273_p10 = por %p18272_p9, %p18271_p8 }
  0x72   :  { %p18274_p11 = pnand %p18273_p10, %p18267_p7 }
  0x74   :  { %18277 = shalt.err (!%p18274_p11)
}
  0x75   :  { %162 = dma.hbm_to_vmem [thread:$0]  %s22276_s13, 8192, %s157_s18, [#allocation18], %s22299_s22, %s22299_s22, %s18494_s23  }
  0x76   :  { %s22375_s3 = sld [smem:[#allocation64_spill]] }
  0x7c   :  { %s18278_s1 = scalar_lea.hbm %s22375_s3, 512 }
  0x7d   :  { %p18279_p12 = scmp.ne.s32.totalorder %s22375_s3, %s18278_s1  ;;  %p18282_p13 = scmp.lt.u32.totalorder %s18278_s1, %s22375_s3 }
  0x7f   :  { %p18284_p0 = pnand %p18282_p13, %p18279_p12 }
  0x81   :  { %18287 = shalt.err (!%p18284_p0)
}
  0x82   :  { %s18288_s30 = scalar_lea.vmem %s18693_s27, 512  ;;  %p18293_p2 = scmp.lt.s32.totalorder %s18693_s27, %s18693_s27 }
  0x83   :  { %p18289_p1 = scmp.ne.s32.totalorder %s18693_s27, %s18288_s30  ;;  %p18294_p3 = scmp.lt.s32.totalorder %s18288_s30, %s18288_s30 }
  0x85   :  { %p18295_p4 = por %p18294_p3, %p18293_p2 }
  0x87   :  { %p18296_p5 = pnand %p18295_p4, %p18289_p1 }
  0x89   :  { %18299 = shalt.err (!%p18296_p5)
}
  0x8a   :  { %46 = dma.hbm_to_vmem [thread:$0]  %s22375_s3, 512, %s18693_s27, [#allocation3], %s22299_s22, %s22299_s22, %s18494_s23  }
  0x8b   :  { %s18504_s5 = smov [#allocation7]   ;;  %s18505_s9 = smov [#allocation10]  }
  0x8c   :  { %s64_s25 = sshll.u32 %s18504_s5, 4  ;;  %s88_s24 = sshll.u32 %s18505_s9, 4  ;;  %s65_s25 = int_to_ptr.vmem [resolvable:$true] %s64_s25  ;;  %s18730_s24 = int_to_ptr.vmem [resolvable:$true] %s88_s24 }
  0x8d   :  { %s22376_s4 = sld [smem:[#allocation66_spill]] }
  0x93   :  { %s18300_s1 = scalar_lea.hbm %s22376_s4, 256 }
  0x94   :  { %p18301_p6 = scmp.ne.s32.totalorder %s22376_s4, %s18300_s1  ;;  %p18304_p7 = scmp.lt.u32.totalorder %s18300_s1, %s22376_s4 }
  0x96   :  { %p18306_p8 = pnand %p18304_p7, %p18301_p6 }
  0x98   :  { %18309 = shalt.err (!%p18306_p8)
}
  0x99   :  { %s18310_s27 = scalar_lea.vmem %s65_s25, 256  ;;  %p18315_p10 = scmp.lt.s32.totalorder %s65_s25, %s65_s25 }
  0x9a   :  { %p18311_p9 = scmp.ne.s32.totalorder %s65_s25, %s18310_s27  ;;  %p18316_p11 = scmp.lt.s32.totalorder %s18310_s27, %s18310_s27 }
  0x9c   :  { %p18317_p12 = por %p18316_p11, %p18315_p10 }
  0x9e   :  { %p18318_p13 = pnand %p18317_p12, %p18311_p9 }
  0xa0   :  { %18321 = shalt.err (!%p18318_p13)
}
  0xa1   :  { %s22377_s3 = smov 8   ;;  %s22378_s30 = smov 128  }
  0xa2   :  { %70 = dma.hbm_to_vmem [thread:$0]  %s22376_s4, 256, %s65_s25, [#allocation6], %s22378_s30, %s22378_s30, %s22377_s3  }
  0xa3   :  { %s22379_s28 = sld [smem:[#allocation68_spill]] }
  0xa9   :  { %s18322_s26 = scalar_lea.hbm %s22379_s28, 24576 }
  0xaa   :  { %p18323_p0 = scmp.ne.s32.totalorder %s22379_s28, %s18322_s26  ;;  %p18326_p1 = scmp.lt.u32.totalorder %s18322_s26, %s22379_s28 }
  0xac   :  { %p18328_p2 = pnand %p18326_p1, %p18323_p0 }
  0xae   :  { %18331 = shalt.err (!%p18328_p2)
}
  0xaf   :  { %s18332_s0 = scalar_lea.vmem %s18730_s24, 24576  ;;  %p18337_p4 = scmp.lt.s32.totalorder %s18730_s24, %s18730_s24 }
  0xb0   :  { %p18333_p3 = scmp.ne.s32.totalorder %s18730_s24, %s18332_s0  ;;  %p18338_p5 = scmp.lt.s32.totalorder %s18332_s0, %s18332_s0 }
  0xb2   :  { %p18339_p6 = por %p18338_p5, %p18337_p4 }
  0xb4   :  { %p18340_p7 = pnand %p18339_p6, %p18333_p3 }
  0xb6   :  { %18343 = shalt.err (!%p18340_p7)
}
  0xb7   :  { %s18506_s25 = smov 768   ;;  %s18507_s4 = smov 48  }
  0xb8   :  { %94 = dma.hbm_to_vmem [thread:$0]  %s22379_s28, 24576, %s18730_s24, [#allocation9], %s18506_s25, %s18506_s25, %s18507_s4  }
  0xb9   :  { %s18508_s18 = smov [#allocation13]   ;;  %s18509_s9 = smov [#allocation16]  }
  0xba   :  { %s116_s5 = sshll.u32 %s18508_s18, 4  ;;  %s140_s26 = sshll.u32 %s18509_s9, 4  ;;  %s117_s5 = int_to_ptr.vmem [resolvable:$true] %s116_s5  ;;  %s18765_s26 = int_to_ptr.vmem [resolvable:$true] %s140_s26 }
  0xbb   :  { %s18344_s21 = scalar_lea.hbm %s22271_s8, 8192 }
  0xbc   :  { %p18345_p8 = scmp.ne.s32.totalorder %s22271_s8, %s18344_s21  ;;  %p18348_p9 = scmp.lt.u32.totalorder %s18344_s21, %s22271_s8 }
  0xbe   :  { %p18350_p10 = pnand %p18348_p9, %p18345_p8 }
  0xc0   :  { %18353 = shalt.err (!%p18350_p10)
}
  0xc1   :  { %s18354_s24 = scalar_lea.vmem %s117_s5, 8192  ;;  %p18359_p12 = scmp.lt.s32.totalorder %s117_s5, %s117_s5 }
  0xc2   :  { %p18355_p11 = scmp.ne.s32.totalorder %s117_s5, %s18354_s24  ;;  %p18360_p13 = scmp.lt.s32.totalorder %s18354_s24, %s18354_s24 }
  0xc4   :  { %p18361_p0 = por %p18360_p13, %p18359_p12 }
  0xc6   :  { %p18362_p1 = pnand %p18361_p0, %p18355_p11 }
  0xc8   :  { %18365 = shalt.err (!%p18362_p1)
}
  0xc9   :  { %s22380_s28 = smov 256   ;;  %s18366_s22 = scalar_lea.hbm %s22273_s10, 8192 }
  0xca   :  { %122 = dma.hbm_to_vmem [thread:$0]  %s22271_s8, 8192, %s117_s5, [#allocation12], %s22380_s28, %s22380_s28, %s18494_s23  }
  0xcb   :  { %p18367_p2 = scmp.ne.s32.totalorder %s22273_s10, %s18366_s22  ;;  %p18370_p3 = scmp.lt.u32.totalorder %s18366_s22, %s22273_s10 }
  0xcd   :  { %p18372_p4 = pnand %p18370_p3, %p18367_p2 }
  0xcf   :  { %18375 = shalt.err (!%p18372_p4)
}
  0xd0   :  { %s18376_s21 = scalar_lea.vmem %s18765_s26, 8192  ;;  %p18381_p6 = scmp.lt.s32.totalorder %s18765_s26, %s18765_s26 }
  0xd1   :  { %p18377_p5 = scmp.ne.s32.totalorder %s18765_s26, %s18376_s21  ;;  %p18382_p7 = scmp.lt.s32.totalorder %s18376_s21, %s18376_s21 }
  0xd3   :  { %p18383_p8 = por %p18382_p7, %p18381_p6 }
  0xd5   :  { %p18384_p9 = pnand %p18383_p8, %p18377_p5 }
  0xd7   :  { %18387 = shalt.err (!%p18384_p9)
}
  0xd8   :  { %146 = dma.hbm_to_vmem [thread:$0]  %s22273_s10, 8192, %s18765_s26, [#allocation15], %s22378_s30, %s22378_s30, %s22377_s3  }
  0xd9   :  { %s18510_s29 = smov [#allocation19]   ;;  %s18388_s27 = scalar_lea.hbm %s22278_s15, 8192 }
  0xda   :  { %s170_s0 = sshll.u32 %s18510_s29, 4  ;;  %p18389_p10 = scmp.ne.s32.totalorder %s22278_s15, %s18388_s27  ;;  %s171_s0 = int_to_ptr.vmem [resolvable:$true] %s170_s0 }
  0xdb   :  { %p18392_p11 = scmp.lt.u32.totalorder %s18388_s27, %s22278_s15 }
  0xdd   :  { %p18394_p12 = pnand %p18392_p11, %p18389_p10 }
  0xdf   :  { %18397 = shalt.err (!%p18394_p12)
}
  0xe0   :  { %s18398_s9 = scalar_lea.vmem %s171_s0, 8192  ;;  %p18403_p0 = scmp.lt.s32.totalorder %s171_s0, %s171_s0 }
  0xe1   :  { %p18399_p13 = scmp.ne.s32.totalorder %s171_s0, %s18398_s9  ;;  %p18404_p1 = scmp.lt.s32.totalorder %s18398_s9, %s18398_s9 }
  0xe3   :  { %p18405_p2 = por %p18404_p1, %p18403_p0 }
  0xe5   :  { %p18406_p3 = pnand %p18405_p2, %p18399_p13 }
  0xe7   :  { %18409 = shalt.err (!%p18406_p3)
}
  0xe8   :  { %176 = dma.hbm_to_vmem [thread:$0]  %s22278_s15, 8192, %s171_s0, [#allocation18], %s22378_s30, %s22378_s30, %s22377_s3  }
  0xe9   :  { %18476 = dma.done.wait [#allocation3], 512  }
  0xea   :  { %18477 = vsyncadd [#allocation3], 4294966784 }
  0xeb   :  { %18478 = dma.done.wait [#allocation6], 1280  }
  0xec   :  { %18479 = vsyncadd [#allocation6], 4294966016 }
  0xed   :  { %18480 = dma.done.wait [#allocation9], 24832  }
  0xee   :  { %18481 = vsyncadd [#allocation9], 4294942464 }
  0xef   :  { %18482 = dma.done.wait [#allocation12], 16384  }
  0xf0   :  { %18483 = vsyncadd [#allocation12], 4294950912 }
  0xf1   :  { %18484 = dma.done.wait [#allocation15], 24576  }
  0xf2   :  { %18485 = vsyncadd [#allocation15], 4294942720 }
  0xf3   :  { %18486 = dma.done.wait [#allocation18], 16384  }
  0xf4   :  { %18487 = vsyncadd [#allocation18], 4294950912  ;;  %v17256_v0 = vld [vmem:[#allocation10 + $0x4] ss:$48 sps:$4 sm:$0xff]   ;;  %v17260_v2 = vld [vmem:[#allocation10] ss:$48 sps:$4 sm:$0xff]  }
  0xf5   :  { %v17258_v1 = vld [vmem:[#allocation10 + $0x14] ss:$48 sps:$4 sm:$0xff]   ;;  %1383 = vmatprep.subr.bf16.mxu1 %v17256_v0  ;;  %v17261_v3 = vld [vmem:[#allocation10 + $0x10] ss:$48 sps:$4 sm:$0xff]   ;;  %v218_v46 = vld [vmem:[#allocation2 + $0x8] sm:$0xff]  ;;  %s18511_s15 = smov 64  }
  0xf6   :  { %1469 = vmatprep.subr.bf16.mxu0 %v17258_v1  ;;  %v17262_v4 = vld [vmem:[#allocation10 + $0x64] ss:$48 sps:$4 sm:$0xff]   ;;  %1384 = vmatpush1.bf16.msra.mxu1 %v17260_v2  ;;  %v17266_v6 = vld [vmem:[#allocation10 + $0x60] ss:$48 sps:$4 sm:$0xff]   ;;  %v220_v49 = vld [vmem:[#allocation2 + $0x18] sm:$0xff]  ;;  %vm18513_vm0 = vmmov 0  }
  0xf7   :  { %1470 = vmatpush1.bf16.msra.mxu0 %v17261_v3  ;;  %v17264_v5 = vld [vmem:[#allocation10 + $0x74] ss:$48 sps:$4 sm:$0xff]   ;;  %1385 = vmatprep.subr.bf16.mxu1 %v17262_v4  ;;  %v17267_v7 = vld [vmem:[#allocation10 + $0x70] ss:$48 sps:$4 sm:$0xff]   ;;  %v18817_v51 = vpack.c.bf16 %v220_v49, %v218_v46  ;;  %v17399_v46 = vld [vmem:[#allocation10 + $0x5ac] ss:$48 sps:$4 sm:$0xff]  }
  0xf8   :  { %1471 = vmatprep.subr.bf16.mxu0 %v17264_v5  ;;  %v17268_v8 = vld [vmem:[#allocation10 + $0xc4] ss:$48 sps:$4 sm:$0xff]   ;;  %v17272_v10 = vld [vmem:[#allocation10 + $0xc0] ss:$48 sps:$4 sm:$0xff]   ;;  %v17354_v5 = vld [vmem:[#allocation10 + $0xc] ss:$48 sps:$4 sm:$0xff]  }
  0xf9   :  { %v17270_v9 = vld [vmem:[#allocation10 + $0xd4] ss:$48 sps:$4 sm:$0xff]   ;;  %v17273_v11 = vld [vmem:[#allocation10 + $0xd0] ss:$48 sps:$4 sm:$0xff]   ;;  %1415 = vmatprep.mubr.bf16.mxu1 %v18817_v51  ;;  %1501 = vmatprep.mubr.bf16.mxu0 %v18817_v51  ;;  %v17400_v49 = vld [vmem:[#allocation10 + $0x18] ss:$48 sps:$4 sm:$0xff]  }
  0xfa   :  { %1386 = vmatpush1.bf16.msra.mxu1 %v17266_v6  ;;  %v17274_v12 = vld [vmem:[#allocation10 + $0x124] ss:$48 sps:$4 sm:$0xff]   ;;  %v17278_v14 = vld [vmem:[#allocation10 + $0x120] ss:$48 sps:$4 sm:$0xff]   ;;  %vm3469_vm1 = vcmask 523264   ;;  %vm4450_vm2 = vcmask 1043456  }
  0xfb   :  { %1472 = vmatpush1.bf16.msra.mxu0 %v17267_v7  ;;  %1387 = vmatprep.subr.bf16.mxu1 %v17268_v8  ;;  %v17276_v13 = vld [vmem:[#allocation10 + $0x134] ss:$48 sps:$4 sm:$0xff]   ;;  %v17279_v15 = vld [vmem:[#allocation10 + $0x130] ss:$48 sps:$4 sm:$0xff]   ;;  %v17352_v7 = vld [vmem:[#allocation10 + $0x8] ss:$48 sps:$4 sm:$0xff]  }
  0xfc   :  { %1473 = vmatprep.subr.bf16.mxu0 %v17270_v9  ;;  %v17280_v16 = vld [vmem:[#allocation10 + $0x184] ss:$48 sps:$4 sm:$0xff]   ;;  %v17284_v18 = vld [vmem:[#allocation10 + $0x180] ss:$48 sps:$4 sm:$0xff]   ;;  %v17357_v8 = vld [vmem:[#allocation10 + $0x6c] ss:$48 sps:$4 sm:$0xff]  }
  0xfd   :  { %v17282_v17 = vld [vmem:[#allocation10 + $0x194] ss:$48 sps:$4 sm:$0xff]   ;;  %v17285_v19 = vld [vmem:[#allocation10 + $0x190] ss:$48 sps:$4 sm:$0xff]   ;;  %v17355_v9 = vld [vmem:[#allocation10 + $0x68] ss:$48 sps:$4 sm:$0xff]  }
  0xfe   :  { %1388 = vmatpush1.bf16.msra.mxu1 %v17272_v10  ;;  %v17286_v20 = vld [vmem:[#allocation10 + $0x1e4] ss:$48 sps:$4 sm:$0xff]   ;;  %v17290_v22 = vld [vmem:[#allocation10 + $0x1e0] ss:$48 sps:$4 sm:$0xff]   ;;  %v17360_v10 = vld [vmem:[#allocation10 + $0xcc] ss:$48 sps:$4 sm:$0xff]  }
  0xff   :  { %1474 = vmatpush1.bf16.msra.mxu0 %v17273_v11  ;;  %1389 = vmatprep.subr.bf16.mxu1 %v17274_v12  ;;  %v17288_v21 = vld [vmem:[#allocation10 + $0x1f4] ss:$48 sps:$4 sm:$0xff]   ;;  %v17291_v23 = vld [vmem:[#allocation10 + $0x1f0] ss:$48 sps:$4 sm:$0xff]   ;;  %v17358_v11 = vld [vmem:[#allocation10 + $0xc8] ss:$48 sps:$4 sm:$0xff]  }
 0x100   :  { %1475 = vmatprep.subr.bf16.mxu0 %v17276_v13  ;;  %v17292_v24 = vld [vmem:[#allocation10 + $0x244] ss:$48 sps:$4 sm:$0xff]   ;;  %v17296_v26 = vld [vmem:[#allocation10 + $0x240] ss:$48 sps:$4 sm:$0xff]   ;;  %v17363_v12 = vld [vmem:[#allocation10 + $0x12c] ss:$48 sps:$4 sm:$0xff]  }
 0x101   :  { %v17294_v25 = vld [vmem:[#allocation10 + $0x254] ss:$48 sps:$4 sm:$0xff]   ;;  %v17297_v27 = vld [vmem:[#allocation10 + $0x250] ss:$48 sps:$4 sm:$0xff]   ;;  %v17361_v13 = vld [vmem:[#allocation10 + $0x128] ss:$48 sps:$4 sm:$0xff]  }
 0x102   :  { %1390 = vmatpush1.bf16.msra.mxu1 %v17278_v14  ;;  %v17298_v28 = vld [vmem:[#allocation10 + $0x2a4] ss:$48 sps:$4 sm:$0xff]   ;;  %v17302_v30 = vld [vmem:[#allocation10 + $0x2a0] ss:$48 sps:$4 sm:$0xff]   ;;  %v17366_v14 = vld [vmem:[#allocation10 + $0x18c] ss:$48 sps:$4 sm:$0xff]  }
 0x103   :  { %1476 = vmatpush1.bf16.msra.mxu0 %v17279_v15  ;;  %1391 = vmatprep.subr.bf16.mxu1 %v17280_v16  ;;  %v17300_v29 = vld [vmem:[#allocation10 + $0x2b4] ss:$48 sps:$4 sm:$0xff]   ;;  %v17303_v31 = vld [vmem:[#allocation10 + $0x2b0] ss:$48 sps:$4 sm:$0xff]   ;;  %v17364_v15 = vld [vmem:[#allocation10 + $0x188] ss:$48 sps:$4 sm:$0xff]  }
 0x104   :  { %1477 = vmatprep.subr.bf16.mxu0 %v17282_v17  ;;  %v17304_v32 = vld [vmem:[#allocation10 + $0x304] ss:$48 sps:$4 sm:$0xff]   ;;  %v17308_v34 = vld [vmem:[#allocation10 + $0x300] ss:$48 sps:$4 sm:$0xff]   ;;  %v17369_v16 = vld [vmem:[#allocation10 + $0x1ec] ss:$48 sps:$4 sm:$0xff]  }
 0x105   :  { %v17306_v33 = vld [vmem:[#allocation10 + $0x314] ss:$48 sps:$4 sm:$0xff]   ;;  %v17309_v35 = vld [vmem:[#allocation10 + $0x310] ss:$48 sps:$4 sm:$0xff]   ;;  %v17367_v17 = vld [vmem:[#allocation10 + $0x1e8] ss:$48 sps:$4 sm:$0xff]  }
 0x106   :  { %1392 = vmatpush1.bf16.msra.mxu1 %v17284_v18  ;;  %v17310_v36 = vld [vmem:[#allocation10 + $0x364] ss:$48 sps:$4 sm:$0xff]   ;;  %v17314_v38 = vld [vmem:[#allocation10 + $0x360] ss:$48 sps:$4 sm:$0xff]   ;;  %v17372_v18 = vld [vmem:[#allocation10 + $0x24c] ss:$48 sps:$4 sm:$0xff]  }
 0x107   :  { %1478 = vmatpush1.bf16.msra.mxu0 %v17285_v19  ;;  %1393 = vmatprep.subr.bf16.mxu1 %v17286_v20  ;;  %v17312_v37 = vld [vmem:[#allocation10 + $0x374] ss:$48 sps:$4 sm:$0xff]   ;;  %v17315_v39 = vld [vmem:[#allocation10 + $0x370] ss:$48 sps:$4 sm:$0xff]   ;;  %v17370_v19 = vld [vmem:[#allocation10 + $0x248] ss:$48 sps:$4 sm:$0xff]  }
 0x108   :  { %1479 = vmatprep.subr.bf16.mxu0 %v17288_v21  ;;  %v17316_v40 = vld [vmem:[#allocation10 + $0x3c4] ss:$48 sps:$4 sm:$0xff]   ;;  %v17320_v42 = vld [vmem:[#allocation10 + $0x3c0] ss:$48 sps:$4 sm:$0xff]   ;;  %vm4238_vm3 = vcmask 64512   ;;  %vm6847_vm4 = vcmask 130048  }
 0x109   :  { %v17318_v41 = vld [vmem:[#allocation10 + $0x3d4] ss:$48 sps:$4 sm:$0xff]   ;;  %v17321_v43 = vld [vmem:[#allocation10 + $0x3d0] ss:$48 sps:$4 sm:$0xff]   ;;  %s18517_s25 = smov 40   ;;  %s18518_s27 = smov 80  }
 0x10a   :  { %1394 = vmatpush1.bf16.msra.mxu1 %v17290_v22  ;;  %v17322_v44 = vld [vmem:[#allocation10 + $0x424] ss:$48 sps:$4 sm:$0xff]   ;;  %v17326_v47 = vld [vmem:[#allocation10 + $0x420] ss:$48 sps:$4 sm:$0xff]   ;;  %v17375_v22 = vld [vmem:[#allocation10 + $0x2ac] ss:$48 sps:$4 sm:$0xff]  }
 0x10b   :  { %1480 = vmatpush1.bf16.msra.mxu0 %v17291_v23  ;;  %1395 = vmatprep.subr.bf16.mxu1 %v17292_v24  ;;  %v17324_v45 = vld [vmem:[#allocation10 + $0x434] ss:$48 sps:$4 sm:$0xff]   ;;  %v17327_v48 = vld [vmem:[#allocation10 + $0x430] ss:$48 sps:$4 sm:$0xff]   ;;  %v17373_v24 = vld [vmem:[#allocation10 + $0x2a8] ss:$48 sps:$4 sm:$0xff]  }
 0x10c   :  { %1481 = vmatprep.subr.bf16.mxu0 %v17294_v25  ;;  %v17328_v50 = vld [vmem:[#allocation10 + $0x484] ss:$48 sps:$4 sm:$0xff]   ;;  %v17332_v53 = vld [vmem:[#allocation10 + $0x480] ss:$48 sps:$4 sm:$0xff]   ;;  %s18519_s13 = smov 56   ;;  %vm6853_vm5 = vcmask 261120  }
 0x10d   :  { %v17330_v52 = vld [vmem:[#allocation10 + $0x494] ss:$48 sps:$4 sm:$0xff]   ;;  %v17333_v54 = vld [vmem:[#allocation10 + $0x490] ss:$48 sps:$4 sm:$0xff]   ;;  %vm6859_vm6 = vcmask 392192   ;;  %vm6850_vm7 = vcmask 195584  }
 0x10e   :  { %1396 = vmatpush1.bf16.msra.mxu1 %v17296_v26  ;;  %v17334_v55 = vld [vmem:[#allocation10 + $0x4e4] ss:$48 sps:$4 sm:$0xff]   ;;  %v17338_v57 = vld [vmem:[#allocation10 + $0x4e0] ss:$48 sps:$4 sm:$0xff]   ;;  %v17378_v26 = vld [vmem:[#allocation10 + $0x30c] ss:$48 sps:$4 sm:$0xff]  }
 0x10f   :  { %1482 = vmatpush1.bf16.msra.mxu0 %v17297_v27  ;;  %1397 = vmatprep.subr.bf16.mxu1 %v17298_v28  ;;  %v17336_v56 = vld [vmem:[#allocation10 + $0x4f4] ss:$48 sps:$4 sm:$0xff]   ;;  %v17339_v58 = vld [vmem:[#allocation10 + $0x4f0] ss:$48 sps:$4 sm:$0xff]   ;;  %vm14635_vm8 = vcmask 654336   ;;  %vm6856_vm9 = vcmask 326656  }
 0x110   :  { %1483 = vmatprep.subr.bf16.mxu0 %v17300_v29  ;;  %v17340_v59 = vld [vmem:[#allocation10 + $0x544] ss:$48 sps:$4 sm:$0xff]   ;;  %v17344_v61 = vld [vmem:[#allocation10 + $0x540] ss:$48 sps:$4 sm:$0xff]   ;;  %s18521_s18 = smov 112   ;;  %vm6862_vm10 = vcmask 457728  }
 0x111   :  { %v17342_v60 = vld [vmem:[#allocation10 + $0x554] ss:$48 sps:$4 sm:$0xff]   ;;  %v17345_v62 = vld [vmem:[#allocation10 + $0x550] ss:$48 sps:$4 sm:$0xff]   ;;  %s18522_s22 = smov [#allocation21]  }
 0x112   :  { %1398 = vmatpush1.bf16.msra.mxu1 %v17302_v30  ;;  %v17346_v63 = vld [vmem:[#allocation10 + $0x5a4] ss:$48 sps:$4 sm:$0xff]   ;;  %v17350_v1 = vld [vmem:[#allocation10 + $0x5a0] ss:$48 sps:$4 sm:$0xff]   ;;  %v17376_v30 = vld [vmem:[#allocation10 + $0x308] ss:$48 sps:$4 sm:$0xff]  }
 0x113   :  { %1484 = vmatpush1.bf16.msra.mxu0 %v17303_v31  ;;  %1399 = vmatprep.subr.bf16.mxu1 %v17304_v32  ;;  %v17348_v0 = vld [vmem:[#allocation10 + $0x5b4] ss:$48 sps:$4 sm:$0xff]   ;;  %v17351_v2 = vld [vmem:[#allocation10 + $0x5b0] ss:$48 sps:$4 sm:$0xff]   ;;  %v17381_v31 = vld [vmem:[#allocation10 + $0x36c] ss:$48 sps:$4 sm:$0xff]  }
 0x114   :  { %1485 = vmatprep.subr.bf16.mxu0 %v17306_v33  ;;  %v217_v3 = vld [vmem:[#allocation2] sm:$0xff]  ;;  %v219_v4 = vld [vmem:[#allocation2 + $0x10] sm:$0xff]  ;;  %s15723_s2 = sshll.u32 %s18522_s22, 4  ;;  %s15724_s2 = int_to_ptr.vmem [resolvable:$true] %s15723_s2 }
 0x115   :  { %v18821_v6 = vpack.c.bf16 %v219_v4, %v217_v3  ;;  %v17448_v20 = vld [vmem:[#allocation10 + $0x20] ss:$48 sps:$4 sm:$0xff]   ;;  %v17450_v21 = vld [vmem:[#allocation10 + $0x24] ss:$48 sps:$4 sm:$0xff]   ;;  %v17421_v4 = vld [vmem:[#allocation10 + $0x2b8] ss:$48 sps:$4 sm:$0xff]   ;;  %p18415_p5 = scmp.lt.s32.totalorder %s15724_s2, %s15724_s2 }
 0x116   :  { %1400 = vmatpush1.bf16.msra.mxu1 %v17308_v34  ;;  %v17453_v23 = vld [vmem:[#allocation10 + $0x84] ss:$48 sps:$4 sm:$0xff]   ;;  %v17451_v25 = vld [vmem:[#allocation10 + $0x80] ss:$48 sps:$4 sm:$0xff]   ;;  %v17379_v34 = vld [vmem:[#allocation10 + $0x368] ss:$48 sps:$4 sm:$0xff]  }
 0x117   :  { %1486 = vmatpush1.bf16.msra.mxu0 %v17309_v35  ;;  %1401 = vmatprep.subr.bf16.mxu1 %v17310_v36  ;;  %v17456_v27 = vld [vmem:[#allocation10 + $0xe4] ss:$48 sps:$4 sm:$0xff]   ;;  %v17454_v28 = vld [vmem:[#allocation10 + $0xe0] ss:$48 sps:$4 sm:$0xff]   ;;  %v17384_v35 = vld [vmem:[#allocation10 + $0x3cc] ss:$48 sps:$4 sm:$0xff]  }
 0x118   :  { %1487 = vmatprep.subr.bf16.mxu0 %v17312_v37  ;;  %v17459_v29 = vld [vmem:[#allocation10 + $0x144] ss:$48 sps:$4 sm:$0xff]   ;;  %v17457_v32 = vld [vmem:[#allocation10 + $0x140] ss:$48 sps:$4 sm:$0xff]   ;;  %v17382_v37 = vld [vmem:[#allocation10 + $0x3c8] ss:$48 sps:$4 sm:$0xff]  }
 0x119   :  { %v17462_v33 = vld [vmem:[#allocation10 + $0x1a4] ss:$48 sps:$4 sm:$0xff]   ;;  %v17460_v36 = vld [vmem:[#allocation10 + $0x1a0] ss:$48 sps:$4 sm:$0xff]   ;;  %s18410_s9 = scalar_lea.vmem %s15724_s2, 256 }
 0x11a   :  { %1402 = vmatpush1.bf16.msra.mxu1 %v17314_v38  ;;  %v17387_v38 = vld [vmem:[#allocation10 + $0x42c] ss:$48 sps:$4 sm:$0xff]   ;;  %v17466_v3 = vld [vmem:[#allocation10 + $0x260] ss:$48 sps:$4 sm:$0xff]   ;;  %p18411_p4 = scmp.ne.s32.totalorder %s15724_s2, %s18410_s9  ;;  %p18416_p6 = scmp.lt.s32.totalorder %s18410_s9, %s18410_s9 }
 0x11b   :  { %1488 = vmatpush1.bf16.msra.mxu0 %v17315_v39  ;;  %1403 = vmatprep.subr.bf16.mxu1 %v17316_v40  ;;  %v17385_v39 = vld [vmem:[#allocation10 + $0x428] ss:$48 sps:$4 sm:$0xff]   ;;  %v17390_v40 = vld [vmem:[#allocation10 + $0x48c] ss:$48 sps:$4 sm:$0xff]  }
 0x11c   :  { %1489 = vmatprep.subr.bf16.mxu0 %v17318_v41  ;;  %v17388_v41 = vld [vmem:[#allocation10 + $0x488] ss:$48 sps:$4 sm:$0xff]   ;;  %p18417_p7 = por %p18416_p6, %p18415_p5 }
 0x11e   :  { %1404 = vmatpush1.bf16.msra.mxu1 %v17320_v42  ;;  %v17393_v42 = vld [vmem:[#allocation10 + $0x4ec] ss:$48 sps:$4 sm:$0xff]   ;;  %p18418_p8 = pnand %p18417_p7, %p18411_p4 }
 0x11f   :  { %1490 = vmatpush1.bf16.msra.mxu0 %v17321_v43  ;;  %1405 = vmatprep.subr.bf16.mxu1 %v17322_v44  ;;  %v17391_v43 = vld [vmem:[#allocation10 + $0x4e8] ss:$48 sps:$4 sm:$0xff]   ;;  %v17396_v44 = vld [vmem:[#allocation10 + $0x54c] ss:$48 sps:$4 sm:$0xff]  }
 0x120   :  { %1491 = vmatprep.subr.bf16.mxu0 %v17324_v45  ;;  %v17394_v45 = vld [vmem:[#allocation10 + $0x548] ss:$48 sps:$4 sm:$0xff]  }
 0x122   :  { %1406 = vmatpush1.bf16.msra.mxu1 %v17326_v47  ;;  %v17397_v47 = vld [vmem:[#allocation10 + $0x5a8] ss:$48 sps:$4 sm:$0xff]  }
 0x123   :  { %1492 = vmatpush1.bf16.msra.mxu0 %v17327_v48  ;;  %1407 = vmatprep.subr.bf16.mxu1 %v17328_v50  ;;  %v17402_v48 = vld [vmem:[#allocation10 + $0x1c] ss:$48 sps:$4 sm:$0xff]  }
 0x124   :  { %1493 = vmatprep.subr.bf16.mxu0 %v17330_v52  ;;  %v17405_v50 = vld [vmem:[#allocation10 + $0x7c] ss:$48 sps:$4 sm:$0xff]   ;;  %v17403_v52 = vld [vmem:[#allocation10 + $0x78] ss:$48 sps:$4 sm:$0xff]  }
 0x126   :  { %1408 = vmatpush1.bf16.msra.mxu1 %v17332_v53  ;;  %v17408_v53 = vld [vmem:[#allocation10 + $0xdc] ss:$48 sps:$4 sm:$0xff]  }
 0x127   :  { %1494 = vmatpush1.bf16.msra.mxu0 %v17333_v54  ;;  %1409 = vmatprep.subr.bf16.mxu1 %v17334_v55  ;;  %v17406_v54 = vld [vmem:[#allocation10 + $0xd8] ss:$48 sps:$4 sm:$0xff]   ;;  %v17411_v55 = vld [vmem:[#allocation10 + $0x13c] ss:$48 sps:$4 sm:$0xff]  }
 0x128   :  { %1495 = vmatprep.subr.bf16.mxu0 %v17336_v56  ;;  %v17409_v56 = vld [vmem:[#allocation10 + $0x138] ss:$48 sps:$4 sm:$0xff]  }
 0x12a   :  { %1410 = vmatpush1.bf16.msra.mxu1 %v17338_v57  ;;  %v17414_v57 = vld [vmem:[#allocation10 + $0x19c] ss:$48 sps:$4 sm:$0xff]  }
 0x12b   :  { %1496 = vmatpush1.bf16.msra.mxu0 %v17339_v58  ;;  %1411 = vmatprep.subr.bf16.mxu1 %v17340_v59  ;;  %v17412_v58 = vld [vmem:[#allocation10 + $0x198] ss:$48 sps:$4 sm:$0xff]   ;;  %v17417_v59 = vld [vmem:[#allocation10 + $0x1fc] ss:$48 sps:$4 sm:$0xff]  }
 0x12c   :  { %1497 = vmatprep.subr.bf16.mxu0 %v17342_v60  ;;  %v17415_v60 = vld [vmem:[#allocation10 + $0x1f8] ss:$48 sps:$4 sm:$0xff]  }
 0x12e   :  { %1412 = vmatpush1.bf16.msra.mxu1 %v17344_v61  ;;  %v17420_v61 = vld [vmem:[#allocation10 + $0x25c] ss:$48 sps:$4 sm:$0xff]  }
 0x12f   :  { %1498 = vmatpush1.bf16.msra.mxu0 %v17345_v62  ;;  %1413 = vmatprep.subr.bf16.mxu1 %v17346_v63  ;;  %v17465_v62 = vld [vmem:[#allocation10 + $0x204] ss:$48 sps:$4 sm:$0xff]   ;;  %v17418_v63 = vld [vmem:[#allocation10 + $0x258] ss:$48 sps:$4 sm:$0xff]  }
 0x130   :  { %1499 = vmatprep.subr.bf16.mxu0 %v17348_v0  ;;  %v17463_v0 = vld [vmem:[#allocation10 + $0x200] ss:$48 sps:$4 sm:$0xff]  }
 0x132   :  { %1414 = vmatpush1.bf16.msra.mxu1 %v17350_v1  ;;  %v17423_v1 = vld [vmem:[#allocation10 + $0x2bc] ss:$48 sps:$4 sm:$0xff]  }
 0x133   :  { %1500 = vmatpush1.bf16.msra.mxu0 %v17351_v2  ;;  %1426 = vmatprep.subr.bf16.mxu1 %v17354_v5  ;;  %v17468_v2 = vld [vmem:[#allocation10 + $0x264] ss:$48 sps:$4 sm:$0xff]   ;;  %v17469_v5 = vld [vmem:[#allocation10 + $0x2c0] ss:$48 sps:$4 sm:$0xff]  }
 0x134   :  { %1555 = vmatprep.subr.bf16.mxu0 %v17450_v21  ;;  %v17483_v21 = vld [vmem:[#allocation10 + $0x444] ss:$48 sps:$4 sm:$0xff]  }
 0x135   :  { %1416 = vmatmul.mubr.bf16.vlgmr.msra.gmra.mrb[0].mxu1 %v18821_v6 }
 0x136   :  { %1502 = vmatmul.mubr.bf16.vlgmr.msra.gmra.mrb[0].mxu0 %v18821_v6  ;;  %1427 = vmatpush1.bf16.msra.mxu1 %v17352_v7  ;;  %v17471_v7 = vld [vmem:[#allocation10 + $0x2c4] ss:$48 sps:$4 sm:$0xff]  }
 0x137   :  { %1458 = vmatprep.mubr.bf16.mxu1 %v18817_v51  ;;  %1428 = vmatprep.subr.bf16.mxu1 %v17357_v8  ;;  %v17426_v8 = vld [vmem:[#allocation10 + $0x31c] ss:$48 sps:$4 sm:$0xff]  }
 0x138   :  { %1587 = vmatprep.mubr.bf16.mxu0 %v18817_v51  ;;  %1556 = vmatpush1.bf16.msra.mxu0 %v17448_v20  ;;  %v17435_v20 = vld [vmem:[#allocation10 + $0x43c] ss:$48 sps:$4 sm:$0xff]  }
 0x139   :  { %1557 = vmatprep.subr.bf16.mxu0 %v17453_v23  ;;  %v17481_v23 = vld [vmem:[#allocation10 + $0x440] ss:$48 sps:$4 sm:$0xff]  }
 0x13a   :  { %1429 = vmatpush1.bf16.msra.mxu1 %v17355_v9  ;;  %v17474_v9 = vld [vmem:[#allocation10 + $0x324] ss:$48 sps:$4 sm:$0xff]  }
 0x13b   :  { %1430 = vmatprep.subr.bf16.mxu1 %v17360_v10  ;;  %v17424_v10 = vld [vmem:[#allocation10 + $0x318] ss:$48 sps:$4 sm:$0xff]  }
 0x13c   :  { %1558 = vmatpush1.bf16.msra.mxu0 %v17451_v25  ;;  %v17486_v25 = vld [vmem:[#allocation10 + $0x4a4] ss:$48 sps:$4 sm:$0xff]  }
 0x13d   :  { %1559 = vmatprep.subr.bf16.mxu0 %v17456_v27  ;;  %v17484_v27 = vld [vmem:[#allocation10 + $0x4a0] ss:$48 sps:$4 sm:$0xff]  }
 0x13e   :  { %1431 = vmatpush1.bf16.msra.mxu1 %v17358_v11  ;;  %v17472_v11 = vld [vmem:[#allocation10 + $0x320] ss:$48 sps:$4 sm:$0xff]  }
 0x13f   :  { %1432 = vmatprep.subr.bf16.mxu1 %v17363_v12  ;;  %v17429_v12 = vld [vmem:[#allocation10 + $0x37c] ss:$48 sps:$4 sm:$0xff]  }
 0x140   :  { %1560 = vmatpush1.bf16.msra.mxu0 %v17454_v28  ;;  %v17441_v28 = vld [vmem:[#allocation10 + $0x4fc] ss:$48 sps:$4 sm:$0xff]  }
 0x141   :  { %1561 = vmatprep.subr.bf16.mxu0 %v17459_v29  ;;  %v17489_v29 = vld [vmem:[#allocation10 + $0x504] ss:$48 sps:$4 sm:$0xff]  }
 0x142   :  { %1433 = vmatpush1.bf16.msra.mxu1 %v17361_v13  ;;  %v17477_v13 = vld [vmem:[#allocation10 + $0x384] ss:$48 sps:$4 sm:$0xff]  }
 0x143   :  { %1434 = vmatprep.subr.bf16.mxu1 %v17366_v14  ;;  %v17427_v14 = vld [vmem:[#allocation10 + $0x378] ss:$48 sps:$4 sm:$0xff]  }
 0x144   :  { %1562 = vmatpush1.bf16.msra.mxu0 %v17457_v32  ;;  %v17444_v32 = vld [vmem:[#allocation10 + $0x55c] ss:$48 sps:$4 sm:$0xff]  }
 0x145   :  { %1563 = vmatprep.subr.bf16.mxu0 %v17462_v33  ;;  %v17492_v33 = vld [vmem:[#allocation10 + $0x564] ss:$48 sps:$4 sm:$0xff]  }
 0x146   :  { %1435 = vmatpush1.bf16.msra.mxu1 %v17364_v15  ;;  %v17475_v15 = vld [vmem:[#allocation10 + $0x380] ss:$48 sps:$4 sm:$0xff]  }
 0x147   :  { %1436 = vmatprep.subr.bf16.mxu1 %v17369_v16  ;;  %v17432_v16 = vld [vmem:[#allocation10 + $0x3dc] ss:$48 sps:$4 sm:$0xff]  }
 0x148   :  { %1564 = vmatpush1.bf16.msra.mxu0 %v17460_v36  ;;  %v17447_v36 = vld [vmem:[#allocation10 + $0x5bc] ss:$48 sps:$4 sm:$0xff]  }
 0x149   :  { %1565 = vmatprep.subr.bf16.mxu0 %v17465_v62  ;;  %v17531_v62 = vld [vmem:[#allocation10 + $0x44c] ss:$48 sps:$4 sm:$0xff]  }
 0x14a   :  { %1437 = vmatpush1.bf16.msra.mxu1 %v17367_v17  ;;  %v17480_v17 = vld [vmem:[#allocation10 + $0x3e4] ss:$48 sps:$4 sm:$0xff]  }
 0x14b   :  { %1438 = vmatprep.subr.bf16.mxu1 %v17372_v18  ;;  %v17430_v18 = vld [vmem:[#allocation10 + $0x3d8] ss:$48 sps:$4 sm:$0xff]  }
 0x14c   :  { %1566 = vmatpush1.bf16.msra.mxu0 %v17463_v0  ;;  %v17534_v0 = vld [vmem:[#allocation10 + $0x4ac] ss:$48 sps:$4 sm:$0xff]  }
 0x14d   :  { %1567 = vmatprep.subr.bf16.mxu0 %v17468_v2  ;;  %v17537_v2 = vld [vmem:[#allocation10 + $0x50c] ss:$48 sps:$4 sm:$0xff]  }
 0x14e   :  { %1439 = vmatpush1.bf16.msra.mxu1 %v17370_v19  ;;  %v17478_v19 = vld [vmem:[#allocation10 + $0x3e0] ss:$48 sps:$4 sm:$0xff]  }
 0x14f   :  { %1440 = vmatprep.subr.bf16.mxu1 %v17375_v22  ;;  %v17433_v22 = vld [vmem:[#allocation10 + $0x438] ss:$48 sps:$4 sm:$0xff]  }
 0x150   :  { %1568 = vmatpush1.bf16.msra.mxu0 %v17466_v3  ;;  %v17535_v3 = vld [vmem:[#allocation10 + $0x508] ss:$48 sps:$4 sm:$0xff]  }
 0x151   :  { %1569 = vmatprep.subr.bf16.mxu0 %v17471_v7 }
 0x152   :  { %1441 = vmatpush1.bf16.msra.mxu1 %v17373_v24  ;;  %v17438_v24 = vld [vmem:[#allocation10 + $0x49c] ss:$48 sps:$4 sm:$0xff]  }
 0x153   :  { %1442 = vmatprep.subr.bf16.mxu1 %v17378_v26  ;;  %v17436_v26 = vld [vmem:[#allocation10 + $0x498] ss:$48 sps:$4 sm:$0xff]  }
 0x154   :  { %1570 = vmatpush1.bf16.msra.mxu0 %v17469_v5  ;;  %v17538_v5 = vld [vmem:[#allocation10 + $0x568] ss:$48 sps:$4 sm:$0xff]  }
 0x155   :  { %1571 = vmatprep.subr.bf16.mxu0 %v17474_v9 }
 0x156   :  { %1443 = vmatpush1.bf16.msra.mxu1 %v17376_v30  ;;  %v17439_v30 = vld [vmem:[#allocation10 + $0x4f8] ss:$48 sps:$4 sm:$0xff]  }
 0x157   :  { %1444 = vmatprep.subr.bf16.mxu1 %v17381_v31  ;;  %v17487_v31 = vld [vmem:[#allocation10 + $0x500] ss:$48 sps:$4 sm:$0xff]  }
 0x158   :  { %1572 = vmatpush1.bf16.msra.mxu0 %v17472_v11 }
 0x159   :  { %1573 = vmatprep.subr.bf16.mxu0 %v17477_v13 }
 0x15a   :  { %1445 = vmatpush1.bf16.msra.mxu1 %v17379_v34  ;;  %v17442_v34 = vld [vmem:[#allocation10 + $0x558] ss:$48 sps:$4 sm:$0xff]  }
 0x15b   :  { %1446 = vmatprep.subr.bf16.mxu1 %v17384_v35  ;;  %v17490_v35 = vld [vmem:[#allocation10 + $0x560] ss:$48 sps:$4 sm:$0xff]  }
 0x15c   :  { %1574 = vmatpush1.bf16.msra.mxu0 %v17475_v15 }
 0x15d   :  { %1575 = vmatprep.subr.bf16.mxu0 %v17480_v17  ;;  %v17543_v17 = vld [vmem:[#allocation10 + $0x5cc] ss:$48 sps:$4 sm:$0xff]  }
 0x15e   :  { %1447 = vmatpush1.bf16.msra.mxu1 %v17382_v37  ;;  %v17495_v37 = vld [vmem:[#allocation10 + $0x5c4] ss:$48 sps:$4 sm:$0xff]  }
 0x15f   :  { %1448 = vmatprep.subr.bf16.mxu1 %v17387_v38  ;;  %v17445_v38 = vld [vmem:[#allocation10 + $0x5b8] ss:$48 sps:$4 sm:$0xff]  }
 0x160   :  { %1576 = vmatpush1.bf16.msra.mxu0 %v17478_v19 }
 0x161   :  { %1577 = vmatprep.subr.bf16.mxu0 %v17483_v21 }
 0x162   :  { %1449 = vmatpush1.bf16.msra.mxu1 %v17385_v39  ;;  %v17493_v39 = vld [vmem:[#allocation10 + $0x5c0] ss:$48 sps:$4 sm:$0xff]  }
 0x163   :  { %1450 = vmatprep.subr.bf16.mxu1 %v17390_v40  ;;  %v17498_v40 = vld [vmem:[#allocation10 + $0x2c] ss:$48 sps:$4 sm:$0xff]  }
 0x164   :  { %1578 = vmatpush1.bf16.msra.mxu0 %v17481_v23 }
 0x165   :  { %1579 = vmatprep.subr.bf16.mxu0 %v17486_v25  ;;  %v22301_v25 = vmov 0.0  }
 0x166   :  { %1451 = vmatpush1.bf16.msra.mxu1 %v17388_v41  ;;  %v17496_v41 = vld [vmem:[#allocation10 + $0x28] ss:$48 sps:$4 sm:$0xff]  }
 0x167   :  { %1452 = vmatprep.subr.bf16.mxu1 %v17393_v42  ;;  %v17501_v42 = vld [vmem:[#allocation10 + $0x8c] ss:$48 sps:$4 sm:$0xff]  }
 0x168   :  { %1580 = vmatpush1.bf16.msra.mxu0 %v17484_v27 }
 0x169   :  { %1581 = vmatprep.subr.bf16.mxu0 %v17489_v29 }
 0x16a   :  { %1453 = vmatpush1.bf16.msra.mxu1 %v17391_v43  ;;  %v17499_v43 = vld [vmem:[#allocation10 + $0x88] ss:$48 sps:$4 sm:$0xff]  }
 0x16b   :  { %1454 = vmatprep.subr.bf16.mxu1 %v17396_v44  ;;  %v17504_v44 = vld [vmem:[#allocation10 + $0xec] ss:$48 sps:$4 sm:$0xff]  }
 0x16c   :  { %1582 = vmatpush1.bf16.msra.mxu0 %v17487_v31 }
 0x16d   :  { %1583 = vmatprep.subr.bf16.mxu0 %v17492_v33  ;;  %v18514_v33 = vmov 1983009808  }
 0x16e   :  { %1455 = vmatpush1.bf16.msra.mxu1 %v17394_v45  ;;  %v17502_v45 = vld [vmem:[#allocation10 + $0xe8] ss:$48 sps:$4 sm:$0xff]  }
 0x16f   :  { %1456 = vmatprep.subr.bf16.mxu1 %v17399_v46  ;;  %v17507_v46 = vld [vmem:[#allocation10 + $0x14c] ss:$48 sps:$4 sm:$0xff]  }
 0x170   :  { %1584 = vmatpush1.bf16.msra.mxu0 %v17490_v35  ;;  %v1678_v35 = vlaneseq }
 0x171   :  { %1585 = vmatprep.subr.bf16.mxu0 %v17495_v37 }
 0x172   :  { %1457 = vmatpush1.bf16.msra.mxu1 %v17397_v47  ;;  %v17505_v47 = vld [vmem:[#allocation10 + $0x148] ss:$48 sps:$4 sm:$0xff]  }
 0x173   :  { %1512 = vmatprep.subr.bf16.mxu1 %v17402_v48  ;;  %v17510_v48 = vld [vmem:[#allocation10 + $0x1ac] ss:$48 sps:$4 sm:$0xff]  }
 0x174   :  { %1586 = vmatpush1.bf16.msra.mxu0 %v17493_v39  ;;  %v18880_v39 = vshrl.u32 %v1678_v35, 7 }
 0x175   :  { %1459 = vmatmul.mubr.bf16.vlgmr.msra.gmra.mrb[4].mxu1 %v18821_v6  ;;  %16783 = vmatprep.subr.bf16.mxu0 %v22301_v25 }
 0x176   :  { %1513 = vmatpush1.bf16.msra.mxu1 %v17400_v49  ;;  %1544 = vmatprep.mubr.bf16.mxu1 %v18817_v51  ;;  %v17508_v49 = vld [vmem:[#allocation10 + $0x1a8] ss:$48 sps:$4 sm:$0xff]   ;;  %22381 = vst [vmem:[#allocation32_spill] sm:$0xff] %v18880_v39 }
 0x177   :  { %1514 = vmatprep.subr.bf16.mxu1 %v17405_v50  ;;  %1588 = vmatmul.mubr.bf16.vlgmr.msra.gmra.mrb[4].mxu0 %v18821_v6  ;;  %v17511_v50 = vld [vmem:[#allocation10 + $0x208] ss:$48 sps:$4 sm:$0xff]  }
 0x178   :  { %16785 = vmatprep.mubr.msk.bf16.mxu0 %vm18513_vm0, %v22301_v25 }
 0x17a   :  { %1515 = vmatpush1.bf16.msra.mxu1 %v17403_v52  ;;  %v17516_v52 = vld [vmem:[#allocation10 + $0x26c] ss:$48 sps:$4 sm:$0xff]  }
 0x17b   :  { %1516 = vmatprep.subr.bf16.mxu1 %v17408_v53  ;;  %v17514_v53 = vld [vmem:[#allocation10 + $0x268] ss:$48 sps:$4 sm:$0xff]  }
 0x17e   :  { %1517 = vmatpush1.bf16.msra.mxu1 %v17406_v54  ;;  %v17519_v54 = vld [vmem:[#allocation10 + $0x2cc] ss:$48 sps:$4 sm:$0xff]  }
 0x17f   :  { %1518 = vmatprep.subr.bf16.mxu1 %v17411_v55  ;;  %v17517_v55 = vld [vmem:[#allocation10 + $0x2c8] ss:$48 sps:$4 sm:$0xff]  }
 0x182   :  { %1519 = vmatpush1.bf16.msra.mxu1 %v17409_v56  ;;  %v17522_v56 = vld [vmem:[#allocation10 + $0x32c] ss:$48 sps:$4 sm:$0xff]  }
 0x183   :  { %1520 = vmatprep.subr.bf16.mxu1 %v17414_v57  ;;  %v17520_v57 = vld [vmem:[#allocation10 + $0x328] ss:$48 sps:$4 sm:$0xff]  }
 0x186   :  { %1521 = vmatpush1.bf16.msra.mxu1 %v17412_v58  ;;  %v17525_v58 = vld [vmem:[#allocation10 + $0x38c] ss:$48 sps:$4 sm:$0xff]  }
 0x187   :  { %1522 = vmatprep.subr.bf16.mxu1 %v17417_v59  ;;  %v17523_v59 = vld [vmem:[#allocation10 + $0x388] ss:$48 sps:$4 sm:$0xff]  }
 0x18a   :  { %1523 = vmatpush1.bf16.msra.mxu1 %v17415_v60  ;;  %v17528_v60 = vld [vmem:[#allocation10 + $0x3ec] ss:$48 sps:$4 sm:$0xff]  }
 0x18b   :  { %1524 = vmatprep.subr.bf16.mxu1 %v17420_v61  ;;  %v17526_v61 = vld [vmem:[#allocation10 + $0x3e8] ss:$48 sps:$4 sm:$0xff]  }
 0x18e   :  { %1525 = vmatpush1.bf16.msra.mxu1 %v17418_v63  ;;  %v17529_v63 = vld [vmem:[#allocation10 + $0x448] ss:$48 sps:$4 sm:$0xff]  }
 0x18f   :  { %1526 = vmatprep.subr.bf16.mxu1 %v17423_v1  ;;  %v17532_v1 = vld [vmem:[#allocation10 + $0x4a8] ss:$48 sps:$4 sm:$0xff]  }
 0x192   :  { %1527 = vmatpush1.bf16.msra.mxu1 %v17421_v4  ;;  %v17540_v4 = vld [vmem:[#allocation10 + $0x56c] ss:$48 sps:$4 sm:$0xff]  }
 0x193   :  { %1528 = vmatprep.subr.bf16.mxu1 %v17426_v8 }
 0x196   :  { %1529 = vmatpush1.bf16.msra.mxu1 %v17424_v10 }
 0x197   :  { %1530 = vmatprep.subr.bf16.mxu1 %v17429_v12 }
 0x19a   :  { %1531 = vmatpush1.bf16.msra.mxu1 %v17427_v14 }
 0x19b   :  { %1532 = vmatprep.subr.bf16.mxu1 %v17432_v16 }
 0x19e   :  { %1533 = vmatpush1.bf16.msra.mxu1 %v17430_v18 }
 0x19f   :  { %1534 = vmatprep.subr.bf16.mxu1 %v17435_v20  ;;  %v17541_v20 = vld [vmem:[#allocation10 + $0x5c8] ss:$48 sps:$4 sm:$0xff]  }
 0x1a2   :  { %1535 = vmatpush1.bf16.msra.mxu1 %v17433_v22 }
 0x1a3   :  { %1536 = vmatprep.subr.bf16.mxu1 %v17438_v24 }
 0x1a6   :  { %1537 = vmatpush1.bf16.msra.mxu1 %v17436_v26 }
 0x1a7   :  { %1538 = vmatprep.subr.bf16.mxu1 %v17441_v28 }
 0x1aa   :  { %1539 = vmatpush1.bf16.msra.mxu1 %v17439_v30 }
 0x1ab   :  { %1540 = vmatprep.subr.bf16.mxu1 %v17444_v32 }
 0x1ae   :  { %1541 = vmatpush1.bf16.msra.mxu1 %v17442_v34  ;;  %v1676_v34 = vunpack.c.l.s4 %v18514_v33 }
 0x1af   :  { %1542 = vmatprep.subr.bf16.mxu1 %v17447_v36  ;;  %v18515_v36 = vmov 1934713408  }
 0x1b0   :  { %v1740_v37 = vunpack.c.l.s4 %v18515_v36 }
 0x1b2   :  { %1543 = vmatpush1.bf16.msra.mxu1 %v17445_v38  ;;  %v1677_v38 = vunpack.c.0.s8 %v1676_v34 }
 0x1b3   :  { %1598 = vmatprep.subr.bf16.mxu1 %v17498_v40 }
 0x1b5   :  { %1545 = vmatmul.mubr.bf16.vlgmr.msra.gmra.mrb[8].mxu1 %v18821_v6 }
 0x1b6   :  { %1630 = vmatprep.mubr.bf16.mxu1 %v18817_v51  ;;  %1599 = vmatpush1.bf16.msra.mxu1 %v17496_v41  ;;  %v17513_v51 = vld [vmem:[#allocation10 + $0x20c] ss:$48 sps:$4 sm:$0xff]  }
 0x1b7   :  { %1600 = vmatprep.subr.bf16.mxu1 %v17501_v42  ;;  %v1741_v42 = vunpack.c.0.s8 %v1740_v37 }
 0x1ba   :  { %1601 = vmatpush1.bf16.msra.mxu1 %v17499_v43  ;;  %v18883_v43 = vsub.s32 %v1677_v38, %v18880_v39 }
 0x1bb   :  { %1602 = vmatprep.subr.bf16.mxu1 %v17504_v44 }
 0x1be   :  { %1603 = vmatpush1.bf16.msra.mxu1 %v17502_v45 }
 0x1bf   :  { %1604 = vmatprep.subr.bf16.mxu1 %v17507_v46 }
 0x1c2   :  { %1605 = vmatpush1.bf16.msra.mxu1 %v17505_v47 }
 0x1c3   :  { %1606 = vmatprep.subr.bf16.mxu1 %v17510_v48 }
 0x1c6   :  { %1607 = vmatpush1.bf16.msra.mxu1 %v17508_v49 }
 0x1c7   :  { %1608 = vmatprep.subr.bf16.mxu1 %v17513_v51 }
 0x1ca   :  { %1609 = vmatpush1.bf16.msra.mxu1 %v17511_v50 }
 0x1cb   :  { %1610 = vmatprep.subr.bf16.mxu1 %v17516_v52  ;;  %v18888_v52 = vsub.s32 %v1741_v42, %v18880_v39 }
 0x1ce   :  { %1611 = vmatpush1.bf16.msra.mxu1 %v17514_v53 }
 0x1cf   :  { %1612 = vmatprep.subr.bf16.mxu1 %v17519_v54 }
 0x1d2   :  { %1613 = vmatpush1.bf16.msra.mxu1 %v17517_v55 }
 0x1d3   :  { %1614 = vmatprep.subr.bf16.mxu1 %v17522_v56 }
 0x1d6   :  { %1615 = vmatpush1.bf16.msra.mxu1 %v17520_v57 }
 0x1d7   :  { %1616 = vmatprep.subr.bf16.mxu1 %v17525_v58 }
 0x1da   :  { %1617 = vmatpush1.bf16.msra.mxu1 %v17523_v59 }
 0x1db   :  { %1618 = vmatprep.subr.bf16.mxu1 %v17528_v60 }
 0x1de   :  { %1619 = vmatpush1.bf16.msra.mxu1 %v17526_v61 }
 0x1df   :  { %1620 = vmatprep.subr.bf16.mxu1 %v17531_v62 }
 0x1e2   :  { %1621 = vmatpush1.bf16.msra.mxu1 %v17529_v63 }
 0x1e3   :  { %1622 = vmatprep.subr.bf16.mxu1 %v17534_v0 }
 0x1e6   :  { %1623 = vmatpush1.bf16.msra.mxu1 %v17532_v1 }
 0x1e7   :  { %1624 = vmatprep.subr.bf16.mxu1 %v17537_v2 }
 0x1ea   :  { %1625 = vmatpush1.bf16.msra.mxu1 %v17535_v3 }
 0x1eb   :  { %1626 = vmatprep.subr.bf16.mxu1 %v17540_v4 }
 0x1ee   :  { %1627 = vmatpush1.bf16.msra.mxu1 %v17538_v5 }
 0x1ef   :  { %1628 = vmatprep.subr.bf16.mxu1 %v17543_v17 }
 0x1f2   :  { %1629 = vmatpush1.bf16.msra.mxu1 %v17541_v20 }
 0x1f3   :  { %16789 = vmatprep.subr.bf16.mxu1 %v22301_v25 }
 0x1f5   :  { %1631 = vmatmul.mubr.bf16.vlgmr.msra.gmra.mrb[12].mxu1 %v18821_v6 }
 0x1f6   :  { %16791 = vmatprep.mubr.msk.bf16.mxu1 %vm18513_vm0, %v22301_v25 }
 0x208   :  { %v18832_v7 = vpop.f32.mrb[0].mxu1 }
 0x209   :  { %v1503_v8 = vpop.f32.mrb[0].mxu0  ;;  %1643 = vrot.lane.b32.xlu1 %v18832_v7, %s18511_s15  ;;  %v1419_v9 = vpop.f32.mrb[1].mxu1 }
 0x20a   :  { %1947 = vrot.lane.b32.xlu0 %v1503_v8, %s18511_s15  ;;  %v1505_v10 = vpop.f32.mrb[1].mxu0  ;;  %v1673_v11 = vcombine.low %v18832_v7, %v1419_v9  ;;  %v1674_v12 = vcombine.high %v18832_v7, %v1419_v9  ;;  %v18839_v13 = vpop.f32.mrb[2].mxu1 }
 0x20b   :  { %v1977_v14 = vcombine.low %v1503_v8, %v1505_v10  ;;  %v1978_v15 = vcombine.high %v1503_v8, %v1505_v10  ;;  %v18841_v16 = vpop.f32.mrb[2].mxu0  ;;  %v18843_v18 = vpop.f32.mrb[3].mxu1 }
 0x20c   :  { %v18845_v19 = vpop.f32.mrb[3].mxu0  ;;  %v1809_v21 = vcombine.low %v18839_v13, %v18843_v18  ;;  %v1810_v22 = vcombine.high %v18839_v13, %v18843_v18  ;;  %v1681_v57 = vrot.slane %v1673_v11, %v18883_v43  ;;  %v1688_v58 = vrot.slane %v1674_v12, %v18883_v43 }
 0x20d   :  { %1651 = vrot.lane.b32.xlu1 %v1419_v9, %s18511_s15  ;;  %v2113_v23 = vcombine.low %v18841_v16, %v18845_v19  ;;  %v2114_v24 = vcombine.high %v18841_v16, %v18845_v19  ;;  %v1985_v51 = vrot.slane %v1977_v14, %v18883_v43  ;;  %v1992_v50 = vrot.slane %v1978_v15, %v18883_v43 }
 0x20e   :  { %1955 = vrot.lane.b32.xlu0 %v1505_v10, %s18511_s15 }
 0x248   :  { %v18864_v26 = vpop.f32.mrb[4].mxu1 }
 0x249   :  { %v18866_v27 = vpop.f32.mrb[5].mxu1 }
 0x24a   :  { %v1705_v28 = vcombine.low %v18864_v26, %v18866_v27  ;;  %v1706_v6 = vcombine.high %v18864_v26, %v18866_v27  ;;  %v18872_v29 = vpop.f32.mrb[6].mxu1 }
 0x24b   :  { %v18874_v30 = vpop.f32.mrb[7].mxu1 }
 0x24c   :  { %v1841_v31 = vcombine.low %v18872_v29, %v18874_v30  ;;  %v1842_v32 = vcombine.high %v18872_v29, %v18874_v30 }
 0x27b   :  { %v1644_v41 = vpop.permute.xlu1 %1643 }
 0x27c   :  { %v1948_v40 = vpop.permute.xlu0 %1947 }
 0x27f   :  { %v1652_v45 = vpop.permute.xlu1 %1651 }
 0x280   :  { %v1956_v44 = vpop.permute.xlu0 %1955  ;;  %v1689_v48 = vcombine.low %v1644_v41, %v1652_v45  ;;  %v1690_v49 = vcombine.high %v1644_v41, %v1652_v45 }
 0x281   :  { %v1993_v46 = vcombine.low %v1948_v40, %v1956_v44  ;;  %v1994_v47 = vcombine.high %v1948_v40, %v1956_v44 }
 0x282   :  { %v1697_v55 = vrot.slane %v1689_v48, %v18883_v43  ;;  %v1704_v56 = vrot.slane %v1690_v49, %v18883_v43 }
 0x283   :  { %v2001_v53 = vrot.slane %v1993_v46, %v18883_v43  ;;  %v2008_v54 = vrot.slane %v1994_v47, %v18883_v43 }
 0x284   :  { %v1737_v63 = vcombine.low %v1681_v57, %v1697_v55  ;;  %v1738_v0 = vcombine.high %v1681_v57, %v1697_v55  ;;  %v1753_v1 = vcombine.low %v1688_v58, %v1704_v56  ;;  %v1754_v2 = vcombine.high %v1688_v58, %v1704_v56 }
 0x285   :  { %v2041_v59 = vcombine.low %v1985_v51, %v2001_v53  ;;  %v2042_v60 = vcombine.high %v1985_v51, %v2001_v53  ;;  %v2057_v61 = vcombine.low %v1992_v50, %v2008_v54  ;;  %v2058_v62 = vcombine.high %v1992_v50, %v2008_v54  ;;  %v18930_v53 = vpop.f32.mrb[4].mxu0 }
 0x286   :  { %v1745_v8 = vrot.slane %v1737_v63, %v18888_v52  ;;  %v1752_v9 = vrot.slane %v1738_v0, %v18888_v52  ;;  %v1761_v10 = vrot.slane %v1753_v1, %v18888_v52  ;;  %v1768_v11 = vrot.slane %v1754_v2, %v18888_v52 }
 0x287   :  { %v2049_v3 = vrot.slane %v2041_v59, %v18888_v52  ;;  %v2056_v4 = vrot.slane %v2042_v60, %v18888_v52  ;;  %v2065_v5 = vrot.slane %v2057_v61, %v18888_v52  ;;  %v2072_v7 = vrot.slane %v2058_v62, %v18888_v52  ;;  %v18938_v60 = vpop.f32.mrb[5].mxu0 }
 0x288   :  { %v18904_v20 = vpop.f32.mrb[8].mxu1  ;;  %v15951_v33 = vcombine.low %v1745_v8, %v1752_v9  ;;  %v15953_v34 = vcombine.high %v1745_v8, %v1752_v9  ;;  %v15955_v35 = vcombine.low %v1761_v10, %v1768_v11  ;;  %v15957_v36 = vcombine.high %v1761_v10, %v1768_v11 }
 0x289   :  { %v15967_v12 = vcombine.low %v2049_v3, %v2056_v4  ;;  %v15969_v14 = vcombine.high %v2049_v3, %v2056_v4  ;;  %v15971_v15 = vcombine.low %v2065_v5, %v2072_v7  ;;  %v15973_v17 = vcombine.high %v2065_v5, %v2072_v7  ;;  %1963 = vrot.lane.b32.xlu0 %v18904_v20, %s18511_s15  ;;  %v18908_v37 = vpop.f32.mrb[9].mxu1 }
 0x28a   :  { %v2009_v38 = vcombine.low %v18904_v20, %v18908_v37  ;;  %v2010_v40 = vcombine.high %v18904_v20, %v18908_v37  ;;  %1971 = vrot.lane.b32.xlu1 %v18908_v37, %s18511_s15  ;;  %v18916_v41 = vpop.f32.mrb[10].mxu1  ;;  %v2629_v45 = vrot.slane %v15951_v33, %v18883_v43  ;;  %v2645_v46 = vrot.slane %v15953_v34, %v18883_v43 }
 0x28b   :  { %v2901_v42 = vrot.slane %v15967_v12, %v18883_v43  ;;  %v2917_v44 = vrot.slane %v15969_v14, %v18883_v43  ;;  %v2661_v47 = vrot.slane %v15955_v35, %v18883_v43  ;;  %v2677_v48 = vrot.slane %v15957_v36, %v18883_v43  ;;  %v18924_v49 = vpop.f32.mrb[11].mxu1 }
 0x28c   :  { %v2145_v51 = vcombine.low %v18916_v41, %v18924_v49  ;;  %v2146_v50 = vcombine.high %v18916_v41, %v18924_v49  ;;  %v2685_v54 = vcombine.low %v2629_v45, %v2645_v46  ;;  %v2686_v55 = vcombine.high %v2629_v45, %v2645_v46 }
 0x28d   :  { %v2717_v56 = vcombine.low %v2661_v47, %v2677_v48  ;;  %v2718_v57 = vcombine.high %v2661_v47, %v2677_v48  ;;  %1659 = vrot.lane.b32.xlu0 %v18864_v26, %s18511_s15  ;;  %v2933_v58 = vrot.slane %v15971_v15, %v18883_v43  ;;  %v2949_v59 = vrot.slane %v15973_v17, %v18883_v43 }
 0x28e   :  { %1667 = vrot.lane.b32.xlu1 %v18866_v27, %s18511_s15  ;;  %v2957_v61 = vcombine.low %v2901_v42, %v2917_v44  ;;  %v2693_v62 = vrot.slane %v2685_v54, %v18888_v52  ;;  %v2958_v0 = vcombine.high %v2901_v42, %v2917_v44  ;;  %v2700_v3 = vrot.slane %v2686_v55, %v18888_v52 }
 0x28f   :  { %v2725_v63 = vrot.slane %v2717_v56, %v18888_v52  ;;  %v2989_v1 = vcombine.low %v2933_v58, %v2949_v59  ;;  %v2990_v2 = vcombine.high %v2933_v58, %v2949_v59  ;;  %v2732_v4 = vrot.slane %v2718_v57, %v18888_v52 }
 0x290   :  { %v2965_v5 = vrot.slane %v2957_v61, %v18888_v52  ;;  %v2972_v9 = vrot.slane %v2958_v0, %v18888_v52  ;;  %v18992_v61 = vpop.f32.mrb[6].mxu0  ;;  %v2121_v20 = vrot.slane %v2113_v23, %v18883_v43  ;;  %v2128_v37 = vrot.slane %v2114_v24, %v18883_v43 }
 0x291   :  { %1949 = vrot.lane.b32.xlu0 %v18841_v16, %s18511_s15  ;;  %v2749_v7 = vcombine.low %v2693_v62, %v2725_v63  ;;  %v2750_v8 = vcombine.high %v2693_v62, %v2725_v63  ;;  %v2997_v10 = vrot.slane %v2989_v1, %v18888_v52  ;;  %v3004_v11 = vrot.slane %v2990_v2, %v18888_v52  ;;  %v18994_v62 = vpop.f32.mrb[7].mxu0 }
 0x292   :  { %1957 = vrot.lane.b32.xlu1 %v18845_v19, %s18511_s15  ;;  %v2751_v12 = vcombine.low %v2700_v3, %v2732_v4  ;;  %v2752_v14 = vcombine.high %v2700_v3, %v2732_v4  ;;  %v19060_v16 = vrot.slane %v1841_v31, %v18883_v43  ;;  %v19066_v19 = vrot.slane %v1842_v32, %v18883_v43 }
 0x293   :  { %v3021_v15 = vcombine.low %v2965_v5, %v2997_v10  ;;  %v3022_v17 = vcombine.high %v2965_v5, %v2997_v10  ;;  %v3023_v33 = vcombine.low %v2972_v9, %v3004_v11  ;;  %v3024_v34 = vcombine.high %v2972_v9, %v3004_v11 }
 0x294   :  { %v3437_v54 = vpack.c.bf16 %v2749_v7, %v2749_v7  ;;  %v3438_v55 = vpack.c.bf16 %v2750_v8, %v2750_v8  ;;  %v3439_v58 = vpack.c.bf16 %v2751_v12, %v2751_v12  ;;  %v3440_v59 = vpack.c.bf16 %v2752_v14, %v2752_v14 }
 0x295   :  { %1645 = vrot.lane.b32.xlu0 %v18839_v13, %s18511_s15  ;;  %v3453_v35 = vpack.c.bf16 %v3021_v15, %v3021_v15  ;;  %v3454_v36 = vpack.c.bf16 %v3022_v17, %v3022_v17  ;;  %v3455_v47 = vpack.c.bf16 %v3023_v33, %v3023_v33  ;;  %v3456_v48 = vpack.c.bf16 %v3024_v34, %v3024_v34 }
 0x296   :  { %1653 = vrot.lane.b32.xlu1 %v18843_v18, %s18511_s15  ;;  %v2017_v15 = vrot.slane %v2009_v38, %v18883_v43  ;;  %v19036_v38 = vrot.slane %v1810_v22, %v18883_v43  ;;  %v1713_v13 = vrot.slane %v1705_v28, %v18883_v43  ;;  %v1720_v18 = vrot.slane %v1706_v6, %v18883_v43 }
 0x297   :  { %v3474_v42 = vsel %vm3469_vm1, %v3453_v35, 0  ;;  %v3520_v44 = vsel %vm3469_vm1, %v3454_v36, 0  ;;  %v3566_v56 = vsel %vm3469_vm1, %v3455_v47, 0  ;;  %v3612_v57 = vsel %vm3469_vm1, %v3456_v48, 0 }
 0x298   :  { %16784 = vmatpush3.bf16.xpose.msra.mxu0 %v3474_v42  ;;  %16790 = vmatpush3.bf16.xpose.msra.mxu1 %v3520_v44  ;;  %v2024_v36 = vrot.slane %v2010_v40, %v18883_v43  ;;  %v19030_v47 = vrot.slane %v1809_v21, %v18883_v43 }
 0x299   :  { %1965 = vrot.lane.b32.xlu0 %v18916_v41, %s18511_s15  ;;  %16795 = vmatprep.subr.bf16.mxu0 %v22301_v25 }
 0x29a   :  { %1973 = vrot.lane.b32.xlu1 %v18924_v49, %s18511_s15  ;;  %16801 = vmatprep.subr.bf16.mxu1 %v22301_v25 }
 0x29d   :  { %1661 = vrot.lane.b32.xlu0 %v18872_v29, %s18511_s15 }
 0x29e   :  { %1669 = vrot.lane.b32.xlu1 %v18874_v30, %s18511_s15 }
 0x29f   :  { %16786 = vmatmul.mubr.msk.bf16.vlgmr.msra.gmra.mrb[8].mxu0 %vm3469_vm1, %v3437_v54  ;;  %16792 = vmatmul.mubr.msk.bf16.vlgmr.msra.gmra.mrb[16].mxu1 %vm3469_vm1, %v3438_v55 }
 0x2a0   :  { %16796 = vmatpush3.bf16.xpose.msra.mxu0 %v3566_v56  ;;  %16802 = vmatpush3.bf16.xpose.msra.mxu1 %v3612_v57 }
 0x2a1   :  { %16797 = vmatprep.mubr.msk.bf16.mxu0 %vm18513_vm0, %v22301_v25  ;;  %16803 = vmatprep.mubr.msk.bf16.mxu1 %vm18513_vm0, %v22301_v25 }
 0x2a2   :  { %2259 = vrot.lane.b32.xlu0 %v18938_v60, %s18511_s15  ;;  %2251 = vrot.lane.b32.xlu1 %v18930_v53, %s18511_s15 }
 0x2a3   :  { %16807 = vmatprep.subr.bf16.mxu0 %v22301_v25  ;;  %16813 = vmatprep.subr.bf16.mxu1 %v22301_v25 }
 0x2a7   :  { %16798 = vmatmul.mubr.msk.bf16.vlgmr.msra.gmra.mrb[12].mxu0 %vm3469_vm1, %v3439_v58  ;;  %16804 = vmatmul.mubr.msk.bf16.vlgmr.msra.gmra.mrb[20].mxu1 %vm3469_vm1, %v3440_v59 }
 0x2a8   :  { %16809 = vmatprep.mubr.msk.bf16.mxu0 %vm18513_vm0, %v22301_v25  ;;  %16815 = vmatprep.mubr.msk.bf16.mxu1 %vm18513_vm0, %v22301_v25 }
 0x2c8   :  { %v19000_v1 = vpop.f32.mrb[12].mxu1 }
 0x2c9   :  { %v19002_v2 = vpop.f32.mrb[13].mxu1 }
 0x2ca   :  { %v19008_v5 = vpop.f32.mrb[14].mxu1 }
 0x2cb   :  { %v19010_v7 = vpop.f32.mrb[15].mxu1 }
 0x2fb   :  { %v1964_v10 = vpop.permute.xlu0 %1963 }
 0x2fc   :  { %v1972_v11 = vpop.permute.xlu1 %1971 }
 0x2fd   :  { %v2025_v12 = vcombine.low %v1964_v10, %v1972_v11  ;;  %v2026_v14 = vcombine.high %v1964_v10, %v1972_v11 }
 0x2ff   :  { %v2033_v17 = vrot.slane %v2025_v12, %v18883_v43  ;;  %v2040_v33 = vrot.slane %v2026_v14, %v18883_v43  ;;  %v1660_v34 = vpop.permute.xlu0 %1659 }
 0x300   :  { %v1668_v35 = vpop.permute.xlu1 %1667 }
 0x301   :  { %v2073_v42 = vcombine.low %v2017_v15, %v2033_v17  ;;  %v2074_v44 = vcombine.high %v2017_v15, %v2033_v17  ;;  %v1721_v48 = vcombine.low %v1660_v34, %v1668_v35  ;;  %v1722_v54 = vcombine.high %v1660_v34, %v1668_v35 }
 0x302   :  { %v2089_v21 = vcombine.low %v2024_v36, %v2040_v33  ;;  %v2090_v40 = vcombine.high %v2024_v36, %v2040_v33 }
 0x303   :  { %v1950_v55 = vpop.permute.xlu0 %1949  ;;  %v1729_v22 = vrot.slane %v1721_v48, %v18883_v43  ;;  %v1736_v23 = vrot.slane %v1722_v54, %v18883_v43  ;;  %v2081_v24 = vrot.slane %v2073_v42, %v18888_v52  ;;  %v2088_v26 = vrot.slane %v2074_v44, %v18888_v52 }
 0x304   :  { %v1958_v56 = vpop.permute.xlu1 %1957  ;;  %v19071_v58 = vrot.slane %v2089_v21, %v18888_v52  ;;  %v19074_v31 = vrot.slane %v2090_v40, %v18888_v52 }
 0x305   :  { %v1769_v27 = vcombine.low %v1713_v13, %v1729_v22  ;;  %v1770_v28 = vcombine.high %v1713_v13, %v1729_v22  ;;  %v1785_v6 = vcombine.low %v1720_v18, %v1736_v23  ;;  %v1786_v57 = vcombine.high %v1720_v18, %v1736_v23 }
 0x306   :  { %v2129_v59 = vcombine.low %v1950_v55, %v1958_v56  ;;  %v2130_v10 = vcombine.high %v1950_v55, %v1958_v56  ;;  %v15968_v15 = vcombine.low %v2081_v24, %v2088_v26  ;;  %v15970_v17 = vcombine.high %v2081_v24, %v2088_v26 }
 0x307   :  { %v1646_v11 = vpop.permute.xlu0 %1645  ;;  %v1777_v29 = vrot.slane %v1769_v27, %v18888_v52  ;;  %v1784_v30 = vrot.slane %v1770_v28, %v18888_v52  ;;  %v1793_v32 = vrot.slane %v1785_v6, %v18888_v52  ;;  %v1800_v12 = vrot.slane %v1786_v57, %v18888_v52 }
 0x308   :  { %v1654_v14 = vpop.permute.xlu1 %1653  ;;  %v2137_v33 = vrot.slane %v2129_v59, %v18883_v43  ;;  %v2144_v34 = vrot.slane %v2130_v10, %v18883_v43  ;;  %v2153_v55 = vrot.slane %v2145_v51, %v18883_v43  ;;  %v2160_v13 = vrot.slane %v2146_v50, %v18883_v43 }
 0x309   :  { %v15952_v35 = vcombine.low %v1777_v29, %v1784_v30  ;;  %v15954_v36 = vcombine.high %v1777_v29, %v1784_v30  ;;  %v15956_v42 = vcombine.low %v1793_v32, %v1800_v12  ;;  %v15958_v44 = vcombine.high %v1793_v32, %v1800_v12 }
 0x30a   :  { %v2177_v48 = vcombine.low %v2121_v20, %v2137_v33  ;;  %v2178_v54 = vcombine.high %v2121_v20, %v2137_v33  ;;  %v2193_v21 = vcombine.low %v2128_v37, %v2144_v34  ;;  %v2194_v40 = vcombine.high %v2128_v37, %v2144_v34 }
 0x30b   :  { %v1825_v18 = vcombine.low %v1646_v11, %v1654_v14  ;;  %v1826_v22 = vcombine.high %v1646_v11, %v1654_v14  ;;  %v1966_v23 = vpop.permute.xlu0 %1965  ;;  %v19091_v24 = vrot.slane %v15952_v35, %v18883_v43  ;;  %v19094_v20 = vrot.slane %v15954_v36, %v18883_v43 }
 0x30c   :  { %v1974_v56 = vpop.permute.xlu1 %1973  ;;  %v19097_v37 = vrot.slane %v15956_v42, %v18883_v43  ;;  %v19100_v51 = vrot.slane %v15958_v44, %v18883_v43  ;;  %v15972_v41 = vcombine.low %v19071_v58, %v19074_v31  ;;  %v15974_v49 = vcombine.high %v19071_v58, %v19074_v31 }
 0x30d   :  { %v19107_v50 = vrot.slane %v15968_v15, %v18883_v43  ;;  %v19110_v26 = vrot.slane %v15970_v17, %v18883_v43  ;;  %v19113_v27 = vrot.slane %v2177_v48, %v18888_v52  ;;  %v19116_v28 = vrot.slane %v2178_v54, %v18888_v52 }
 0x30e   :  { %v19119_v6 = vrot.slane %v2193_v21, %v18888_v52  ;;  %v19122_v57 = vrot.slane %v2194_v40, %v18888_v52  ;;  %v1833_v58 = vrot.slane %v1825_v18, %v18883_v43  ;;  %v1840_v31 = vrot.slane %v1826_v22, %v18883_v43 }
 0x30f   :  { %v2161_v59 = vcombine.low %v1966_v23, %v1974_v56  ;;  %v2162_v10 = vcombine.high %v1966_v23, %v1974_v56  ;;  %v1662_v11 = vpop.permute.xlu0 %1661  ;;  %v2701_v30 = vcombine.low %v19091_v24, %v19094_v20  ;;  %v2702_v32 = vcombine.high %v19091_v24, %v19094_v20 }
 0x310   :  { %v1670_v29 = vpop.permute.xlu1 %1669  ;;  %v2733_v12 = vcombine.low %v19097_v37, %v19100_v51  ;;  %v2734_v14 = vcombine.high %v19097_v37, %v19100_v51  ;;  %v1873_v15 = vcombine.low %v19030_v47, %v1833_v58  ;;  %v1874_v17 = vcombine.high %v19030_v47, %v1833_v58 }
 0x311   :  { %v1889_v33 = vcombine.low %v19036_v38, %v1840_v31  ;;  %v1890_v34 = vcombine.high %v19036_v38, %v1840_v31  ;;  %v2169_v35 = vrot.slane %v2161_v59, %v18883_v43  ;;  %v2176_v36 = vrot.slane %v2162_v10, %v18883_v43 }
 0x312   :  { %v1857_v42 = vcombine.low %v1662_v11, %v1670_v29  ;;  %v1858_v44 = vcombine.high %v1662_v11, %v1670_v29  ;;  %v1881_v48 = vrot.slane %v1873_v15, %v18888_v52  ;;  %v1888_v54 = vrot.slane %v1874_v17, %v18888_v52 }
 0x313   :  { %v1897_v21 = vrot.slane %v1889_v33, %v18888_v52  ;;  %v1904_v40 = vrot.slane %v1890_v34, %v18888_v52  ;;  %v2209_v18 = vcombine.low %v2153_v55, %v2169_v35  ;;  %v2210_v47 = vcombine.high %v2153_v55, %v2169_v35 }
 0x314   :  { %v2225_v22 = vcombine.low %v2160_v13, %v2176_v36  ;;  %v2226_v23 = vcombine.high %v2160_v13, %v2176_v36  ;;  %v15959_v56 = vcombine.low %v1881_v48, %v1888_v54  ;;  %v15961_v38 = vcombine.high %v1881_v48, %v1888_v54 }
 0x315   :  { %v15963_v58 = vcombine.low %v1897_v21, %v1904_v40  ;;  %v15965_v31 = vcombine.high %v1897_v21, %v1904_v40  ;;  %v15975_v59 = vcombine.low %v19113_v27, %v19116_v28  ;;  %v15977_v10 = vcombine.high %v19113_v27, %v19116_v28 }
 0x316   :  { %v1865_v11 = vrot.slane %v1857_v42, %v18883_v43  ;;  %v1872_v29 = vrot.slane %v1858_v44, %v18883_v43  ;;  %v15979_v15 = vcombine.low %v19119_v6, %v19122_v57  ;;  %v15981_v55 = vcombine.high %v19119_v6, %v19122_v57 }
 0x317   :  { %v2940_v13 = vrot.slane %v15972_v41, %v18883_v43  ;;  %v2956_v17 = vrot.slane %v15974_v49, %v18883_v43  ;;  %v19157_v33 = vrot.slane %v2209_v18, %v18888_v52  ;;  %v19160_v34 = vrot.slane %v2210_v47, %v18888_v52 }
 0x318   :  { %v19163_v35 = vrot.slane %v2225_v22, %v18888_v52  ;;  %v19166_v36 = vrot.slane %v2226_v23, %v18888_v52  ;;  %v19169_v42 = vrot.slane %v15959_v56, %v18883_v43  ;;  %v19172_v44 = vrot.slane %v15961_v38, %v18883_v43 }
 0x319   :  { %v19175_v41 = vrot.slane %v15963_v58, %v18883_v43  ;;  %v19178_v49 = vrot.slane %v15965_v31, %v18883_v43  ;;  %v1905_v48 = vcombine.low %v19060_v16, %v1865_v11  ;;  %v1906_v54 = vcombine.high %v19060_v16, %v1865_v11 }
 0x31a   :  { %v1921_v21 = vcombine.low %v19066_v19, %v1872_v29  ;;  %v1922_v40 = vcombine.high %v19066_v19, %v1872_v29  ;;  %v2973_v18 = vcombine.low %v19107_v50, %v19110_v26  ;;  %v3005_v47 = vcombine.low %v2940_v13, %v2956_v17 }
 0x31b   :  { %v2709_v22 = vrot.slane %v2701_v30, %v18888_v52  ;;  %v2741_v23 = vrot.slane %v2733_v12, %v18888_v52  ;;  %v1913_v56 = vrot.slane %v1905_v48, %v18888_v52  ;;  %v1920_v38 = vrot.slane %v1906_v54, %v18888_v52 }
 0x31c   :  { %v1929_v58 = vrot.slane %v1921_v21, %v18888_v52  ;;  %v1936_v16 = vrot.slane %v1922_v40, %v18888_v52  ;;  %v2981_v31 = vrot.slane %v2973_v18, %v18888_v52  ;;  %v3013_v19 = vrot.slane %v3005_v47, %v18888_v52 }
 0x31d   :  { %v2753_v11 = vcombine.low %v2709_v22, %v2741_v23  ;;  %v2754_v29 = vcombine.high %v2709_v22, %v2741_v23  ;;  %v15976_v9 = vcombine.low %v19157_v33, %v19160_v34  ;;  %v15978_v30 = vcombine.high %v19157_v33, %v19160_v34 }
 0x31e   :  { %v15980_v12 = vcombine.low %v19163_v35, %v19166_v36  ;;  %v15960_v48 = vcombine.low %v1913_v56, %v1920_v38  ;;  %v2821_v54 = vcombine.low %v19169_v42, %v19172_v44  ;;  %v2822_v21 = vcombine.high %v19169_v42, %v19172_v44 }
 0x31f   :  { %v3025_v40 = vcombine.low %v2981_v31, %v3013_v19  ;;  %v3026_v18 = vcombine.high %v2981_v31, %v3013_v19  ;;  %v2853_v47 = vcombine.low %v19175_v41, %v19178_v49  ;;  %v2854_v22 = vcombine.high %v19175_v41, %v19178_v49 }
 0x320   :  { %v15962_v23 = vcombine.high %v1913_v56, %v1920_v38  ;;  %v15964_v8 = vcombine.low %v1929_v58, %v1936_v16  ;;  %v2974_v4 = vcombine.high %v19107_v50, %v19110_v26  ;;  %v3006_v3 = vcombine.high %v2940_v13, %v2956_v17 }
 0x321   :  { %v3457_v0 = vpack.c.bf16 %v3025_v40, %v3025_v40  ;;  %v3458_v63 = vpack.c.bf16 %v3026_v18, %v3026_v18  ;;  %v19211_v46 = vrot.slane %v15960_v48, %v18883_v43  ;;  %v15966_v42 = vcombine.high %v1929_v58, %v1936_v16 }
 0x322   :  { %v3441_v44 = vpack.c.bf16 %v2753_v11, %v2753_v11  ;;  %v3442_v31 = vpack.c.bf16 %v2754_v29, %v2754_v29  ;;  %v2988_v41 = vrot.slane %v2974_v4, %v18888_v52  ;;  %v3020_v49 = vrot.slane %v3006_v3, %v18888_v52 }
 0x323   :  { %v3658_v19 = vsel %vm3469_vm1, %v3457_v0, 0  ;;  %v3704_v45 = vsel %vm3469_vm1, %v3458_v63, 0  ;;  %v2716_v50 = vrot.slane %v2702_v32, %v18888_v52  ;;  %v2748_v26 = vrot.slane %v2734_v14, %v18888_v52 }
 0x324   :  { %16808 = vmatpush3.bf16.xpose.msra.mxu0 %v3658_v19  ;;  %16814 = vmatpush3.bf16.xpose.msra.mxu1 %v3704_v45  ;;  %v3037_v0 = vrot.slane %v15975_v59, %v18883_v43  ;;  %v3027_v63 = vcombine.low %v2988_v41, %v3020_v49  ;;  %v3028_v3 = vcombine.high %v2988_v41, %v3020_v49 }
 0x325   :  { %16819 = vmatprep.subr.bf16.mxu0 %v22301_v25  ;;  %16825 = vmatprep.subr.bf16.mxu1 %v22301_v25  ;;  %v3053_v45 = vrot.slane %v15977_v10, %v18883_v43  ;;  %v2755_v4 = vcombine.low %v2716_v50, %v2748_v26  ;;  %v2756_v24 = vcombine.high %v2716_v50, %v2748_v26 }
 0x326   :  { %v3069_v20 = vrot.slane %v15979_v15, %v18883_v43  ;;  %v3085_v37 = vrot.slane %v15981_v55, %v18883_v43  ;;  %v3459_v51 = vpack.c.bf16 %v3027_v63, %v3027_v63  ;;  %v3460_v32 = vpack.c.bf16 %v3028_v3, %v3028_v3 }
 0x327   :  { %v3093_v14 = vcombine.low %v3037_v0, %v3053_v45  ;;  %v2829_v59 = vrot.slane %v2821_v54, %v18888_v52  ;;  %v19242_v27 = vrot.slane %v15962_v23, %v18883_v43  ;;  %v19245_v28 = vrot.slane %v15964_v8, %v18883_v43 }
 0x328   :  { %v3125_v10 = vcombine.low %v3069_v20, %v3085_v37  ;;  %v2861_v13 = vrot.slane %v2853_v47, %v18888_v52  ;;  %v19249_v15 = vrot.slane %v15966_v42, %v18883_v43  ;;  %v3750_v6 = vsel %vm3469_vm1, %v3459_v51, 0 }
 0x329   :  { %v3101_v57 = vrot.slane %v3093_v14, %v18888_v52  ;;  %v3094_v55 = vcombine.high %v3037_v0, %v3053_v45  ;;  %v3126_v58 = vcombine.high %v3069_v20, %v3085_v37  ;;  %v3796_v8 = vsel %vm3469_vm1, %v3460_v32, 0  ;;  %v2260_v14 = vpop.permute.xlu0 %2259 }
 0x32a   :  { %v3133_v17 = vrot.slane %v3125_v10, %v18888_v52  ;;  %v19254_v56 = vcombine.low %v2829_v59, %v2861_v13  ;;  %v19256_v38 = vcombine.high %v2829_v59, %v2861_v13  ;;  %v2836_v11 = vrot.slane %v2822_v21, %v18888_v52  ;;  %v2252_v59 = vpop.permute.xlu1 %2251 }
 0x32b   :  { %16810 = vmatmul.mubr.msk.bf16.vlgmr.msra.gmra.mrb[16].mxu0 %vm3469_vm1, %v3441_v44  ;;  %16816 = vmatmul.mubr.msk.bf16.vlgmr.msra.gmra.mrb[24].mxu1 %vm3469_vm1, %v3442_v31  ;;  %v3108_v16 = vrot.slane %v3094_v55, %v18888_v52  ;;  %v2868_v29 = vrot.slane %v2854_v22, %v18888_v52  ;;  %v15982_v48 = vcombine.high %v19163_v35, %v19166_v36 }
 0x32c   :  { %16820 = vmatpush3.bf16.xpose.msra.mxu0 %v3750_v6  ;;  %16826 = vmatpush3.bf16.xpose.msra.mxu1 %v3796_v8  ;;  %v3157_v54 = vcombine.low %v3101_v57, %v3133_v17  ;;  %v3158_v40 = vcombine.high %v3101_v57, %v3133_v17  ;;  %v2837_v18 = vcombine.low %v19211_v46, %v19242_v27 }
 0x32d   :  { %16821 = vmatprep.mubr.msk.bf16.mxu0 %vm18513_vm0, %v22301_v25  ;;  %16827 = vmatprep.mubr.msk.bf16.mxu1 %vm18513_vm0, %v22301_v25  ;;  %v3140_v21 = vrot.slane %v3126_v58, %v18888_v52  ;;  %v19273_v47 = vcombine.low %v2836_v11, %v2868_v29  ;;  %v2869_v22 = vcombine.low %v19245_v28, %v19249_v15 }
 0x32e   :  { %16831 = vmatprep.subr.bf16.mxu0 %v22301_v25  ;;  %16837 = vmatprep.subr.bf16.mxu1 %v22301_v25  ;;  %v3461_v23 = vpack.c.bf16 %v3157_v54, %v3157_v54  ;;  %v19279_v42 = vcombine.high %v2836_v11, %v2868_v29  ;;  %v3462_v44 = vpack.c.bf16 %v3158_v40, %v3158_v40 }
 0x32f   :  { %v3159_v31 = vcombine.low %v3108_v16, %v3140_v21  ;;  %v3160_v19 = vcombine.high %v3108_v16, %v3140_v21  ;;  %v3044_v41 = vrot.slane %v15976_v9, %v18883_v43  ;;  %v2838_v49 = vcombine.high %v19211_v46, %v19242_v27 }
 0x330   :  { %v2870_v50 = vcombine.high %v19245_v28, %v19249_v15  ;;  %v3060_v26 = vrot.slane %v15978_v30, %v18883_v43  ;;  %v3443_v0 = vpack.c.bf16 %v2755_v4, %v2755_v4  ;;  %v3444_v63 = vpack.c.bf16 %v2756_v24, %v2756_v24 }
 0x331   :  { %v3076_v3 = vrot.slane %v15980_v12, %v18883_v43  ;;  %v3092_v9 = vrot.slane %v15982_v48, %v18883_v43  ;;  %v2845_v46 = vrot.slane %v2837_v18, %v18888_v52  ;;  %v2877_v20 = vrot.slane %v2869_v22, %v18888_v52 }
 0x332   :  { %v3109_v45 = vcombine.low %v3044_v41, %v3060_v26  ;;  %v3110_v37 = vcombine.high %v3044_v41, %v3060_v26  ;;  %v3842_v33 = vsel %vm3469_vm1, %v3461_v23, 0  ;;  %v3888_v34 = vsel %vm3469_vm1, %v3462_v44, 0 }
 0x333   :  { %16822 = vmatmul.mubr.msk.bf16.vlgmr.msra.gmra.mrb[20].mxu0 %vm3469_vm1, %v3443_v0  ;;  %16828 = vmatmul.mubr.msk.bf16.vlgmr.msra.gmra.mrb[28].mxu1 %vm3469_vm1, %v3444_v63  ;;  %v3141_v30 = vcombine.low %v3076_v3, %v3092_v9  ;;  %v3142_v4 = vcombine.high %v3076_v3, %v3092_v9  ;;  %v19305_v36 = vcombine.low %v2845_v46, %v2877_v20 }
 0x334   :  { %16832 = vmatpush3.bf16.xpose.msra.mxu0 %v3842_v33  ;;  %16838 = vmatpush3.bf16.xpose.msra.mxu1 %v3888_v34  ;;  %v3117_v35 = vrot.slane %v3109_v45, %v18888_v52  ;;  %v19307_v12 = vcombine.high %v2845_v46, %v2877_v20  ;;  %v3124_v51 = vrot.slane %v3110_v37, %v18888_v52 }
 0x335   :  { %16833 = vmatprep.mubr.msk.bf16.mxu0 %vm18513_vm0, %v22301_v25  ;;  %16839 = vmatprep.mubr.msk.bf16.mxu1 %vm18513_vm0, %v22301_v25  ;;  %v3149_v24 = vrot.slane %v3141_v30, %v18888_v52  ;;  %v3156_v32 = vrot.slane %v3142_v4, %v18888_v52  ;;  %v3463_v27 = vpack.c.bf16 %v3159_v31, %v3159_v31 }
 0x336   :  { %16843 = vmatprep.subr.bf16.mxu0 %v22301_v25  ;;  %16849 = vmatprep.subr.bf16.mxu1 %v22301_v25  ;;  %v3464_v28 = vpack.c.bf16 %v3160_v19, %v3160_v19  ;;  %v2852_v10 = vrot.slane %v2838_v49, %v18888_v52  ;;  %v22382_v55 = vcombine.low %v18930_v53, %v18938_v60 }
 0x337   :  { %v3161_v13 = vcombine.low %v3117_v35, %v3149_v24  ;;  %v3162_v15 = vcombine.high %v3117_v35, %v3149_v24  ;;  %v19319_v6 = vcombine.low %v3124_v51, %v3156_v32  ;;  %v19321_v57 = vcombine.high %v3124_v51, %v3156_v32 }
 0x338   :  { %v2289_v17 = vrot.slane %v22382_v55, %v18883_v43  ;;  %v2884_v58 = vrot.slane %v2870_v50, %v18888_v52  ;;  %v2297_v8 = vcombine.low %v2252_v59, %v2260_v14  ;;  %v2298_v16 = vcombine.high %v2252_v59, %v2260_v14 }
 0x339   :  { %v22383_v11 = vcombine.high %v18930_v53, %v18938_v60  ;;  %v3445_v48 = vpack.c.bf16 %v19254_v56, %v19254_v56  ;;  %v3446_v54 = vpack.c.bf16 %v19256_v38, %v19256_v38  ;;  %v3934_v53 = vsel %vm3469_vm1, %v3463_v27, 0 }
 0x33a   :  { %v19336_v40 = vcombine.low %v2852_v10, %v2884_v58  ;;  %v19338_v18 = vcombine.high %v2852_v10, %v2884_v58  ;;  %v2305_v21 = vrot.slane %v2297_v8, %v18883_v43  ;;  %v2312_v22 = vrot.slane %v2298_v16, %v18883_v43 }
 0x33b   :  { %v2296_v29 = vrot.slane %v22383_v11, %v18883_v43  ;;  %16834 = vmatmul.mubr.msk.bf16.vlgmr.msra.gmra.mrb[24].mxu0 %vm3469_vm1, %v3445_v48  ;;  %16840 = vmatmul.mubr.msk.bf16.vlgmr.msra.gmra.mrb[32].mxu1 %vm3469_vm1, %v3446_v54  ;;  %v3980_v60 = vsel %vm3469_vm1, %v3464_v28, 0  ;;  %v3465_v31 = vpack.c.bf16 %v3161_v13, %v3161_v13  ;;  %v3466_v41 = vpack.c.bf16 %v3162_v15, %v3162_v15 }
 0x33c   :  { %16844 = vmatpush3.bf16.xpose.msra.mxu0 %v3934_v53  ;;  %16850 = vmatpush3.bf16.xpose.msra.mxu1 %v3980_v60  ;;  %v2345_v56 = vcombine.low %v2289_v17, %v2305_v21  ;;  %v2346_v38 = vcombine.high %v2289_v17, %v2305_v21  ;;  %v3447_v0 = vpack.c.bf16 %v19273_v47, %v19273_v47 }
 0x33d   :  { %16845 = vmatprep.mubr.msk.bf16.mxu0 %vm18513_vm0, %v22301_v25  ;;  %16851 = vmatprep.mubr.msk.bf16.mxu1 %vm18513_vm0, %v22301_v25  ;;  %v2361_v23 = vcombine.low %v2296_v29, %v2312_v22  ;;  %v2362_v44 = vcombine.high %v2296_v29, %v2312_v22  ;;  %v3448_v63 = vpack.c.bf16 %v19279_v42, %v19279_v42  ;;  %v4026_v20 = vsel %vm3469_vm1, %v3465_v31, 0 }
 0x33e   :  { %16855 = vmatprep.subr.bf16.mxu0 %v22301_v25  ;;  %16861 = vmatprep.subr.bf16.mxu1 %v22301_v25  ;;  %v2353_v19 = vrot.slane %v2345_v56, %v18888_v52  ;;  %v2360_v49 = vrot.slane %v2346_v38, %v18888_v52  ;;  %v4072_v37 = vsel %vm3469_vm1, %v3466_v41, 0  ;;  %v3467_v51 = vpack.c.bf16 %v19319_v6, %v19319_v6 }
 0x33f   :  { %v2369_v50 = vrot.slane %v2361_v23, %v18888_v52  ;;  %v2376_v26 = vrot.slane %v2362_v44, %v18888_v52  ;;  %v3468_v32 = vpack.c.bf16 %v19321_v57, %v19321_v57  ;;  %v3449_v10 = vpack.c.bf16 %v19305_v36, %v19305_v36 }
 0x340   :  { %v15983_v3 = vcombine.low %v2353_v19, %v2360_v49  ;;  %v15985_v9 = vcombine.high %v2353_v19, %v2360_v49  ;;  %v3450_v13 = vpack.c.bf16 %v19307_v12, %v19307_v12  ;;  %v4118_v57 = vsel %vm3469_vm1, %v3467_v51, 0 }
 0x341   :  { %v15987_v45 = vcombine.low %v2369_v50, %v2376_v26  ;;  %v15989_v46 = vcombine.high %v2369_v50, %v2376_v26  ;;  %v4164_v58 = vsel %vm3469_vm1, %v3468_v32, 0  ;;  %v3451_v8 = vpack.c.bf16 %v19336_v40, %v19336_v40  ;;  %v2553_v40 = vld [vmem:[#allocation7] sm:$0xff] }
 0x342   :  { %v3173_v33 = vrot.slane %v15983_v3, %v18883_v43  ;;  %v3189_v34 = vrot.slane %v15985_v9, %v18883_v43  ;;  %v3452_v16 = vpack.c.bf16 %v19338_v18, %v19338_v18 }
 0x343   :  { %16846 = vmatmul.mubr.msk.bf16.vlgmr.msra.gmra.mrb[28].mxu0 %vm3469_vm1, %v3447_v0  ;;  %16852 = vmatmul.mubr.msk.bf16.vlgmr.msra.gmra.mrb[36].mxu1 %vm3469_vm1, %v3448_v63  ;;  %v3205_v47 = vrot.slane %v15987_v45, %v18883_v43  ;;  %v3221_v42 = vrot.slane %v15989_v46, %v18883_v43 }
 0x344   :  { %16856 = vmatpush3.bf16.xpose.msra.mxu0 %v4026_v20  ;;  %16862 = vmatpush3.bf16.xpose.msra.mxu1 %v4072_v37  ;;  %v3229_v30 = vcombine.low %v3173_v33, %v3189_v34  ;;  %v3230_v4 = vcombine.high %v3173_v33, %v3189_v34 }
 0x345   :  { %16857 = vmatprep.mubr.msk.bf16.mxu0 %vm18513_vm0, %v22301_v25  ;;  %16863 = vmatprep.mubr.msk.bf16.mxu1 %vm18513_vm0, %v22301_v25  ;;  %v3261_v35 = vcombine.low %v3205_v47, %v3221_v42  ;;  %v3262_v24 = vcombine.high %v3205_v47, %v3221_v42 }
 0x346   :  { %16867 = vmatprep.subr.bf16.mxu0 %v22301_v25  ;;  %16873 = vmatprep.subr.bf16.mxu1 %v22301_v25  ;;  %v3237_v14 = vrot.slane %v3229_v30, %v18888_v52  ;;  %v3244_v59 = vrot.slane %v3230_v4, %v18888_v52 }
 0x347   :  { %v3269_v27 = vrot.slane %v3261_v35, %v18888_v52  ;;  %v3276_v28 = vrot.slane %v3262_v24, %v18888_v52 }
 0x349   :  { %v3293_v15 = vcombine.low %v3237_v14, %v3269_v27  ;;  %v3294_v55 = vcombine.high %v3237_v14, %v3269_v27  ;;  %v19386_v6 = vcombine.low %v3244_v59, %v3276_v28  ;;  %v19388_v17 = vcombine.high %v3244_v59, %v3276_v28 }
 0x34b   :  { %16858 = vmatmul.mubr.msk.bf16.vlgmr.msra.gmra.mrb[32].mxu0 %vm3469_vm1, %v3449_v10  ;;  %16864 = vmatmul.mubr.msk.bf16.vlgmr.msra.gmra.mrb[40].mxu1 %vm3469_vm1, %v3450_v13  ;;  %v4431_v36 = vpack.c.bf16 %v3293_v15, %v3293_v15  ;;  %v4432_v12 = vpack.c.bf16 %v3294_v55, %v3294_v55 }
 0x34c   :  { %16868 = vmatpush3.bf16.xpose.msra.mxu0 %v4118_v57  ;;  %16874 = vmatpush3.bf16.xpose.msra.mxu1 %v4164_v58 }
 0x34d   :  { %16869 = vmatprep.mubr.msk.bf16.mxu0 %vm18513_vm0, %v22301_v25  ;;  %16875 = vmatprep.mubr.msk.bf16.mxu1 %vm18513_vm0, %v22301_v25  ;;  %v4452_v11 = vsel %vm4450_vm2, %v4431_v36, 0  ;;  %v4498_v29 = vsel %vm4450_vm2, %v4432_v12, 0 }
 0x34e   :  { %16879 = vmatprep.subr.bf16.mxu0 %v22301_v25  ;;  %16885 = vmatprep.subr.bf16.mxu1 %v22301_v25 }
 0x353   :  { %16870 = vmatmul.mubr.msk.bf16.vlgmr.msra.gmra.mrb[36].mxu0 %vm3469_vm1, %v3451_v8  ;;  %16876 = vmatmul.mubr.msk.bf16.vlgmr.msra.gmra.mrb[44].mxu1 %vm3469_vm1, %v3452_v16 }
 0x354   :  { %16880 = vmatpush3.bf16.msra.mxu0 %v4452_v11  ;;  %16886 = vmatpush3.bf16.msra.mxu1 %v4498_v29 }
 0x355   :  { %16881 = vmatprep.mubr.msk.bf16.mxu0 %vm18513_vm0, %v22301_v25  ;;  %16887 = vmatprep.mubr.msk.bf16.mxu1 %vm18513_vm0, %v22301_v25 }
 0x356   :  { %16891 = vmatprep.subr.bf16.mxu0 %v22301_v25  ;;  %16897 = vmatprep.subr.bf16.mxu1 %v22301_v25 }
 0x372   :  { %v3510_v48 = vpop.f32.mrb[8].mxu0  ;;  %v3556_v54 = vpop.f32.mrb[16].mxu1 }
 0x373   :  { %v4206_v18 = vmul.f32 0.125, %v3510_v48  ;;  %v4207_v21 = vmul.f32 0.125, %v3556_v54  ;;  %v16787_v22 = vpop.f32.mrb[9].mxu0  ;;  %v16793_v53 = vpop.f32.mrb[17].mxu1 }
 0x374   :  { %v3513_v60 = vpop.f32.mrb[10].mxu0  ;;  %v3559_v56 = vpop.f32.mrb[18].mxu1 }
 0x375   :  { %v16788_v38 = vpop.f32.mrb[11].mxu0  ;;  %v16794_v23 = vpop.f32.mrb[19].mxu1  ;;  %v19414_v44 = vadd.f32 %v4206_v18, %v2553_v40  ;;  %v19416_v31 = vadd.f32 %v4207_v21, %v2553_v40  ;;  %v2554_v56 = vld [vmem:[#allocation7 + $0x8] sm:$0xff] }
 0x377   :  { %v4239_v19 = vsel %vm4238_vm3, %v19414_v44, -inf  ;;  %v4242_v41 = vsel %vm4238_vm3, %v19416_v31, -inf }
 0x378   :  { %4240 = vmax.xlane.f32.xlu0 %v4239_v19  ;;  %4243 = vmax.xlane.f32.xlu1 %v4242_v41 }
 0x37a   :  { %v3602_v49 = vpop.f32.mrb[12].mxu0  ;;  %v3648_v50 = vpop.f32.mrb[20].mxu1 }
 0x37b   :  { %v4208_v26 = vmul.f32 0.125, %v3602_v49  ;;  %v4209_v0 = vmul.f32 0.125, %v3648_v50  ;;  %v16799_v63 = vpop.f32.mrb[13].mxu0  ;;  %v16805_v3 = vpop.f32.mrb[21].mxu1 }
 0x37c   :  { %v3605_v9 = vpop.f32.mrb[14].mxu0  ;;  %v3651_v45 = vpop.f32.mrb[22].mxu1 }
 0x37d   :  { %v16800_v46 = vpop.f32.mrb[15].mxu0  ;;  %v16806_v20 = vpop.f32.mrb[23].mxu1  ;;  %v19422_v37 = vadd.f32 %v4208_v26, %v2553_v40  ;;  %v19426_v34 = vadd.f32 %v4209_v0, %v2553_v40 }
 0x37f   :  { %v4245_v33 = vsel %vm4238_vm3, %v19422_v37, -inf  ;;  %v4248_v47 = vsel %vm4238_vm3, %v19426_v34, -inf }
 0x380   :  { %4246 = vmax.xlane.f32.xlu0 %v4245_v33 }
 0x384   :  { %4249 = vmax.xlane.f32.xlu0 %v4248_v47 }
 0x3fe   :  { %v3694_v42 = vpop.f32.mrb[16].mxu0  ;;  %v3740_v30 = vpop.f32.mrb[24].mxu1 }
 0x3ff   :  { %v4210_v4 = vmul.f32 0.125, %v3694_v42  ;;  %v4211_v35 = vmul.f32 0.125, %v3740_v30  ;;  %v16811_v24 = vpop.f32.mrb[17].mxu0  ;;  %v16817_v51 = vpop.f32.mrb[25].mxu1 }
 0x400   :  { %v3697_v32 = vpop.f32.mrb[18].mxu0  ;;  %v3743_v14 = vpop.f32.mrb[26].mxu1 }
 0x401   :  { %v16812_v59 = vpop.f32.mrb[19].mxu0  ;;  %v16818_v27 = vpop.f32.mrb[27].mxu1  ;;  %v19430_v28 = vadd.f32 %v4210_v4, %v2553_v40  ;;  %v19432_v10 = vadd.f32 %v4211_v35, %v2553_v40 }
 0x403   :  { %v4251_v13 = vsel %vm4238_vm3, %v19430_v28, -inf  ;;  %v4254_v15 = vsel %vm4238_vm3, %v19432_v10, -inf }
 0x404   :  { %4252 = vmax.xlane.f32.xlu1 %v4251_v13  ;;  %4255 = vmax.xlane.f32.xlu0 %v4254_v15 }
 0x406   :  { %v3786_v55 = vpop.f32.mrb[20].mxu0  ;;  %v3832_v57 = vpop.f32.mrb[28].mxu1 }
 0x407   :  { %v4212_v58 = vmul.f32 0.125, %v3786_v55  ;;  %v4213_v36 = vmul.f32 0.125, %v3832_v57  ;;  %v16823_v12 = vpop.f32.mrb[21].mxu0  ;;  %v16829_v8 = vpop.f32.mrb[29].mxu1 }
 0x408   :  { %v3789_v16 = vpop.f32.mrb[22].mxu0  ;;  %v3835_v11 = vpop.f32.mrb[30].mxu1 }
 0x409   :  { %v16824_v29 = vpop.f32.mrb[23].mxu0  ;;  %v16830_v48 = vpop.f32.mrb[31].mxu1  ;;  %v19438_v54 = vadd.f32 %v4212_v58, %v2553_v40  ;;  %v19440_v18 = vadd.f32 %v4213_v36, %v2553_v40 }
 0x40b   :  { %v4257_v21 = vsel %vm4238_vm3, %v19438_v54, -inf  ;;  %v4260_v22 = vsel %vm4238_vm3, %v19440_v18, -inf }
 0x40c   :  { %4258 = vmax.xlane.f32.xlu1 %v4257_v21  ;;  %4261 = vmax.xlane.f32.xlu0 %v4260_v22 }
 0x40e   :  { %v3878_v53 = vpop.f32.mrb[24].mxu0  ;;  %v3924_v60 = vpop.f32.mrb[32].mxu1 }
 0x40f   :  { %v4214_v38 = vmul.f32 0.125, %v3878_v53  ;;  %v4215_v23 = vmul.f32 0.125, %v3924_v60  ;;  %v16835_v19 = vpop.f32.mrb[25].mxu0  ;;  %v16841_v41 = vpop.f32.mrb[33].mxu1 }
 0x410   :  { %v3881_v49 = vpop.f32.mrb[26].mxu0  ;;  %v3927_v50 = vpop.f32.mrb[34].mxu1 }
 0x411   :  { %v16836_v26 = vpop.f32.mrb[27].mxu0  ;;  %v16842_v40 = vpop.f32.mrb[35].mxu1  ;;  %v19446_v0 = vadd.f32 %v4214_v38, %v2554_v56  ;;  %v19448_v63 = vadd.f32 %v4215_v23, %v2554_v56 }
 0x412   :  { %v4241_v40 = vpop.xlane.xlu0 %4240 }
 0x413   :  { %v4263_v3 = vsel %vm4238_vm3, %v19446_v0, -inf  ;;  %v4266_v9 = vsel %vm4238_vm3, %v19448_v63, -inf }
 0x414   :  { %4264 = vmax.xlane.f32.xlu1 %v4263_v3  ;;  %4267 = vmax.xlane.f32.xlu0 %v4266_v9  ;;  %v4244_v3 = vpop.xlane.xlu1 %4243  ;;  %v4287_v9 = vsub.f32 %v19414_v44, %v4241_v40 }
 0x416   :  { %v3970_v45 = vpop.f32.mrb[28].mxu0  ;;  %v4016_v46 = vpop.f32.mrb[36].mxu1 }
 0x417   :  { %v4216_v20 = vmul.f32 0.125, %v3970_v45  ;;  %v4217_v33 = vmul.f32 0.125, %v4016_v46  ;;  %v16847_v47 = vpop.f32.mrb[29].mxu0  ;;  %v16853_v42 = vpop.f32.mrb[37].mxu1  ;;  %v4288_v46 = vsub.f32 %v19416_v31, %v4244_v3 }
 0x418   :  { %v3973_v30 = vpop.f32.mrb[30].mxu0  ;;  %v4019_v4 = vpop.f32.mrb[38].mxu1 }
 0x419   :  { %v16848_v35 = vpop.f32.mrb[31].mxu0  ;;  %v16854_v24 = vpop.f32.mrb[39].mxu1  ;;  %v19454_v51 = vadd.f32 %v4216_v20, %v2554_v56  ;;  %v19456_v32 = vadd.f32 %v4217_v33, %v2554_v56  ;;  %v4303_v20 = vmul.f32 1.442695, %v4287_v9  ;;  %v4305_v33 = vmul.f32 1.442695, %v4288_v46 }
 0x41a   :  { %v4247_v45 = vpop.xlane.xlu0 %4246 }
 0x41b   :  { %v4269_v14 = vsel %vm4238_vm3, %v19454_v51, -inf  ;;  %v4272_v59 = vsel %vm4238_vm3, %v19456_v32, -inf  ;;  %18024 = vpow2.f32 %v4303_v20 }
 0x41c   :  { %4270 = vmax.xlane.f32.xlu1 %v4269_v14  ;;  %4273 = vmax.xlane.f32.xlu0 %v4272_v59  ;;  %18026 = vpow2.f32 %v4305_v33 }
 0x41e   :  { %v4062_v27 = vpop.f32.mrb[32].mxu0  ;;  %v4108_v13 = vpop.f32.mrb[40].mxu1 }
 0x41f   :  { %v4218_v15 = vmul.f32 0.125, %v4062_v27  ;;  %v4219_v55 = vmul.f32 0.125, %v4108_v13  ;;  %v16859_v57 = vpop.f32.mrb[33].mxu0  ;;  %v16865_v58 = vpop.f32.mrb[41].mxu1 }
 0x420   :  { %v4065_v36 = vpop.f32.mrb[34].mxu0  ;;  %v4111_v12 = vpop.f32.mrb[42].mxu1 }
 0x421   :  { %v16860_v8 = vpop.f32.mrb[35].mxu0  ;;  %v16866_v16 = vpop.f32.mrb[43].mxu1  ;;  %v19462_v11 = vadd.f32 %v4218_v15, %v2554_v56  ;;  %v19464_v29 = vadd.f32 %v4219_v55, %v2554_v56 }
 0x422   :  { %v4250_v47 = vpop.xlane.xlu0 %4249 }
 0x423   :  { %v4290_v42 = vsub.f32 %v19426_v34, %v4250_v47  ;;  %v4275_v34 = vsel %vm4238_vm3, %v19462_v11, -inf  ;;  %v4278_v14 = vsel %vm4238_vm3, %v19464_v29, -inf }
 0x425   :  { %v4309_v4 = vmul.f32 1.442695, %v4290_v42  ;;  %v19478_v35 = vpop.eup %18024 }
 0x426   :  { %v4154_v48 = vpop.f32.mrb[36].mxu0  ;;  %v4200_v21 = vpop.f32.mrb[44].mxu1  ;;  %v4335_v44 = vsel %vm4238_vm3, %v19478_v35, 0.0 }
 0x427   :  { %v4220_v22 = vmul.f32 0.125, %v4154_v48  ;;  %v4221_v53 = vmul.f32 0.125, %v4200_v21  ;;  %v16871_v60 = vpop.f32.mrb[37].mxu0  ;;  %v16877_v38 = vpop.f32.mrb[45].mxu1 }
 0x428   :  { %v4157_v23 = vpop.f32.mrb[38].mxu0  ;;  %v4203_v19 = vpop.f32.mrb[46].mxu1 }
 0x429   :  { %v16872_v41 = vpop.f32.mrb[39].mxu0  ;;  %v16878_v49 = vpop.f32.mrb[47].mxu1  ;;  %v19466_v50 = vadd.f32 %v4220_v22, %v2554_v56  ;;  %v19468_v26 = vadd.f32 %v4221_v53, %v2554_v56  ;;  %v4289_v56 = vsub.f32 %v19422_v37, %v4247_v45 }
 0x42a   :  { %v19480_v24 = vpop.eup %18026 }
 0x42b   :  { %v4307_v30 = vmul.f32 1.442695, %v4289_v56  ;;  %v4338_v31 = vsel %vm4238_vm3, %v19480_v24, 0.0  ;;  %v4281_v15 = vsel %vm4238_vm3, %v19466_v50, -inf  ;;  %v4284_v55 = vsel %vm4238_vm3, %v19468_v26, -inf }
 0x42d   :  { %2267 = vrot.lane.b32.xlu1 %v19000_v1, %s18511_s15  ;;  %18028 = vpow2.f32 %v4307_v30 }
 0x42e   :  { %18030 = vpow2.f32 %v4309_v4  ;;  %v22384_v4 = vcombine.low %v19000_v1, %v19002_v2 }
 0x432   :  { %2275 = vrot.lane.b32.xlu0 %v19002_v2, %s18511_s15 }
 0x437   :  { %v19486_v37 = vpop.eup %18028 }
 0x438   :  { %v19492_v59 = vpop.eup %18030  ;;  %v4341_v27 = vsel %vm4238_vm3, %v19486_v37, 0.0 }
 0x439   :  { %v4344_v13 = vsel %vm4238_vm3, %v19492_v59, 0.0 }
 0x451   :  { %4336 = vadd.xlane.f32.xlu1 %v4335_v44  ;;  %4339 = vadd.xlane.f32.xlu0 %v4338_v31  ;;  %v2321_v44 = vrot.slane %v22384_v4, %v18883_v43  ;;  %v22385_v31 = vcombine.high %v19000_v1, %v19002_v2 }
 0x455   :  { %4276 = vmax.xlane.f32.xlu1 %v4275_v34  ;;  %4279 = vmax.xlane.f32.xlu0 %v4278_v14  ;;  %v2328_v34 = vrot.slane %v22385_v31, %v18883_v43 }
 0x459   :  { %4342 = vadd.xlane.f32.xlu1 %v4341_v27  ;;  %4345 = vadd.xlane.f32.xlu0 %v4344_v13 }
 0x45d   :  { %4282 = vmax.xlane.f32.xlu1 %v4281_v15  ;;  %4285 = vmax.xlane.f32.xlu0 %v4284_v55 }
 0x491   :  { %v4253_v57 = vpop.xlane.xlu1 %4252  ;;  %v4256_v58 = vpop.xlane.xlu0 %4255 }
 0x492   :  { %v4291_v36 = vsub.f32 %v19430_v28, %v4253_v57  ;;  %v4292_v12 = vsub.f32 %v19432_v10, %v4256_v58 }
 0x494   :  { %v4311_v8 = vmul.f32 1.442695, %v4291_v36  ;;  %v4313_v16 = vmul.f32 1.442695, %v4292_v12 }
 0x496   :  { %18032 = vpow2.f32 %v4311_v8 }
 0x497   :  { %18034 = vpow2.f32 %v4313_v16 }
 0x499   :  { %v4259_v48 = vpop.xlane.xlu1 %4258  ;;  %v4262_v21 = vpop.xlane.xlu0 %4261 }
 0x49a   :  { %v4293_v22 = vsub.f32 %v19438_v54, %v4259_v48  ;;  %v4294_v53 = vsub.f32 %v19440_v18, %v4262_v21 }
 0x49c   :  { %v4315_v60 = vmul.f32 1.442695, %v4293_v22  ;;  %v4317_v38 = vmul.f32 1.442695, %v4294_v53 }
 0x49e   :  { %18036 = vpow2.f32 %v4315_v60 }
 0x49f   :  { %18038 = vpow2.f32 %v4317_v38 }
 0x4a0   :  { %v19506_v23 = vpop.eup %18032 }
 0x4a1   :  { %v19508_v19 = vpop.eup %18034  ;;  %v4265_v28 = vpop.xlane.xlu1 %4264  ;;  %v4347_v41 = vsel %vm4238_vm3, %v19506_v23, 0.0 }
 0x4a2   :  { %v4268_v10 = vpop.xlane.xlu0 %4267  ;;  %v4295_v49 = vsub.f32 %v19446_v0, %v4265_v28  ;;  %4348 = vadd.xlane.f32.xlu1 %v4347_v41  ;;  %v4350_v54 = vsel %vm4238_vm3, %v19508_v19, 0.0 }
 0x4a3   :  { %v4296_v40 = vsub.f32 %v19448_v63, %v4268_v10  ;;  %4351 = vadd.xlane.f32.xlu0 %v4350_v54 }
 0x4a4   :  { %v4319_v18 = vmul.f32 1.442695, %v4295_v49 }
 0x4a5   :  { %v4321_v3 = vmul.f32 1.442695, %v4296_v40 }
 0x4a6   :  { %18040 = vpow2.f32 %v4319_v18 }
 0x4a7   :  { %18042 = vpow2.f32 %v4321_v3 }
 0x4a8   :  { %v19516_v9 = vpop.eup %18036 }
 0x4a9   :  { %v19518_v45 = vpop.eup %18038  ;;  %v4271_v46 = vpop.xlane.xlu1 %4270  ;;  %v4353_v0 = vsel %vm4238_vm3, %v19516_v9, 0.0 }
 0x4aa   :  { %v4274_v20 = vpop.xlane.xlu0 %4273  ;;  %4354 = vadd.xlane.f32.xlu1 %v4353_v0  ;;  %v4356_v63 = vsel %vm4238_vm3, %v19518_v45, 0.0  ;;  %v4297_v4 = vsub.f32 %v19454_v51, %v4271_v46 }
 0x4ab   :  { %4357 = vadd.xlane.f32.xlu0 %v4356_v63 }
 0x4ac   :  { %v4323_v31 = vmul.f32 1.442695, %v4297_v4 }
 0x4ad   :  { %v2268_v33 = vpop.permute.xlu1 %2267 }
 0x4ae   :  { %v2276_v47 = vpop.permute.xlu0 %2275  ;;  %18044 = vpow2.f32 %v4323_v31 }
 0x4af   :  { %v2329_v56 = vcombine.low %v2268_v33, %v2276_v47  ;;  %v2330_v42 = vcombine.high %v2268_v33, %v2276_v47 }
 0x4b0   :  { %v19524_v30 = vpop.eup %18040 }
 0x4b1   :  { %v2337_v14 = vrot.slane %v2329_v56, %v18883_v43  ;;  %v2344_v27 = vrot.slane %v2330_v42, %v18883_v43  ;;  %v19536_v13 = vpop.eup %18042  ;;  %v4359_v15 = vsel %vm4238_vm3, %v19524_v30, 0.0 }
 0x4b2   :  { %4360 = vadd.xlane.f32.xlu1 %v4359_v15  ;;  %v4362_v12 = vsel %vm4238_vm3, %v19536_v13, 0.0 }
 0x4b3   :  { %v2377_v55 = vcombine.low %v2321_v44, %v2337_v14  ;;  %v2378_v57 = vcombine.high %v2321_v44, %v2337_v14  ;;  %v2393_v58 = vcombine.low %v2328_v34, %v2344_v27  ;;  %v2394_v36 = vcombine.high %v2328_v34, %v2344_v27  ;;  %4363 = vadd.xlane.f32.xlu0 %v4362_v12 }
 0x4b4   :  { %v4298_v44 = vsub.f32 %v19456_v32, %v4274_v20 }
 0x4b5   :  { %v2385_v1 = vrot.slane %v2377_v55, %v18888_v52  ;;  %v2392_v2 = vrot.slane %v2378_v57, %v18888_v52  ;;  %v2401_v8 = vrot.slane %v2393_v58, %v18888_v52  ;;  %v2408_v16 = vrot.slane %v2394_v36, %v18888_v52 }
 0x4b6   :  { %v4325_v34 = vmul.f32 1.442695, %v4298_v44 }
 0x4b7   :  { %v15984_v48 = vcombine.low %v2385_v1, %v2392_v2  ;;  %v15986_v21 = vcombine.high %v2385_v1, %v2392_v2  ;;  %v15988_v22 = vcombine.low %v2401_v8, %v2408_v16  ;;  %v15990_v53 = vcombine.high %v2401_v8, %v2408_v16 }
 0x4b8   :  { %18046 = vpow2.f32 %v4325_v34  ;;  %v19568_v57 = vpop.eup %18044  ;;  %v4433_v16 = vpack.c.bf16 %v19386_v6, %v19386_v6 }
 0x4b9   :  { %v3180_v60 = vrot.slane %v15984_v48, %v18883_v43  ;;  %v3196_v38 = vrot.slane %v15986_v21, %v18883_v43  ;;  %v3212_v28 = vrot.slane %v15988_v22, %v18883_v43  ;;  %v3228_v10 = vrot.slane %v15990_v53, %v18883_v43 }
 0x4ba   :  { %v4365_v20 = vsel %vm4238_vm3, %v19568_v57, 0.0  ;;  %v4434_v21 = vpack.c.bf16 %v19388_v17, %v19388_v17 }
 0x4bb   :  { %v3245_v41 = vcombine.low %v3180_v60, %v3196_v38  ;;  %v3277_v49 = vcombine.low %v3212_v28, %v3228_v10  ;;  %v3246_v40 = vcombine.high %v3180_v60, %v3196_v38  ;;  %v3278_v54 = vcombine.high %v3212_v28, %v3228_v10 }
 0x4bc   :  { %v4544_v60 = vsel %vm4450_vm2, %v4433_v16, 0 }
 0x4bd   :  { %v3253_v18 = vrot.slane %v3245_v41, %v18888_v52  ;;  %v3285_v3 = vrot.slane %v3277_v49, %v18888_v52  ;;  %v3260_v0 = vrot.slane %v3246_v40, %v18888_v52  ;;  %v3292_v63 = vrot.slane %v3278_v54, %v18888_v52 }
 0x4bf   :  { %v19554_v33 = vcombine.low %v3253_v18, %v3285_v3  ;;  %v19556_v47 = vcombine.high %v3253_v18, %v3285_v3  ;;  %v19558_v56 = vcombine.low %v3260_v0, %v3292_v63  ;;  %v19560_v42 = vcombine.high %v3260_v0, %v3292_v63 }
 0x4c1   :  { %v4435_v49 = vpack.c.bf16 %v19554_v33, %v19554_v33  ;;  %v4436_v54 = vpack.c.bf16 %v19556_v47, %v19556_v47 }
 0x4c2   :  { %v19572_v12 = vpop.eup %18046 }
 0x4c3   :  { %2253 = vrot.lane.b32.xlu1 %v18992_v61, %s18511_s15  ;;  %v4368_v2 = vsel %vm4238_vm3, %v19572_v12, 0.0  ;;  %v4636_v31 = vsel %vm4450_vm2, %v4435_v49, 0 }
 0x4c9   :  { %2261 = vrot.lane.b32.xlu0 %v18994_v62, %s18511_s15 }
 0x4de   :  { %v4337_v14 = vpop.xlane.xlu1 %4336  ;;  %v4340_v27 = vpop.xlane.xlu0 %4339 }
 0x4df   :  { %18048 = vrcp.f32 %v4337_v14 }
 0x4e0   :  { %18050 = vrcp.f32 %v4340_v27 }
 0x4e2   :  { %v4277_v15 = vpop.xlane.xlu1 %4276  ;;  %v4280_v55 = vpop.xlane.xlu0 %4279 }
 0x4e3   :  { %v4299_v58 = vsub.f32 %v19462_v11, %v4277_v15  ;;  %v4300_v36 = vsub.f32 %v19464_v29, %v4280_v55 }
 0x4e5   :  { %v4327_v51 = vmul.f32 1.442695, %v4299_v58  ;;  %v4329_v32 = vmul.f32 1.442695, %v4300_v36 }
 0x4e6   :  { %v4343_v46 = vpop.xlane.xlu1 %4342  ;;  %v4346_v1 = vpop.xlane.xlu0 %4345 }
 0x4e7   :  { %18052 = vpow2.f32 %v4327_v51  ;;  %4366 = vadd.xlane.f32.xlu1 %v4365_v20 }
 0x4e8   :  { %18054 = vpow2.f32 %v4329_v32  ;;  %4369 = vadd.xlane.f32.xlu0 %v4368_v2 }
 0x4e9   :  { %v18049_v8 = vpop.eup %18048  ;;  %18056 = vrcp.f32 %v4343_v46 }
 0x4ea   :  { %v18051_v11 = vpop.eup %18050  ;;  %v4399_v29 = vmul.f32 %v18049_v8, %v19478_v35  ;;  %18058 = vrcp.f32 %v4346_v1  ;;  %v4590_v35 = vsel %vm4450_vm2, %v4434_v21, 0 }
 0x4eb   :  { %v4400_v48 = vmul.f32 %v18051_v11, %v19480_v24 }
 0x4ec   :  { %v4415_v22 = vpack.c.bf16 %v4399_v29, %v4399_v29 }
 0x4ed   :  { %v4416_v53 = vpack.c.bf16 %v4400_v48, %v4400_v48 }
 0x4ee   :  { %16882 = vmatmul.mubr.msk.bf16.vlgmr.msra.gmra.mrb[40].mxu0 %vm4238_vm3, %v4415_v22 }
 0x4ef   :  { %16888 = vmatmul.mubr.msk.bf16.vlgmr.msra.gmra.mrb[48].mxu1 %vm4238_vm3, %v4416_v53  ;;  %16892 = vmatpush3.bf16.msra.mxu0 %v4544_v60 }
 0x4f0   :  { %16898 = vmatpush3.bf16.msra.mxu1 %v4590_v35  ;;  %16893 = vmatprep.mubr.msk.bf16.mxu0 %vm18513_vm0, %v22301_v25 }
 0x4f1   :  { %v19590_v6 = vpop.eup %18052  ;;  %16899 = vmatprep.mubr.msk.bf16.mxu1 %vm18513_vm0, %v22301_v25  ;;  %16903 = vmatprep.subr.bf16.mxu0 %v22301_v25 }
 0x4f2   :  { %v19595_v17 = vpop.eup %18054  ;;  %v4371_v24 = vsel %vm4238_vm3, %v19590_v6, 0.0  ;;  %16909 = vmatprep.subr.bf16.mxu1 %v22301_v25 }
 0x4f3   :  { %v18057_v38 = vpop.eup %18056  ;;  %4372 = vadd.xlane.f32.xlu1 %v4371_v24  ;;  %v4374_v28 = vsel %vm4238_vm3, %v19595_v17, 0.0 }
 0x4f4   :  { %v18059_v10 = vpop.eup %18058  ;;  %v4401_v41 = vmul.f32 %v18057_v38, %v19486_v37  ;;  %4375 = vadd.xlane.f32.xlu0 %v4374_v28 }
 0x4f5   :  { %v4402_v40 = vmul.f32 %v18059_v10, %v19492_v59  ;;  %v4682_v59 = vsel %vm4450_vm2, %v4436_v54, 0  ;;  %v4286_v54 = vpop.xlane.xlu0 %4285  ;;  %v6911_v10 = vld [vmem:[#allocation14 + $0x140] sm:$0xff] }
 0x4f6   :  { %v6245_v18 = vcombine.low %v4399_v29, %v4401_v41  ;;  %v6246_v3 = vcombine.high %v4399_v29, %v4401_v41  ;;  %v4417_v0 = vpack.c.bf16 %v4401_v41, %v4401_v41 }
 0x4f7   :  { %v6261_v63 = vcombine.low %v4400_v48, %v4402_v40  ;;  %v6262_v4 = vcombine.high %v4400_v48, %v4402_v40  ;;  %v4418_v44 = vpack.c.bf16 %v4402_v40, %v4402_v40  ;;  %v4283_v40 = vpop.xlane.xlu1 %4282 }
 0x4f8   :  { %16894 = vmatmul.mubr.msk.bf16.vlgmr.msra.gmra.mrb[44].mxu0 %vm4238_vm3, %v4417_v0  ;;  %v6253_v37 = vrot.slane %v6245_v18, %v18883_v43  ;;  %v6260_v34 = vrot.slane %v6246_v3, %v18883_v43  ;;  %v4301_v18 = vsub.f32 %v19466_v50, %v4283_v40  ;;  %v4302_v3 = vsub.f32 %v19468_v26, %v4286_v54 }
 0x4f9   :  { %16900 = vmatmul.mubr.msk.bf16.vlgmr.msra.gmra.mrb[52].mxu1 %vm4238_vm3, %v4418_v44  ;;  %16904 = vmatpush3.bf16.msra.mxu0 %v4636_v31  ;;  %v6269_v33 = vrot.slane %v6261_v63, %v18883_v43  ;;  %v6276_v47 = vrot.slane %v6262_v4, %v18883_v43 }
 0x4fa   :  { %16910 = vmatpush3.bf16.msra.mxu1 %v4682_v59  ;;  %16905 = vmatprep.mubr.msk.bf16.mxu0 %vm18513_vm0, %v22301_v25  ;;  %v4331_v0 = vmul.f32 1.442695, %v4301_v18  ;;  %v4333_v63 = vmul.f32 1.442695, %v4302_v3 }
 0x4fb   :  { %16911 = vmatprep.mubr.msk.bf16.mxu1 %vm18513_vm0, %v22301_v25  ;;  %16915 = vmatprep.subr.bf16.mxu0 %v22301_v25  ;;  %v6309_v14 = vcombine.low %v6253_v37, %v6269_v33  ;;  %v6310_v27 = vcombine.high %v6253_v37, %v6269_v33  ;;  %v6325_v15 = vcombine.low %v6260_v34, %v6276_v47 }
 0x4fc   :  { %16921 = vmatprep.subr.bf16.mxu1 %v22301_v25  ;;  %v6326_v55 = vcombine.high %v6260_v34, %v6276_v47  ;;  %18060 = vpow2.f32 %v4331_v0 }
 0x4fd   :  { %v6317_v58 = vrot.slane %v6309_v14, %v18888_v52  ;;  %v6324_v36 = vrot.slane %v6310_v27, %v18888_v52  ;;  %v6333_v51 = vrot.slane %v6325_v15, %v18888_v52  ;;  %18062 = vpow2.f32 %v4333_v63 }
 0x4fe   :  { %v6340_v32 = vrot.slane %v6326_v55, %v18888_v52  ;;  %v4437_v27 = vpack.c.bf16 %v19558_v56, %v19558_v56  ;;  %v4438_v55 = vpack.c.bf16 %v19560_v42, %v19560_v42 }
 0x4ff   :  { %v16111_v46 = vcombine.low %v6317_v58, %v6324_v36  ;;  %v16113_v20 = vcombine.high %v6317_v58, %v6324_v36 }
 0x500   :  { %v16115_v1 = vcombine.low %v6333_v51, %v6340_v32  ;;  %v16117_v2 = vcombine.high %v6333_v51, %v6340_v32  ;;  %v4728_v32 = vsel %vm4450_vm2, %v4437_v27, 0 }
 0x501   :  { %v6525_v8 = vrot.slane %v16111_v46, %v18883_v43  ;;  %v6541_v11 = vrot.slane %v16113_v20, %v18883_v43 }
 0x502   :  { %v6557_v29 = vrot.slane %v16115_v1, %v18883_v43  ;;  %v6573_v16 = vrot.slane %v16117_v2, %v18883_v43  ;;  %v22390_v2 = vcombine.low %v18992_v61, %v18994_v62 }
 0x503   :  { %v6581_v48 = vcombine.low %v6525_v8, %v6541_v11  ;;  %v6582_v21 = vcombine.high %v6525_v8, %v6541_v11 }
 0x504   :  { %2269 = vrot.lane.b32.xlu1 %v19008_v5, %s18511_s15  ;;  %v6613_v22 = vcombine.low %v6557_v29, %v6573_v16  ;;  %v6614_v53 = vcombine.high %v6557_v29, %v6573_v16  ;;  %v2425_v8 = vrot.slane %v22390_v2, %v18883_v43 }
 0x505   :  { %v19633_v60 = vrot.slane %v6581_v48, %v18888_v52  ;;  %v19636_v35 = vrot.slane %v6582_v21, %v18888_v52 }
 0x506   :  { %v19639_v24 = vrot.slane %v6613_v22, %v18888_v52  ;;  %v19642_v38 = vrot.slane %v6614_v53, %v18888_v52  ;;  %v19656_v4 = vpop.eup %18060 }
 0x507   :  { %22386 = vst [vmem:[#allocation33_spill] sm:$0xff] %v19633_v60  ;;  %22387 = vst [vmem:[#allocation34_spill] sm:$0xff] %v19636_v35  ;;  %v19658_v44 = vpop.eup %18062  ;;  %v4377_v31 = vsel %vm4238_vm3, %v19656_v4, 0.0 }
 0x508   :  { %22388 = vst [vmem:[#allocation35_spill] sm:$0xff] %v19639_v24  ;;  %22389 = vst [vmem:[#allocation36_spill] sm:$0xff] %v19642_v38  ;;  %v4380_v37 = vsel %vm4238_vm3, %v19658_v44, 0.0 }
 0x50a   :  { %2277 = vrot.lane.b32.xlu0 %v19010_v7, %s18511_s15 }
 0x528   :  { %4378 = vadd.xlane.f32.xlu1 %v4377_v31 }
 0x529   :  { %4381 = vadd.xlane.f32.xlu0 %v4380_v37 }
 0x52f   :  { %v4349_v34 = vpop.xlane.xlu1 %4348 }
 0x530   :  { %18064 = vrcp.f32 %v4349_v34  ;;  %v4352_v50 = vpop.xlane.xlu0 %4351 }
 0x531   :  { %18066 = vrcp.f32 %v4352_v50 }
 0x537   :  { %v4355_v26 = vpop.xlane.xlu1 %4354 }
 0x538   :  { %18068 = vrcp.f32 %v4355_v26  ;;  %v4358_v59 = vpop.xlane.xlu0 %4357 }
 0x539   :  { %18070 = vrcp.f32 %v4358_v59 }
 0x53a   :  { %v18065_v33 = vpop.eup %18064 }
 0x53b   :  { %v18067_v47 = vpop.eup %18066  ;;  %v4403_v14 = vmul.f32 %v18065_v33, %v19506_v23  ;;  %v4774_v23 = vsel %vm4450_vm2, %v4438_v55, 0 }
 0x53c   :  { %v4404_v15 = vmul.f32 %v18067_v47, %v19508_v19 }
 0x53d   :  { %v4419_v58 = vpack.c.bf16 %v4403_v14, %v4403_v14 }
 0x53e   :  { %v4420_v36 = vpack.c.bf16 %v4404_v15, %v4404_v15 }
 0x53f   :  { %v4361_v51 = vpop.xlane.xlu1 %4360  ;;  %16906 = vmatmul.mubr.msk.bf16.vlgmr.msra.gmra.mrb[48].mxu0 %vm4238_vm3, %v4419_v58 }
 0x540   :  { %16912 = vmatmul.mubr.msk.bf16.vlgmr.msra.gmra.mrb[56].mxu1 %vm4238_vm3, %v4420_v36  ;;  %16916 = vmatpush3.bf16.msra.mxu0 %v4728_v32  ;;  %v4364_v46 = vpop.xlane.xlu0 %4363  ;;  %18072 = vrcp.f32 %v4361_v51 }
 0x541   :  { %16922 = vmatpush3.bf16.msra.mxu1 %v4774_v23  ;;  %16917 = vmatprep.mubr.msk.bf16.mxu0 %vm18513_vm0, %v22301_v25  ;;  %18074 = vrcp.f32 %v4364_v46 }
 0x542   :  { %v18069_v19 = vpop.eup %18068  ;;  %16923 = vmatprep.mubr.msk.bf16.mxu1 %vm18513_vm0, %v22301_v25  ;;  %16927 = vmatprep.subr.bf16.mxu0 %v22301_v25 }
 0x543   :  { %v18071_v56 = vpop.eup %18070  ;;  %v4405_v42 = vmul.f32 %v18069_v19, %v19516_v9  ;;  %v2254_v20 = vpop.permute.xlu1 %2253  ;;  %16933 = vmatprep.subr.bf16.mxu1 %v22301_v25  ;;  %v22391_v9 = vcombine.high %v18992_v61, %v18994_v62 }
 0x544   :  { %v4406_v1 = vmul.f32 %v18071_v56, %v19518_v45  ;;  %v2262_v16 = vpop.permute.xlu0 %2261 }
 0x545   :  { %v6277_v11 = vcombine.low %v4403_v14, %v4405_v42  ;;  %v6278_v29 = vcombine.high %v4403_v14, %v4405_v42  ;;  %v4421_v48 = vpack.c.bf16 %v4405_v42, %v4405_v42  ;;  %v2433_v53 = vcombine.low %v2254_v20, %v2262_v16 }
 0x546   :  { %v6293_v21 = vcombine.low %v4404_v15, %v4406_v1  ;;  %v6294_v22 = vcombine.high %v4404_v15, %v4406_v1  ;;  %v2434_v40 = vcombine.high %v2254_v20, %v2262_v16  ;;  %v2432_v54 = vrot.slane %v22391_v9, %v18883_v43 }
 0x547   :  { %16918 = vmatmul.mubr.msk.bf16.vlgmr.msra.gmra.mrb[52].mxu0 %vm4238_vm3, %v4421_v48  ;;  %v4422_v45 = vpack.c.bf16 %v4406_v1, %v4406_v1  ;;  %v6285_v18 = vrot.slane %v6277_v11, %v18883_v43  ;;  %v6292_v3 = vrot.slane %v6278_v29, %v18883_v43  ;;  %v2441_v0 = vrot.slane %v2433_v53, %v18883_v43 }
 0x548   :  { %v2448_v63 = vrot.slane %v2434_v40, %v18883_v43  ;;  %16929 = vmatprep.mubr.msk.bf16.mxu0 %vm18513_vm0, %v22301_v25  ;;  %v6301_v31 = vrot.slane %v6293_v21, %v18883_v43  ;;  %v6308_v37 = vrot.slane %v6294_v22, %v18883_v43 }
 0x549   :  { %16924 = vmatmul.mubr.msk.bf16.vlgmr.msra.gmra.mrb[60].mxu1 %vm4238_vm3, %v4422_v45  ;;  %v2481_v61 = vcombine.low %v2425_v8, %v2441_v0  ;;  %v2482_v62 = vcombine.high %v2425_v8, %v2441_v0 }
 0x54a   :  { %v2497_v34 = vcombine.low %v2432_v54, %v2448_v63  ;;  %v2498_v50 = vcombine.high %v2432_v54, %v2448_v63  ;;  %16935 = vmatprep.mubr.msk.bf16.mxu1 %vm18513_vm0, %v22301_v25  ;;  %v6341_v26 = vcombine.low %v6285_v18, %v6301_v31  ;;  %v6342_v59 = vcombine.high %v6285_v18, %v6301_v31  ;;  %v18073_v53 = vpop.eup %18072 }
 0x54b   :  { %v6357_v33 = vcombine.low %v6292_v3, %v6308_v37  ;;  %v2489_v47 = vrot.slane %v2481_v61, %v18888_v52  ;;  %v2496_v14 = vrot.slane %v2482_v62, %v18888_v52  ;;  %v6358_v46 = vcombine.high %v6292_v3, %v6308_v37  ;;  %v18075_v63 = vpop.eup %18074 }
 0x54c   :  { %v2505_v27 = vrot.slane %v2497_v34, %v18888_v52  ;;  %v2512_v15 = vrot.slane %v2498_v50, %v18888_v52  ;;  %v6349_v55 = vrot.slane %v6341_v26, %v18888_v52  ;;  %v6356_v58 = vrot.slane %v6342_v59, %v18888_v52 }
 0x54d   :  { %v15991_v36 = vcombine.low %v2489_v47, %v2496_v14  ;;  %v15993_v51 = vcombine.high %v2489_v47, %v2496_v14  ;;  %v6365_v19 = vrot.slane %v6357_v33, %v18888_v52  ;;  %v6372_v8 = vrot.slane %v6358_v46, %v18888_v52 }
 0x54e   :  { %v15995_v32 = vcombine.low %v2505_v27, %v2512_v15  ;;  %v15997_v23 = vcombine.high %v2505_v27, %v2512_v15  ;;  %v16112_v56 = vcombine.low %v6349_v55, %v6356_v58  ;;  %v16114_v29 = vcombine.high %v6349_v55, %v6356_v58 }
 0x54f   :  { %v3309_v42 = vrot.slane %v15991_v36, %v18883_v43  ;;  %v3325_v20 = vrot.slane %v15993_v51, %v18883_v43  ;;  %v16116_v9 = vcombine.low %v6365_v19, %v6372_v8  ;;  %v16118_v54 = vcombine.high %v6365_v19, %v6372_v8 }
 0x550   :  { %v3341_v1 = vrot.slane %v15995_v32, %v18883_v43  ;;  %v3357_v2 = vrot.slane %v15997_v23, %v18883_v43  ;;  %v6532_v11 = vrot.slane %v16112_v56, %v18883_v43  ;;  %v6548_v40 = vrot.slane %v16114_v29, %v18883_v43 }
 0x551   :  { %v3365_v16 = vcombine.low %v3309_v42, %v3325_v20  ;;  %v3366_v21 = vcombine.high %v3309_v42, %v3325_v20  ;;  %v6564_v31 = vrot.slane %v16116_v9, %v18883_v43  ;;  %v6580_v37 = vrot.slane %v16118_v54, %v18883_v43 }
 0x552   :  { %v3397_v48 = vcombine.low %v3341_v1, %v3357_v2  ;;  %v3398_v22 = vcombine.high %v3341_v1, %v3357_v2  ;;  %v6597_v61 = vcombine.low %v6532_v11, %v6548_v40  ;;  %v6598_v62 = vcombine.high %v6532_v11, %v6548_v40  ;;  %v17559_v2 = vld [vmem:[#allocation11 + $0x50] ss:$8 sps:$4 sm:$0xff]  }
 0x553   :  { %v3373_v45 = vrot.slane %v3365_v16, %v18888_v52  ;;  %v3380_v3 = vrot.slane %v3366_v21, %v18888_v52  ;;  %v6629_v47 = vcombine.low %v6564_v31, %v6580_v37  ;;  %v6630_v27 = vcombine.high %v6564_v31, %v6580_v37 }
 0x554   :  { %v3405_v18 = vrot.slane %v3397_v48, %v18888_v52  ;;  %v3412_v0 = vrot.slane %v3398_v22, %v18888_v52  ;;  %v19723_v33 = vrot.slane %v6597_v61, %v18888_v52  ;;  %v19726_v14 = vrot.slane %v6598_v62, %v18888_v52 }
 0x555   :  { %v4407_v15 = vmul.f32 %v18073_v53, %v19524_v30  ;;  %v4408_v55 = vmul.f32 %v18075_v63, %v19536_v13  ;;  %v19731_v51 = vrot.slane %v6629_v47, %v18888_v52  ;;  %v19734_v32 = vrot.slane %v6630_v27, %v18888_v52  ;;  %v17586_v13 = vld [vmem:[#allocation11 + $0xe0] ss:$8 sps:$4 sm:$0xff]  }
 0x556   :  { %v3429_v34 = vcombine.low %v3373_v45, %v3405_v18  ;;  %v3430_v50 = vcombine.high %v3373_v45, %v3405_v18  ;;  %v3431_v26 = vcombine.low %v3380_v3, %v3412_v0  ;;  %v3432_v59 = vcombine.high %v3380_v3, %v3412_v0  ;;  %22392 = vst [vmem:[#allocation37_spill] sm:$0xff] %v19723_v33 }
 0x557   :  { %22393 = vst [vmem:[#allocation38_spill] sm:$0xff] %v19726_v14  ;;  %22394 = vst [vmem:[#allocation39_spill] sm:$0xff] %v19731_v51  ;;  %v4423_v20 = vpack.c.bf16 %v4407_v15, %v4407_v15  ;;  %v4424_v1 = vpack.c.bf16 %v4408_v55, %v4408_v55 }
 0x558   :  { %v4439_v58 = vpack.c.bf16 %v3429_v34, %v3429_v34  ;;  %v4440_v36 = vpack.c.bf16 %v3430_v50, %v3430_v50  ;;  %22395 = vst [vmem:[#allocation40_spill] sm:$0xff] %v19734_v32  ;;  %v4441_v19 = vpack.c.bf16 %v3431_v26, %v3431_v26  ;;  %v4442_v56 = vpack.c.bf16 %v3432_v59, %v3432_v59 }
 0x559   :  { %v22396_v50 = vcombine.low %v19008_v5, %v19010_v7  ;;  %v22397_v59 = vcombine.high %v19008_v5, %v19010_v7 }
 0x55a   :  { %v4820_v23 = vsel %vm4450_vm2, %v4439_v58, 0  ;;  %v4866_v46 = vsel %vm4450_vm2, %v4440_v36, 0  ;;  %v4912_v8 = vsel %vm4450_vm2, %v4441_v19, 0  ;;  %v4958_v11 = vsel %vm4450_vm2, %v4442_v56, 0 }
 0x55b   :  { %16928 = vmatpush3.bf16.msra.mxu0 %v4820_v23  ;;  %16934 = vmatpush3.bf16.msra.mxu1 %v4866_v46  ;;  %v2457_v26 = vrot.slane %v22396_v50, %v18883_v43  ;;  %v2464_v47 = vrot.slane %v22397_v59, %v18883_v43 }
 0x55c   :  { %16939 = vmatprep.subr.bf16.mxu0 %v22301_v25  ;;  %16945 = vmatprep.subr.bf16.mxu1 %v22301_v25 }
 0x55e   :  { %16930 = vmatmul.mubr.msk.bf16.vlgmr.msra.gmra.mrb[56].mxu0 %vm4238_vm3, %v4423_v20  ;;  %16936 = vmatmul.mubr.msk.bf16.vlgmr.msra.gmra.mrb[64].mxu1 %vm4238_vm3, %v4424_v1 }
 0x55f   :  { %16940 = vmatpush3.bf16.msra.mxu0 %v4912_v8  ;;  %16946 = vmatpush3.bf16.msra.mxu1 %v4958_v11 }
 0x560   :  { %16941 = vmatprep.mubr.msk.bf16.mxu0 %vm18513_vm0, %v22301_v25  ;;  %16947 = vmatprep.mubr.msk.bf16.mxu1 %vm18513_vm0, %v22301_v25 }
 0x561   :  { %16951 = vmatprep.subr.bf16.mxu0 %v22301_v25  ;;  %16957 = vmatprep.subr.bf16.mxu1 %v22301_v25 }
 0x574   :  { %v4367_v29 = vpop.xlane.xlu1 %4366 }
 0x575   :  { %18076 = vrcp.f32 %v4367_v29  ;;  %v4370_v16 = vpop.xlane.xlu0 %4369 }
 0x576   :  { %18078 = vrcp.f32 %v4370_v16 }
 0x57f   :  { %v18077_v48 = vpop.eup %18076 }
 0x580   :  { %v4409_v21 = vmul.f32 %v18077_v48, %v19568_v57  ;;  %v4373_v22 = vpop.xlane.xlu1 %4372  ;;  %v18079_v53 = vpop.eup %18078 }
 0x581   :  { %v4376_v40 = vpop.xlane.xlu0 %4375  ;;  %v4410_v45 = vmul.f32 %v18079_v53, %v19572_v12  ;;  %18080 = vrcp.f32 %v4373_v22 }
 0x582   :  { %v6381_v9 = vcombine.low %v4407_v15, %v4409_v21  ;;  %v6382_v54 = vcombine.high %v4407_v15, %v4409_v21  ;;  %v4425_v18 = vpack.c.bf16 %v4409_v21, %v4409_v21  ;;  %18082 = vrcp.f32 %v4376_v40 }
 0x583   :  { %v6397_v3 = vcombine.low %v4408_v55, %v4410_v45  ;;  %v6398_v0 = vcombine.high %v4408_v55, %v4410_v45  ;;  %v4426_v31 = vpack.c.bf16 %v4410_v45, %v4410_v45 }
 0x584   :  { %v2270_v63 = vpop.permute.xlu1 %2269  ;;  %v6389_v37 = vrot.slane %v6381_v9, %v18883_v43  ;;  %16942 = vmatmul.mubr.msk.bf16.vlgmr.msra.gmra.mrb[60].mxu0 %vm4238_vm3, %v4425_v18  ;;  %v6396_v62 = vrot.slane %v6382_v54, %v18883_v43 }
 0x585   :  { %v2278_v61 = vpop.permute.xlu0 %2277  ;;  %16948 = vmatmul.mubr.msk.bf16.vlgmr.msra.gmra.mrb[68].mxu1 %vm4238_vm3, %v4426_v31  ;;  %16953 = vmatprep.mubr.msk.bf16.mxu0 %vm18513_vm0, %v22301_v25  ;;  %v6405_v12 = vrot.slane %v6397_v3, %v18883_v43  ;;  %v6412_v27 = vrot.slane %v6398_v0, %v18883_v43 }
 0x586   :  { %v2465_v57 = vcombine.low %v2270_v63, %v2278_v61  ;;  %v2466_v34 = vcombine.high %v2270_v63, %v2278_v61  ;;  %16959 = vmatprep.mubr.msk.bf16.mxu1 %vm18513_vm0, %v22301_v25 }
 0x587   :  { %v6445_v58 = vcombine.low %v6389_v37, %v6405_v12  ;;  %v6446_v36 = vcombine.high %v6389_v37, %v6405_v12  ;;  %v6461_v23 = vcombine.low %v6396_v62, %v6412_v27  ;;  %v6462_v46 = vcombine.high %v6396_v62, %v6412_v27 }
 0x588   :  { %v2473_v15 = vrot.slane %v2465_v57, %v18883_v43  ;;  %v2480_v55 = vrot.slane %v2466_v34, %v18883_v43 }
 0x589   :  { %v6453_v5 = vrot.slane %v6445_v58, %v18888_v52  ;;  %v6460_v7 = vrot.slane %v6446_v36, %v18888_v52  ;;  %v6469_v8 = vrot.slane %v6461_v23, %v18888_v52  ;;  %v6476_v11 = vrot.slane %v6462_v46, %v18888_v52 }
 0x58a   :  { %v2513_v19 = vcombine.low %v2457_v26, %v2473_v15  ;;  %v2514_v56 = vcombine.high %v2457_v26, %v2473_v15  ;;  %v2529_v20 = vcombine.low %v2464_v47, %v2480_v55  ;;  %v2530_v1 = vcombine.high %v2464_v47, %v2480_v55 }
 0x58b   :  { %v16119_v22 = vcombine.low %v6453_v5, %v6460_v7  ;;  %v16121_v53 = vcombine.high %v6453_v5, %v6460_v7  ;;  %v16123_v45 = vcombine.low %v6469_v8, %v6476_v11  ;;  %v16125_v57 = vcombine.high %v6469_v8, %v6476_v11  ;;  %v18081_v59 = vpop.eup %18080 }
 0x58c   :  { %v2521_v29 = vrot.slane %v2513_v19, %v18888_v52  ;;  %v2528_v16 = vrot.slane %v2514_v56, %v18888_v52  ;;  %v2537_v48 = vrot.slane %v2529_v20, %v18888_v52  ;;  %v2544_v21 = vrot.slane %v2530_v1, %v18888_v52  ;;  %v18083_v56 = vpop.eup %18082 }
 0x58d   :  { %v6661_v0 = vrot.slane %v16119_v22, %v18883_v43  ;;  %v6677_v31 = vrot.slane %v16121_v53, %v18883_v43  ;;  %v6693_v62 = vrot.slane %v16123_v45, %v18883_v43  ;;  %v6709_v15 = vrot.slane %v16125_v57, %v18883_v43 }
 0x58e   :  { %v15992_v9 = vcombine.low %v2521_v29, %v2528_v16  ;;  %v15994_v54 = vcombine.high %v2521_v29, %v2528_v16  ;;  %v15996_v18 = vcombine.low %v2537_v48, %v2544_v21  ;;  %v15998_v3 = vcombine.high %v2537_v48, %v2544_v21 }
 0x58f   :  { %v6718_v50 = vcombine.high %v6661_v0, %v6677_v31  ;;  %v6717_v26 = vcombine.low %v6661_v0, %v6677_v31  ;;  %v6750_v46 = vcombine.high %v6693_v62, %v6709_v15  ;;  %v6749_v19 = vcombine.low %v6693_v62, %v6709_v15 }
 0x590   :  { %v3316_v63 = vrot.slane %v15992_v9, %v18883_v43  ;;  %v3332_v40 = vrot.slane %v15994_v54, %v18883_v43  ;;  %v3348_v37 = vrot.slane %v15996_v18, %v18883_v43  ;;  %v3364_v61 = vrot.slane %v15998_v3, %v18883_v43  ;;  %v17561_v18 = vld [vmem:[#allocation11 + $0x54] ss:$8 sps:$4 sm:$0xff]   ;;  %v6903_v9 = vld [vmem:[#allocation14 + $0x100] sm:$0xff] }
 0x591   :  { %v19801_v20 = vrot.slane %v6718_v50, %v18888_v52  ;;  %v19804_v1 = vrot.slane %v6717_v26, %v18888_v52  ;;  %v19807_v29 = vrot.slane %v6750_v46, %v18888_v52  ;;  %v19810_v16 = vrot.slane %v6749_v19, %v18888_v52 }
 0x592   :  { %v3381_v34 = vcombine.low %v3316_v63, %v3332_v40  ;;  %v3382_v12 = vcombine.high %v3316_v63, %v3332_v40  ;;  %v3413_v47 = vcombine.low %v3348_v37, %v3364_v61  ;;  %v3414_v27 = vcombine.high %v3348_v37, %v3364_v61 }
 0x593   :  { %22398 = vst [vmem:[#allocation41_spill] sm:$0xff] %v19801_v20  ;;  %22399 = vst [vmem:[#allocation42_spill] sm:$0xff] %v19804_v1  ;;  %v4411_v48 = vmul.f32 %v18081_v59, %v19590_v6  ;;  %v4412_v21 = vmul.f32 %v18083_v56, %v19595_v17 }
 0x594   :  { %v3389_v55 = vrot.slane %v3381_v34, %v18888_v52  ;;  %v3396_v58 = vrot.slane %v3382_v12, %v18888_v52  ;;  %v3421_v36 = vrot.slane %v3413_v47, %v18888_v52  ;;  %v3428_v23 = vrot.slane %v3414_v27, %v18888_v52  ;;  %22400 = vst [vmem:[#allocation43_spill] sm:$0xff] %v19807_v29 }
 0x595   :  { %22401 = vst [vmem:[#allocation44_spill] sm:$0xff] %v19810_v16  ;;  %v4427_v63 = vpack.c.bf16 %v4411_v48, %v4411_v48  ;;  %v4428_v40 = vpack.c.bf16 %v4412_v21, %v4412_v21 }
 0x596   :  { %v3433_v5 = vcombine.low %v3389_v55, %v3421_v36  ;;  %v3434_v7 = vcombine.high %v3389_v55, %v3421_v36  ;;  %v3435_v8 = vcombine.low %v3396_v58, %v3428_v23  ;;  %v3436_v11 = vcombine.high %v3396_v58, %v3428_v23 }
 0x598   :  { %v4443_v22 = vpack.c.bf16 %v3433_v5, %v3433_v5  ;;  %v4444_v53 = vpack.c.bf16 %v3434_v7, %v3434_v7  ;;  %v4445_v0 = vpack.c.bf16 %v3435_v8, %v3435_v8  ;;  %v4446_v17 = vpack.c.bf16 %v3436_v11, %v3436_v11 }
 0x59a   :  { %v5004_v3 = vsel %vm4450_vm2, %v4443_v22, 0  ;;  %v5050_v6 = vsel %vm4450_vm2, %v4444_v53, 0  ;;  %v5096_v31 = vsel %vm4450_vm2, %v4445_v0, 0  ;;  %v5142_v37 = vsel %vm4450_vm2, %v4446_v17, 0 }
 0x59b   :  { %16952 = vmatpush3.bf16.msra.mxu0 %v5004_v3  ;;  %16958 = vmatpush3.bf16.msra.mxu1 %v5050_v6 }
 0x59c   :  { %16963 = vmatprep.subr.bf16.mxu0 %v22301_v25  ;;  %16969 = vmatprep.subr.bf16.mxu1 %v22301_v25 }
 0x59e   :  { %16954 = vmatmul.mubr.msk.bf16.vlgmr.msra.gmra.mrb[64].mxu0 %vm4238_vm3, %v4427_v63  ;;  %16960 = vmatmul.mubr.msk.bf16.vlgmr.msra.gmra.mrb[72].mxu1 %vm4238_vm3, %v4428_v40 }
 0x59f   :  { %16964 = vmatpush3.bf16.msra.mxu0 %v5096_v31  ;;  %16970 = vmatpush3.bf16.msra.mxu1 %v5142_v37 }
 0x5a0   :  { %16965 = vmatprep.mubr.msk.bf16.mxu0 %vm18513_vm0, %v22301_v25  ;;  %16971 = vmatprep.mubr.msk.bf16.mxu1 %vm18513_vm0, %v22301_v25 }
 0x5b5   :  { %v4379_v61 = vpop.xlane.xlu1 %4378 }
 0x5b6   :  { %18084 = vrcp.f32 %v4379_v61  ;;  %v4382_v62 = vpop.xlane.xlu0 %4381 }
 0x5b7   :  { %18086 = vrcp.f32 %v4382_v62 }
 0x5c0   :  { %v18085_v57 = vpop.eup %18084 }
 0x5c1   :  { %v18087_v34 = vpop.eup %18086  ;;  %v4413_v12 = vmul.f32 %v18085_v57, %v19656_v4  ;;  %v4488_v50 = vpop.f32.mrb[40].mxu0 }
 0x5c2   :  { %v4414_v26 = vmul.f32 %v18087_v34, %v19658_v44  ;;  %v4534_v59 = vpop.f32.mrb[48].mxu1  ;;  %v16883_v47 = vpop.f32.mrb[41].mxu0 }
 0x5c3   :  { %v6413_v27 = vcombine.low %v4411_v48, %v4413_v12  ;;  %v6414_v15 = vcombine.high %v4411_v48, %v4413_v12  ;;  %v16889_v55 = vpop.f32.mrb[49].mxu1  ;;  %v4491_v58 = vpop.f32.mrb[42].mxu0  ;;  %v4429_v36 = vpack.c.bf16 %v4413_v12, %v4413_v12 }
 0x5c4   :  { %v6429_v23 = vcombine.low %v4412_v21, %v4414_v26  ;;  %v6430_v46 = vcombine.high %v4412_v21, %v4414_v26  ;;  %v4537_v19 = vpop.f32.mrb[50].mxu1  ;;  %v16884_v56 = vpop.f32.mrb[43].mxu0  ;;  %v4430_v5 = vpack.c.bf16 %v4414_v26, %v4414_v26 }
 0x5c5   :  { %v16890_v7 = vpop.f32.mrb[51].mxu1  ;;  %16966 = vmatmul.mubr.msk.bf16.vlgmr.msra.gmra.mrb[68].mxu0 %vm4238_vm3, %v4429_v36  ;;  %v6421_v4 = vrot.slane %v6413_v27, %v18883_v43  ;;  %v6428_v8 = vrot.slane %v6414_v15, %v18883_v43 }
 0x5c6   :  { %16972 = vmatmul.mubr.msk.bf16.vlgmr.msra.gmra.mrb[76].mxu1 %vm4238_vm3, %v4430_v5  ;;  %v6437_v44 = vrot.slane %v6429_v23, %v18883_v43  ;;  %v6444_v11 = vrot.slane %v6430_v46, %v18883_v43 }
 0x5c8   :  { %v6477_v48 = vcombine.low %v6421_v4, %v6437_v44  ;;  %v6478_v22 = vcombine.high %v6421_v4, %v6437_v44  ;;  %v6493_v53 = vcombine.low %v6428_v8, %v6444_v11  ;;  %v6494_v21 = vcombine.high %v6428_v8, %v6444_v11 }
 0x5ca   :  { %v6485_v3 = vrot.slane %v6477_v48, %v18888_v52  ;;  %v6492_v6 = vrot.slane %v6478_v22, %v18888_v52  ;;  %v6501_v0 = vrot.slane %v6493_v53, %v18888_v52  ;;  %v6508_v17 = vrot.slane %v6494_v21, %v18888_v52 }
 0x5cb   :  { %v4580_v63 = vpop.f32.mrb[44].mxu0 }
 0x5cc   :  { %v5184_v40 = vcombine.low %v4488_v50, %v4580_v63  ;;  %v5185_v31 = vcombine.high %v4488_v50, %v4580_v63  ;;  %v4626_v37 = vpop.f32.mrb[52].mxu1  ;;  %v16895_v61 = vpop.f32.mrb[45].mxu0  ;;  %v16120_v62 = vcombine.low %v6485_v3, %v6492_v6  ;;  %v16122_v57 = vcombine.high %v6485_v3, %v6492_v6 }
 0x5cd   :  { %v5200_v34 = vcombine.low %v4534_v59, %v4626_v37  ;;  %v5201_v12 = vcombine.high %v4534_v59, %v4626_v37  ;;  %v16901_v26 = vpop.f32.mrb[53].mxu1  ;;  %v4583_v47 = vpop.f32.mrb[46].mxu0  ;;  %v16124_v27 = vcombine.low %v6501_v0, %v6508_v17  ;;  %v16126_v15 = vcombine.high %v6501_v0, %v6508_v17 }
 0x5ce   :  { %v5192_v55 = vrot.slane %v5184_v40, %v18883_v43  ;;  %v5199_v58 = vrot.slane %v5185_v31, %v18883_v43  ;;  %v4629_v36 = vpop.f32.mrb[54].mxu1  ;;  %v16896_v23 = vpop.f32.mrb[47].mxu0  ;;  %v6668_v46 = vrot.slane %v16120_v62, %v18883_v43  ;;  %v6684_v50 = vrot.slane %v16122_v57, %v18883_v43 }
 0x5cf   :  { %v5208_v19 = vrot.slane %v5200_v34, %v18883_v43  ;;  %v5215_v56 = vrot.slane %v5201_v12, %v18883_v43  ;;  %v16902_v5 = vpop.f32.mrb[55].mxu1  ;;  %v6700_v59 = vrot.slane %v16124_v27, %v18883_v43  ;;  %v6716_v7 = vrot.slane %v16126_v15, %v18883_v43  ;;  %v17567_v27 = vld [vmem:[#allocation11 + $0x74] ss:$8 sps:$4 sm:$0xff]  }
 0x5d0   :  { %v6733_v4 = vcombine.low %v6668_v46, %v6684_v50  ;;  %v6734_v8 = vcombine.high %v6668_v46, %v6684_v50 }
 0x5d1   :  { %v5248_v44 = vcombine.low %v5192_v55, %v5208_v19  ;;  %v5249_v11 = vcombine.high %v5192_v55, %v5208_v19  ;;  %v5264_v48 = vcombine.low %v5199_v58, %v5215_v56  ;;  %v5265_v22 = vcombine.high %v5199_v58, %v5215_v56 }
 0x5d2   :  { %v19855_v53 = vrot.slane %v6733_v4, %v18888_v52  ;;  %v6765_v21 = vcombine.low %v6700_v59, %v6716_v7  ;;  %v19858_v3 = vrot.slane %v6734_v8, %v18888_v52  ;;  %v6766_v6 = vcombine.high %v6700_v59, %v6716_v7 }
 0x5d3   :  { %v5256_v0 = vrot.slane %v5248_v44, %v18888_v52  ;;  %v5263_v17 = vrot.slane %v5249_v11, %v18888_v52  ;;  %v5272_v63 = vrot.slane %v5264_v48, %v18888_v52  ;;  %v5279_v40 = vrot.slane %v5265_v22, %v18888_v52 }
 0x5d4   :  { %22402 = vst [vmem:[#allocation45_spill] sm:$0xff] %v19855_v53  ;;  %22403 = vst [vmem:[#allocation46_spill] sm:$0xff] %v19858_v3  ;;  %v19865_v31 = vrot.slane %v6765_v21, %v18888_v52  ;;  %v19868_v37 = vrot.slane %v6766_v6, %v18888_v52 }
 0x5d5   :  { %v16031_v61 = vcombine.low %v5256_v0, %v5263_v17  ;;  %v16033_v62 = vcombine.high %v5256_v0, %v5263_v17  ;;  %v16035_v57 = vcombine.low %v5272_v63, %v5279_v40  ;;  %v16037_v34 = vcombine.high %v5272_v63, %v5279_v40 }
 0x5d6   :  { %22404 = vst [vmem:[#allocation47_spill] sm:$0xff] %v19865_v31  ;;  %22405 = vst [vmem:[#allocation48_spill] sm:$0xff] %v19868_v37 }
 0x5d7   :  { %v5464_v15 = vrot.slane %v16031_v61, %v18883_v43  ;;  %v5480_v55 = vrot.slane %v16033_v62, %v18883_v43  ;;  %v5496_v58 = vrot.slane %v16035_v57, %v18883_v43  ;;  %v5512_v36 = vrot.slane %v16037_v34, %v18883_v43 }
 0x5d9   :  { %v5521_v23 = vcombine.high %v5464_v15, %v5480_v55  ;;  %v5553_v46 = vcombine.high %v5496_v58, %v5512_v36  ;;  %v5520_v50 = vcombine.low %v5464_v15, %v5480_v55  ;;  %v5552_v19 = vcombine.low %v5496_v58, %v5512_v36 }
 0x5db   :  { %v19883_v56 = vrot.slane %v5521_v23, %v18888_v52  ;;  %v19886_v5 = vrot.slane %v5553_v46, %v18888_v52  ;;  %v19889_v59 = vrot.slane %v5520_v50, %v18888_v52  ;;  %v19892_v7 = vrot.slane %v5552_v19, %v18888_v52 }
 0x5dd   :  { %v5587_v4 = vcombine.high %v19883_v56, %v19886_v5  ;;  %v5584_v8 = vcombine.low %v19889_v59, %v19892_v7  ;;  %v5585_v44 = vcombine.high %v19889_v59, %v19892_v7  ;;  %v5586_v11 = vcombine.low %v19883_v56, %v19886_v5  ;;  %v17592_v59 = vld [vmem:[#allocation11 + $0x100] ss:$8 sps:$4 sm:$0xff]   ;;  %v17597_v7 = vld [vmem:[#allocation11 + $0x114] ss:$8 sps:$4 sm:$0xff]   ;;  %v17601_v5 = vld [vmem:[#allocation11 + $0x130] ss:$8 sps:$4 sm:$0xff]  }
 0x5de   :  { %v17603_v56 = vld [vmem:[#allocation11 + $0x134] ss:$8 sps:$4 sm:$0xff]  }
 0x612   :  { %v4672_v48 = vpop.f32.mrb[48].mxu0 }
 0x613   :  { %v4718_v22 = vpop.f32.mrb[56].mxu1  ;;  %v16907_v21 = vpop.f32.mrb[49].mxu0 }
 0x614   :  { %v16913_v6 = vpop.f32.mrb[57].mxu1  ;;  %v4675_v0 = vpop.f32.mrb[50].mxu0 }
 0x615   :  { %v4721_v17 = vpop.f32.mrb[58].mxu1  ;;  %v16908_v63 = vpop.f32.mrb[51].mxu0 }
 0x616   :  { %v16914_v40 = vpop.f32.mrb[59].mxu1 }
 0x61a   :  { %v4764_v61 = vpop.f32.mrb[52].mxu0 }
 0x61b   :  { %v5216_v62 = vcombine.low %v4672_v48, %v4764_v61  ;;  %v5217_v57 = vcombine.high %v4672_v48, %v4764_v61  ;;  %v16919_v34 = vpop.f32.mrb[53].mxu0 }
 0x61c   :  { %v4810_v15 = vpop.f32.mrb[60].mxu1  ;;  %v4767_v55 = vpop.f32.mrb[54].mxu0 }
 0x61d   :  { %v5224_v58 = vrot.slane %v5216_v62, %v18883_v43  ;;  %v5231_v36 = vrot.slane %v5217_v57, %v18883_v43  ;;  %v5232_v23 = vcombine.low %v4718_v22, %v4810_v15  ;;  %v5233_v46 = vcombine.high %v4718_v22, %v4810_v15  ;;  %v16925_v50 = vpop.f32.mrb[61].mxu1  ;;  %v16920_v19 = vpop.f32.mrb[55].mxu0  ;;  %v17544_v15 = vld [vmem:[#allocation11] ss:$8 sps:$4 sm:$0xff]   ;;  %v17546_v55 = vld [vmem:[#allocation11 + $0x4] ss:$8 sps:$4 sm:$0xff]  }
 0x61e   :  { %v4813_v21 = vpop.f32.mrb[62].mxu1  ;;  %6092 = vmatprep.subr.bf16.mxu0 %v17546_v55 }
 0x61f   :  { %v5240_v6 = vrot.slane %v5232_v23, %v18883_v43  ;;  %v5247_v0 = vrot.slane %v5233_v46, %v18883_v43  ;;  %v16926_v17 = vpop.f32.mrb[63].mxu1  ;;  %v17549_v46 = vld [vmem:[#allocation11 + $0x14] ss:$8 sps:$4 sm:$0xff]   ;;  %6093 = vmatpush1.bf16.msra.mxu0 %v17544_v15 }
 0x620   :  { %v17547_v17 = vld [vmem:[#allocation11 + $0x10] ss:$8 sps:$4 sm:$0xff]   ;;  %6094 = vmatprep.subr.bf16.mxu0 %v17549_v46  ;;  %v17555_v46 = vld [vmem:[#allocation11 + $0x34] ss:$8 sps:$4 sm:$0xff]  }
 0x621   :  { %v5280_v63 = vcombine.low %v5224_v58, %v5240_v6  ;;  %v5281_v40 = vcombine.high %v5224_v58, %v5240_v6  ;;  %v5296_v48 = vcombine.low %v5231_v36, %v5247_v0  ;;  %v5297_v61 = vcombine.high %v5231_v36, %v5247_v0 }
 0x623   :  { %v5288_v34 = vrot.slane %v5280_v63, %v18888_v52  ;;  %v5295_v62 = vrot.slane %v5281_v40, %v18888_v52  ;;  %v5304_v57 = vrot.slane %v5296_v48, %v18888_v52  ;;  %v5311_v22 = vrot.slane %v5297_v61, %v18888_v52  ;;  %v17552_v63 = vld [vmem:[#allocation11 + $0x24] ss:$8 sps:$4 sm:$0xff]   ;;  %6095 = vmatpush1.bf16.msra.mxu0 %v17547_v17 }
 0x624   :  { %6096 = vmatprep.subr.bf16.mxu0 %v17552_v63  ;;  %v17558_v63 = vld [vmem:[#allocation11 + $0x44] ss:$8 sps:$4 sm:$0xff]  }
 0x625   :  { %v16032_v50 = vcombine.low %v5288_v34, %v5295_v62  ;;  %v16034_v19 = vcombine.high %v5288_v34, %v5295_v62  ;;  %v16036_v23 = vcombine.low %v5304_v57, %v5311_v22  ;;  %v16038_v21 = vcombine.high %v5304_v57, %v5311_v22  ;;  %v17550_v62 = vld [vmem:[#allocation11 + $0x20] ss:$8 sps:$4 sm:$0xff]  }
 0x627   :  { %v5471_v58 = vrot.slane %v16032_v50, %v18883_v43  ;;  %v5487_v36 = vrot.slane %v16034_v19, %v18883_v43  ;;  %v5503_v6 = vrot.slane %v16036_v23, %v18883_v43  ;;  %v5519_v0 = vrot.slane %v16038_v21, %v18883_v43  ;;  %6097 = vmatpush1.bf16.msra.mxu0 %v17550_v62  ;;  %v17564_v62 = vld [vmem:[#allocation11 + $0x64] ss:$8 sps:$4 sm:$0xff]  }
 0x628   :  { %6098 = vmatprep.subr.bf16.mxu0 %v17555_v46  ;;  %v17562_v46 = vld [vmem:[#allocation11 + $0x60] ss:$8 sps:$4 sm:$0xff]  }
 0x629   :  { %v5537_v40 = vcombine.high %v5471_v58, %v5487_v36  ;;  %v5569_v48 = vcombine.high %v5503_v6, %v5519_v0  ;;  %v5536_v61 = vcombine.low %v5471_v58, %v5487_v36  ;;  %v5568_v34 = vcombine.low %v5503_v6, %v5519_v0  ;;  %v17553_v58 = vld [vmem:[#allocation11 + $0x30] ss:$8 sps:$4 sm:$0xff]  }
 0x62b   :  { %v19915_v57 = vrot.slane %v5537_v40, %v18888_v52  ;;  %v19918_v22 = vrot.slane %v5569_v48, %v18888_v52  ;;  %v19921_v55 = vrot.slane %v5536_v61, %v18888_v52  ;;  %v19924_v15 = vrot.slane %v5568_v34, %v18888_v52  ;;  %6099 = vmatpush1.bf16.msra.mxu0 %v17553_v58  ;;  %v17556_v61 = vld [vmem:[#allocation11 + $0x40] ss:$8 sps:$4 sm:$0xff]   ;;  %v17573_v58 = vld [vmem:[#allocation11 + $0x94] ss:$8 sps:$4 sm:$0xff]  }
 0x62c   :  { %6100 = vmatprep.subr.bf16.mxu0 %v17558_v63  ;;  %v17576_v63 = vld [vmem:[#allocation11 + $0xa4] ss:$8 sps:$4 sm:$0xff]  }
 0x62d   :  { %v5591_v50 = vcombine.high %v19915_v57, %v19918_v22  ;;  %v5588_v19 = vcombine.low %v19921_v55, %v19924_v15  ;;  %v5589_v23 = vcombine.high %v19921_v55, %v19924_v15  ;;  %v5590_v21 = vcombine.low %v19915_v57, %v19918_v22  ;;  %v6959_v55 = vld [vmem:[#allocation14 + $0x2c0] sm:$0xff] }
 0x62e   :  { %v6963_v15 = vld [vmem:[#allocation14 + $0x2e0] sm:$0xff] }
 0x62f   :  { %6101 = vmatpush1.bf16.msra.mxu0 %v17556_v61  ;;  %v17582_v61 = vld [vmem:[#allocation11 + $0xc4] ss:$8 sps:$4 sm:$0xff]  }
 0x630   :  { %6102 = vmatprep.subr.bf16.mxu0 %v17561_v18  ;;  %v17579_v18 = vld [vmem:[#allocation11 + $0xb4] ss:$8 sps:$4 sm:$0xff]  }
 0x631   :  { %v4856_v36 = vpop.f32.mrb[56].mxu0  ;;  %v19934_v6 = vpop.f32.mrb[64].mxu1 }
 0x632   :  { %v16931_v0 = vpop.f32.mrb[57].mxu0  ;;  %v16937_v17 = vpop.f32.mrb[65].mxu1 }
 0x633   :  { %v4859_v40 = vpop.f32.mrb[58].mxu0  ;;  %v4905_v48 = vpop.f32.mrb[66].mxu1  ;;  %6103 = vmatpush1.bf16.msra.mxu0 %v17559_v2  ;;  %v17565_v0 = vld [vmem:[#allocation11 + $0x70] ss:$8 sps:$4 sm:$0xff]   ;;  %v17570_v17 = vld [vmem:[#allocation11 + $0x84] ss:$8 sps:$4 sm:$0xff]  }
 0x634   :  { %v16932_v34 = vpop.f32.mrb[59].mxu0  ;;  %v16938_v41 = vpop.f32.mrb[67].mxu1  ;;  %6104 = vmatprep.subr.bf16.mxu0 %v17564_v62  ;;  %v17568_v40 = vld [vmem:[#allocation11 + $0x80] ss:$8 sps:$4 sm:$0xff]   ;;  %v17577_v2 = vld [vmem:[#allocation11 + $0xb0] ss:$8 sps:$4 sm:$0xff]  }
 0x635   :  { %v17571_v41 = vld [vmem:[#allocation11 + $0x90] ss:$8 sps:$4 sm:$0xff]   ;;  %v17574_v48 = vld [vmem:[#allocation11 + $0xa0] ss:$8 sps:$4 sm:$0xff]  }
 0x636   :  { %v17580_v34 = vld [vmem:[#allocation11 + $0xc0] ss:$8 sps:$4 sm:$0xff]   ;;  %v17583_v62 = vld [vmem:[#allocation11 + $0xd0] ss:$8 sps:$4 sm:$0xff]  }
 0x637   :  { %6105 = vmatpush1.bf16.msra.mxu0 %v17562_v46 }
 0x638   :  { %6106 = vmatprep.subr.bf16.mxu0 %v17567_v27  ;;  %v17585_v27 = vld [vmem:[#allocation11 + $0xd4] ss:$8 sps:$4 sm:$0xff]  }
 0x63b   :  { %6107 = vmatpush1.bf16.msra.mxu0 %v17565_v0  ;;  %v17588_v0 = vld [vmem:[#allocation11 + $0xe4] ss:$8 sps:$4 sm:$0xff]  }
 0x63c   :  { %6108 = vmatprep.subr.bf16.mxu0 %v17570_v17 }
 0x63f   :  { %6109 = vmatpush1.bf16.msra.mxu0 %v17568_v40 }
 0x640   :  { %6110 = vmatprep.subr.bf16.mxu0 %v17573_v58 }
 0x643   :  { %6111 = vmatpush1.bf16.msra.mxu0 %v17571_v41 }
 0x644   :  { %6112 = vmatprep.subr.bf16.mxu0 %v17576_v63 }
 0x647   :  { %6113 = vmatpush1.bf16.msra.mxu0 %v17574_v48 }
 0x648   :  { %6114 = vmatprep.subr.bf16.mxu0 %v17579_v18 }
 0x64b   :  { %6115 = vmatpush1.bf16.msra.mxu0 %v17577_v2 }
 0x64c   :  { %6116 = vmatprep.subr.bf16.mxu0 %v17582_v61 }
 0x64f   :  { %6117 = vmatpush1.bf16.msra.mxu0 %v17580_v34 }
 0x650   :  { %6118 = vmatprep.subr.bf16.mxu0 %v17585_v27 }
 0x653   :  { %6119 = vmatpush1.bf16.msra.mxu0 %v17583_v62 }
 0x654   :  { %6120 = vmatprep.subr.bf16.mxu0 %v17588_v0 }
 0x657   :  { %v4948_v46 = vpop.f32.mrb[60].mxu0  ;;  %6121 = vmatpush1.bf16.msra.mxu0 %v17586_v13 }
 0x658   :  { %v5320_v17 = vcombine.low %v4856_v36, %v4948_v46  ;;  %v5321_v40 = vcombine.high %v4856_v36, %v4948_v46  ;;  %v4994_v58 = vpop.f32.mrb[68].mxu1  ;;  %v16943_v41 = vpop.f32.mrb[61].mxu0 }
 0x659   :  { %v5336_v63 = vcombine.low %v19934_v6, %v4994_v58  ;;  %v5337_v48 = vcombine.high %v19934_v6, %v4994_v58  ;;  %v16949_v42 = vpop.f32.mrb[69].mxu1  ;;  %v4951_v18 = vpop.f32.mrb[62].mxu0 }
 0x65a   :  { %v5328_v2 = vrot.slane %v5320_v17, %v18883_v43  ;;  %v5335_v61 = vrot.slane %v5321_v40, %v18883_v43  ;;  %v4997_v47 = vpop.f32.mrb[70].mxu1  ;;  %v16944_v34 = vpop.f32.mrb[63].mxu0 }
 0x65b   :  { %v5344_v27 = vrot.slane %v5336_v63, %v18883_v43  ;;  %v5351_v36 = vrot.slane %v5337_v48, %v18883_v43  ;;  %v16950_v46 = vpop.f32.mrb[71].mxu1  ;;  %v17589_v48 = vld [vmem:[#allocation11 + $0xf0] ss:$8 sps:$4 sm:$0xff]   ;;  %v17591_v34 = vld [vmem:[#allocation11 + $0xf4] ss:$8 sps:$4 sm:$0xff]  }
 0x65c   :  { %6122 = vmatprep.subr.bf16.mxu0 %v17591_v34  ;;  %v17594_v46 = vld [vmem:[#allocation11 + $0x104] ss:$8 sps:$4 sm:$0xff]  }
 0x65d   :  { %v5384_v41 = vcombine.low %v5328_v2, %v5344_v27  ;;  %v5385_v26 = vcombine.high %v5328_v2, %v5344_v27  ;;  %v5400_v30 = vcombine.low %v5335_v61, %v5351_v36  ;;  %v5401_v6 = vcombine.high %v5335_v61, %v5351_v36  ;;  %6123 = vmatpush1.bf16.msra.mxu0 %v17589_v48 }
 0x65e   :  { %6135 = vmatprep.subr.bf16.mxu0 %v17594_v46 }
 0x65f   :  { %v5392_v42 = vrot.slane %v5384_v41, %v18888_v52  ;;  %v5399_v17 = vrot.slane %v5385_v26, %v18888_v52  ;;  %v5408_v47 = vrot.slane %v5400_v30, %v18888_v52  ;;  %v5415_v62 = vrot.slane %v5401_v6, %v18888_v52 }
 0x661   :  { %v16039_v40 = vcombine.low %v5392_v42, %v5399_v17  ;;  %v16041_v58 = vcombine.high %v5392_v42, %v5399_v17  ;;  %v16043_v63 = vcombine.low %v5408_v47, %v5415_v62  ;;  %v16045_v18 = vcombine.high %v5408_v47, %v5415_v62 }
 0x663   :  { %v5600_v0 = vrot.slane %v16039_v40, %v18883_v43  ;;  %v5616_v2 = vrot.slane %v16041_v58, %v18883_v43  ;;  %v5632_v13 = vrot.slane %v16043_v63, %v18883_v43  ;;  %v5648_v61 = vrot.slane %v16045_v18, %v18883_v43 }
 0x665   :  { %v5657_v26 = vcombine.high %v5600_v0, %v5616_v2  ;;  %v5689_v27 = vcombine.high %v5632_v13, %v5648_v61  ;;  %v5656_v30 = vcombine.low %v5600_v0, %v5616_v2  ;;  %v5688_v36 = vcombine.low %v5632_v13, %v5648_v61 }
 0x667   :  { %v19951_v41 = vrot.slane %v5657_v26, %v18888_v52  ;;  %v19954_v6 = vrot.slane %v5689_v27, %v18888_v52  ;;  %v19957_v42 = vrot.slane %v5656_v30, %v18888_v52  ;;  %v19960_v17 = vrot.slane %v5688_v36, %v18888_v52 }
 0x669   :  { %v5723_v47 = vcombine.high %v19951_v41, %v19954_v6  ;;  %v5721_v62 = vcombine.high %v19957_v42, %v19960_v17  ;;  %v5720_v40 = vcombine.low %v19957_v42, %v19960_v17  ;;  %v5722_v58 = vcombine.low %v19951_v41, %v19954_v6  ;;  %v17600_v42 = vld [vmem:[#allocation11 + $0x124] ss:$8 sps:$4 sm:$0xff]   ;;  %v17598_v17 = vld [vmem:[#allocation11 + $0x120] ss:$8 sps:$4 sm:$0xff]   ;;  %v17609_v6 = vld [vmem:[#allocation11 + $0x154] ss:$8 sps:$4 sm:$0xff]  }
 0x66a   :  { %v17604_v41 = vld [vmem:[#allocation11 + $0x140] ss:$8 sps:$4 sm:$0xff]  }
 0x66b   :  { %v17216_v63 = vpack.i.bf16 %v5723_v47, %v5587_v4  ;;  %v17221_v18 = vpack.i.bf16 %v5721_v62, %v5585_v44 }
 0x66d   :  { %17217 = vrot.lane.b32.xlu1 %v17216_v63, %s18511_s15  ;;  %17222 = vrot.lane.b32.xlu0 %v17221_v18, %s18511_s15 }
 0x671   :  { %v5040_v48 = vpop.f32.mrb[64].mxu0  ;;  %v5086_v34 = vpop.f32.mrb[72].mxu1 }
 0x672   :  { %v16955_v0 = vpop.f32.mrb[65].mxu0  ;;  %v16961_v2 = vpop.f32.mrb[73].mxu1 }
 0x673   :  { %v5043_v13 = vpop.f32.mrb[66].mxu0  ;;  %v5089_v61 = vpop.f32.mrb[74].mxu1 }
 0x674   :  { %v16956_v26 = vpop.f32.mrb[67].mxu0  ;;  %v16962_v27 = vpop.f32.mrb[75].mxu1 }
 0x698   :  { %v5132_v30 = vpop.f32.mrb[68].mxu0 }
 0x699   :  { %v5352_v36 = vcombine.low %v5040_v48, %v5132_v30  ;;  %v5353_v46 = vcombine.high %v5040_v48, %v5132_v30  ;;  %v5178_v4 = vpop.f32.mrb[76].mxu1  ;;  %v16967_v47 = vpop.f32.mrb[69].mxu0 }
 0x69a   :  { %v5368_v12 = vcombine.low %v5086_v34, %v5178_v4  ;;  %v5369_v49 = vcombine.high %v5086_v34, %v5178_v4  ;;  %v16973_v44 = vpop.f32.mrb[77].mxu1  ;;  %v5135_v62 = vpop.f32.mrb[70].mxu0 }
 0x69b   :  { %v5360_v63 = vrot.slane %v5352_v36, %v18883_v43  ;;  %v5367_v18 = vrot.slane %v5353_v46, %v18883_v43  ;;  %v5181_v45 = vpop.f32.mrb[78].mxu1  ;;  %v16968_v0 = vpop.f32.mrb[71].mxu0 }
 0x69c   :  { %v5376_v2 = vrot.slane %v5368_v12, %v18883_v43  ;;  %v5383_v13 = vrot.slane %v5369_v49, %v18883_v43  ;;  %v16974_v61 = vpop.f32.mrb[79].mxu1 }
 0x69e   :  { %v5416_v26 = vcombine.low %v5360_v63, %v5376_v2  ;;  %v5417_v27 = vcombine.high %v5360_v63, %v5376_v2  ;;  %v5432_v48 = vcombine.low %v5367_v18, %v5383_v13  ;;  %v5433_v30 = vcombine.high %v5367_v18, %v5383_v13 }
 0x6a0   :  { %v5424_v47 = vrot.slane %v5416_v26, %v18888_v52  ;;  %v5431_v34 = vrot.slane %v5417_v27, %v18888_v52  ;;  %v5440_v4 = vrot.slane %v5432_v48, %v18888_v52  ;;  %v5447_v36 = vrot.slane %v5433_v30, %v18888_v52 }
 0x6a2   :  { %v16040_v46 = vcombine.low %v5424_v47, %v5431_v34  ;;  %v16042_v45 = vcombine.high %v5424_v47, %v5431_v34  ;;  %v16044_v44 = vcombine.low %v5440_v4, %v5447_v36  ;;  %v16046_v62 = vcombine.high %v5440_v4, %v5447_v36 }
 0x6a4   :  { %v5607_v12 = vrot.slane %v16040_v46, %v18883_v43  ;;  %v5623_v49 = vrot.slane %v16042_v45, %v18883_v43  ;;  %v5639_v63 = vrot.slane %v16044_v44, %v18883_v43  ;;  %v5655_v18 = vrot.slane %v16046_v62, %v18883_v43  ;;  %v6871_v46 = vld [vmem:[#allocation14] sm:$0xff] }
 0x6a5   :  { %v6875_v45 = vld [vmem:[#allocation14 + $0x20] sm:$0xff] }
 0x6a6   :  { %v5673_v0 = vcombine.high %v5607_v12, %v5623_v49  ;;  %v5705_v2 = vcombine.high %v5639_v63, %v5655_v18  ;;  %v5672_v13 = vcombine.low %v5607_v12, %v5623_v49  ;;  %v5704_v61 = vcombine.low %v5639_v63, %v5655_v18  ;;  %v6879_v44 = vld [vmem:[#allocation14 + $0x40] sm:$0xff] }
 0x6a7   :  { %v16127_v62 = vcombine.low %v6871_v46, %v6875_v45  ;;  %v16128_v12 = vcombine.high %v6871_v46, %v6875_v45  ;;  %v6883_v49 = vld [vmem:[#allocation14 + $0x60] sm:$0xff] }
 0x6a8   :  { %v19991_v26 = vrot.slane %v5673_v0, %v18888_v52  ;;  %v19994_v27 = vrot.slane %v5705_v2, %v18888_v52  ;;  %v19997_v48 = vrot.slane %v5672_v13, %v18888_v52  ;;  %v20000_v30 = vrot.slane %v5704_v61, %v18888_v52  ;;  %v6887_v2 = vld [vmem:[#allocation14 + $0x80] sm:$0xff] }
 0x6a9   :  { %v16136_v0 = vcombine.high %v6879_v44, %v6883_v49  ;;  %v6891_v13 = vld [vmem:[#allocation14 + $0xa0] sm:$0xff]  ;;  %7639 = vmatprep.subr.bf16.mxu1 %v16128_v12  ;;  %v16135_v61 = vcombine.low %v6879_v44, %v6883_v49 }
 0x6aa   :  { %v5727_v47 = vcombine.high %v19991_v26, %v19994_v27  ;;  %v5725_v34 = vcombine.high %v19997_v48, %v20000_v30  ;;  %v5724_v4 = vcombine.low %v19997_v48, %v20000_v30  ;;  %v5726_v36 = vcombine.low %v19991_v26, %v19994_v27  ;;  %7640 = vmatpush1.bf16.msra.mxu1 %v16127_v62  ;;  %v6895_v46 = vld [vmem:[#allocation14 + $0xc0] sm:$0xff] }
 0x6ab   :  { %7641 = vmatprep.subr.bf16.mxu1 %v16136_v0  ;;  %v16144_v54 = vcombine.high %v6887_v2, %v6891_v13  ;;  %v6899_v45 = vld [vmem:[#allocation14 + $0xe0] sm:$0xff]  ;;  %v16215_v30 = vcombine.low %v6959_v55, %v6963_v15 }
 0x6ac   :  { %v17226_v63 = vpack.i.bf16 %v5727_v47, %v5591_v50  ;;  %v17231_v18 = vpack.i.bf16 %v5725_v34, %v5589_v23  ;;  %v16143_v50 = vcombine.low %v6887_v2, %v6891_v13  ;;  %v16152_v47 = vcombine.high %v6895_v46, %v6899_v45  ;;  %v6907_v23 = vld [vmem:[#allocation14 + $0x120] sm:$0xff] }
 0x6ad   :  { %v16151_v34 = vcombine.low %v6895_v46, %v6899_v45  ;;  %v16160_v12 = vcombine.high %v6903_v9, %v6907_v23  ;;  %v16159_v44 = vcombine.low %v6903_v9, %v6907_v23  ;;  %v6919_v49 = vld [vmem:[#allocation14 + $0x180] sm:$0xff] }
 0x6ae   :  { %17227 = vrot.lane.b32.xlu1 %v17226_v63, %s18511_s15  ;;  %7642 = vmatpush1.bf16.msra.mxu1 %v16135_v61  ;;  %v6915_v63 = vld [vmem:[#allocation14 + $0x160] sm:$0xff] }
 0x6af   :  { %7643 = vmatprep.subr.bf16.mxu1 %v16144_v54  ;;  %v16168_v62 = vcombine.high %v6911_v10, %v6915_v63  ;;  %v6923_v0 = vld [vmem:[#allocation14 + $0x1a0] sm:$0xff] }
 0x6b0   :  { %v16176_v2 = vcombine.high %v6919_v49, %v6923_v0  ;;  %v6927_v54 = vld [vmem:[#allocation14 + $0x1c0] sm:$0xff]  ;;  %v16175_v61 = vcombine.low %v6919_v49, %v6923_v0 }
 0x6b1   :  { %v6931_v13 = vld [vmem:[#allocation14 + $0x1e0] sm:$0xff] }
 0x6b2   :  { %17232 = vrot.lane.b32.xlu1 %v17231_v18, %s18511_s15  ;;  %7644 = vmatpush1.bf16.msra.mxu1 %v16143_v50  ;;  %v16167_v18 = vcombine.low %v6911_v10, %v6915_v63  ;;  %v16184_v46 = vcombine.high %v6927_v54, %v6931_v13  ;;  %v6935_v45 = vld [vmem:[#allocation14 + $0x200] sm:$0xff] }
 0x6b3   :  { %7645 = vmatprep.subr.bf16.mxu1 %v16152_v47  ;;  %v6939_v50 = vld [vmem:[#allocation14 + $0x220] sm:$0xff]  ;;  %v16183_v47 = vcombine.low %v6927_v54, %v6931_v13 }
 0x6b4   :  { %v16192_v9 = vcombine.high %v6935_v45, %v6939_v50  ;;  %v16191_v23 = vcombine.low %v6935_v45, %v6939_v50  ;;  %v17613_v45 = vld [vmem:[#allocation11 + $0x170] ss:$8 sps:$4 sm:$0xff]   ;;  %v17618_v50 = vld [vmem:[#allocation11 + $0x184] ss:$8 sps:$4 sm:$0xff]  }
 0x6b5   :  { %v6947_v26 = vld [vmem:[#allocation14 + $0x260] sm:$0xff] }
 0x6b6   :  { %7646 = vmatpush1.bf16.msra.mxu1 %v16151_v34  ;;  %v6971_v48 = vld [vmem:[#allocation14 + $0x320] sm:$0xff] }
 0x6b7   :  { %7647 = vmatprep.subr.bf16.mxu1 %v16160_v12 }
 0x6ba   :  { %7648 = vmatpush1.bf16.msra.mxu1 %v16159_v44 }
 0x6bb   :  { %7649 = vmatprep.subr.bf16.mxu1 %v16168_v62 }
 0x6be   :  { %7650 = vmatpush1.bf16.msra.mxu1 %v16167_v18 }
 0x6bf   :  { %7651 = vmatprep.subr.bf16.mxu1 %v16176_v2 }
 0x6c2   :  { %7652 = vmatpush1.bf16.msra.mxu1 %v16175_v61  ;;  %v17610_v61 = vld [vmem:[#allocation11 + $0x160] ss:$8 sps:$4 sm:$0xff]  }
 0x6c3   :  { %7653 = vmatprep.subr.bf16.mxu1 %v16184_v46  ;;  %v17615_v46 = vld [vmem:[#allocation11 + $0x174] ss:$8 sps:$4 sm:$0xff]  }
 0x6c6   :  { %7654 = vmatpush1.bf16.msra.mxu1 %v16183_v47  ;;  %v17616_v47 = vld [vmem:[#allocation11 + $0x180] ss:$8 sps:$4 sm:$0xff]  }
 0x6c7   :  { %7655 = vmatprep.subr.bf16.mxu1 %v16192_v9  ;;  %v17621_v9 = vld [vmem:[#allocation11 + $0x194] ss:$8 sps:$4 sm:$0xff]  }
 0x6ca   :  { %7656 = vmatpush1.bf16.msra.mxu1 %v16191_v23  ;;  %v17619_v23 = vld [vmem:[#allocation11 + $0x190] ss:$8 sps:$4 sm:$0xff]  }
 0x6df   :  { %v17218_v34 = vpop.permute.xlu1 %17217  ;;  %v17223_v10 = vpop.permute.xlu0 %17222 }
 0x6e0   :  { %v17220_v12 = vunpack.i.h.bf16 %v17218_v34  ;;  %v17219_v63 = vunpack.i.l.bf16 %v17218_v34  ;;  %v17225_v44 = vunpack.i.h.bf16 %v17223_v10  ;;  %v17224_v62 = vunpack.i.l.bf16 %v17223_v10  ;;  %v17624_v34 = vld [vmem:[#allocation11 + $0x1a4] ss:$8 sps:$4 sm:$0xff]   ;;  %v17622_v10 = vld [vmem:[#allocation11 + $0x1a0] ss:$8 sps:$4 sm:$0xff]  }
 0x6e2   :  { %v5760_v49 = vsel %vm3469_vm1, %v5584_v8, %v17224_v62  ;;  %v5761_v0 = vsel %vm3469_vm1, %v5720_v40, %v17225_v44  ;;  %v5762_v18 = vsel %vm3469_vm1, %v5586_v11, %v17219_v63  ;;  %v5763_v2 = vsel %vm3469_vm1, %v5722_v58, %v17220_v12  ;;  %v17595_v8 = vld [vmem:[#allocation11 + $0x110] ss:$8 sps:$4 sm:$0xff]   ;;  %v17606_v11 = vld [vmem:[#allocation11 + $0x144] ss:$8 sps:$4 sm:$0xff]   ;;  %v17627_v12 = vld [vmem:[#allocation11 + $0x1b4] ss:$8 sps:$4 sm:$0xff]  }
 0x6e3   :  { %v5769_v54 = vpack.c.bf16 %v5763_v2, %v5762_v18  ;;  %v5768_v13 = vpack.c.bf16 %v5761_v0, %v5760_v49  ;;  %v17607_v40 = vld [vmem:[#allocation11 + $0x150] ss:$8 sps:$4 sm:$0xff]   ;;  %v17612_v58 = vld [vmem:[#allocation11 + $0x164] ss:$8 sps:$4 sm:$0xff]   ;;  %v17628_v62 = vld [vmem:[#allocation11 + $0x1c0] ss:$8 sps:$4 sm:$0xff]  }
 0x6e4   :  { %v17625_v63 = vld [vmem:[#allocation11 + $0x1b0] ss:$8 sps:$4 sm:$0xff]   ;;  %v17630_v44 = vld [vmem:[#allocation11 + $0x1c4] ss:$8 sps:$4 sm:$0xff]   ;;  %v17633_v49 = vld [vmem:[#allocation11 + $0x1d4] ss:$8 sps:$4 sm:$0xff]  }
 0x6e5   :  { %6124 = vmatprep.mubr.bf16.mxu0 %v5769_v54  ;;  %v17631_v0 = vld [vmem:[#allocation11 + $0x1d0] ss:$8 sps:$4 sm:$0xff]   ;;  %v17636_v18 = vld [vmem:[#allocation11 + $0x1e4] ss:$8 sps:$4 sm:$0xff]   ;;  %v17634_v2 = vld [vmem:[#allocation11 + $0x1e0] ss:$8 sps:$4 sm:$0xff]  }
 0x6e6   :  { %6125 = vmatmul.mubr.bf16.vlgmr.msra.gmra.mrb[72].mxu0 %v5768_v13  ;;  %v17639_v54 = vld [vmem:[#allocation11 + $0x1f4] ss:$8 sps:$4 sm:$0xff]  }
 0x6e7   :  { %6136 = vmatpush1.bf16.msra.mxu0 %v17592_v59  ;;  %v17637_v59 = vld [vmem:[#allocation11 + $0x1f0] ss:$8 sps:$4 sm:$0xff]  }
 0x6e8   :  { %6137 = vmatprep.subr.bf16.mxu0 %v17597_v7 }
 0x6eb   :  { %6138 = vmatpush1.bf16.msra.mxu0 %v17595_v8 }
 0x6ec   :  { %6139 = vmatprep.subr.bf16.mxu0 %v17600_v42 }
 0x6ef   :  { %6140 = vmatpush1.bf16.msra.mxu0 %v17598_v17 }
 0x6f0   :  { %6141 = vmatprep.subr.bf16.mxu0 %v17603_v56 }
 0x6f3   :  { %6142 = vmatpush1.bf16.msra.mxu0 %v17601_v5 }
 0x6f4   :  { %6143 = vmatprep.subr.bf16.mxu0 %v17606_v11 }
 0x6f7   :  { %6144 = vmatpush1.bf16.msra.mxu0 %v17604_v41 }
 0x6f8   :  { %6145 = vmatprep.subr.bf16.mxu0 %v17609_v6 }
 0x6fb   :  { %6146 = vmatpush1.bf16.msra.mxu0 %v17607_v40  ;;  %v6951_v40 = vld [vmem:[#allocation14 + $0x280] sm:$0xff] }
 0x6fc   :  { %6147 = vmatprep.subr.bf16.mxu0 %v17612_v58  ;;  %v6955_v58 = vld [vmem:[#allocation14 + $0x2a0] sm:$0xff] }
 0x6ff   :  { %6148 = vmatpush1.bf16.msra.mxu0 %v17610_v61  ;;  %v16207_v61 = vcombine.low %v6951_v40, %v6955_v58 }
 0x700   :  { %6149 = vmatprep.subr.bf16.mxu0 %v17615_v46  ;;  %v16208_v46 = vcombine.high %v6951_v40, %v6955_v58 }
 0x703   :  { %6150 = vmatpush1.bf16.msra.mxu0 %v17613_v45  ;;  %v6967_v45 = vld [vmem:[#allocation14 + $0x300] sm:$0xff] }
 0x704   :  { %6151 = vmatprep.subr.bf16.mxu0 %v17618_v50  ;;  %v222_v50 = vld [vmem:[#allocation5 + $0x8] sm:$0xff] }
 0x707   :  { %6152 = vmatpush1.bf16.msra.mxu0 %v17616_v47  ;;  %v6975_v47 = vld [vmem:[#allocation14 + $0x340] sm:$0xff] }
 0x708   :  { %6153 = vmatprep.subr.bf16.mxu0 %v17621_v9  ;;  %v6979_v9 = vld [vmem:[#allocation14 + $0x360] sm:$0xff] }
 0x70b   :  { %6154 = vmatpush1.bf16.msra.mxu0 %v17619_v23  ;;  %v224_v23 = vld [vmem:[#allocation5 + $0x18] sm:$0xff] }
 0x70c   :  { %6155 = vmatprep.subr.bf16.mxu0 %v17624_v34  ;;  %v20050_v34 = vpack.c.bf16 %v224_v23, %v222_v50 }
 0x70e   :  { %7671 = vmatprep.mubr.bf16.mxu1 %v20050_v34 }
 0x70f   :  { %6156 = vmatpush1.bf16.msra.mxu0 %v17622_v10  ;;  %v16223_v10 = vcombine.low %v6967_v45, %v6971_v48 }
 0x710   :  { %6157 = vmatprep.subr.bf16.mxu0 %v17627_v12  ;;  %v16232_v12 = vcombine.high %v6975_v47, %v6979_v9 }
 0x713   :  { %6158 = vmatpush1.bf16.msra.mxu0 %v17625_v63  ;;  %v6983_v63 = vld [vmem:[#allocation14 + $0x380] sm:$0xff] }
 0x714   :  { %6159 = vmatprep.subr.bf16.mxu0 %v17630_v44  ;;  %v6987_v44 = vld [vmem:[#allocation14 + $0x3a0] sm:$0xff] }
 0x717   :  { %6160 = vmatpush1.bf16.msra.mxu0 %v17628_v62  ;;  %v16231_v62 = vcombine.low %v6975_v47, %v6979_v9  ;;  %v18167_v9 = vld [vmem:[#allocation2 + $0x18] sm:$0xff] }
 0x718   :  { %6161 = vmatprep.subr.bf16.mxu0 %v17633_v49  ;;  %v16240_v49 = vcombine.high %v6983_v63, %v6987_v44 }
 0x71b   :  { %6162 = vmatpush1.bf16.msra.mxu0 %v17631_v0  ;;  %v6991_v0 = vld [vmem:[#allocation14 + $0x3c0] sm:$0xff] }
 0x71c   :  { %6163 = vmatprep.subr.bf16.mxu0 %v17636_v18  ;;  %v6995_v18 = vld [vmem:[#allocation14 + $0x3e0] sm:$0xff] }
 0x71f   :  { %6164 = vmatpush1.bf16.msra.mxu0 %v17634_v2  ;;  %v16239_v2 = vcombine.low %v6983_v63, %v6987_v44  ;;  %v6904_v63 = vld [vmem:[#allocation14 + $0x108] sm:$0xff] }
 0x720   :  { %v17228_v13 = vpop.permute.xlu1 %17227  ;;  %6165 = vmatprep.subr.bf16.mxu0 %v17639_v54  ;;  %v16248_v54 = vcombine.high %v6991_v0, %v6995_v18  ;;  %v6908_v44 = vld [vmem:[#allocation14 + $0x128] sm:$0xff] }
 0x721   :  { %v17230_v7 = vunpack.i.h.bf16 %v17228_v13  ;;  %v17229_v8 = vunpack.i.l.bf16 %v17228_v13  ;;  %v6872_v13 = vld [vmem:[#allocation14 + $0x8] sm:$0xff] }
 0x723   :  { %v5766_v42 = vsel %vm3469_vm1, %v5590_v21, %v17229_v8  ;;  %v5767_v17 = vsel %vm3469_vm1, %v5726_v36, %v17230_v7  ;;  %6166 = vmatpush1.bf16.msra.mxu0 %v17637_v59  ;;  %v6943_v21 = vld [vmem:[#allocation14 + $0x240] sm:$0xff]  ;;  %v6876_v59 = vld [vmem:[#allocation14 + $0x28] sm:$0xff]  ;;  %v16247_v7 = vcombine.low %v6991_v0, %v6995_v18  ;;  %v16162_v0 = vcombine.high %v6904_v63, %v6908_v44 }
 0x724   :  { %v17233_v56 = vpop.permute.xlu1 %17232  ;;  %v5771_v5 = vpack.c.bf16 %v5767_v17, %v5766_v42  ;;  %v16199_v27 = vcombine.low %v6943_v21, %v6947_v26  ;;  %v16200_v36 = vcombine.high %v6943_v21, %v6947_v26  ;;  %v221_v8 = vld [vmem:[#allocation5] sm:$0xff]  ;;  %v223_v42 = vld [vmem:[#allocation5 + $0x10] sm:$0xff]  ;;  %v16130_v17 = vcombine.high %v6872_v13, %v6876_v59  ;;  %v6916_v18 = vld [vmem:[#allocation14 + $0x168] sm:$0xff] }
 0x725   :  { %v17235_v11 = vunpack.i.h.bf16 %v17233_v56  ;;  %v17234_v41 = vunpack.i.l.bf16 %v17233_v56  ;;  %v6880_v56 = vld [vmem:[#allocation14 + $0x48] sm:$0xff] }
 0x726   :  { %6167 = vmatprep.mubr.bf16.mxu0 %v5771_v5  ;;  %7657 = vmatprep.subr.bf16.mxu1 %v16200_v36  ;;  %v6884_v5 = vld [vmem:[#allocation14 + $0x68] sm:$0xff] }
 0x727   :  { %v5764_v6 = vsel %vm3469_vm1, %v5588_v19, %v17234_v41  ;;  %v5765_v57 = vsel %vm3469_vm1, %v5724_v4, %v17235_v11  ;;  %7658 = vmatpush1.bf16.msra.mxu1 %v16199_v27  ;;  %v16216_v19 = vcombine.high %v6959_v55, %v6963_v15  ;;  %v16224_v4 = vcombine.high %v6967_v45, %v6971_v48  ;;  %v6896_v27 = vld [vmem:[#allocation14 + $0xc8] sm:$0xff]  ;;  %v18164_v55 = vld [vmem:[#allocation2] sm:$0xff] }
 0x728   :  { %v5770_v22 = vpack.c.bf16 %v5765_v57, %v5764_v6  ;;  %7659 = vmatprep.subr.bf16.mxu1 %v16208_v46  ;;  %v20054_v11 = vpack.c.bf16 %v223_v42, %v221_v8  ;;  %v16129_v41 = vcombine.low %v6872_v13, %v6876_v59  ;;  %v16138_v6 = vcombine.high %v6880_v56, %v6884_v5  ;;  %v6888_v57 = vld [vmem:[#allocation14 + $0x88] sm:$0xff] }
 0x729   :  { %v16137_v21 = vcombine.low %v6880_v56, %v6884_v5  ;;  %v6900_v36 = vld [vmem:[#allocation14 + $0xe8] sm:$0xff] }
 0x72a   :  { %6168 = vmatmul.mubr.bf16.vlgmr.msra.gmra.mrb[72].mxu0 %v5770_v22  ;;  %v6892_v22 = vld [vmem:[#allocation14 + $0xa8] sm:$0xff]  ;;  %v16154_v58 = vcombine.high %v6896_v27, %v6900_v36 }
 0x72b   :  { %7660 = vmatpush1.bf16.msra.mxu1 %v16207_v61  ;;  %7777 = vmatprep.mubr.bf16.mxu0 %v20050_v34  ;;  %v16146_v26 = vcombine.high %v6888_v57, %v6892_v22  ;;  %v16145_v40 = vcombine.low %v6888_v57, %v6892_v22  ;;  %v16153_v61 = vcombine.low %v6896_v27, %v6900_v36  ;;  %v18165_v45 = vld [vmem:[#allocation2 + $0x8] sm:$0xff] }
 0x72c   :  { %7661 = vmatprep.subr.bf16.mxu1 %v16216_v19  ;;  %v6920_v13 = vld [vmem:[#allocation14 + $0x188] sm:$0xff] }
 0x72d   :  { %v6924_v59 = vld [vmem:[#allocation14 + $0x1a8] sm:$0xff] }
 0x72e   :  { %v16177_v8 = vcombine.low %v6920_v13, %v6924_v59  ;;  %v6928_v42 = vld [vmem:[#allocation14 + $0x1c8] sm:$0xff] }
 0x72f   :  { %7662 = vmatpush1.bf16.msra.mxu1 %v16215_v30  ;;  %v6936_v5 = vld [vmem:[#allocation14 + $0x208] sm:$0xff] }
 0x730   :  { %7663 = vmatprep.subr.bf16.mxu1 %v16224_v4  ;;  %v18166_v4 = vld [vmem:[#allocation2 + $0x10] sm:$0xff]  ;;  %v226_v57 = vld [vmem:[#allocation5 + $0x28] sm:$0xff] }
 0x731   :  { %v6948_v27 = vld [vmem:[#allocation14 + $0x268] sm:$0xff] }
 0x733   :  { %7664 = vmatpush1.bf16.msra.mxu1 %v16223_v10 }
 0x734   :  { %7665 = vmatprep.subr.bf16.mxu1 %v16232_v12 }
 0x737   :  { %7666 = vmatpush1.bf16.msra.mxu1 %v16231_v62  ;;  %v6912_v62 = vld [vmem:[#allocation14 + $0x148] sm:$0xff] }
 0x738   :  { %7667 = vmatprep.subr.bf16.mxu1 %v16240_v49  ;;  %v16161_v49 = vcombine.low %v6904_v63, %v6908_v44  ;;  %v6889_v44 = vld [vmem:[#allocation14 + $0x90] sm:$0xff] }
 0x73b   :  { %7668 = vmatpush1.bf16.msra.mxu1 %v16239_v2  ;;  %v16170_v2 = vcombine.high %v6912_v62, %v6916_v18 }
 0x73c   :  { %7669 = vmatprep.subr.bf16.mxu1 %v16248_v54  ;;  %v16169_v54 = vcombine.low %v6912_v62, %v6916_v18  ;;  %v6893_v62 = vld [vmem:[#allocation14 + $0xb0] sm:$0xff] }
 0x73f   :  { %7670 = vmatpush1.bf16.msra.mxu1 %v16247_v7  ;;  %v16178_v7 = vcombine.high %v6920_v13, %v6924_v59  ;;  %v6964_v13 = vld [vmem:[#allocation14 + $0x2e8] sm:$0xff]  ;;  %v6897_v59 = vld [vmem:[#allocation14 + $0xd0] sm:$0xff] }
 0x740   :  { %7692 = vmatprep.subr.bf16.mxu1 %v16130_v17  ;;  %v6932_v17 = vld [vmem:[#allocation14 + $0x1e8] sm:$0xff] }
 0x741   :  { %v16186_v56 = vcombine.high %v6928_v42, %v6932_v17 }
 0x742   :  { %7672 = vmatmul.mubr.bf16.vlgmr.msra.gmra.mrb[80].mxu1 %v20054_v11 }
 0x743   :  { %7693 = vmatpush1.bf16.msra.mxu1 %v16129_v41  ;;  %v6940_v41 = vld [vmem:[#allocation14 + $0x228] sm:$0xff] }
 0x744   :  { %7694 = vmatprep.subr.bf16.mxu1 %v16138_v6  ;;  %v16185_v6 = vcombine.low %v6928_v42, %v6932_v17  ;;  %v16194_v22 = vcombine.high %v6936_v5, %v6940_v41  ;;  %v16147_v42 = vcombine.low %v6889_v44, %v6893_v62 }
 0x747   :  { %7695 = vmatpush1.bf16.msra.mxu1 %v16137_v21  ;;  %v6944_v21 = vld [vmem:[#allocation14 + $0x248] sm:$0xff] }
 0x748   :  { %7696 = vmatprep.subr.bf16.mxu1 %v16146_v26  ;;  %v228_v26 = vld [vmem:[#allocation5 + $0x38] sm:$0xff] }
 0x749   :  { %v20069_v36 = vpack.c.bf16 %v228_v26, %v226_v57  ;;  %v6909_v57 = vld [vmem:[#allocation14 + $0x130] sm:$0xff] }
 0x74b   :  { %7697 = vmatpush1.bf16.msra.mxu1 %v16145_v40  ;;  %v225_v40 = vld [vmem:[#allocation5 + $0x20] sm:$0xff]  ;;  %7681 = vmatprep.mubr.bf16.mxu1 %v20069_v36 }
 0x74c   :  { %7698 = vmatprep.subr.bf16.mxu1 %v16154_v58  ;;  %v227_v58 = vld [vmem:[#allocation5 + $0x30] sm:$0xff] }
 0x74f   :  { %7699 = vmatpush1.bf16.msra.mxu1 %v16153_v61  ;;  %v20071_v61 = vpack.c.bf16 %v227_v58, %v225_v40  ;;  %v6980_v58 = vld [vmem:[#allocation14 + $0x368] sm:$0xff] }
 0x750   :  { %7700 = vmatprep.subr.bf16.mxu1 %v16162_v0 }
 0x751   :  { %7682 = vmatmul.mubr.bf16.gmra.mrb[84].mxu1 %v20071_v61 }
 0x752   :  { %7724 = vmatprep.mubr.bf16.mxu1 %v20050_v34 }
 0x753   :  { %7701 = vmatpush1.bf16.msra.mxu1 %v16161_v49  ;;  %v16201_v49 = vcombine.low %v6944_v21, %v6948_v27 }
 0x754   :  { %7702 = vmatprep.subr.bf16.mxu1 %v16170_v2  ;;  %v6960_v2 = vld [vmem:[#allocation14 + $0x2c8] sm:$0xff] }
 0x755   :  { %v16218_v17 = vcombine.high %v6960_v2, %v6964_v13 }
 0x757   :  { %7703 = vmatpush1.bf16.msra.mxu1 %v16169_v54  ;;  %v16148_v54 = vcombine.high %v6889_v44, %v6893_v62 }
 0x758   :  { %7704 = vmatprep.subr.bf16.mxu1 %v16178_v7  ;;  %v6901_v7 = vld [vmem:[#allocation14 + $0xf0] sm:$0xff] }
 0x75b   :  { %7705 = vmatpush1.bf16.msra.mxu1 %v16177_v8 }
 0x75c   :  { %7706 = vmatprep.subr.bf16.mxu1 %v16186_v56  ;;  %v6968_v56 = vld [vmem:[#allocation14 + $0x308] sm:$0xff] }
 0x75f   :  { %7707 = vmatpush1.bf16.msra.mxu1 %v16185_v6  ;;  %v6905_v6 = vld [vmem:[#allocation14 + $0x110] sm:$0xff] }
 0x760   :  { %7708 = vmatprep.subr.bf16.mxu1 %v16194_v22  ;;  %v16217_v22 = vcombine.low %v6960_v2, %v6964_v13  ;;  %v16164_v40 = vcombine.high %v6905_v6, %v6909_v57  ;;  %v6929_v2 = vld [vmem:[#allocation14 + $0x1d0] sm:$0xff] }
 0x7fd   :  { %v6169_v46 = vpop.f32.mrb[72].mxu0 }
 0x7fe   :  { %v20057_v15 = vadd.f32 %v18164_v55, %v6169_v46  ;;  %v6171_v19 = vpop.f32.mrb[73].mxu0  ;;  %v6873_v46 = vld [vmem:[#allocation14 + $0x10] sm:$0xff] }
 0x7ff   :  { %v20059_v48 = vadd.f32 %v18165_v45, %v6171_v19  ;;  %v6173_v30 = vpop.f32.mrb[74].mxu0  ;;  %v6877_v55 = vld [vmem:[#allocation14 + $0x30] sm:$0xff]  ;;  %v16193_v19 = vcombine.low %v6936_v5, %v6940_v41  ;;  %v16156_v5 = vcombine.high %v6897_v59, %v6901_v7  ;;  %v6972_v41 = vld [vmem:[#allocation14 + $0x328] sm:$0xff] }
 0x800   :  { %v20061_v50 = vadd.f32 %v18166_v4, %v6173_v30  ;;  %v6175_v47 = vpop.f32.mrb[75].mxu0  ;;  %v16131_v45 = vcombine.low %v6873_v46, %v6877_v55  ;;  %v6881_v30 = vld [vmem:[#allocation14 + $0x50] sm:$0xff]  ;;  %v16202_v4 = vcombine.high %v6944_v21, %v6948_v27  ;;  %v16155_v21 = vcombine.low %v6897_v59, %v6901_v7  ;;  %v6976_v27 = vld [vmem:[#allocation14 + $0x348] sm:$0xff] }
 0x801   :  { %v20063_v23 = vadd.f32 %v18167_v9, %v6175_v47  ;;  %v6182_v10 = vadd.f32 %v20059_v48, %v20057_v15  ;;  %v6952_v47 = vld [vmem:[#allocation14 + $0x288] sm:$0xff]  ;;  %v16132_v9 = vcombine.high %v6873_v46, %v6877_v55  ;;  %7709 = vmatpush1.bf16.msra.mxu1 %v16193_v19  ;;  %v16226_v26 = vcombine.high %v6968_v56, %v6972_v41  ;;  %v6913_v46 = vld [vmem:[#allocation14 + $0x150] sm:$0xff] }
 0x802   :  { %7710 = vmatprep.subr.bf16.mxu1 %v16202_v4  ;;  %v6917_v55 = vld [vmem:[#allocation14 + $0x170] sm:$0xff]  ;;  %v16225_v19 = vcombine.low %v6968_v56, %v6972_v41  ;;  %v6984_v4 = vld [vmem:[#allocation14 + $0x388] sm:$0xff] }
 0x803   :  { %6183 = vadd.xlane.f32.xlu0 %v6182_v10  ;;  %v6185_v12 = vadd.f32 %v20063_v23, %v20061_v50  ;;  %v6885_v10 = vld [vmem:[#allocation14 + $0x70] sm:$0xff]  ;;  %7745 = vmatprep.subr.bf16.mxu0 %v16132_v9  ;;  %v6988_v9 = vld [vmem:[#allocation14 + $0x3a8] sm:$0xff]  ;;  %v16171_v44 = vcombine.low %v6913_v46, %v6917_v55 }
 0x804   :  { %v16140_v63 = vcombine.high %v6881_v30, %v6885_v10  ;;  %7746 = vmatpush1.bf16.msra.mxu0 %v16131_v45  ;;  %v16139_v0 = vcombine.low %v6881_v30, %v6885_v10  ;;  %v16163_v45 = vcombine.low %v6905_v6, %v6909_v57  ;;  %v16234_v30 = vcombine.high %v6976_v27, %v6980_v58  ;;  %v6921_v10 = vld [vmem:[#allocation14 + $0x190] sm:$0xff] }
 0x805   :  { %6186 = vadd.xlane.f32.xlu1 %v6185_v12  ;;  %v6956_v12 = vld [vmem:[#allocation14 + $0x2a8] sm:$0xff]  ;;  %7711 = vmatpush1.bf16.msra.mxu1 %v16201_v49  ;;  %v16242_v62 = vcombine.high %v6984_v4, %v6988_v9  ;;  %v16241_v13 = vcombine.low %v6984_v4, %v6988_v9  ;;  %v6937_v56 = vld [vmem:[#allocation14 + $0x210] sm:$0xff] }
 0x806   :  { %v16210_v18 = vcombine.high %v6952_v47, %v6956_v12  ;;  %7747 = vmatprep.subr.bf16.mxu0 %v16140_v63  ;;  %v16209_v8 = vcombine.low %v6952_v47, %v6956_v12  ;;  %v16172_v47 = vcombine.high %v6913_v46, %v6917_v55  ;;  %v6925_v12 = vld [vmem:[#allocation14 + $0x1b0] sm:$0xff]  ;;  %v16233_v63 = vcombine.low %v6976_v27, %v6980_v58  ;;  %v6992_v49 = vld [vmem:[#allocation14 + $0x3c8] sm:$0xff] }
 0x807   :  { %v16179_v59 = vcombine.low %v6921_v10, %v6925_v12  ;;  %v6945_v27 = vld [vmem:[#allocation14 + $0x250] sm:$0xff] }
 0x808   :  { %7748 = vmatpush1.bf16.msra.mxu0 %v16139_v0  ;;  %7712 = vmatprep.subr.bf16.mxu1 %v16210_v18  ;;  %v16180_v0 = vcombine.high %v6921_v10, %v6925_v12  ;;  %v6996_v18 = vld [vmem:[#allocation14 + $0x3e8] sm:$0xff]  ;;  %v6953_v4 = vld [vmem:[#allocation14 + $0x290] sm:$0xff] }
 0x809   :  { %7749 = vmatprep.subr.bf16.mxu0 %v16148_v54  ;;  %7713 = vmatpush1.bf16.msra.mxu1 %v16209_v8  ;;  %v6933_v54 = vld [vmem:[#allocation14 + $0x1f0] sm:$0xff]  ;;  %v16250_v7 = vcombine.high %v6992_v49, %v6996_v18  ;;  %v6874_v8 = vld [vmem:[#allocation14 + $0x18] sm:$0xff]  ;;  %v16249_v41 = vcombine.low %v6992_v49, %v6996_v18 }
 0x80a   :  { %7714 = vmatprep.subr.bf16.mxu1 %v16218_v17  ;;  %v6878_v17 = vld [vmem:[#allocation14 + $0x38] sm:$0xff]  ;;  %v16187_v6 = vcombine.low %v6929_v2, %v6933_v54  ;;  %v6961_v49 = vld [vmem:[#allocation14 + $0x2d0] sm:$0xff] }
 0x80b   :  { %v16134_v57 = vcombine.high %v6874_v8, %v6878_v17  ;;  %v16133_v58 = vcombine.low %v6874_v8, %v6878_v17  ;;  %v6969_v8 = vld [vmem:[#allocation14 + $0x310] sm:$0xff] }
 0x80c   :  { %7750 = vmatpush1.bf16.msra.mxu0 %v16147_v42  ;;  %v16188_v42 = vcombine.high %v6929_v2, %v6933_v54 }
 0x80d   :  { %7751 = vmatprep.subr.bf16.mxu0 %v16156_v5  ;;  %7715 = vmatpush1.bf16.msra.mxu1 %v16217_v22  ;;  %v6941_v5 = vld [vmem:[#allocation14 + $0x230] sm:$0xff]  ;;  %v6882_v22 = vld [vmem:[#allocation14 + $0x58] sm:$0xff] }
 0x80e   :  { %7716 = vmatprep.subr.bf16.mxu1 %v16226_v26  ;;  %v6886_v26 = vld [vmem:[#allocation14 + $0x78] sm:$0xff]  ;;  %v16195_v46 = vcombine.low %v6937_v56, %v6941_v5 }
 0x80f   :  { %v16142_v55 = vcombine.high %v6882_v22, %v6886_v26  ;;  %v16141_v9 = vcombine.low %v6882_v22, %v6886_v26  ;;  %v6977_v22 = vld [vmem:[#allocation14 + $0x350] sm:$0xff] }
 0x810   :  { %7752 = vmatpush1.bf16.msra.mxu0 %v16155_v21  ;;  %v16196_v21 = vcombine.high %v6937_v56, %v6941_v5 }
 0x811   :  { %7753 = vmatprep.subr.bf16.mxu0 %v16164_v40  ;;  %7717 = vmatpush1.bf16.msra.mxu1 %v16225_v19  ;;  %v6949_v40 = vld [vmem:[#allocation14 + $0x270] sm:$0xff]  ;;  %v6890_v19 = vld [vmem:[#allocation14 + $0x98] sm:$0xff] }
 0x812   :  { %7718 = vmatprep.subr.bf16.mxu1 %v16234_v30  ;;  %v6894_v30 = vld [vmem:[#allocation14 + $0xb8] sm:$0xff]  ;;  %v16203_v10 = vcombine.low %v6945_v27, %v6949_v40 }
 0x813   :  { %v16150_v12 = vcombine.high %v6890_v19, %v6894_v30  ;;  %v16149_v18 = vcombine.low %v6890_v19, %v6894_v30  ;;  %v6985_v19 = vld [vmem:[#allocation14 + $0x390] sm:$0xff] }
 0x814   :  { %7754 = vmatpush1.bf16.msra.mxu0 %v16163_v45  ;;  %v16204_v45 = vcombine.high %v6945_v27, %v6949_v40 }
 0x815   :  { %7755 = vmatprep.subr.bf16.mxu0 %v16172_v47  ;;  %7719 = vmatpush1.bf16.msra.mxu1 %v16233_v63  ;;  %v6957_v47 = vld [vmem:[#allocation14 + $0x2b0] sm:$0xff]  ;;  %v6898_v63 = vld [vmem:[#allocation14 + $0xd8] sm:$0xff] }
 0x816   :  { %7720 = vmatprep.subr.bf16.mxu1 %v16242_v62  ;;  %v6902_v62 = vld [vmem:[#allocation14 + $0xf8] sm:$0xff]  ;;  %v16211_v2 = vcombine.low %v6953_v4, %v6957_v47 }
 0x817   :  { %v16158_v54 = vcombine.high %v6898_v63, %v6902_v62  ;;  %v16157_v17 = vcombine.low %v6898_v63, %v6902_v62  ;;  %v6997_v63 = vld [vmem:[#allocation14 + $0x3f0] sm:$0xff] }
 0x818   :  { %7756 = vmatpush1.bf16.msra.mxu0 %v16171_v44  ;;  %v16212_v44 = vcombine.high %v6953_v4, %v6957_v47 }
 0x819   :  { %7757 = vmatprep.subr.bf16.mxu0 %v16180_v0  ;;  %7721 = vmatpush1.bf16.msra.mxu1 %v16241_v13  ;;  %v6965_v0 = vld [vmem:[#allocation14 + $0x2f0] sm:$0xff]  ;;  %v6906_v13 = vld [vmem:[#allocation14 + $0x118] sm:$0xff] }
 0x81a   :  { %7722 = vmatprep.subr.bf16.mxu1 %v16250_v7  ;;  %v6910_v7 = vld [vmem:[#allocation14 + $0x138] sm:$0xff]  ;;  %v16219_v56 = vcombine.low %v6961_v49, %v6965_v0 }
 0x81b   :  { %v16166_v5 = vcombine.high %v6906_v13, %v6910_v7  ;;  %v16165_v26 = vcombine.low %v6906_v13, %v6910_v7  ;;  %v17642_v7 = vld [vmem:[#allocation13 + $0x4] ss:$16 sps:$4 sm:$0xff]  }
 0x81c   :  { %7758 = vmatpush1.bf16.msra.mxu0 %v16179_v59  ;;  %v16220_v59 = vcombine.high %v6961_v49, %v6965_v0 }
 0x81d   :  { %7759 = vmatprep.subr.bf16.mxu0 %v16188_v42  ;;  %7723 = vmatpush1.bf16.msra.mxu1 %v16249_v41  ;;  %v6973_v42 = vld [vmem:[#allocation14 + $0x330] sm:$0xff]  ;;  %v6914_v41 = vld [vmem:[#allocation14 + $0x158] sm:$0xff] }
 0x81e   :  { %7798 = vmatprep.subr.bf16.mxu1 %v16134_v57  ;;  %v6918_v57 = vld [vmem:[#allocation14 + $0x178] sm:$0xff]  ;;  %v16227_v27 = vcombine.low %v6969_v8, %v6973_v42 }
 0x81f   :  { %v16174_v40 = vcombine.high %v6914_v41, %v6918_v57  ;;  %v16173_v30 = vcombine.low %v6914_v41, %v6918_v57  ;;  %v17648_v41 = vld [vmem:[#allocation13 + $0x24] ss:$16 sps:$4 sm:$0xff]   ;;  %v6958_v57 = vld [vmem:[#allocation14 + $0x2b8] sm:$0xff] }
 0x820   :  { %7760 = vmatpush1.bf16.msra.mxu0 %v16187_v6  ;;  %7725 = vmatmul.mubr.bf16.vlgmr.msra.gmra.mrb[88].mxu1 %v20054_v11  ;;  %v16228_v6 = vcombine.high %v6969_v8, %v6973_v42  ;;  %v6946_v8 = vld [vmem:[#allocation14 + $0x258] sm:$0xff] }
 0x821   :  { %7761 = vmatprep.subr.bf16.mxu0 %v16196_v21  ;;  %7799 = vmatpush1.bf16.msra.mxu1 %v16133_v58  ;;  %v6981_v21 = vld [vmem:[#allocation14 + $0x370] sm:$0xff]  ;;  %v6922_v58 = vld [vmem:[#allocation14 + $0x198] sm:$0xff] }
 0x822   :  { %7800 = vmatprep.subr.bf16.mxu1 %v16142_v55  ;;  %7734 = vmatprep.mubr.bf16.mxu1 %v20069_v36  ;;  %v6926_v55 = vld [vmem:[#allocation14 + $0x1b8] sm:$0xff]  ;;  %v16235_v4 = vcombine.low %v6977_v22, %v6981_v21 }
 0x823   :  { %v16182_v47 = vcombine.high %v6922_v58, %v6926_v55  ;;  %v6950_v42 = vld [vmem:[#allocation14 + $0x278] sm:$0xff] }
 0x824   :  { %7762 = vmatpush1.bf16.msra.mxu0 %v16195_v46  ;;  %v16236_v46 = vcombine.high %v6977_v22, %v6981_v21  ;;  %v16205_v22 = vcombine.low %v6946_v8, %v6950_v42  ;;  %v17646_v21 = vld [vmem:[#allocation13 + $0x20] ss:$16 sps:$4 sm:$0xff]  }
 0x825   :  { %7763 = vmatprep.subr.bf16.mxu0 %v16204_v45  ;;  %7801 = vmatpush1.bf16.msra.mxu1 %v16141_v9  ;;  %v6989_v45 = vld [vmem:[#allocation14 + $0x3b0] sm:$0xff]  ;;  %v6930_v9 = vld [vmem:[#allocation14 + $0x1d8] sm:$0xff] }
 0x826   :  { %7802 = vmatprep.subr.bf16.mxu1 %v16150_v12  ;;  %v6993_v12 = vld [vmem:[#allocation14 + $0x3d0] sm:$0xff]  ;;  %v16243_v62 = vcombine.low %v6985_v19, %v6989_v45 }
 0x827   :  { %v16252_v0 = vcombine.high %v6993_v12, %v6997_v63  ;;  %v16251_v13 = vcombine.low %v6993_v12, %v6997_v63 }
 0x828   :  { %7764 = vmatpush1.bf16.msra.mxu0 %v16203_v10  ;;  %7735 = vmatmul.mubr.bf16.gmra.mrb[92].mxu1 %v20071_v61  ;;  %v6934_v10 = vld [vmem:[#allocation14 + $0x1f8] sm:$0xff] }
 0x829   :  { %7765 = vmatprep.subr.bf16.mxu0 %v16212_v44  ;;  %7803 = vmatpush1.bf16.msra.mxu1 %v16149_v18  ;;  %v16181_v44 = vcombine.low %v6922_v58, %v6926_v55  ;;  %v16190_v49 = vcombine.high %v6930_v9, %v6934_v10  ;;  %v6938_v18 = vld [vmem:[#allocation14 + $0x218] sm:$0xff] }
 0x82a   :  { %7804 = vmatprep.subr.bf16.mxu1 %v16158_v54  ;;  %7830 = vmatprep.mubr.bf16.mxu1 %v20050_v34  ;;  %v16244_v34 = vcombine.high %v6985_v19, %v6989_v45  ;;  %v16189_v54 = vcombine.low %v6930_v9, %v6934_v10  ;;  %v6966_v58 = vld [vmem:[#allocation14 + $0x2f8] sm:$0xff]  ;;  %v17652_v19 = vld [vmem:[#allocation13 + $0x40] ss:$16 sps:$4 sm:$0xff]  }
 0x82b   :  { %v6970_v45 = vld [vmem:[#allocation14 + $0x318] sm:$0xff] }
 0x82c   :  { %7766 = vmatpush1.bf16.msra.mxu0 %v16211_v2  ;;  %v6942_v2 = vld [vmem:[#allocation14 + $0x238] sm:$0xff] }
 0x82d   :  { %7767 = vmatprep.subr.bf16.mxu0 %v16220_v59  ;;  %7805 = vmatpush1.bf16.msra.mxu1 %v16157_v17  ;;  %v16198_v59 = vcombine.high %v6938_v18, %v6942_v2  ;;  %v16197_v17 = vcombine.low %v6938_v18, %v6942_v2  ;;  %v6982_v18 = vld [vmem:[#allocation14 + $0x378] sm:$0xff]  ;;  %v17666_v2 = vld [vmem:[#allocation13 + $0x84] ss:$16 sps:$4 sm:$0xff]  }
 0x82e   :  { %7806 = vmatprep.subr.bf16.mxu1 %v16166_v5  ;;  %v16206_v5 = vcombine.high %v6946_v8, %v6950_v42  ;;  %v17664_v8 = vld [vmem:[#allocation13 + $0x80] ss:$16 sps:$4 sm:$0xff]   ;;  %v6986_v42 = vld [vmem:[#allocation14 + $0x398] sm:$0xff] }
 0x830   :  { %7768 = vmatpush1.bf16.msra.mxu0 %v16219_v56  ;;  %v17640_v56 = vld [vmem:[#allocation13] ss:$16 sps:$4 sm:$0xff]  }
 0x831   :  { %7769 = vmatprep.subr.bf16.mxu0 %v16228_v6  ;;  %7807 = vmatpush1.bf16.msra.mxu1 %v16165_v26  ;;  %v6954_v6 = vld [vmem:[#allocation14 + $0x298] sm:$0xff] }
 0x832   :  { %7808 = vmatprep.subr.bf16.mxu1 %v16174_v40  ;;  %v16214_v26 = vcombine.high %v6954_v6, %v6958_v57  ;;  %v6962_v40 = vld [vmem:[#allocation14 + $0x2d8] sm:$0xff] }
 0x833   :  { %v16222_v55 = vcombine.high %v6962_v40, %v6966_v58  ;;  %v16221_v9 = vcombine.low %v6962_v40, %v6966_v58  ;;  %v17676_v40 = vld [vmem:[#allocation13 + $0xc0] ss:$16 sps:$4 sm:$0xff]   ;;  %v17684_v58 = vld [vmem:[#allocation13 + $0xe4] ss:$16 sps:$4 sm:$0xff]  }
 0x834   :  { %7770 = vmatpush1.bf16.msra.mxu0 %v16227_v27  ;;  %v17654_v27 = vld [vmem:[#allocation13 + $0x44] ss:$16 sps:$4 sm:$0xff]  }
 0x835   :  { %7771 = vmatprep.subr.bf16.mxu0 %v16236_v46  ;;  %7809 = vmatpush1.bf16.msra.mxu1 %v16173_v30  ;;  %v16213_v46 = vcombine.low %v6954_v6, %v6958_v57  ;;  %v6974_v30 = vld [vmem:[#allocation14 + $0x338] sm:$0xff]  ;;  %v17670_v6 = vld [vmem:[#allocation13 + $0xa0] ss:$16 sps:$4 sm:$0xff]  }
 0x836   :  { %7810 = vmatprep.subr.bf16.mxu1 %v16182_v47  ;;  %v20082_v47 = vpop.f32.mrb[80].mxu1  ;;  %v6994_v57 = vld [vmem:[#allocation14 + $0x3d8] sm:$0xff] }
 0x837   :  { %7855 = vrot.lane.b32.xlu1 %v20082_v47, %s18511_s15 }
 0x838   :  { %7772 = vmatpush1.bf16.msra.mxu0 %v16235_v4  ;;  %v17660_v4 = vld [vmem:[#allocation13 + $0x64] ss:$16 sps:$4 sm:$0xff]  }
 0x839   :  { %7773 = vmatprep.subr.bf16.mxu0 %v16244_v34  ;;  %7811 = vmatpush1.bf16.msra.mxu1 %v16181_v44  ;;  %v20087_v34 = vpop.f32.mrb[81].mxu1  ;;  %v16230_v44 = vcombine.high %v6970_v45, %v6974_v30 }
 0x83a   :  { %7812 = vmatprep.subr.bf16.mxu1 %v16190_v49  ;;  %v7915_v10 = vcombine.low %v20082_v47, %v20087_v34  ;;  %v7916_v12 = vcombine.high %v20082_v47, %v20087_v34  ;;  %v20093_v63 = vpop.f32.mrb[82].mxu1 }
 0x83b   :  { %v20095_v49 = vpop.f32.mrb[83].mxu1  ;;  %7871 = vrot.lane.b32.xlu1 %v20087_v34, %s18511_s15 }
 0x83c   :  { %7774 = vmatpush1.bf16.msra.mxu0 %v16243_v62  ;;  %v17658_v62 = vld [vmem:[#allocation13 + $0x60] ss:$16 sps:$4 sm:$0xff]  }
 0x83d   :  { %7775 = vmatprep.subr.bf16.mxu0 %v16252_v0  ;;  %7813 = vmatpush1.bf16.msra.mxu1 %v16189_v54  ;;  %v6978_v0 = vld [vmem:[#allocation14 + $0x358] sm:$0xff]  ;;  %v8051_v54 = vcombine.low %v20093_v63, %v20095_v49 }
 0x83e   :  { %7814 = vmatprep.subr.bf16.mxu1 %v16198_v59  ;;  %v16229_v59 = vcombine.low %v6970_v45, %v6974_v30  ;;  %v17690_v45 = vld [vmem:[#allocation13 + $0x104] ss:$16 sps:$4 sm:$0xff]   ;;  %v17643_v30 = vld [vmem:[#allocation13 + $0x8] ss:$16 sps:$4 sm:$0xff]  }
 0x83f   :  { %7873 = vrot.lane.b32.xlu1 %v20095_v49, %s18511_s15 }
 0x840   :  { %7776 = vmatpush1.bf16.msra.mxu0 %v16251_v13  ;;  %v8052_v13 = vcombine.high %v20093_v63, %v20095_v49 }
 0x841   :  { %9453 = vmatprep.subr.bf16.mxu0 %v17642_v7  ;;  %7815 = vmatpush1.bf16.msra.mxu1 %v16197_v17  ;;  %v16238_v7 = vcombine.high %v6978_v0, %v6982_v18  ;;  %v6990_v17 = vld [vmem:[#allocation14 + $0x3b8] sm:$0xff] }
 0x842   :  { %7816 = vmatprep.subr.bf16.mxu1 %v16206_v5  ;;  %v16237_v5 = vcombine.low %v6978_v0, %v6982_v18  ;;  %v17655_v0 = vld [vmem:[#allocation13 + $0x48] ss:$16 sps:$4 sm:$0xff]   ;;  %v17663_v18 = vld [vmem:[#allocation13 + $0x6c] ss:$16 sps:$4 sm:$0xff]  }
 0x843   :  { %7778 = vmatmul.mubr.bf16.vlgmr.msra.gmra.mrb[76].mxu0 %v20054_v11 }
 0x844   :  { %9454 = vmatpush1.bf16.msra.mxu0 %v17640_v56  ;;  %7787 = vmatprep.mubr.bf16.mxu0 %v20069_v36  ;;  %v17672_v56 = vld [vmem:[#allocation13 + $0xa4] ss:$16 sps:$4 sm:$0xff]  }
 0x845   :  { %9455 = vmatprep.subr.bf16.mxu0 %v17648_v41  ;;  %7817 = vmatpush1.bf16.msra.mxu1 %v16205_v22  ;;  %v16246_v41 = vcombine.high %v6986_v42, %v6990_v17  ;;  %v6998_v22 = vld [vmem:[#allocation14 + $0x3f8] sm:$0xff] }
 0x846   :  { %7818 = vmatprep.subr.bf16.mxu1 %v16214_v26  ;;  %v16245_v26 = vcombine.low %v6986_v42, %v6990_v17 }
 0x848   :  { %9456 = vmatpush1.bf16.msra.mxu0 %v17646_v21  ;;  %v17678_v21 = vld [vmem:[#allocation13 + $0xc4] ss:$16 sps:$4 sm:$0xff]  }
 0x849   :  { %9457 = vmatprep.subr.bf16.mxu0 %v17654_v27  ;;  %7819 = vmatpush1.bf16.msra.mxu1 %v16213_v46  ;;  %v16254_v27 = vcombine.high %v6994_v57, %v6998_v22  ;;  %v16253_v46 = vcombine.low %v6994_v57, %v6998_v22  ;;  %v17681_v22 = vld [vmem:[#allocation13 + $0xcc] ss:$16 sps:$4 sm:$0xff]  }
 0x84a   :  { %7820 = vmatprep.subr.bf16.mxu1 %v16222_v55  ;;  %v17645_v55 = vld [vmem:[#allocation13 + $0xc] ss:$16 sps:$4 sm:$0xff]  }
 0x84b   :  { %7788 = vmatmul.mubr.bf16.gmra.mrb[80].mxu0 %v20071_v61 }
 0x84c   :  { %9458 = vmatpush1.bf16.msra.mxu0 %v17652_v19  ;;  %v17682_v19 = vld [vmem:[#allocation13 + $0xe0] ss:$16 sps:$4 sm:$0xff]  }
 0x84d   :  { %9459 = vmatprep.subr.bf16.mxu0 %v17660_v4  ;;  %7821 = vmatpush1.bf16.msra.mxu1 %v16221_v9  ;;  %v17651_v4 = vld [vmem:[#allocation13 + $0x2c] ss:$16 sps:$4 sm:$0xff]   ;;  %v17688_v9 = vld [vmem:[#allocation13 + $0x100] ss:$16 sps:$4 sm:$0xff]  }
 0x84e   :  { %7822 = vmatprep.subr.bf16.mxu1 %v16230_v44  ;;  %v17649_v44 = vld [vmem:[#allocation13 + $0x28] ss:$16 sps:$4 sm:$0xff]  }
 0x850   :  { %9460 = vmatpush1.bf16.msra.mxu0 %v17658_v62  ;;  %v17657_v62 = vld [vmem:[#allocation13 + $0x4c] ss:$16 sps:$4 sm:$0xff]  }
 0x851   :  { %9461 = vmatprep.subr.bf16.mxu0 %v17666_v2  ;;  %7823 = vmatpush1.bf16.msra.mxu1 %v16229_v59 }
 0x852   :  { %7824 = vmatprep.subr.bf16.mxu1 %v16238_v7  ;;  %v17661_v7 = vld [vmem:[#allocation13 + $0x68] ss:$16 sps:$4 sm:$0xff]  }
 0x854   :  { %9462 = vmatpush1.bf16.msra.mxu0 %v17664_v8 }
 0x855   :  { %9463 = vmatprep.subr.bf16.mxu0 %v17672_v56  ;;  %7825 = vmatpush1.bf16.msra.mxu1 %v16237_v5 }
 0x856   :  { %7826 = vmatprep.subr.bf16.mxu1 %v16246_v41 }
 0x858   :  { %9464 = vmatpush1.bf16.msra.mxu0 %v17670_v6  ;;  %v17667_v6 = vld [vmem:[#allocation13 + $0x88] ss:$16 sps:$4 sm:$0xff]  }
 0x859   :  { %9465 = vmatprep.subr.bf16.mxu0 %v17678_v21  ;;  %7827 = vmatpush1.bf16.msra.mxu1 %v16245_v26  ;;  %v17679_v26 = vld [vmem:[#allocation13 + $0xc8] ss:$16 sps:$4 sm:$0xff]  }
 0x85a   :  { %7828 = vmatprep.subr.bf16.mxu1 %v16254_v27  ;;  %v17687_v27 = vld [vmem:[#allocation13 + $0xec] ss:$16 sps:$4 sm:$0xff]  }
 0x85c   :  { %9466 = vmatpush1.bf16.msra.mxu0 %v17676_v40  ;;  %v17685_v40 = vld [vmem:[#allocation13 + $0xe8] ss:$16 sps:$4 sm:$0xff]  }
 0x85d   :  { %9467 = vmatprep.subr.bf16.mxu0 %v17684_v58  ;;  %7829 = vmatpush1.bf16.msra.mxu1 %v16253_v46  ;;  %v17693_v58 = vld [vmem:[#allocation13 + $0x10c] ss:$16 sps:$4 sm:$0xff]   ;;  %v17691_v46 = vld [vmem:[#allocation13 + $0x108] ss:$16 sps:$4 sm:$0xff]  }
 0x85e   :  { %9496 = vmatprep.subr.bf16.mxu1 %v17645_v55  ;;  %v17696_v55 = vld [vmem:[#allocation13 + $0x124] ss:$16 sps:$4 sm:$0xff]  }
 0x860   :  { %9468 = vmatpush1.bf16.msra.mxu0 %v17682_v19  ;;  %7831 = vmatmul.mubr.bf16.vlgmr.msra.gmra.mrb[96].mxu1 %v20054_v11  ;;  %v17669_v11 = vld [vmem:[#allocation13 + $0x8c] ss:$16 sps:$4 sm:$0xff]  }
 0x861   :  { %9469 = vmatprep.subr.bf16.mxu0 %v17690_v45  ;;  %9497 = vmatpush1.bf16.msra.mxu1 %v17643_v30  ;;  %v17699_v19 = vld [vmem:[#allocation13 + $0x12c] ss:$16 sps:$4 sm:$0xff]   ;;  %v17694_v45 = vld [vmem:[#allocation13 + $0x120] ss:$16 sps:$4 sm:$0xff]   ;;  %v17697_v30 = vld [vmem:[#allocation13 + $0x128] ss:$16 sps:$4 sm:$0xff]  }
 0x862   :  { %7840 = vmatprep.mubr.bf16.mxu1 %v20069_v36  ;;  %9498 = vmatprep.subr.bf16.mxu1 %v17651_v4  ;;  %v17702_v4 = vld [vmem:[#allocation13 + $0x144] ss:$16 sps:$4 sm:$0xff]  }
 0x864   :  { %9470 = vmatpush1.bf16.msra.mxu0 %v17688_v9  ;;  %v17705_v9 = vld [vmem:[#allocation13 + $0x14c] ss:$16 sps:$4 sm:$0xff]  }
 0x865   :  { %9499 = vmatpush1.bf16.msra.mxu1 %v17649_v44  ;;  %9471 = vmatprep.subr.bf16.mxu0 %v17696_v55  ;;  %v17700_v44 = vld [vmem:[#allocation13 + $0x140] ss:$16 sps:$4 sm:$0xff]   ;;  %v7930_v55 = vrot.slane %v7916_v12, %v18883_v43 }
 0x866   :  { %9500 = vmatprep.subr.bf16.mxu1 %v17657_v62  ;;  %v17703_v62 = vld [vmem:[#allocation13 + $0x148] ss:$16 sps:$4 sm:$0xff]  }
 0x868   :  { %7841 = vmatmul.mubr.bf16.gmra.mrb[100].mxu1 %v20071_v61  ;;  %9472 = vmatpush1.bf16.msra.mxu0 %v17694_v45 }
 0x869   :  { %9501 = vmatpush1.bf16.msra.mxu1 %v17655_v0  ;;  %9473 = vmatprep.subr.bf16.mxu0 %v17702_v4  ;;  %v17708_v0 = vld [vmem:[#allocation13 + $0x164] ss:$16 sps:$4 sm:$0xff]  }
 0x86a   :  { %9502 = vmatprep.subr.bf16.mxu1 %v17663_v18  ;;  %v17711_v18 = vld [vmem:[#allocation13 + $0x16c] ss:$16 sps:$4 sm:$0xff]  }
 0x86c   :  { %9474 = vmatpush1.bf16.msra.mxu0 %v17700_v44 }
 0x86d   :  { %9503 = vmatpush1.bf16.msra.mxu1 %v17661_v7  ;;  %9475 = vmatprep.subr.bf16.mxu0 %v17708_v0  ;;  %v17714_v7 = vld [vmem:[#allocation13 + $0x184] ss:$16 sps:$4 sm:$0xff]  }
 0x86e   :  { %9504 = vmatprep.subr.bf16.mxu1 %v17669_v11  ;;  %v17712_v11 = vld [vmem:[#allocation13 + $0x180] ss:$16 sps:$4 sm:$0xff]  }
 0x871   :  { %9505 = vmatpush1.bf16.msra.mxu1 %v17667_v6  ;;  %v17723_v6 = vld [vmem:[#allocation13 + $0x1ac] ss:$16 sps:$4 sm:$0xff]  }
 0x890   :  { %v6184_v2 = vpop.xlane.xlu0 %6183 }
 0x891   :  { %v6189_v59 = vmul.f32 0.00390625, %v6184_v2  ;;  %v17706_v2 = vld [vmem:[#allocation13 + $0x160] ss:$16 sps:$4 sm:$0xff]  }
 0x892   :  { %v6187_v8 = vpop.xlane.xlu1 %6186  ;;  %9476 = vmatpush1.bf16.msra.mxu0 %v17706_v2 }
 0x893   :  { %v20109_v42 = vsub.f32 %v20057_v15, %v6189_v59  ;;  %v20112_v36 = vsub.f32 %v20059_v48, %v6189_v59  ;;  %v6190_v17 = vmul.f32 0.00390625, %v6187_v8  ;;  %v17675_v15 = vld [vmem:[#allocation13 + $0xac] ss:$16 sps:$4 sm:$0xff]   ;;  %v17709_v59 = vld [vmem:[#allocation13 + $0x168] ss:$16 sps:$4 sm:$0xff]   ;;  %9477 = vmatprep.subr.bf16.mxu0 %v17714_v7 }
 0x894   :  { %9506 = vmatprep.subr.bf16.mxu1 %v17675_v15  ;;  %v17717_v8 = vld [vmem:[#allocation13 + $0x18c] ss:$16 sps:$4 sm:$0xff]   ;;  %v17721_v15 = vld [vmem:[#allocation13 + $0x1a8] ss:$16 sps:$4 sm:$0xff]  }
 0x895   :  { %v20115_v56 = vsub.f32 %v20061_v50, %v6190_v17  ;;  %v20118_v5 = vsub.f32 %v20063_v23, %v6190_v17  ;;  %v6195_v61 = vmul.f32 %v20109_v42, %v20109_v42  ;;  %v6196_v41 = vmul.f32 %v20112_v36, %v20112_v36  ;;  %v17673_v23 = vld [vmem:[#allocation13 + $0xa8] ss:$16 sps:$4 sm:$0xff]  }
 0x896   :  { %9507 = vmatpush1.bf16.msra.mxu1 %v17673_v23  ;;  %v17715_v17 = vld [vmem:[#allocation13 + $0x188] ss:$16 sps:$4 sm:$0xff]   ;;  %9478 = vmatpush1.bf16.msra.mxu0 %v17712_v11 }
 0x897   :  { %v6199_v57 = vadd.f32 %v6196_v41, %v6195_v61  ;;  %v6197_v48 = vmul.f32 %v20115_v56, %v20115_v56  ;;  %v6198_v50 = vmul.f32 %v20118_v5, %v20118_v5  ;;  %9508 = vmatprep.subr.bf16.mxu1 %v17681_v22  ;;  %v17720_v61 = vld [vmem:[#allocation13 + $0x1a4] ss:$16 sps:$4 sm:$0xff]   ;;  %v17718_v41 = vld [vmem:[#allocation13 + $0x1a0] ss:$16 sps:$4 sm:$0xff]   ;;  %v17727_v23 = vld [vmem:[#allocation13 + $0x1c8] ss:$16 sps:$4 sm:$0xff]  }
 0x898   :  { %9479 = vmatprep.subr.bf16.mxu0 %v17720_v61  ;;  %v17732_v22 = vld [vmem:[#allocation13 + $0x1e4] ss:$16 sps:$4 sm:$0xff]  }
 0x899   :  { %6200 = vadd.xlane.f32.xlu0 %v6199_v57  ;;  %v6202_v21 = vadd.f32 %v6198_v50, %v6197_v48  ;;  %v17726_v57 = vld [vmem:[#allocation13 + $0x1c4] ss:$16 sps:$4 sm:$0xff]   ;;  %v17729_v48 = vld [vmem:[#allocation13 + $0x1cc] ss:$16 sps:$4 sm:$0xff]   ;;  %v17724_v50 = vld [vmem:[#allocation13 + $0x1c0] ss:$16 sps:$4 sm:$0xff]  }
 0x89a   :  { %9509 = vmatpush1.bf16.msra.mxu1 %v17679_v26  ;;  %9480 = vmatpush1.bf16.msra.mxu0 %v17718_v41  ;;  %v17730_v26 = vld [vmem:[#allocation13 + $0x1e0] ss:$16 sps:$4 sm:$0xff]  }
 0x89b   :  { %9510 = vmatprep.subr.bf16.mxu1 %v17687_v27  ;;  %9481 = vmatprep.subr.bf16.mxu0 %v17726_v57  ;;  %v17733_v27 = vld [vmem:[#allocation13 + $0x1e8] ss:$16 sps:$4 sm:$0xff]  }
 0x89d   :  { %6203 = vadd.xlane.f32.xlu0 %v6202_v21  ;;  %v17735_v21 = vld [vmem:[#allocation13 + $0x1ec] ss:$16 sps:$4 sm:$0xff]  }
 0x89e   :  { %9511 = vmatpush1.bf16.msra.mxu1 %v17685_v40  ;;  %9482 = vmatpush1.bf16.msra.mxu0 %v17724_v50 }
 0x89f   :  { %9512 = vmatprep.subr.bf16.mxu1 %v17693_v58  ;;  %9483 = vmatprep.subr.bf16.mxu0 %v17732_v22 }
 0x8a2   :  { %9513 = vmatpush1.bf16.msra.mxu1 %v17691_v46  ;;  %9484 = vmatpush1.bf16.msra.mxu0 %v17730_v26  ;;  %v7923_v46 = vrot.slane %v7915_v10, %v18883_v43 }
 0x8a3   :  { %9514 = vmatprep.subr.bf16.mxu1 %v17699_v19  ;;  %16975 = vmatprep.subr.bf16.mxu0 %v22301_v25 }
 0x8a6   :  { %9515 = vmatpush1.bf16.msra.mxu1 %v17697_v30 }
 0x8a7   :  { %9516 = vmatprep.subr.bf16.mxu1 %v17705_v9 }
 0x8a9   :  { %v7856_v40 = vpop.permute.xlu1 %7855 }
 0x8aa   :  { %9517 = vmatpush1.bf16.msra.mxu1 %v17703_v62 }
 0x8ab   :  { %9518 = vmatprep.subr.bf16.mxu1 %v17711_v18 }
 0x8ad   :  { %v7872_v58 = vpop.permute.xlu1 %7871 }
 0x8ae   :  { %9519 = vmatpush1.bf16.msra.mxu1 %v17709_v59  ;;  %v7931_v19 = vcombine.low %v7856_v40, %v7872_v58  ;;  %v7932_v45 = vcombine.high %v7856_v40, %v7872_v58 }
 0x8af   :  { %9520 = vmatprep.subr.bf16.mxu1 %v17717_v8 }
 0x8b0   :  { %v7939_v30 = vrot.slane %v7931_v19, %v18883_v43  ;;  %v7946_v4 = vrot.slane %v7932_v45, %v18883_v43 }
 0x8b2   :  { %9521 = vmatpush1.bf16.msra.mxu1 %v17715_v17  ;;  %v7979_v9 = vcombine.low %v7923_v46, %v7939_v30  ;;  %v7980_v44 = vcombine.high %v7923_v46, %v7939_v30  ;;  %v7995_v62 = vcombine.low %v7930_v55, %v7946_v4  ;;  %v7996_v0 = vcombine.high %v7930_v55, %v7946_v4  ;;  %v2620_v46 = vld [vmem:[%s22270_s7] sm:$0x3] }
 0x8b3   :  { %7857 = vrot.lane.b32.xlu0 %v20093_v63, %s18511_s15  ;;  %9522 = vmatprep.subr.bf16.mxu1 %v17723_v6 }
 0x8b4   :  { %v7987_v18 = vrot.slane %v7979_v9, %v18888_v52  ;;  %v7994_v2 = vrot.slane %v7980_v44, %v18888_v52  ;;  %v8003_v10 = vrot.slane %v7995_v62, %v18888_v52  ;;  %v8010_v59 = vrot.slane %v7996_v0, %v18888_v52 }
 0x8b6   :  { %9523 = vmatpush1.bf16.msra.mxu1 %v17721_v15  ;;  %v16335_v47 = vcombine.low %v7987_v18, %v7994_v2  ;;  %v16337_v34 = vcombine.high %v7987_v18, %v7994_v2  ;;  %v16339_v12 = vcombine.low %v8003_v10, %v8010_v59  ;;  %v16341_v7 = vcombine.high %v8003_v10, %v8010_v59 }
 0x8b7   :  { %9524 = vmatprep.subr.bf16.mxu1 %v17729_v48 }
 0x8b8   :  { %v10191_v8 = vrot.slane %v16335_v47, %v18883_v43  ;;  %v10207_v11 = vrot.slane %v16337_v34, %v18883_v43  ;;  %v10223_v17 = vrot.slane %v16339_v12, %v18883_v43  ;;  %v10239_v61 = vrot.slane %v16341_v7, %v18883_v43  ;;  %v7874_v7 = vpop.permute.xlu1 %7873 }
 0x8ba   :  { %9525 = vmatpush1.bf16.msra.mxu1 %v17727_v23  ;;  %v10247_v41 = vcombine.low %v10191_v8, %v10207_v11  ;;  %v10279_v6 = vcombine.low %v10223_v17, %v10239_v61  ;;  %v20160_v23 = vpop.f32.mrb[84].mxu1  ;;  %v10248_v55 = vcombine.high %v10191_v8, %v10207_v11  ;;  %v10280_v19 = vcombine.high %v10223_v17, %v10239_v61 }
 0x8bb   :  { %9526 = vmatprep.subr.bf16.mxu1 %v17735_v21  ;;  %v20162_v22 = vpop.f32.mrb[85].mxu1  ;;  %v8059_v8 = vrot.slane %v8051_v54, %v18883_v43 }
 0x8bc   :  { %v20151_v15 = vrot.slane %v10247_v41, %v18888_v52  ;;  %v20154_v57 = vrot.slane %v10279_v6, %v18888_v52  ;;  %v20177_v45 = vrot.slane %v10248_v55, %v18888_v52  ;;  %v20180_v30 = vrot.slane %v10280_v19, %v18888_v52 }
 0x8be   :  { %9527 = vmatpush1.bf16.msra.mxu1 %v17733_v27  ;;  %v20168_v27 = vpop.f32.mrb[86].mxu1 }
 0x8bf   :  { %16981 = vmatprep.subr.bf16.mxu1 %v22301_v25  ;;  %v20170_v40 = vpop.f32.mrb[87].mxu1 }
 0x8c0   :  { %v22428_v33 = vcombine.low %v20168_v27, %v20170_v40  ;;  %v22429_v53 = vcombine.high %v20168_v27, %v20170_v40 }
 0x8c2   :  { %v20448_v31 = vrot.slane %v22428_v33, %v18883_v43 }
 0x8f3   :  { %v20186_v44 = vpop.f32.mrb[88].mxu1 }
 0x8f4   :  { %v20188_v62 = vpop.f32.mrb[89].mxu1 }
 0x8f5   :  { %v20194_v2 = vpop.f32.mrb[90].mxu1 }
 0x8f6   :  { %v20196_v10 = vpop.f32.mrb[91].mxu1 }
 0x8f7   :  { %v22432_v16 = vcombine.low %v20194_v2, %v20196_v10 }
 0x8fb   :  { %v20202_v34 = vpop.f32.mrb[92].mxu1 }
 0x8fc   :  { %v20204_v12 = vpop.f32.mrb[93].mxu1 }
 0x8fd   :  { %v20210_v11 = vpop.f32.mrb[94].mxu1 }
 0x8fe   :  { %v20212_v61 = vpop.f32.mrb[95].mxu1 }
 0x926   :  { %v6201_v17 = vpop.xlane.xlu0 %6200 }
 0x927   :  { %v6205_v41 = vmul.f32 0.00390625, %v6201_v17  ;;  %v8066_v17 = vrot.slane %v8052_v13, %v18883_v43 }
 0x929   :  { %v6207_v19 = vadd.f32 1e-05, %v6205_v41  ;;  %v20227_v41 = vsub.s32 0, %v18880_v39 }
 0x92a   :  { %v6204_v28 = vpop.xlane.xlu0 %6203 }
 0x92b   :  { %18088 = vrsqrt.f32 %v6207_v19  ;;  %v6206_v47 = vmul.f32 0.00390625, %v6204_v28  ;;  %22406 = vst [vmem:[#allocation49_spill] sm:$0xff] %v20227_v41  ;;  %v20230_v28 = vsub.s32 1, %v18880_v39  ;;  %v6234_v4 = vrot.slane %v2620_v46, %v20227_v41 }
 0x92c   :  { %v20454_v39 = vrot.slane %v22429_v53, %v18883_v43  ;;  %v22433_v53 = vcombine.high %v20194_v2, %v20196_v10 }
 0x92d   :  { %v6208_v59 = vadd.f32 1e-05, %v6206_v47  ;;  %22407 = vst [vmem:[#allocation50_spill] sm:$0xff] %v20230_v28  ;;  %v2619_v47 = vld [vmem:[%s22269_s6] sm:$0x3]  ;;  %s18516_s6 = smov 24  }
 0x92e   :  { %v7858_v18 = vpop.permute.xlu0 %7857 }
 0x92f   :  { %18090 = vrsqrt.f32 %v6208_v59  ;;  %v8067_v6 = vcombine.low %v7858_v18, %v7874_v7  ;;  %v8068_v55 = vcombine.high %v7858_v18, %v7874_v7  ;;  %v6219_v18 = vrot.slane %v2619_v47, %v20227_v41 }
 0x930   :  { %v6223_v59 = vrot.slane %v2619_v47, %v20230_v28 }
 0x931   :  { %v8075_v54 = vrot.slane %v8067_v6, %v18883_v43  ;;  %v8082_v19 = vrot.slane %v8068_v55, %v18883_v43 }
 0x933   :  { %v8115_v0 = vcombine.low %v8059_v8, %v8075_v54  ;;  %v8116_v63 = vcombine.high %v8059_v8, %v8075_v54  ;;  %v8131_v49 = vcombine.low %v8066_v17, %v8082_v19  ;;  %v8132_v13 = vcombine.high %v8066_v17, %v8082_v19 }
 0x935   :  { %v18089_v7 = vpop.eup %18088  ;;  %v8123_v58 = vrot.slane %v8115_v0, %v18888_v52  ;;  %v8130_v26 = vrot.slane %v8116_v63, %v18888_v52  ;;  %v8139_v6 = vrot.slane %v8131_v49, %v18888_v52  ;;  %v8146_v55 = vrot.slane %v8132_v13, %v18888_v52 }
 0x936   :  { %v6211_v8 = vmul.f32 %v18089_v7, %v20109_v42  ;;  %v6212_v17 = vmul.f32 %v18089_v7, %v20112_v36  ;;  %v6238_v0 = vrot.slane %v2620_v46, %v20230_v28  ;;  %v22430_v28 = vcombine.low %v20186_v44, %v20188_v62 }
 0x937   :  { %v16343_v54 = vcombine.low %v8123_v58, %v8130_v26  ;;  %v16345_v19 = vcombine.high %v8123_v58, %v8130_v26  ;;  %v16347_v47 = vcombine.low %v8139_v6, %v8146_v55  ;;  %v16349_v21 = vcombine.high %v8139_v6, %v8146_v55  ;;  %v20256_v6 = vpop.f32.mrb[76].mxu0 }
 0x938   :  { %v6226_v25 = vmul.f32 %v6219_v18, %v6211_v8  ;;  %v6227_v9 = vmul.f32 %v6223_v59, %v6212_v17 }
 0x939   :  { %v18091_v50 = vpop.eup %18090  ;;  %v10327_v63 = vrot.slane %v16343_v54, %v18883_v43  ;;  %v10343_v49 = vrot.slane %v16345_v19, %v18883_v43  ;;  %v10359_v13 = vrot.slane %v16347_v47, %v18883_v43  ;;  %v10375_v42 = vrot.slane %v16349_v21, %v18883_v43  ;;  %v20262_v19 = vpop.f32.mrb[77].mxu0 }
 0x93a   :  { %v6213_v36 = vmul.f32 %v18091_v50, %v20115_v56  ;;  %v6214_v26 = vmul.f32 %v18091_v50, %v20118_v5  ;;  %v20258_v48 = vadd.f32 %v6234_v4, %v6226_v25  ;;  %v20260_v54 = vadd.f32 %v6238_v0, %v6227_v9  ;;  %v20270_v47 = vpop.f32.mrb[78].mxu0 }
 0x93b   :  { %v10383_v58 = vcombine.low %v10327_v63, %v10343_v49  ;;  %v10415_v7 = vcombine.low %v10359_v13, %v10375_v42  ;;  %v10384_v55 = vcombine.high %v10327_v63, %v10343_v49  ;;  %v10416_v8 = vcombine.high %v10359_v13, %v10375_v42  ;;  %v20276_v9 = vpop.f32.mrb[79].mxu0 }
 0x93c   :  { %v6228_v46 = vmul.f32 %v6219_v18, %v6213_v36  ;;  %v6229_v17 = vmul.f32 %v6223_v59, %v6214_v26  ;;  %22408 = vst [vmem:[#allocation51_spill] sm:$0xff] %v20258_v48  ;;  %22409 = vst [vmem:[#allocation52_spill] sm:$0xff] %v20260_v54  ;;  %v22412_v26 = vcombine.low %v20151_v15, %v20154_v57 }
 0x93d   :  { %v10391_v21 = vrot.slane %v10383_v58, %v18888_v52  ;;  %v10423_v56 = vrot.slane %v10415_v7, %v18888_v52  ;;  %v10398_v59 = vrot.slane %v10384_v55, %v18888_v52  ;;  %v10430_v63 = vrot.slane %v10416_v8, %v18888_v52 }
 0x93e   :  { %v20272_v18 = vadd.f32 %v6234_v4, %v6228_v46  ;;  %v20274_v25 = vadd.f32 %v6238_v0, %v6229_v17  ;;  %v22413_v7 = vcombine.high %v20151_v15, %v20154_v57  ;;  %v22415_v0 = vcombine.low %v20177_v45, %v20180_v30 }
 0x93f   :  { %v10447_v49 = vcombine.low %v10391_v21, %v10423_v56  ;;  %v10448_v13 = vcombine.high %v10391_v21, %v10423_v56  ;;  %v10449_v8 = vcombine.low %v10398_v59, %v10430_v63  ;;  %v10450_v46 = vcombine.high %v10398_v59, %v10430_v63  ;;  %v20296_v56 = vpop.f32.mrb[80].mxu0 }
 0x940   :  { %22410 = vst [vmem:[#allocation53_spill] sm:$0xff] %v20272_v18  ;;  %22411 = vst [vmem:[#allocation54_spill] sm:$0xff] %v20274_v25  ;;  %v9068_v42 = vpack.c.bf16 %v20274_v25, %v20260_v54  ;;  %v9067_v36 = vpack.c.bf16 %v20272_v18, %v20258_v48  ;;  %v22416_v15 = vcombine.high %v20177_v45, %v20180_v30  ;;  %v20308_v59 = vpop.f32.mrb[81].mxu0 }
 0x941   :  { %v11287_v58 = vpack.c.bf16 %v10447_v49, %v22412_v26  ;;  %v11288_v55 = vpack.c.bf16 %v10448_v13, %v22413_v7  ;;  %22414 = vst [vmem:[#allocation55_spill] sm:$0xff] %v20296_v56  ;;  %v20301_v49 = vpack.c.bf16 %v10449_v8, %v22415_v0  ;;  %22417 = vst [vmem:[#allocation56_spill] sm:$0xff] %v20308_v59  ;;  %v20328_v26 = vpop.f32.mrb[96].mxu1 }
 0x942   :  { %9485 = vmatprep.mubr.bf16.mxu0 %v9068_v42  ;;  %9528 = vmatprep.mubr.bf16.mxu1 %v9068_v42  ;;  %v20306_v57 = vpack.c.bf16 %v10450_v46, %v22416_v15  ;;  %v20314_v42 = vpop.f32.mrb[82].mxu0  ;;  %22421 = vst [vmem:[#allocation59_spill] sm:$0xff] %v20328_v26  ;;  %v22427_v13 = vcombine.high %v20160_v23, %v20162_v22 }
 0x943   :  { %9486 = vmatmul.mubr.bf16.vlgmr.msra.gmra.mrb[84].mxu0 %v9067_v36  ;;  %9529 = vmatmul.mubr.bf16.vlgmr.msra.gmra.mrb[104].mxu1 %v9067_v36  ;;  %v11307_v17 = vsel %vm3469_vm1, %v11287_v58, 0  ;;  %v11353_v21 = vsel %vm3469_vm1, %v11288_v55, 0  ;;  %22418 = vst [vmem:[#allocation57_spill] sm:$0xff] %v20314_v42  ;;  %v22419_v36 = vmov 0.0   ;;  %v20320_v45 = vpop.f32.mrb[83].mxu0  ;;  %v20330_v58 = vpop.f32.mrb[97].mxu1 }
 0x944   :  { %16976 = vmatpush3.bf16.xpose.msra.mxu0 %v11307_v17  ;;  %16982 = vmatpush3.bf16.xpose.msra.mxu1 %v11353_v21  ;;  %22420 = vst [vmem:[#allocation58_spill] sm:$0xff] %v20320_v45  ;;  %v20336_v8 = vpop.f32.mrb[98].mxu1  ;;  %v20442_v51 = vrot.slane %v22427_v13, %v18883_v43 }
 0x945   :  { %16977 = vmatprep.mubr.msk.bf16.mxu0 %vm18513_vm0, %v22419_v36  ;;  %16983 = vmatprep.mubr.msk.bf16.mxu1 %vm18513_vm0, %v22419_v36  ;;  %v20338_v46 = vpop.f32.mrb[99].mxu1 }
 0x946   :  { %16987 = vmatprep.subr.bf16.mxu0 %v22419_v36  ;;  %16993 = vmatprep.subr.bf16.mxu1 %v22419_v36  ;;  %v20344_v15 = vpop.f32.mrb[100].mxu1 }
 0x947   :  { %22422 = vst [vmem:[#allocation60_spill] sm:$0xff] %v20344_v15  ;;  %v20346_v0 = vpop.f32.mrb[101].mxu1 }
 0x948   :  { %22423 = vst [vmem:[#allocation61_spill] sm:$0xff] %v20346_v0  ;;  %v20352_v63 = vpop.f32.mrb[102].mxu1 }
 0x949   :  { %22424 = vst [vmem:[#allocation62_spill] sm:$0xff] %v20352_v63  ;;  %v20354_v55 = vpop.f32.mrb[103].mxu1 }
 0x94a   :  { %22425 = vst [vmem:[#allocation63_spill] sm:$0xff] %v20354_v55 }
 0xa16   :  { %v9487_v7 = vpop.f32.mrb[84].mxu0  ;;  %v20360_v4 = vpop.f32.mrb[104].mxu1 }
 0xa17   :  { %v20362_v50 = vpop.f32.mrb[105].mxu1  ;;  %9541 = vrot.lane.b32.xlu0 %v9487_v7, %s18511_s15  ;;  %v9489_v30 = vpop.f32.mrb[85].mxu0 }
 0xa18   :  { %v9571_v32 = vcombine.low %v9487_v7, %v9489_v30  ;;  %v9572_v14 = vcombine.high %v9487_v7, %v9489_v30  ;;  %v20369_v17 = vpop.f32.mrb[106].mxu1  ;;  %9549 = vrot.lane.b32.xlu1 %v9489_v30, %s18511_s15  ;;  %v20372_v21 = vpop.f32.mrb[86].mxu0  ;;  %v22426_v7 = vcombine.low %v20160_v23, %v20162_v22 }
 0xa19   :  { %v20374_v37 = vpop.f32.mrb[87].mxu0  ;;  %v20376_v3 = vpop.f32.mrb[107].mxu1 }
 0xa1a   :  { %v20436_v5 = vrot.slane %v22426_v7, %v18883_v43 }
 0xa1b   :  { %7887 = vrot.lane.b32.xlu0 %v20186_v44, %s18511_s15 }
 0xa1c   :  { %7889 = vrot.lane.b32.xlu1 %v20194_v2, %s18511_s15 }
 0xa1f   :  { %7903 = vrot.lane.b32.xlu0 %v20188_v62, %s18511_s15 }
 0xa20   :  { %7905 = vrot.lane.b32.xlu1 %v20196_v10, %s18511_s15 }
 0xa23   :  { %9557 = vrot.lane.b32.xlu0 %v20360_v4, %s18511_s15 }
 0xa24   :  { %9565 = vrot.lane.b32.xlu1 %v20362_v50, %s18511_s15 }
 0xa27   :  { %7859 = vrot.lane.b32.xlu0 %v20160_v23, %s18511_s15  ;;  %v7955_v23 = vrot.slane %v22430_v28, %v18883_v43  ;;  %v22434_v28 = vcombine.low %v20202_v34, %v20204_v12 }
 0xa28   :  { %7861 = vrot.lane.b32.xlu1 %v20168_v27, %s18511_s15  ;;  %v20468_v27 = vrot.slane %v22432_v16, %v18883_v43  ;;  %v9579_v16 = vrot.slane %v9571_v32, %v18883_v43 }
 0xa2b   :  { %7875 = vrot.lane.b32.xlu0 %v20162_v22, %s18511_s15  ;;  %v22431_v22 = vcombine.high %v20186_v44, %v20188_v62  ;;  %v20480_v44 = vrot.slane %v22434_v28, %v18883_v43  ;;  %v22435_v62 = vcombine.high %v20202_v34, %v20204_v12 }
 0xa2c   :  { %7877 = vrot.lane.b32.xlu1 %v20170_v40, %s18511_s15  ;;  %v20474_v40 = vrot.slane %v22433_v53, %v18883_v43  ;;  %v22436_v53 = vcombine.low %v20256_v6, %v20262_v19 }
 0xa2d   :  { %v7962_v13 = vrot.slane %v22431_v22, %v18883_v43 }
 0xa2e   :  { %v20496_v28 = vrot.slane %v22436_v53, %v18883_v43 }
 0xa2f   :  { %9543 = vrot.lane.b32.xlu0 %v20372_v21, %s18511_s15 }
 0xa30   :  { %9551 = vrot.lane.b32.xlu1 %v20374_v37, %s18511_s15 }
 0xa33   :  { %7891 = vrot.lane.b32.xlu0 %v20202_v34, %s18511_s15  ;;  %v22437_v34 = vcombine.high %v20256_v6, %v20262_v19 }
 0xa34   :  { %7893 = vrot.lane.b32.xlu1 %v20210_v11, %s18511_s15 }
 0xa37   :  { %7907 = vrot.lane.b32.xlu0 %v20204_v12, %s18511_s15  ;;  %v20502_v12 = vrot.slane %v22437_v34, %v18883_v43  ;;  %v22441_v34 = vcombine.high %v20270_v47, %v20276_v9 }
 0xa38   :  { %7909 = vrot.lane.b32.xlu1 %v20212_v61, %s18511_s15 }
 0xa3b   :  { %9559 = vrot.lane.b32.xlu0 %v20369_v17, %s18511_s15 }
 0xa3c   :  { %9567 = vrot.lane.b32.xlu1 %v20376_v3, %s18511_s15 }
 0xa3f   :  { %8465 = vrot.lane.b32.xlu0 %v20270_v47, %s18511_s15 }
 0xa40   :  { %8463 = vrot.lane.b32.xlu1 %v20256_v6, %s18511_s15  ;;  %v22440_v6 = vcombine.low %v20270_v47, %v20276_v9 }
 0xa44   :  { %8479 = vrot.lane.b32.xlu1 %v20262_v19, %s18511_s15  ;;  %v20520_v19 = vrot.slane %v22440_v6, %v18883_v43 }
 0xa48   :  { %8481 = vrot.lane.b32.xlu1 %v20276_v9, %s18511_s15 }
 0xa4c   :  { %8495 = vrot.lane.b32.xlu1 %v20328_v26, %s18511_s15 }
 0xa89   :  { %v9542_v30 = vpop.permute.xlu0 %9541 }
 0xa8a   :  { %v9550_v7 = vpop.permute.xlu1 %9549 }
 0xa8b   :  { %v9587_v41 = vcombine.low %v9542_v30, %v9550_v7  ;;  %v9588_v33 = vcombine.high %v9542_v30, %v9550_v7  ;;  %v20486_v30 = vrot.slane %v22435_v62, %v18883_v43  ;;  %v9586_v7 = vrot.slane %v9572_v14, %v18883_v43 }
 0xa8c   :  { %v22438_v14 = vcombine.low %v20210_v11, %v20212_v61 }
 0xa8d   :  { %v9595_v2 = vrot.slane %v9587_v41, %v18883_v43  ;;  %v9602_v10 = vrot.slane %v9588_v33, %v18883_v43  ;;  %v7888_v22 = vpop.permute.xlu0 %7887  ;;  %v22439_v41 = vcombine.high %v20210_v11, %v20212_v61  ;;  %v22442_v11 = vcombine.low %v20360_v4, %v20362_v50 }
 0xa8e   :  { %v20508_v32 = vrot.slane %v22438_v14, %v18883_v43  ;;  %v7890_v62 = vpop.permute.xlu1 %7889  ;;  %v20526_v14 = vrot.slane %v22441_v34, %v18883_v43 }
 0xa8f   :  { %v20514_v33 = vrot.slane %v22439_v41, %v18883_v43  ;;  %v9635_v53 = vcombine.low %v9579_v16, %v9595_v2  ;;  %v9636_v1 = vcombine.high %v9579_v16, %v9595_v2  ;;  %v9651_v29 = vcombine.low %v9586_v7, %v9602_v10 }
 0xa90   :  { %v9652_v20 = vcombine.high %v9586_v7, %v9602_v10  ;;  %v20532_v61 = vrot.slane %v22442_v11, %v18883_v43  ;;  %v20536_v16 = vsel %vm3469_vm1, %v20301_v49, 0  ;;  %v22443_v41 = vcombine.high %v20360_v4, %v20362_v50 }
 0xa91   :  { %v9643_v7 = vrot.slane %v9635_v53, %v18888_v52  ;;  %v9650_v2 = vrot.slane %v9636_v1, %v18888_v52  ;;  %v9659_v10 = vrot.slane %v9651_v29, %v18888_v52  ;;  %v7904_v9 = vpop.permute.xlu0 %7903  ;;  %v22444_v49 = vcombine.low %v20372_v21, %v20374_v37 }
 0xa92   :  { %v9666_v47 = vrot.slane %v9652_v20, %v18888_v52  ;;  %v20546_v6 = vrot.slane %v22443_v41, %v18883_v43  ;;  %v7963_v53 = vcombine.low %v7888_v22, %v7904_v9  ;;  %v7964_v11 = vcombine.high %v7888_v22, %v7904_v9  ;;  %v7906_v1 = vpop.permute.xlu1 %7905 }
 0xa93   :  { %v20552_v34 = vrot.slane %v22444_v49, %v18883_v43  ;;  %v16319_v38 = vcombine.low %v9643_v7, %v9650_v2  ;;  %v16321_v29 = vcombine.high %v9643_v7, %v9650_v2  ;;  %v8099_v50 = vcombine.low %v7890_v62, %v7906_v1 }
 0xa94   :  { %v16323_v35 = vcombine.low %v9659_v10, %v9666_v47  ;;  %v16325_v20 = vcombine.high %v9659_v10, %v9666_v47  ;;  %v7971_v24 = vrot.slane %v7963_v53, %v18883_v43  ;;  %v7978_v60 = vrot.slane %v7964_v11, %v18883_v43 }
 0xa95   :  { %v8100_v4 = vcombine.high %v7890_v62, %v7906_v1  ;;  %v20557_v41 = vrot.slane %v16319_v38, %v18883_v43  ;;  %v20560_v25 = vrot.slane %v16321_v29, %v18883_v43  ;;  %v9558_v7 = vpop.permute.xlu0 %9557  ;;  %v22445_v38 = vcombine.high %v20372_v21, %v20374_v37 }
 0xa96   :  { %v20563_v49 = vrot.slane %v16323_v35, %v18883_v43  ;;  %v20566_v22 = vrot.slane %v16325_v20, %v18883_v43  ;;  %v8011_v2 = vcombine.low %v7955_v23, %v7971_v24  ;;  %v8012_v10 = vcombine.high %v7955_v23, %v7971_v24  ;;  %v9566_v53 = vpop.permute.xlu1 %9565 }
 0xa97   :  { %v8027_v47 = vcombine.low %v7962_v13, %v7978_v60  ;;  %v8028_v9 = vcombine.high %v7962_v13, %v7978_v60  ;;  %v20572_v62 = vrot.slane %v22445_v38, %v18883_v43  ;;  %v22446_v35 = vcombine.low %v20369_v17, %v20376_v3 }
 0xa98   :  { %v22447_v1 = vcombine.high %v20369_v17, %v20376_v3  ;;  %v9975_v60 = vcombine.low %v20557_v41, %v20560_v25  ;;  %v20589_v23 = vrot.slane %v8011_v2, %v18888_v52  ;;  %v20592_v37 = vrot.slane %v8012_v10, %v18888_v52 }
 0xa99   :  { %v20578_v11 = vrot.slane %v22446_v35, %v18883_v43  ;;  %v20595_v21 = vrot.slane %v8027_v47, %v18888_v52  ;;  %v20598_v13 = vrot.slane %v8028_v9, %v18888_v52  ;;  %v8107_v29 = vrot.slane %v8099_v50, %v18883_v43  ;;  %v7860_v38 = vpop.permute.xlu0 %7859 }
 0xa9a   :  { %v20584_v24 = vrot.slane %v22447_v1, %v18883_v43  ;;  %v8114_v3 = vrot.slane %v8100_v4, %v18883_v43  ;;  %v9619_v17 = vcombine.low %v9558_v7, %v9566_v53  ;;  %v9620_v20 = vcombine.high %v9558_v7, %v9566_v53  ;;  %v7862_v35 = vpop.permute.xlu1 %7861 }
 0xa9b   :  { %v10007_v10 = vcombine.low %v20563_v49, %v20566_v22  ;;  %v8147_v50 = vcombine.low %v20468_v27, %v8107_v29  ;;  %v8148_v4 = vcombine.high %v20468_v27, %v8107_v29 }
 0xa9c   :  { %v8163_v7 = vcombine.low %v20474_v40, %v8114_v3  ;;  %v8164_v53 = vcombine.high %v20474_v40, %v8114_v3  ;;  %v9627_v47 = vrot.slane %v9619_v17, %v18883_v43  ;;  %v9634_v18 = vrot.slane %v9620_v20, %v18883_v43 }
 0xa9d   :  { %v20623_v54 = vrot.slane %v8147_v50, %v18888_v52  ;;  %v20626_v27 = vrot.slane %v8148_v4, %v18888_v52  ;;  %v20629_v40 = vrot.slane %v9975_v60, %v18888_v52  ;;  %v7876_v2 = vpop.permute.xlu0 %7875  ;;  %v10015_v4 = vrot.slane %v10007_v10, %v18888_v52 }
 0xa9e   :  { %v9667_v29 = vcombine.low %v20532_v61, %v9627_v47  ;;  %v9668_v3 = vcombine.high %v20532_v61, %v9627_v47  ;;  %v9683_v17 = vcombine.low %v20546_v6, %v9634_v18  ;;  %v9684_v20 = vcombine.high %v20546_v6, %v9634_v18  ;;  %v7878_v1 = vpop.permute.xlu1 %7877 }
 0xa9f   :  { %v20636_v9 = vrot.slane %v8163_v7, %v18888_v52  ;;  %v20639_v50 = vrot.slane %v8164_v53, %v18888_v52  ;;  %v8203_v6 = vcombine.low %v7860_v38, %v7876_v2  ;;  %v8204_v63 = vcombine.high %v7860_v38, %v7876_v2 }
 0xaa0   :  { %v9675_v48 = vrot.slane %v9667_v29, %v18888_v52  ;;  %v9682_v61 = vrot.slane %v9668_v3, %v18888_v52  ;;  %v9691_v47 = vrot.slane %v9683_v17, %v18888_v52  ;;  %v9698_v18 = vrot.slane %v9684_v20, %v18888_v52 }
 0xaa1   :  { %v8339_v7 = vcombine.low %v7862_v35, %v7878_v1  ;;  %v8340_v55 = vcombine.high %v7862_v35, %v7878_v1  ;;  %v8211_v29 = vrot.slane %v8203_v6, %v18883_v43  ;;  %v8218_v3 = vrot.slane %v8204_v63, %v18883_v43 }
 0xaa2   :  { %v16320_v0 = vcombine.low %v9675_v48, %v9682_v61  ;;  %v16322_v53 = vcombine.high %v9675_v48, %v9682_v61  ;;  %v16324_v15 = vcombine.low %v9691_v47, %v9698_v18  ;;  %v16326_v42 = vcombine.high %v9691_v47, %v9698_v18 }
 0xaa3   :  { %v8347_v48 = vrot.slane %v8339_v7, %v18883_v43  ;;  %v8354_v2 = vrot.slane %v8340_v55, %v18883_v43  ;;  %v8251_v35 = vcombine.low %v20436_v5, %v8211_v29  ;;  %v8252_v1 = vcombine.high %v20436_v5, %v8211_v29  ;;  %v9544_v29 = vpop.permute.xlu0 %9543 }
 0xaa4   :  { %v20655_v17 = vrot.slane %v16320_v0, %v18883_v43  ;;  %v20658_v38 = vrot.slane %v16322_v53, %v18883_v43  ;;  %v8267_v20 = vcombine.low %v20442_v51, %v8218_v3  ;;  %v8268_v61 = vcombine.high %v20442_v51, %v8218_v3  ;;  %v9552_v3 = vpop.permute.xlu1 %9551 }
 0xaa5   :  { %v20669_v0 = vrot.slane %v16324_v15, %v18883_v43  ;;  %v20672_v47 = vrot.slane %v16326_v42, %v18883_v43  ;;  %v8259_v18 = vrot.slane %v8251_v35, %v18888_v52  ;;  %v8266_v5 = vrot.slane %v8252_v1, %v18888_v52 }
 0xaa6   :  { %v8275_v6 = vrot.slane %v8267_v20, %v18888_v52  ;;  %v8282_v51 = vrot.slane %v8268_v61, %v18888_v52  ;;  %v8387_v7 = vcombine.low %v20448_v31, %v8347_v48  ;;  %v8388_v53 = vcombine.high %v20448_v31, %v8347_v48 }
 0xaa7   :  { %v8403_v15 = vcombine.low %v20454_v39, %v8354_v2  ;;  %v8404_v42 = vcombine.high %v20454_v39, %v8354_v2  ;;  %v16351_v63 = vcombine.low %v8259_v18, %v8266_v5  ;;  %v16353_v55 = vcombine.high %v8259_v18, %v8266_v5  ;;  %v20727_v39 = vpop.permute.xlu0 %7891 }
 0xaa8   :  { %v16355_v10 = vcombine.low %v8275_v6, %v8282_v51  ;;  %v16357_v35 = vcombine.high %v8275_v6, %v8282_v51  ;;  %v20685_v1 = vrot.slane %v8387_v7, %v18888_v52  ;;  %v20688_v20 = vrot.slane %v8388_v53, %v18888_v52  ;;  %v20729_v48 = vpop.permute.xlu1 %7893 }
 0xaa9   :  { %v20691_v61 = vrot.slane %v8403_v15, %v18888_v52  ;;  %v20694_v31 = vrot.slane %v8404_v42, %v18888_v52  ;;  %v20703_v18 = vrot.slane %v16351_v63, %v18883_v43  ;;  %v20706_v5 = vrot.slane %v16353_v55, %v18883_v43 }
 0xaaa   :  { %v20709_v6 = vrot.slane %v16355_v10, %v18883_v43  ;;  %v20712_v51 = vrot.slane %v16357_v35, %v18883_v43  ;;  %v16359_v7 = vcombine.low %v20685_v1, %v20688_v20  ;;  %v10039_v53 = vcombine.low %v20629_v40, %v10015_v4 }
 0xaab   :  { %v10040_v15 = vcombine.high %v20629_v40, %v10015_v4  ;;  %v9723_v42 = vcombine.low %v9544_v29, %v9552_v3  ;;  %v9724_v2 = vcombine.high %v9544_v29, %v9552_v3  ;;  %v16361_v55 = vcombine.high %v20685_v1, %v20688_v20 }
 0xaac   :  { %v20719_v63 = vrot.slane %v16359_v7, %v18883_v43  ;;  %v16363_v10 = vcombine.low %v20691_v61, %v20694_v31  ;;  %v16365_v35 = vcombine.high %v20691_v61, %v20694_v31  ;;  %v11271_v60 = vpack.c.bf16 %v10039_v53, %v10039_v53 }
 0xaad   :  { %v11272_v40 = vpack.c.bf16 %v10040_v15, %v10040_v15  ;;  %v9731_v4 = vrot.slane %v9723_v42, %v18883_v43  ;;  %v9738_v29 = vrot.slane %v9724_v2, %v18883_v43  ;;  %v22448_v3 = vcombine.high %v20557_v41, %v20560_v25 }
 0xaae   :  { %v22449_v20 = vcombine.high %v20563_v49, %v20566_v22  ;;  %v22450_v31 = vcombine.low %v20589_v23, %v20592_v37  ;;  %v22451_v2 = vcombine.high %v20589_v23, %v20592_v37  ;;  %16978 = vmatmul.mubr.msk.bf16.vlgmr.msra.gmra.mrb[88].mxu0 %vm3469_vm1, %v11271_v60  ;;  %v11445_v25 = vsel %vm3469_vm1, %v20306_v57, 0 }
 0xaaf   :  { %v9990_v1 = vrot.slane %v22448_v3, %v18888_v52  ;;  %16984 = vmatmul.mubr.msk.bf16.vlgmr.msra.gmra.mrb[108].mxu1 %vm3469_vm1, %v11272_v40  ;;  %v9771_v41 = vcombine.low %v20552_v34, %v9731_v4  ;;  %v9772_v49 = vcombine.high %v20552_v34, %v9731_v4  ;;  %v9787_v22 = vcombine.low %v20572_v62, %v9738_v29  ;;  %v7910_v4 = vpop.permute.xlu1 %7909 }
 0xab0   :  { %v10022_v61 = vrot.slane %v22449_v20, %v18888_v52  ;;  %v20745_v7 = vrot.slane %v22450_v31, %v18883_v43  ;;  %v20751_v53 = vrot.slane %v22451_v2, %v18883_v43  ;;  %16988 = vmatpush3.bf16.xpose.msra.mxu0 %v20536_v16  ;;  %16994 = vmatpush3.bf16.xpose.msra.mxu1 %v11445_v25 }
 0xab1   :  { %v9788_v23 = vcombine.high %v20572_v62, %v9738_v29  ;;  %v9779_v60 = vrot.slane %v9771_v41, %v18888_v52  ;;  %v9786_v42 = vrot.slane %v9772_v49, %v18888_v52  ;;  %v9795_v40 = vrot.slane %v9787_v22, %v18888_v52  ;;  %16989 = vmatprep.mubr.msk.bf16.mxu0 %vm18513_vm0, %v22419_v36  ;;  %v7908_v62 = vpop.permute.xlu0 %7907 }
 0xab2   :  { %v10041_v37 = vcombine.low %v9990_v1, %v10022_v61  ;;  %v10042_v15 = vcombine.high %v9990_v1, %v10022_v61  ;;  %16995 = vmatprep.mubr.msk.bf16.mxu1 %vm18513_vm0, %v22419_v36  ;;  %16999 = vmatprep.subr.bf16.mxu0 %v22419_v36  ;;  %v22452_v1 = vcombine.low %v20595_v21, %v20598_v13 }
 0xab3   :  { %v9802_v57 = vrot.slane %v9788_v23, %v18888_v52  ;;  %17005 = vmatprep.subr.bf16.mxu1 %v22419_v36  ;;  %v16327_v29 = vcombine.low %v9779_v60, %v9786_v42  ;;  %v16329_v3 = vcombine.high %v9779_v60, %v9786_v42  ;;  %v22453_v61 = vcombine.high %v20595_v21, %v20598_v13 }
 0xab4   :  { %v11273_v16 = vpack.c.bf16 %v10041_v37, %v10041_v37  ;;  %v11274_v34 = vpack.c.bf16 %v10042_v15, %v10042_v15  ;;  %v20776_v20 = vrot.slane %v22452_v1, %v18883_v43  ;;  %v10263_v41 = vcombine.low %v20745_v7, %v20751_v53 }
 0xab5   :  { %v20782_v31 = vrot.slane %v22453_v61, %v18883_v43  ;;  %v16331_v2 = vcombine.low %v9795_v40, %v9802_v57  ;;  %v16333_v25 = vcombine.high %v9795_v40, %v9802_v57  ;;  %v22454_v49 = vcombine.low %v20623_v54, %v20626_v27 }
 0xab6   :  { %v20793_v23 = vrot.slane %v16327_v29, %v18883_v43  ;;  %v20796_v37 = vrot.slane %v16329_v3, %v18883_v43  ;;  %v22455_v13 = vcombine.high %v20623_v54, %v20626_v27  ;;  %v20807_v60 = vrot.slane %v16361_v55, %v18883_v43 }
 0xab7   :  { %v20790_v22 = vrot.slane %v22454_v49, %v18883_v43  ;;  %v10295_v21 = vcombine.low %v20776_v20, %v20782_v31  ;;  %v20810_v42 = vrot.slane %v16363_v10, %v18883_v43  ;;  %v10271_v40 = vrot.slane %v10263_v41, %v18888_v52  ;;  %16990 = vmatmul.mubr.msk.bf16.vlgmr.msra.gmra.mrb[92].mxu0 %vm3469_vm1, %v11273_v16  ;;  %v9560_v16 = vpop.permute.xlu0 %9559 }
 0xab8   :  { %v20804_v15 = vrot.slane %v22455_v13, %v18883_v43  ;;  %v22456_v57 = vcombine.low %v20636_v9, %v20639_v50  ;;  %v20820_v3 = vrot.slane %v16365_v35, %v18883_v43  ;;  %v20823_v54 = vrot.slane %v16331_v2, %v18883_v43  ;;  %16996 = vmatmul.mubr.msk.bf16.vlgmr.msra.gmra.mrb[112].mxu1 %vm3469_vm1, %v11274_v34  ;;  %v9568_v34 = vpop.permute.xlu1 %9567 }
 0xab9   :  { %v10303_v27 = vrot.slane %v10295_v21, %v18888_v52  ;;  %v20829_v55 = vrot.slane %v16333_v25, %v18883_v43  ;;  %v22457_v35 = vcombine.high %v20636_v9, %v20639_v50  ;;  %17001 = vmatprep.mubr.msk.bf16.mxu0 %vm18513_vm0, %v22419_v36  ;;  %v8235_v41 = vcombine.low %v20727_v39, %v7908_v62 }
 0xaba   :  { %v20817_v29 = vrot.slane %v22456_v57, %v18883_v43  ;;  %v10399_v61 = vcombine.low %v20790_v22, %v20804_v15  ;;  %v8236_v49 = vcombine.high %v20727_v39, %v7908_v62  ;;  %17007 = vmatprep.mubr.msk.bf16.mxu1 %vm18513_vm0, %v22419_v36  ;;  %v8371_v21 = vcombine.low %v20729_v48, %v7910_v4 }
 0xabb   :  { %v20837_v1 = vrot.slane %v22457_v35, %v18883_v43  ;;  %v10315_v2 = vcombine.low %v10271_v40, %v10303_v27  ;;  %v10316_v25 = vcombine.high %v10271_v40, %v10303_v27  ;;  %v8372_v13 = vcombine.high %v20729_v48, %v7910_v4 }
 0xabc   :  { %v10407_v9 = vrot.slane %v10399_v61, %v18888_v52  ;;  %v8243_v40 = vrot.slane %v8235_v41, %v18883_v43  ;;  %v8250_v27 = vrot.slane %v8236_v49, %v18883_v43  ;;  %v9755_v39 = vcombine.low %v9560_v16, %v9568_v34 }
 0xabd   :  { %v10431_v50 = vcombine.low %v20817_v29, %v20837_v1  ;;  %v8379_v35 = vrot.slane %v8371_v21, %v18883_v43  ;;  %v8386_v61 = vrot.slane %v8372_v13, %v18883_v43  ;;  %v9756_v10 = vcombine.high %v9560_v16, %v9568_v34 }
 0xabe   :  { %v8283_v45 = vcombine.low %v20480_v44, %v8243_v40  ;;  %v8284_v59 = vcombine.high %v20480_v44, %v8243_v40  ;;  %v8299_v48 = vcombine.low %v20486_v30, %v8250_v27  ;;  %v8300_v4 = vcombine.high %v20486_v30, %v8250_v27 }
 0xabf   :  { %v10439_v62 = vrot.slane %v10431_v50, %v18888_v52  ;;  %v8419_v49 = vcombine.low %v20508_v32, %v8379_v35  ;;  %v8420_v26 = vcombine.high %v20508_v32, %v8379_v35  ;;  %v8436_v35 = vcombine.high %v20514_v33, %v8386_v61 }
 0xac0   :  { %v8291_v50 = vrot.slane %v8283_v45, %v18888_v52  ;;  %v8298_v21 = vrot.slane %v8284_v59, %v18888_v52  ;;  %v8307_v16 = vrot.slane %v8299_v48, %v18888_v52  ;;  %v8314_v34 = vrot.slane %v8300_v4, %v18888_v52 }
 0xac1   :  { %v10451_v57 = vcombine.low %v10407_v9, %v10439_v62  ;;  %v10452_v41 = vcombine.high %v10407_v9, %v10439_v62  ;;  %v8427_v40 = vrot.slane %v8419_v49, %v18888_v52  ;;  %v8434_v30 = vrot.slane %v8420_v26, %v18888_v52 }
 0xac2   :  { %v16352_v27 = vcombine.low %v8291_v50, %v8298_v21  ;;  %v16354_v9 = vcombine.high %v8291_v50, %v8298_v21  ;;  %v16356_v62 = vcombine.low %v8307_v16, %v8314_v34  ;;  %v16358_v56 = vcombine.high %v8307_v16, %v8314_v34 }
 0xac3   :  { %v11291_v13 = vpack.c.bf16 %v10451_v57, %v10315_v2  ;;  %v11292_v44 = vpack.c.bf16 %v10452_v41, %v10316_v25  ;;  %v8435_v59 = vcombine.low %v20514_v33, %v8386_v61  ;;  %v10143_v2 = vcombine.low %v20823_v54, %v20829_v55 }
 0xac4   :  { %v10144_v25 = vcombine.high %v20823_v54, %v20829_v55  ;;  %v22458_v26 = vcombine.low %v20655_v17, %v20658_v38  ;;  %v20884_v48 = vrot.slane %v16352_v27, %v18883_v43  ;;  %v8450_v33 = vrot.slane %v8436_v35, %v18888_v52 }
 0xac5   :  { %v11491_v32 = vsel %vm3469_vm1, %v11291_v13, 0  ;;  %v11537_v45 = vsel %vm3469_vm1, %v11292_v44, 0  ;;  %v8443_v4 = vrot.slane %v8435_v59, %v18888_v52  ;;  %v16360_v61 = vcombine.low %v8427_v40, %v8434_v30 }
 0xac6   :  { %17000 = vmatpush3.bf16.xpose.msra.mxu0 %v11491_v32  ;;  %17006 = vmatpush3.bf16.xpose.msra.mxu1 %v11537_v45  ;;  %v9999_v57 = vrot.slane %v22458_v26, %v18888_v52  ;;  %v20890_v41 = vrot.slane %v16354_v9, %v18883_v43  ;;  %v9763_v49 = vrot.slane %v9755_v39, %v18883_v43  ;;  %v8464_v39 = vpop.permute.xlu1 %8463 }
 0xac7   :  { %17011 = vmatprep.subr.bf16.mxu0 %v22419_v36  ;;  %v9770_v50 = vrot.slane %v9756_v10, %v18883_v43  ;;  %v22459_v21 = vcombine.low %v20669_v0, %v20672_v47  ;;  %17017 = vmatprep.subr.bf16.mxu1 %v22419_v36  ;;  %v20900_v34 = vrot.slane %v16356_v62, %v18883_v43 }
 0xac8   :  { %v20903_v13 = vrot.slane %v16358_v56, %v18883_v43  ;;  %v16362_v44 = vcombine.high %v8427_v40, %v8434_v30  ;;  %v10264_v27 = vcombine.high %v20745_v7, %v20751_v53  ;;  %v20908_v10 = vrot.slane %v16360_v61, %v18883_v43 }
 0xac9   :  { %v10031_v16 = vrot.slane %v22459_v21, %v18888_v52  ;;  %v9803_v9 = vcombine.low %v20578_v11, %v9763_v49  ;;  %v9804_v32 = vcombine.high %v20578_v11, %v9763_v49  ;;  %v9819_v45 = vcombine.low %v20584_v24, %v9770_v50 }
 0xaca   :  { %v16364_v59 = vcombine.low %v8443_v4, %v8450_v33  ;;  %v16366_v62 = vcombine.high %v8443_v4, %v8450_v33  ;;  %v9820_v35 = vcombine.high %v20584_v24, %v9770_v50  ;;  %v10278_v21 = vrot.slane %v10264_v27, %v18888_v52 }
 0xacb   :  { %v10043_v56 = vcombine.low %v9999_v57, %v10031_v16  ;;  %v9811_v40 = vrot.slane %v9803_v9, %v18888_v52  ;;  %v9818_v30 = vrot.slane %v9804_v32, %v18888_v52  ;;  %v9827_v7 = vrot.slane %v9819_v45, %v18888_v52  ;;  %v8480_v32 = vpop.permute.xlu1 %8479 }
 0xacc   :  { %v10044_v53 = vcombine.high %v9999_v57, %v10031_v16  ;;  %v9834_v26 = vrot.slane %v9820_v35, %v18888_v52  ;;  %v10296_v11 = vcombine.high %v20776_v20, %v20782_v31  ;;  %v10400_v24 = vcombine.high %v20790_v22, %v20804_v15 }
 0xacd   :  { %v11275_v61 = vpack.c.bf16 %v10043_v56, %v10043_v56  ;;  %v16328_v49 = vcombine.low %v9811_v40, %v9818_v30  ;;  %v16330_v4 = vcombine.high %v9811_v40, %v9818_v30  ;;  %v10432_v16 = vcombine.high %v20817_v29, %v20837_v1 }
 0xace   :  { %v11276_v33 = vpack.c.bf16 %v10044_v53, %v10044_v53  ;;  %v16332_v50 = vcombine.low %v9827_v7, %v9834_v26  ;;  %v16334_v9 = vcombine.high %v9827_v7, %v9834_v26  ;;  %v10310_v57 = vrot.slane %v10296_v11, %v18888_v52 }
 0xacf   :  { %17002 = vmatmul.mubr.msk.bf16.vlgmr.msra.gmra.mrb[96].mxu0 %vm3469_vm1, %v11275_v61  ;;  %v20928_v27 = vrot.slane %v16328_v49, %v18883_v43  ;;  %v20931_v20 = vrot.slane %v16330_v4, %v18883_v43  ;;  %v10414_v31 = vrot.slane %v10400_v24, %v18888_v52  ;;  %v20938_v22 = vrot.slane %v16362_v44, %v18883_v43 }
 0xad0   :  { %17008 = vmatmul.mubr.msk.bf16.vlgmr.msra.gmra.mrb[116].mxu1 %vm3469_vm1, %v11276_v33  ;;  %17013 = vmatprep.mubr.msk.bf16.mxu0 %vm18513_vm0, %v22419_v36  ;;  %v20941_v15 = vrot.slane %v16364_v59, %v18883_v43  ;;  %v10317_v29 = vcombine.low %v10278_v21, %v10310_v57  ;;  %v10446_v1 = vrot.slane %v10432_v16, %v18888_v52 }
 0xad1   :  { %17019 = vmatprep.mubr.msk.bf16.mxu1 %vm18513_vm0, %v22419_v36  ;;  %v20947_v45 = vrot.slane %v16366_v62, %v18883_v43  ;;  %v20950_v35 = vrot.slane %v16332_v50, %v18883_v43  ;;  %v10318_v56 = vcombine.high %v10278_v21, %v10310_v57  ;;  %v8539_v40 = vcombine.low %v8464_v39, %v8480_v32 }
 0xad2   :  { %v20953_v44 = vrot.slane %v16334_v9, %v18883_v43  ;;  %v10127_v59 = vcombine.low %v20928_v27, %v20931_v20  ;;  %v10453_v30 = vcombine.low %v10414_v31, %v10446_v1  ;;  %v10454_v7 = vcombine.high %v10414_v31, %v10446_v1 }
 0xad3   :  { %v8540_v53 = vcombine.high %v8464_v39, %v8480_v32  ;;  %v8547_v26 = vrot.slane %v8539_v40, %v18883_v43  ;;  %v22460_v62 = vcombine.high %v20655_v17, %v20658_v38  ;;  %v22461_v21 = vcombine.high %v20669_v0, %v20672_v47 }
 0xad4   :  { %v11293_v49 = vpack.c.bf16 %v10453_v30, %v10317_v29  ;;  %v11294_v4 = vpack.c.bf16 %v10454_v7, %v10318_v56  ;;  %v10519_v33 = vcombine.low %v20703_v18, %v20706_v5  ;;  %v10551_v39 = vcombine.low %v20709_v6, %v20712_v51  ;;  %v8482_v29 = vpop.permute.xlu1 %8481  ;;  %v8466_v30 = vpop.permute.xlu0 %8465 }
 0xad5   :  { %v10006_v61 = vrot.slane %v22460_v62, %v18888_v52  ;;  %v10038_v11 = vrot.slane %v22461_v21, %v18888_v52  ;;  %v8554_v24 = vrot.slane %v8540_v53, %v18883_v43  ;;  %v8587_v50 = vcombine.low %v20496_v28, %v8547_v26 }
 0xad6   :  { %v8588_v17 = vcombine.high %v20496_v28, %v8547_v26  ;;  %v11583_v9 = vsel %vm3469_vm1, %v11293_v49, 0  ;;  %v11629_v0 = vsel %vm3469_vm1, %v11294_v4, 0  ;;  %v10527_v57 = vrot.slane %v10519_v33, %v18888_v52 }
 0xad7   :  { %v10045_v38 = vcombine.low %v10006_v61, %v10038_v11  ;;  %v10046_v47 = vcombine.high %v10006_v61, %v10038_v11  ;;  %17012 = vmatpush3.bf16.xpose.msra.mxu0 %v11583_v9  ;;  %17018 = vmatpush3.bf16.xpose.msra.mxu1 %v11629_v0  ;;  %v8595_v16 = vrot.slane %v8587_v50, %v18888_v52 }
 0xad8   :  { %v8602_v32 = vrot.slane %v8588_v17, %v18888_v52  ;;  %v8603_v31 = vcombine.low %v20502_v12, %v8554_v24  ;;  %v10128_v28 = vcombine.high %v20928_v27, %v20931_v20  ;;  %v10159_v1 = vcombine.low %v20950_v35, %v20953_v44  ;;  %17023 = vmatprep.subr.bf16.mxu0 %v22419_v36 }
 0xad9   :  { %v8604_v56 = vcombine.high %v20502_v12, %v8554_v24  ;;  %17029 = vmatprep.subr.bf16.mxu1 %v22419_v36  ;;  %v10160_v40 = vcombine.high %v20950_v35, %v20953_v44  ;;  %v10559_v26 = vrot.slane %v10551_v39, %v18888_v52  ;;  %v10655_v61 = vcombine.low %v20719_v63, %v20807_v60 }
 0xada   :  { %v8611_v7 = vrot.slane %v8603_v31, %v18888_v52  ;;  %v16367_v53 = vcombine.low %v8595_v16, %v8602_v32  ;;  %v10687_v12 = vcombine.low %v20810_v42, %v20820_v3  ;;  %v8675_v21 = vcombine.low %v8466_v30, %v8482_v29 }
 0xadb   :  { %v8618_v62 = vrot.slane %v8604_v56, %v18888_v52  ;;  %v11277_v11 = vpack.c.bf16 %v10045_v38, %v10045_v38  ;;  %v11278_v49 = vpack.c.bf16 %v10046_v47, %v10046_v47  ;;  %v10583_v4 = vcombine.low %v10527_v57, %v10559_v26 }
 0xadc   :  { %v10584_v33 = vcombine.high %v10527_v57, %v10559_v26  ;;  %v20996_v24 = vrot.slane %v16367_v53, %v18883_v43  ;;  %v16369_v50 = vcombine.high %v8595_v16, %v8602_v32  ;;  %v10663_v17 = vrot.slane %v10655_v61, %v18888_v52 }
 0xadd   :  { %v10695_v39 = vrot.slane %v10687_v12, %v18888_v52  ;;  %v8676_v9 = vcombine.high %v8466_v30, %v8482_v29  ;;  %v8683_v0 = vrot.slane %v8675_v21, %v18883_v43  ;;  %v22462_v31 = vcombine.low %v20793_v23, %v20796_v37 }
 0xade   :  { %v10151_v38 = vrot.slane %v10143_v2, %v18888_v52  ;;  %v16371_v47 = vcombine.low %v8611_v7, %v8618_v62  ;;  %v16373_v57 = vcombine.high %v8611_v7, %v8618_v62  ;;  %17014 = vmatmul.mubr.msk.bf16.vlgmr.msra.gmra.mrb[100].mxu0 %vm3469_vm1, %v11277_v11  ;;  %17020 = vmatmul.mubr.msk.bf16.vlgmr.msra.gmra.mrb[120].mxu1 %vm3469_vm1, %v11278_v49 }
 0xadf   :  { %v10119_v56 = vrot.slane %v22462_v31, %v18888_v52  ;;  %v10719_v16 = vcombine.low %v10663_v17, %v10695_v39  ;;  %v10720_v32 = vcombine.high %v10663_v17, %v10695_v39  ;;  %v8690_v29 = vrot.slane %v8676_v9, %v18883_v43  ;;  %17025 = vmatprep.mubr.msk.bf16.mxu0 %vm18513_vm0, %v22419_v36 }
 0xae0   :  { %v8723_v30 = vcombine.low %v20520_v19, %v8683_v0  ;;  %v8724_v53 = vcombine.high %v20520_v19, %v8683_v0  ;;  %17031 = vmatprep.mubr.msk.bf16.mxu1 %vm18513_vm0, %v22419_v36  ;;  %v10520_v62 = vcombine.high %v20703_v18, %v20706_v5  ;;  %v21024_v19 = vrot.slane %v16369_v50, %v18883_v43 }
 0xae1   :  { %v11295_v26 = vpack.c.bf16 %v10719_v16, %v10583_v4  ;;  %v10175_v2 = vcombine.low %v10119_v56, %v10151_v38  ;;  %v10176_v7 = vcombine.high %v10119_v56, %v10151_v38  ;;  %v11296_v61 = vpack.c.bf16 %v10720_v32, %v10584_v33 }
 0xae2   :  { %v8731_v12 = vrot.slane %v8723_v30, %v18888_v52  ;;  %v8738_v21 = vrot.slane %v8724_v53, %v18888_v52  ;;  %v8739_v11 = vcombine.low %v20526_v14, %v8690_v29  ;;  %v21027_v49 = vrot.slane %v16371_v47, %v18883_v43 }
 0xae3   :  { %v11675_v4 = vsel %vm3469_vm1, %v11295_v26, 0  ;;  %v8740_v17 = vcombine.high %v20526_v14, %v8690_v29  ;;  %v11721_v18 = vsel %vm3469_vm1, %v11296_v61, 0  ;;  %v10534_v50 = vrot.slane %v10520_v62, %v18888_v52 }
 0xae4   :  { %17024 = vmatpush3.bf16.xpose.msra.mxu0 %v11675_v4  ;;  %v21033_v5 = vrot.slane %v8739_v11, %v18888_v52  ;;  %v16375_v33 = vcombine.low %v8731_v12, %v8738_v21  ;;  %v16377_v39 = vcombine.high %v8731_v12, %v8738_v21  ;;  %17030 = vmatpush3.bf16.xpose.msra.mxu1 %v11721_v18 }
 0xae5   :  { %v8754_v9 = vrot.slane %v8740_v17, %v18888_v52  ;;  %17035 = vmatprep.subr.bf16.mxu0 %v22419_v36  ;;  %v10552_v0 = vcombine.high %v20709_v6, %v20712_v51  ;;  %v21041_v14 = vrot.slane %v16373_v57, %v18883_v43  ;;  %v11279_v31 = vpack.c.bf16 %v10175_v2, %v10175_v2 }
 0xae6   :  { %17041 = vmatprep.subr.bf16.mxu1 %v22419_v36  ;;  %v10656_v56 = vcombine.high %v20719_v63, %v20807_v60  ;;  %v10688_v38 = vcombine.high %v20810_v42, %v20820_v3  ;;  %v21049_v47 = vrot.slane %v16375_v33, %v18883_v43  ;;  %v11280_v16 = vpack.c.bf16 %v10176_v7, %v10176_v7 }
 0xae7   :  { %v10566_v32 = vrot.slane %v10552_v0, %v18888_v52  ;;  %v22463_v6 = vcombine.high %v20793_v23, %v20796_v37  ;;  %v10158_v63 = vrot.slane %v10144_v25, %v18888_v52  ;;  %v10535_v60 = vcombine.low %v20884_v48, %v20890_v41 }
 0xae8   :  { %v10670_v57 = vrot.slane %v10656_v56, %v18888_v52  ;;  %v10702_v29 = vrot.slane %v10688_v38, %v18888_v52  ;;  %v21065_v42 = vrot.slane %v16377_v39, %v18883_v43  ;;  %v16379_v3 = vcombine.low %v21033_v5, %v8754_v9 }
 0xae9   :  { %v10126_v51 = vrot.slane %v22463_v6, %v18888_v52  ;;  %v10585_v30 = vcombine.low %v10534_v50, %v10566_v32  ;;  %v10586_v23 = vcombine.high %v10534_v50, %v10566_v32  ;;  %v10543_v7 = vrot.slane %v10535_v60, %v18888_v52 }
 0xaea   :  { %v10721_v37 = vcombine.low %v10670_v57, %v10702_v29  ;;  %v10722_v53 = vcombine.high %v10670_v57, %v10702_v29  ;;  %v10567_v54 = vcombine.low %v20900_v34, %v20903_v13  ;;  %v10671_v55 = vcombine.low %v20908_v10, %v20938_v22 }
 0xaeb   :  { %v10177_v26 = vcombine.low %v10126_v51, %v10158_v63  ;;  %v10178_v2 = vcombine.high %v10126_v51, %v10158_v63  ;;  %17026 = vmatmul.mubr.msk.bf16.vlgmr.msra.gmra.mrb[104].mxu0 %vm3469_vm1, %v11279_v31  ;;  %v10703_v25 = vcombine.low %v20941_v15, %v20947_v45  ;;  %v16381_v62 = vcombine.high %v21033_v5, %v8754_v9 }
 0xaec   :  { %17032 = vmatmul.mubr.msk.bf16.vlgmr.msra.gmra.mrb[124].mxu1 %vm3469_vm1, %v11280_v16  ;;  %v11297_v61 = vpack.c.bf16 %v10721_v37, %v10585_v30  ;;  %v11298_v12 = vpack.c.bf16 %v10722_v53, %v10586_v23  ;;  %17037 = vmatprep.mubr.msk.bf16.mxu0 %vm18513_vm0, %v22419_v36  ;;  %v21081_v21 = vrot.slane %v16379_v3, %v18883_v43 }
 0xaed   :  { %17043 = vmatprep.mubr.msk.bf16.mxu1 %vm18513_vm0, %v22419_v36  ;;  %v10575_v11 = vrot.slane %v10567_v54, %v18888_v52  ;;  %v10679_v4 = vrot.slane %v10671_v55, %v18888_v52  ;;  %v10711_v17 = vrot.slane %v10703_v25, %v18888_v52  ;;  %v10135_v33 = vrot.slane %v10127_v59, %v18888_v52 }
 0xaee   :  { %v11767_v18 = vsel %vm3469_vm1, %v11297_v61, 0  ;;  %v11813_v5 = vsel %vm3469_vm1, %v11298_v12, 0  ;;  %v10167_v39 = vrot.slane %v10159_v1, %v18888_v52  ;;  %v10536_v59 = vcombine.high %v20884_v48, %v20890_v41 }
 0xaef   :  { %17036 = vmatpush3.bf16.xpose.msra.mxu0 %v11767_v18  ;;  %17042 = vmatpush3.bf16.xpose.msra.mxu1 %v11813_v5  ;;  %v10587_v9 = vcombine.low %v10543_v7, %v10575_v11  ;;  %v10723_v50 = vcombine.low %v10679_v4, %v10711_v17  ;;  %v10588_v0 = vcombine.high %v10543_v7, %v10575_v11 }
 0xaf0   :  { %17047 = vmatprep.subr.bf16.mxu0 %v22419_v36  ;;  %17053 = vmatprep.subr.bf16.mxu1 %v22419_v36  ;;  %v10724_v31 = vcombine.high %v10679_v4, %v10711_v17  ;;  %v10179_v56 = vcombine.low %v10135_v33, %v10167_v39  ;;  %v10180_v38 = vcombine.high %v10135_v33, %v10167_v39 }
 0xaf1   :  { %v11299_v16 = vpack.c.bf16 %v10723_v50, %v10587_v9  ;;  %v10568_v32 = vcombine.high %v20900_v34, %v20903_v13  ;;  %v10672_v1 = vcombine.high %v20908_v10, %v20938_v22  ;;  %v10919_v6 = vrot.slane %v16381_v62, %v18883_v43 }
 0xaf2   :  { %v11281_v51 = vpack.c.bf16 %v10177_v26, %v10177_v26  ;;  %v11300_v57 = vpack.c.bf16 %v10724_v31, %v10588_v0  ;;  %v10704_v29 = vcombine.high %v20941_v15, %v20947_v45  ;;  %v11282_v63 = vpack.c.bf16 %v10178_v2, %v10178_v2 }
 0xaf3   :  { %v10550_v60 = vrot.slane %v10536_v59, %v18888_v52  ;;  %v10582_v3 = vrot.slane %v10568_v32, %v18888_v52  ;;  %v10686_v48 = vrot.slane %v10672_v1, %v18888_v52  ;;  %v11859_v41 = vsel %vm3469_vm1, %v11299_v16, 0  ;;  %v9843_v1 = vld [vmem:[#allocation8] sm:$0xff] }
 0xaf4   :  { %v10718_v34 = vrot.slane %v10704_v29, %v18888_v52  ;;  %v10142_v13 = vrot.slane %v10128_v28, %v18888_v52  ;;  %v10174_v10 = vrot.slane %v10160_v40, %v18888_v52  ;;  %v10791_v45 = vcombine.low %v20996_v24, %v21024_v19 }
 0xaf5   :  { %v10589_v22 = vcombine.low %v10550_v60, %v10582_v3  ;;  %v10590_v15 = vcombine.high %v10550_v60, %v10582_v3  ;;  %v10823_v30 = vcombine.low %v21027_v49, %v21041_v14  ;;  %v11905_v27 = vsel %vm3469_vm1, %v11300_v57, 0 }
 0xaf6   :  { %17038 = vmatmul.mubr.msk.bf16.vlgmr.msra.gmra.mrb[108].mxu0 %vm3469_vm1, %v11281_v51  ;;  %17044 = vmatmul.mubr.msk.bf16.vlgmr.msra.gmra.mrb[128].mxu1 %vm3469_vm1, %v11282_v63  ;;  %v10725_v20 = vcombine.low %v10686_v48, %v10718_v34  ;;  %v10726_v28 = vcombine.high %v10686_v48, %v10718_v34  ;;  %v10181_v23 = vcombine.low %v10142_v13, %v10174_v10 }
 0xaf7   :  { %17048 = vmatpush3.bf16.xpose.msra.mxu0 %v11859_v41  ;;  %17054 = vmatpush3.bf16.xpose.msra.mxu1 %v11905_v27  ;;  %v10182_v35 = vcombine.high %v10142_v13, %v10174_v10  ;;  %v10799_v44 = vrot.slane %v10791_v45, %v18888_v52  ;;  %v10831_v40 = vrot.slane %v10823_v30, %v18888_v52 }
 0xaf8   :  { %17049 = vmatprep.mubr.msk.bf16.mxu0 %vm18513_vm0, %v22419_v36  ;;  %17055 = vmatprep.mubr.msk.bf16.mxu1 %vm18513_vm0, %v22419_v36  ;;  %v11301_v37 = vpack.c.bf16 %v10725_v20, %v10589_v22  ;;  %v11302_v53 = vpack.c.bf16 %v10726_v28, %v10590_v15  ;;  %v10927_v2 = vcombine.low %v21049_v47, %v21065_v42 }
 0xaf9   :  { %17059 = vmatprep.subr.bf16.mxu0 %v22419_v36  ;;  %17065 = vmatprep.subr.bf16.mxu1 %v22419_v36  ;;  %v10855_v26 = vcombine.low %v10799_v44, %v10831_v40  ;;  %v10959_v7 = vcombine.low %v21081_v21, %v10919_v6  ;;  %v10856_v54 = vcombine.high %v10799_v44, %v10831_v40 }
 0xafa   :  { %v10935_v55 = vrot.slane %v10927_v2, %v18888_v52  ;;  %v10792_v25 = vcombine.high %v20996_v24, %v21024_v19  ;;  %v10824_v62 = vcombine.high %v21027_v49, %v21041_v14  ;;  %v10928_v61 = vcombine.high %v21049_v47, %v21065_v42 }
 0xafb   :  { %v11283_v12 = vpack.c.bf16 %v10179_v56, %v10179_v56  ;;  %v11284_v11 = vpack.c.bf16 %v10180_v38, %v10180_v38  ;;  %v10967_v4 = vrot.slane %v10959_v7, %v18888_v52  ;;  %v10960_v17 = vcombine.high %v21081_v21, %v10919_v6 }
 0xafc   :  { %v11951_v18 = vsel %vm3469_vm1, %v11301_v37, 0  ;;  %v10806_v5 = vrot.slane %v10792_v25, %v18888_v52  ;;  %v10838_v33 = vrot.slane %v10824_v62, %v18888_v52  ;;  %v10942_v24 = vrot.slane %v10928_v61, %v18888_v52 }
 0xafd   :  { %v11997_v19 = vsel %vm3469_vm1, %v11302_v53, 0  ;;  %v10991_v49 = vcombine.low %v10935_v55, %v10967_v4  ;;  %v10992_v14 = vcombine.high %v10935_v55, %v10967_v4  ;;  %v10974_v47 = vrot.slane %v10960_v17, %v18888_v52 }
 0xafe   :  { %17050 = vmatmul.mubr.msk.bf16.vlgmr.msra.gmra.mrb[112].mxu0 %vm3469_vm1, %v11283_v12  ;;  %17056 = vmatmul.mubr.msk.bf16.vlgmr.msra.gmra.mrb[132].mxu1 %vm3469_vm1, %v11284_v11  ;;  %v10858_v42 = vcombine.high %v10806_v5, %v10838_v33  ;;  %v10857_v21 = vcombine.low %v10806_v5, %v10838_v33  ;;  %v11285_v38 = vpack.c.bf16 %v10181_v23, %v10181_v23 }
 0xaff   :  { %17060 = vmatpush3.bf16.xpose.msra.mxu0 %v11951_v18  ;;  %17066 = vmatpush3.bf16.xpose.msra.mxu1 %v11997_v19  ;;  %v12263_v39 = vpack.c.bf16 %v10991_v49, %v10855_v26  ;;  %v12264_v9 = vpack.c.bf16 %v10992_v14, %v10856_v54  ;;  %v10994_v50 = vcombine.high %v10942_v24, %v10974_v47 }
 0xb00   :  { %17061 = vmatprep.mubr.msk.bf16.mxu0 %vm18513_vm0, %v22419_v36  ;;  %17067 = vmatprep.mubr.msk.bf16.mxu1 %vm18513_vm0, %v22419_v36  ;;  %v10993_v0 = vcombine.low %v10942_v24, %v10974_v47  ;;  %v11286_v16 = vpack.c.bf16 %v10182_v35, %v10182_v35 }
 0xb01   :  { %17071 = vmatprep.subr.bf16.mxu0 %v22419_v36  ;;  %17077 = vmatprep.subr.bf16.mxu1 %v22419_v36  ;;  %v21163_v31 = vpack.c.bf16 %v10994_v50, %v10858_v42 }
 0xb02   :  { %v21165_v56 = vpack.c.bf16 %v10993_v0, %v10857_v21 }
 0xb06   :  { %17062 = vmatmul.mubr.msk.bf16.vlgmr.msra.gmra.mrb[116].mxu0 %vm3469_vm1, %v11285_v38  ;;  %17068 = vmatmul.mubr.msk.bf16.vlgmr.msra.gmra.mrb[136].mxu1 %vm3469_vm1, %v11286_v16 }
 0xb07   :  { %17072 = vmatpush3.bf16.msra.mxu0 %v12263_v39  ;;  %17078 = vmatpush3.bf16.msra.mxu1 %v12264_v9 }
 0xb08   :  { %17073 = vmatprep.mubr.msk.bf16.mxu0 %vm18513_vm0, %v22419_v36  ;;  %17079 = vmatprep.mubr.msk.bf16.mxu1 %vm18513_vm0, %v22419_v36 }
 0xb09   :  { %17083 = vmatprep.subr.bf16.mxu0 %v22419_v36  ;;  %17089 = vmatprep.subr.bf16.mxu1 %v22419_v36 }
 0xb81   :  { %v11343_v59 = vpop.f32.mrb[88].mxu0 }
 0xb82   :  { %v11389_v32 = vpop.f32.mrb[108].mxu1  ;;  %v12039_v6 = vmul.f32 0.125, %v11343_v59  ;;  %v16979_v57 = vpop.f32.mrb[89].mxu0 }
 0xb83   :  { %v12040_v51 = vmul.f32 0.125, %v11389_v32  ;;  %v16985_v29 = vpop.f32.mrb[109].mxu1  ;;  %v11346_v63 = vpop.f32.mrb[90].mxu0  ;;  %v9844_v32 = vld [vmem:[#allocation8 + $0x8] sm:$0xff] }
 0xb84   :  { %v11392_v60 = vpop.f32.mrb[110].mxu1  ;;  %v16980_v3 = vpop.f32.mrb[91].mxu0  ;;  %v21177_v34 = vadd.f32 %v12039_v6, %v9843_v1 }
 0xb85   :  { %v16986_v48 = vpop.f32.mrb[111].mxu1  ;;  %v21175_v41 = vadd.f32 %v12040_v51, %v9843_v1 }
 0xb86   :  { %v12071_v10 = vsel %vm6847_vm4, %v21177_v34, -inf }
 0xb87   :  { %v12074_v13 = vsel %vm6847_vm4, %v21175_v41, -inf  ;;  %12072 = vmax.xlane.f32.xlu0 %v12071_v10 }
 0xb88   :  { %12075 = vmax.xlane.f32.xlu1 %v12074_v13 }
 0xb8a   :  { %v11435_v22 = vpop.f32.mrb[92].mxu0 }
 0xb8b   :  { %v11481_v15 = vpop.f32.mrb[112].mxu1  ;;  %v12041_v45 = vmul.f32 0.125, %v11435_v22  ;;  %v16991_v27 = vpop.f32.mrb[93].mxu0 }
 0xb8c   :  { %v12042_v30 = vmul.f32 0.125, %v11481_v15  ;;  %v16997_v20 = vpop.f32.mrb[113].mxu1  ;;  %v11438_v28 = vpop.f32.mrb[94].mxu0 }
 0xb8d   :  { %v11484_v23 = vpop.f32.mrb[114].mxu1  ;;  %v16992_v35 = vpop.f32.mrb[95].mxu0  ;;  %v21183_v40 = vadd.f32 %v12041_v45, %v9843_v1 }
 0xb8e   :  { %v16998_v44 = vpop.f32.mrb[115].mxu1  ;;  %v21187_v53 = vadd.f32 %v12042_v30, %v9843_v1 }
 0xb8f   :  { %v12077_v37 = vsel %vm6847_vm4, %v21183_v40, -inf }
 0xb90   :  { %12078 = vmax.xlane.f32.xlu0 %v12077_v37  ;;  %v12080_v26 = vsel %vm6847_vm4, %v21187_v53, -inf }
 0xb94   :  { %12081 = vmax.xlane.f32.xlu0 %v12080_v26 }
 0xba2   :  { %v11527_v2 = vpop.f32.mrb[96].mxu0 }
 0xba3   :  { %v12043_v7 = vmul.f32 0.125, %v11527_v2  ;;  %v11573_v54 = vpop.f32.mrb[116].mxu1  ;;  %v17003_v55 = vpop.f32.mrb[97].mxu0 }
 0xba4   :  { %v12044_v25 = vmul.f32 0.125, %v11573_v54  ;;  %v17009_v62 = vpop.f32.mrb[117].mxu1  ;;  %v11530_v61 = vpop.f32.mrb[98].mxu0 }
 0xba5   :  { %v21191_v12 = vadd.f32 %v12043_v7, %v9843_v1  ;;  %v11576_v11 = vpop.f32.mrb[118].mxu1  ;;  %v17004_v4 = vpop.f32.mrb[99].mxu0 }
 0xba6   :  { %v17010_v17 = vpop.f32.mrb[119].mxu1  ;;  %v21193_v18 = vadd.f32 %v12044_v25, %v9843_v1 }
 0xba7   :  { %v12083_v5 = vsel %vm6847_vm4, %v21191_v12, -inf }
 0xba8   :  { %v12086_v33 = vsel %vm6847_vm4, %v21193_v18, -inf  ;;  %12084 = vmax.xlane.f32.xlu1 %v12083_v5 }
 0xba9   :  { %12087 = vmax.xlane.f32.xlu0 %v12086_v33 }
 0xbb1   :  { %v11619_v24 = vpop.f32.mrb[100].mxu0  ;;  %v11665_v19 = vpop.f32.mrb[120].mxu1 }
 0xbb2   :  { %v12045_v49 = vmul.f32 0.125, %v11619_v24  ;;  %v12046_v14 = vmul.f32 0.125, %v11665_v19  ;;  %v17015_v47 = vpop.f32.mrb[101].mxu0  ;;  %v17021_v42 = vpop.f32.mrb[121].mxu1 }
 0xbb3   :  { %v11622_v21 = vpop.f32.mrb[102].mxu0  ;;  %v11668_v39 = vpop.f32.mrb[122].mxu1 }
 0xbb4   :  { %v21199_v9 = vadd.f32 %v12045_v49, %v9843_v1  ;;  %v21201_v50 = vadd.f32 %v12046_v14, %v9843_v1  ;;  %v17016_v0 = vpop.f32.mrb[103].mxu0  ;;  %v17022_v38 = vpop.f32.mrb[123].mxu1 }
 0xbb6   :  { %v12092_v16 = vsel %vm6847_vm4, %v21201_v50, -inf  ;;  %v12089_v59 = vsel %vm6847_vm4, %v21199_v9, -inf }
 0xbb7   :  { %12093 = vmax.xlane.f32.xlu0 %v12092_v16  ;;  %12090 = vmax.xlane.f32.xlu1 %v12089_v59 }
 0xbbe   :  { %v11711_v6 = vpop.f32.mrb[104].mxu0 }
 0xbbf   :  { %v12047_v51 = vmul.f32 0.125, %v11711_v6  ;;  %v11757_v57 = vpop.f32.mrb[124].mxu1  ;;  %v17027_v29 = vpop.f32.mrb[105].mxu0 }
 0xbc0   :  { %v12048_v63 = vmul.f32 0.125, %v11757_v57  ;;  %v17033_v60 = vpop.f32.mrb[125].mxu1  ;;  %v11714_v3 = vpop.f32.mrb[106].mxu0 }
 0xbc1   :  { %v21207_v1 = vadd.f32 %v12047_v51, %v9844_v32  ;;  %v11760_v48 = vpop.f32.mrb[126].mxu1  ;;  %v17028_v13 = vpop.f32.mrb[107].mxu0 }
 0xbc2   :  { %v21209_v10 = vadd.f32 %v12048_v63, %v9844_v32  ;;  %v17034_v22 = vpop.f32.mrb[127].mxu1  ;;  %v22464_v48 = vld [vmem:[#allocation55_spill] sm:$0xff]  ;;  %v21243_v13 = vpop.permute.xlu1 %8495 }
 0xbc3   :  { %v12095_v15 = vsel %vm6847_vm4, %v21207_v1, -inf }
 0xbc4   :  { %v12098_v45 = vsel %vm6847_vm4, %v21209_v10, -inf  ;;  %12096 = vmax.xlane.f32.xlu1 %v12095_v15 }
 0xbc5   :  { %12099 = vmax.xlane.f32.xlu0 %v12098_v45 }
 0xbc9   :  { %v11803_v30 = vpop.f32.mrb[108].mxu0  ;;  %v11849_v27 = vpop.f32.mrb[128].mxu1 }
 0xbca   :  { %v17039_v20 = vpop.f32.mrb[109].mxu0  ;;  %v17045_v28 = vpop.f32.mrb[129].mxu1  ;;  %v12050_v39 = vmul.f32 0.125, %v11849_v27  ;;  %v12049_v0 = vmul.f32 0.125, %v11803_v30 }
 0xbcb   :  { %v11806_v23 = vpop.f32.mrb[110].mxu0  ;;  %v11852_v35 = vpop.f32.mrb[130].mxu1 }
 0xbcc   :  { %v17040_v44 = vpop.f32.mrb[111].mxu0  ;;  %v17046_v37 = vpop.f32.mrb[131].mxu1  ;;  %v21225_v38 = vadd.f32 %v12050_v39, %v9844_v32  ;;  %v21227_v59 = vadd.f32 %v12049_v0, %v9844_v32 }
 0xbce   :  { %v12104_v57 = vsel %vm6847_vm4, %v21225_v38, -inf  ;;  %v12101_v29 = vsel %vm6847_vm4, %v21227_v59, -inf }
 0xbd1   :  { %v11895_v26 = vpop.f32.mrb[112].mxu0  ;;  %v11941_v2 = vpop.f32.mrb[132].mxu1 }
 0xbd2   :  { %v12052_v7 = vmul.f32 0.125, %v11941_v2  ;;  %v17051_v54 = vpop.f32.mrb[113].mxu0  ;;  %v17057_v55 = vpop.f32.mrb[133].mxu1  ;;  %v12051_v16 = vmul.f32 0.125, %v11895_v26 }
 0xbd3   :  { %v11898_v25 = vpop.f32.mrb[114].mxu0  ;;  %v11944_v62 = vpop.f32.mrb[134].mxu1 }
 0xbd4   :  { %v21215_v61 = vadd.f32 %v12052_v7, %v9844_v32  ;;  %v17052_v11 = vpop.f32.mrb[115].mxu0  ;;  %v17058_v4 = vpop.f32.mrb[135].mxu1  ;;  %v21229_v6 = vadd.f32 %v12051_v16, %v9844_v32 }
 0xbd5   :  { %8511 = vrot.lane.b32.xlu1 %v20330_v58, %s18511_s15 }
 0xbd6   :  { %v12107_v60 = vsel %vm6847_vm4, %v21229_v6, -inf }
 0xbd9   :  { %v11987_v17 = vpop.f32.mrb[116].mxu0  ;;  %v12033_v5 = vpop.f32.mrb[136].mxu1  ;;  %8513 = vrot.lane.b32.xlu1 %v20338_v46, %s18511_s15 }
 0xbda   :  { %v12053_v33 = vmul.f32 0.125, %v11987_v17  ;;  %v17063_v24 = vpop.f32.mrb[117].mxu0  ;;  %v17069_v19 = vpop.f32.mrb[137].mxu1  ;;  %v12054_v51 = vmul.f32 0.125, %v12033_v5 }
 0xbdb   :  { %v11990_v49 = vpop.f32.mrb[118].mxu0  ;;  %v12036_v14 = vpop.f32.mrb[138].mxu1  ;;  %8497 = vrot.lane.b32.xlu0 %v20336_v8, %s18511_s15 }
 0xbdc   :  { %v21223_v47 = vadd.f32 %v12053_v33, %v9844_v32  ;;  %v17064_v42 = vpop.f32.mrb[119].mxu0  ;;  %v17070_v21 = vpop.f32.mrb[139].mxu1  ;;  %v21235_v63 = vadd.f32 %v12054_v51, %v9844_v32 }
 0xbde   :  { %v12116_v3 = vsel %vm6847_vm4, %v21235_v63, -inf  ;;  %v12113_v55 = vsel %vm6847_vm4, %v21223_v47, -inf }
 0xbfa   :  { %12105 = vmax.xlane.f32.xlu0 %v12104_v57 }
 0xbfd   :  { %12102 = vmax.xlane.f32.xlu1 %v12101_v29 }
 0xbfe   :  { %12108 = vmax.xlane.f32.xlu0 %v12107_v60 }
 0xc02   :  { %12117 = vmax.xlane.f32.xlu0 %v12116_v3 }
 0xc0e   :  { %8467 = vrot.lane.b32.xlu1 %v22464_v48, %s18511_s15 }
 0xc14   :  { %v12073_v32 = vpop.xlane.xlu0 %12072 }
 0xc15   :  { %v12076_v22 = vpop.xlane.xlu1 %12075  ;;  %v12119_v20 = vsub.f32 %v21177_v34, %v12073_v32 }
 0xc16   :  { %v12120_v15 = vsub.f32 %v21175_v41, %v12076_v22 }
 0xc17   :  { %v12135_v44 = vmul.f32 1.442695, %v12119_v20 }
 0xc18   :  { %v12137_v45 = vmul.f32 1.442695, %v12120_v15 }
 0xc1a   :  { %18092 = vpow2.f32 %v12137_v45 }
 0xc1d   :  { %v12079_v30 = vpop.xlane.xlu0 %12078 }
 0xc1e   :  { %v12121_v27 = vsub.f32 %v21183_v40, %v12079_v30  ;;  %v12110_v40 = vsel %vm6847_vm4, %v21215_v61, -inf }
 0xc20   :  { %v12139_v28 = vmul.f32 1.442695, %v12121_v27 }
 0xc21   :  { %v12082_v23 = vpop.xlane.xlu0 %12081 }
 0xc22   :  { %18094 = vpow2.f32 %v12139_v28  ;;  %v12122_v35 = vsub.f32 %v21187_v53, %v12082_v23 }
 0xc24   :  { %v12141_v37 = vmul.f32 1.442695, %v12122_v35  ;;  %v21249_v26 = vpop.eup %18092 }
 0xc25   :  { %v12170_v41 = vsel %vm6847_vm4, %v21249_v26, 0.0 }
 0xc26   :  { %18096 = vpow2.f32 %v12141_v37  ;;  %12171 = vadd.xlane.f32.xlu0 %v12170_v41 }
 0xc27   :  { %18098 = vpow2.f32 %v12135_v44 }
 0xc2c   :  { %v21253_v2 = vpop.eup %18094 }
 0xc2d   :  { %v12173_v34 = vsel %vm6847_vm4, %v21253_v2, 0.0 }
 0xc2e   :  { %12174 = vadd.xlane.f32.xlu0 %v12173_v34 }
 0xc30   :  { %v21259_v53 = vpop.eup %18096 }
 0xc31   :  { %v21261_v7 = vpop.eup %18098  ;;  %v12176_v54 = vsel %vm6847_vm4, %v21259_v53, 0.0 }
 0xc32   :  { %12111 = vmax.xlane.f32.xlu1 %v12110_v40  ;;  %12177 = vadd.xlane.f32.xlu0 %v12176_v54  ;;  %v12167_v17 = vsel %vm6847_vm4, %v21261_v7, 0.0 }
 0xc35   :  { %v12085_v25 = vpop.xlane.xlu1 %12084 }
 0xc36   :  { %12114 = vmax.xlane.f32.xlu1 %v12113_v55  ;;  %v12088_v62 = vpop.xlane.xlu0 %12087  ;;  %v12123_v11 = vsub.f32 %v21191_v12, %v12085_v25 }
 0xc37   :  { %v12124_v4 = vsub.f32 %v21193_v18, %v12088_v62 }
 0xc38   :  { %v12143_v5 = vmul.f32 1.442695, %v12123_v11 }
 0xc39   :  { %v12145_v33 = vmul.f32 1.442695, %v12124_v4  ;;  %v22468_v4 = vcombine.low %v20336_v8, %v20338_v46 }
 0xc3a   :  { %18100 = vpow2.f32 %v12143_v5  ;;  %12168 = vadd.xlane.f32.xlu1 %v12167_v17  ;;  %v22469_v5 = vcombine.high %v20336_v8, %v20338_v46 }
 0xc3b   :  { %18102 = vpow2.f32 %v12145_v33  ;;  %v8699_v17 = vrot.slane %v22468_v4, %v18883_v43  ;;  %v22470_v4 = vld [vmem:[#allocation56_spill] sm:$0xff] }
 0xc3c   :  { %v8706_v33 = vrot.slane %v22469_v5, %v18883_v43 }
 0xc44   :  { %v21271_v24 = vpop.eup %18100  ;;  %v12094_v49 = vpop.xlane.xlu0 %12093 }
 0xc45   :  { %v21273_v19 = vpop.eup %18102  ;;  %v12091_v14 = vpop.xlane.xlu1 %12090  ;;  %v12179_v42 = vsel %vm6847_vm4, %v21271_v24, 0.0  ;;  %v12126_v12 = vsub.f32 %v21201_v50, %v12094_v49 }
 0xc46   :  { %v12125_v18 = vsub.f32 %v21199_v9, %v12091_v14  ;;  %v12182_v21 = vsel %vm6847_vm4, %v21273_v19, 0.0  ;;  %12180 = vadd.xlane.f32.xlu1 %v12179_v42 }
 0xc47   :  { %12183 = vadd.xlane.f32.xlu0 %v12182_v21  ;;  %v12149_v39 = vmul.f32 1.442695, %v12126_v12 }
 0xc48   :  { %v12147_v0 = vmul.f32 1.442695, %v12125_v18 }
 0xc49   :  { %18104 = vpow2.f32 %v12149_v39 }
 0xc4a   :  { %18106 = vpow2.f32 %v12147_v0 }
 0xc51   :  { %v12097_v16 = vpop.xlane.xlu1 %12096 }
 0xc52   :  { %v12100_v51 = vpop.xlane.xlu0 %12099  ;;  %v12127_v57 = vsub.f32 %v21207_v1, %v12097_v16 }
 0xc53   :  { %v12128_v29 = vsub.f32 %v21209_v10, %v12100_v51  ;;  %v21283_v60 = vpop.eup %18104  ;;  %v22465_v10 = vld [vmem:[#allocation59_spill] sm:$0xff] }
 0xc54   :  { %v12151_v50 = vmul.f32 1.442695, %v12127_v57  ;;  %v21285_v3 = vpop.eup %18106  ;;  %v12188_v15 = vsel %vm6847_vm4, %v21283_v60, 0.0  ;;  %v22466_v30 = vcombine.low %v22465_v10, %v20330_v58  ;;  %v22467_v20 = vcombine.high %v22465_v10, %v20330_v58 }
 0xc55   :  { %v12153_v9 = vmul.f32 1.442695, %v12128_v29  ;;  %v8512_v22 = vpop.permute.xlu1 %8511  ;;  %12189 = vadd.xlane.f32.xlu1 %v12188_v15  ;;  %v12185_v1 = vsel %vm6847_vm4, %v21285_v3, 0.0 }
 0xc56   :  { %18108 = vpow2.f32 %v12151_v50  ;;  %v8571_v45 = vcombine.low %v21243_v13, %v8512_v22  ;;  %v8572_v32 = vcombine.high %v21243_v13, %v8512_v22  ;;  %12186 = vadd.xlane.f32.xlu0 %v12185_v1  ;;  %v8563_v27 = vrot.slane %v22466_v30, %v18883_v43  ;;  %v8498_v44 = vpop.permute.xlu0 %8497 }
 0xc57   :  { %18110 = vpow2.f32 %v12153_v9  ;;  %v8570_v28 = vrot.slane %v22467_v20, %v18883_v43 }
 0xc58   :  { %v8579_v23 = vrot.slane %v8571_v45, %v18883_v43  ;;  %v8586_v13 = vrot.slane %v8572_v32, %v18883_v43 }
 0xc59   :  { %v8514_v35 = vpop.permute.xlu1 %8513 }
 0xc5a   :  { %v8619_v37 = vcombine.low %v8563_v27, %v8579_v23  ;;  %v8620_v41 = vcombine.high %v8563_v27, %v8579_v23  ;;  %v8635_v34 = vcombine.low %v8570_v28, %v8586_v13  ;;  %v8636_v40 = vcombine.high %v8570_v28, %v8586_v13 }
 0xc5b   :  { %v8707_v54 = vcombine.low %v8498_v44, %v8514_v35  ;;  %v8708_v55 = vcombine.high %v8498_v44, %v8514_v35 }
 0xc5c   :  { %v8627_v25 = vrot.slane %v8619_v37, %v18888_v52  ;;  %v8634_v62 = vrot.slane %v8620_v41, %v18888_v52  ;;  %v8643_v11 = vrot.slane %v8635_v34, %v18888_v52  ;;  %v8650_v58 = vrot.slane %v8636_v40, %v18888_v52 }
 0xc5d   :  { %v8715_v49 = vrot.slane %v8707_v54, %v18883_v43  ;;  %v8722_v14 = vrot.slane %v8708_v55, %v18883_v43 }
 0xc5e   :  { %v16368_v42 = vcombine.low %v8627_v25, %v8634_v62  ;;  %v16370_v12 = vcombine.high %v8627_v25, %v8634_v62  ;;  %v16372_v18 = vcombine.low %v8643_v11, %v8650_v58  ;;  %v16374_v21 = vcombine.high %v8643_v11, %v8650_v58 }
 0xc5f   :  { %v8755_v39 = vcombine.low %v8699_v17, %v8715_v49  ;;  %v8756_v0 = vcombine.high %v8699_v17, %v8715_v49  ;;  %v8771_v16 = vcombine.low %v8706_v33, %v8722_v14  ;;  %v8772_v51 = vcombine.high %v8706_v33, %v8722_v14 }
 0xc60   :  { %v21317_v57 = vpop.eup %18108  ;;  %v10742_v29 = vrot.slane %v16368_v42, %v18883_v43  ;;  %v10758_v50 = vrot.slane %v16370_v12, %v18883_v43  ;;  %v10774_v8 = vrot.slane %v16372_v18, %v18883_v43  ;;  %v10790_v46 = vrot.slane %v16374_v21, %v18883_v43 }
 0xc61   :  { %v21323_v9 = vpop.eup %18110  ;;  %v8763_v22 = vrot.slane %v8755_v39, %v18888_v52  ;;  %v8770_v15 = vrot.slane %v8756_v0, %v18888_v52  ;;  %v8779_v45 = vrot.slane %v8771_v16, %v18888_v52  ;;  %v8786_v32 = vrot.slane %v8772_v51, %v18888_v52  ;;  %v22471_v0 = vld [vmem:[#allocation58_spill] sm:$0xff] }
 0xc62   :  { %v12191_v1 = vsel %vm6847_vm4, %v21317_v57, 0.0  ;;  %v12194_v10 = vsel %vm6847_vm4, %v21323_v9, 0.0  ;;  %v10807_v30 = vcombine.low %v10742_v29, %v10758_v50  ;;  %v10839_v27 = vcombine.low %v10774_v8, %v10790_v46 }
 0xc63   :  { %v16376_v20 = vcombine.low %v8763_v22, %v8770_v15  ;;  %v16378_v28 = vcombine.high %v8763_v22, %v8770_v15  ;;  %v16380_v23 = vcombine.low %v8779_v45, %v8786_v32  ;;  %v16382_v13 = vcombine.high %v8779_v45, %v8786_v32  ;;  %12192 = vadd.xlane.f32.xlu0 %v12191_v1  ;;  %v22472_v45 = vld [vmem:[#allocation57_spill] sm:$0xff] }
 0xc64   :  { %v10815_v35 = vrot.slane %v10807_v30, %v18888_v52  ;;  %v10847_v44 = vrot.slane %v10839_v27, %v18888_v52  ;;  %v10808_v37 = vcombine.high %v10742_v29, %v10758_v50  ;;  %v10840_v41 = vcombine.high %v10774_v8, %v10790_v46 }
 0xc65   :  { %v10878_v34 = vrot.slane %v16376_v20, %v18883_v43  ;;  %v10894_v40 = vrot.slane %v16378_v28, %v18883_v43  ;;  %v10910_v54 = vrot.slane %v16380_v23, %v18883_v43  ;;  %v10926_v55 = vrot.slane %v16382_v13, %v18883_v43 }
 0xc66   :  { %v10859_v25 = vcombine.low %v10815_v35, %v10847_v44  ;;  %v10860_v62 = vcombine.high %v10815_v35, %v10847_v44  ;;  %v10822_v11 = vrot.slane %v10808_v37, %v18888_v52  ;;  %v10854_v58 = vrot.slane %v10840_v41, %v18888_v52  ;;  %8483 = vrot.lane.b32.xlu1 %v22470_v4, %s18511_s15 }
 0xc67   :  { %12195 = vadd.xlane.f32.xlu0 %v12194_v10  ;;  %v10943_v17 = vcombine.low %v10878_v34, %v10894_v40  ;;  %v10975_v5 = vcombine.low %v10910_v54, %v10926_v55  ;;  %v10944_v33 = vcombine.high %v10878_v34, %v10894_v40  ;;  %v10976_v14 = vcombine.high %v10910_v54, %v10926_v55  ;;  %v22474_v34 = vld [vmem:[#allocation61_spill] sm:$0xff]  ;;  %v22475_v40 = vld [vmem:[#allocation63_spill] sm:$0xff] }
 0xc68   :  { %v10861_v49 = vcombine.low %v10822_v11, %v10854_v58  ;;  %v10862_v42 = vcombine.high %v10822_v11, %v10854_v58 }
 0xc69   :  { %v10951_v12 = vrot.slane %v10943_v17, %v18888_v52  ;;  %v10983_v18 = vrot.slane %v10975_v5, %v18888_v52  ;;  %v10958_v21 = vrot.slane %v10944_v33, %v18888_v52  ;;  %v10990_v39 = vrot.slane %v10976_v14, %v18888_v52 }
 0xc6a   :  { %8485 = vrot.lane.b32.xlu1 %v22471_v0, %s18511_s15 }
 0xc6b   :  { %v10995_v16 = vcombine.low %v10951_v12, %v10983_v18  ;;  %v10996_v51 = vcombine.high %v10951_v12, %v10983_v18  ;;  %v10997_v29 = vcombine.low %v10958_v21, %v10990_v39  ;;  %v10998_v50 = vcombine.high %v10958_v21, %v10990_v39 }
 0xc6d   :  { %v21349_v8 = vpack.c.bf16 %v10995_v16, %v10859_v25  ;;  %v21351_v46 = vpack.c.bf16 %v10996_v51, %v10860_v62  ;;  %v21353_v22 = vpack.c.bf16 %v10997_v29, %v10861_v49  ;;  %v21355_v15 = vpack.c.bf16 %v10998_v50, %v10862_v42 }
 0xc7d   :  { %8469 = vrot.lane.b32.xlu0 %v22472_v45, %s18511_s15 }
 0xc87   :  { %v12106_v32 = vpop.xlane.xlu0 %12105 }
 0xc88   :  { %v12130_v1 = vsub.f32 %v21225_v38, %v12106_v32 }
 0xc8a   :  { %v12157_v10 = vmul.f32 1.442695, %v12130_v1  ;;  %v12103_v30 = vpop.xlane.xlu1 %12102 }
 0xc8b   :  { %v12109_v27 = vpop.xlane.xlu0 %12108  ;;  %v12129_v20 = vsub.f32 %v21227_v59, %v12103_v30 }
 0xc8c   :  { %18112 = vpow2.f32 %v12157_v10  ;;  %v12131_v28 = vsub.f32 %v21229_v6, %v12109_v27  ;;  %v22473_v6 = vld [vmem:[#allocation60_spill] sm:$0xff] }
 0xc8d   :  { %v12155_v23 = vmul.f32 1.442695, %v12129_v20 }
 0xc8e   :  { %v12159_v13 = vmul.f32 1.442695, %v12131_v28  ;;  %v21380_v25 = vpop.permute.xlu1 %8467 }
 0xc8f   :  { %18114 = vpow2.f32 %v12155_v23  ;;  %v12118_v54 = vpop.xlane.xlu0 %12117 }
 0xc90   :  { %18116 = vpow2.f32 %v12159_v13  ;;  %v12134_v11 = vsub.f32 %v21235_v63, %v12118_v54 }
 0xc92   :  { %v12165_v14 = vmul.f32 1.442695, %v12134_v11 }
 0xc96   :  { %v21362_v35 = vpop.eup %18112 }
 0xc97   :  { %v12200_v44 = vsel %vm6847_vm4, %v21362_v35, 0.0 }
 0xc98   :  { %12201 = vadd.xlane.f32.xlu1 %v12200_v44 }
 0xc99   :  { %v21366_v37 = vpop.eup %18114 }
 0xc9a   :  { %v12197_v38 = vsel %vm6847_vm4, %v21366_v37, 0.0  ;;  %v21370_v41 = vpop.eup %18116 }
 0xc9b   :  { %v12203_v59 = vsel %vm6847_vm4, %v21370_v41, 0.0 }
 0xc9c   :  { %12198 = vadd.xlane.f32.xlu0 %v12197_v38 }
 0xca0   :  { %12204 = vadd.xlane.f32.xlu0 %v12203_v59 }
 0xca9   :  { %8499 = vrot.lane.b32.xlu1 %v22473_v6, %s18511_s15 }
 0xcad   :  { %8515 = vrot.lane.b32.xlu1 %v22474_v34, %s18511_s15 }
 0xcb1   :  { %8517 = vrot.lane.b32.xlu1 %v22475_v40, %s18511_s15 }
 0xcb3   :  { %v12172_v55 = vpop.xlane.xlu0 %12171 }
 0xcb4   :  { %18118 = vrcp.f32 %v12172_v55 }
 0xcbb   :  { %v12175_v62 = vpop.xlane.xlu0 %12174 }
 0xcbe   :  { %v18119_v5 = vpop.eup %18118 }
 0xcbf   :  { %v12112_v58 = vpop.xlane.xlu1 %12111  ;;  %v12178_v49 = vpop.xlane.xlu0 %12177  ;;  %v12232_v12 = vmul.f32 %v18119_v5, %v21249_v26 }
 0xcc0   :  { %v12132_v17 = vsub.f32 %v21215_v61, %v12112_v58  ;;  %18120 = vrcp.f32 %v12178_v49 }
 0xcc1   :  { %v12248_v18 = vpack.c.bf16 %v12232_v12, %v12232_v12 }
 0xcc2   :  { %v12161_v33 = vmul.f32 1.442695, %v12132_v17 }
 0xcc3   :  { %v21384_v42 = vpop.xlane.xlu1 %12114  ;;  %17080 = vmatmul.mubr.msk.bf16.vlgmr.msra.gmra.mrb[140].mxu1 %vm6847_vm4, %v12248_v18 }
 0xcc4   :  { %18122 = vpow2.f32 %v12161_v33  ;;  %17090 = vmatpush3.bf16.msra.mxu1 %v21163_v31  ;;  %17091 = vmatprep.mubr.msk.bf16.mxu1 %vm18513_vm0, %v22419_v36 }
 0xcc5   :  { %18124 = vrcp.f32 %v12175_v62  ;;  %17101 = vmatprep.subr.bf16.mxu1 %v22419_v36 }
 0xcc6   :  { %18126 = vpow2.f32 %v12165_v14 }
 0xcc7   :  { %v12169_v21 = vpop.xlane.xlu1 %12168 }
 0xcc8   :  { %18128 = vrcp.f32 %v12169_v21 }
 0xcca   :  { %v18121_v61 = vpop.eup %18120 }
 0xccb   :  { %v12234_v26 = vmul.f32 %v18121_v61, %v21259_v53 }
 0xccd   :  { %v14043_v51 = vcombine.low %v12232_v12, %v12234_v26  ;;  %v14044_v29 = vcombine.high %v12232_v12, %v12234_v26  ;;  %v12250_v50 = vpack.c.bf16 %v12234_v26, %v12234_v26 }
 0xcce   :  { %v21392_v63 = vpop.eup %18122 }
 0xccf   :  { %v18125_v39 = vpop.eup %18124  ;;  %v12206_v16 = vsel %vm6847_vm4, %v21392_v63, 0.0  ;;  %17092 = vmatmul.mubr.msk.bf16.vlgmr.msra.gmra.mrb[144].mxu1 %vm6847_vm4, %v12250_v50 }
 0xcd0   :  { %12207 = vadd.xlane.f32.xlu0 %v12206_v16  ;;  %v21397_v31 = vpop.eup %18126  ;;  %v12233_v32 = vmul.f32 %v18125_v39, %v21253_v2  ;;  %17102 = vmatpush3.bf16.msra.mxu1 %v21351_v46  ;;  %v14051_v2 = vrot.slane %v14043_v51, %v18883_v43  ;;  %v14058_v46 = vrot.slane %v14044_v29, %v18883_v43 }
 0xcd1   :  { %17103 = vmatprep.mubr.msk.bf16.mxu1 %vm18513_vm0, %v22419_v36  ;;  %v12212_v30 = vsel %vm6847_vm4, %v21397_v31, 0.0  ;;  %17113 = vmatprep.subr.bf16.mxu1 %v22419_v36 }
 0xcd2   :  { %v18129_v1 = vpop.eup %18128  ;;  %v12249_v55 = vpack.c.bf16 %v12233_v32, %v12233_v32 }
 0xcd3   :  { %v12181_v10 = vpop.xlane.xlu1 %12180  ;;  %v12231_v53 = vmul.f32 %v18129_v1, %v21261_v7 }
 0xcd4   :  { %v12184_v27 = vpop.xlane.xlu0 %12183  ;;  %18130 = vrcp.f32 %v12181_v10 }
 0xcd5   :  { %12213 = vadd.xlane.f32.xlu1 %v12212_v30  ;;  %18132 = vrcp.f32 %v12184_v27  ;;  %v14027_v20 = vcombine.low %v12231_v53, %v12233_v32  ;;  %v14028_v28 = vcombine.high %v12231_v53, %v12233_v32  ;;  %v12247_v23 = vpack.c.bf16 %v12231_v53, %v12231_v53 }
 0xcd7   :  { %17074 = vmatmul.mubr.msk.bf16.vlgmr.msra.gmra.mrb[120].mxu0 %vm6847_vm4, %v12247_v23  ;;  %v14035_v7 = vrot.slane %v14027_v20, %v18883_v43  ;;  %v14042_v13 = vrot.slane %v14028_v28, %v18883_v43 }
 0xcd8   :  { %17084 = vmatpush3.bf16.msra.mxu0 %v21165_v56  ;;  %17085 = vmatprep.mubr.msk.bf16.mxu0 %vm18513_vm0, %v22419_v36 }
 0xcd9   :  { %17095 = vmatprep.subr.bf16.mxu0 %v22419_v36  ;;  %v14091_v44 = vcombine.low %v14035_v7, %v14051_v2  ;;  %v14092_v38 = vcombine.high %v14035_v7, %v14051_v2  ;;  %v14107_v59 = vcombine.low %v14042_v13, %v14058_v46  ;;  %v14108_v54 = vcombine.high %v14042_v13, %v14058_v46  ;;  %v22476_v2 = vld [vmem:[#allocation62_spill] sm:$0xff] }
 0xcdb   :  { %v14099_v62 = vrot.slane %v14091_v44, %v18888_v52  ;;  %v14106_v11 = vrot.slane %v14092_v38, %v18888_v52  ;;  %v14115_v58 = vrot.slane %v14107_v59, %v18888_v52  ;;  %v14122_v17 = vrot.slane %v14108_v54, %v18888_v52 }
 0xcdc   :  { %v22477_v44 = vcombine.low %v22464_v48, %v22470_v4  ;;  %v22478_v59 = vcombine.high %v22464_v48, %v22470_v4 }
 0xcdd   :  { %v16511_v56 = vcombine.low %v14099_v62, %v14106_v11  ;;  %v16513_v33 = vcombine.high %v14099_v62, %v14106_v11  ;;  %v16515_v49 = vcombine.low %v14115_v58, %v14122_v17  ;;  %v16517_v14 = vcombine.high %v14115_v58, %v14122_v17 }
 0xcde   :  { %v18131_v5 = vpop.eup %18130  ;;  %v8803_v38 = vrot.slane %v22477_v44, %v18883_v43  ;;  %v8810_v54 = vrot.slane %v22478_v59, %v18883_v43  ;;  %v12133_v17 = vsub.f32 %v21223_v47, %v21384_v42  ;;  %v22480_v47 = vcombine.high %v22472_v45, %v22471_v0 }
 0xcdf   :  { %v18133_v12 = vpop.eup %18132  ;;  %v21422_v18 = vmul.f32 %v18131_v5, %v21271_v24  ;;  %17086 = vmatmul.mubr.msk.bf16.vlgmr.msra.gmra.mrb[124].mxu0 %vm6847_vm4, %v12249_v55  ;;  %v14307_v61 = vrot.slane %v16511_v56, %v18883_v43  ;;  %v14323_v26 = vrot.slane %v16513_v33, %v18883_v43  ;;  %v14339_v39 = vrot.slane %v16515_v49, %v18883_v43 }
 0xce0   :  { %v21425_v21 = vmul.f32 %v18133_v12, %v21273_v19  ;;  %17096 = vmatpush3.bf16.msra.mxu0 %v21349_v8  ;;  %17097 = vmatprep.mubr.msk.bf16.mxu0 %vm18513_vm0, %v22419_v36  ;;  %v14355_v16 = vrot.slane %v16517_v14, %v18883_v43  ;;  %v22479_v14 = vcombine.low %v22472_v45, %v22471_v0 }
 0xce1   :  { %17107 = vmatprep.subr.bf16.mxu0 %v22419_v36  ;;  %v14363_v19 = vcombine.low %v14307_v61, %v14323_v26  ;;  %v14364_v51 = vcombine.high %v14307_v61, %v14323_v26  ;;  %v12251_v8 = vpack.c.bf16 %v21422_v18, %v21422_v18  ;;  %v21500_v42 = vrot.slane %v22480_v47, %v18883_v43 }
 0xce2   :  { %v12252_v24 = vpack.c.bf16 %v21425_v21, %v21425_v21  ;;  %v12190_v29 = vpop.xlane.xlu1 %12189  ;;  %v14395_v50 = vcombine.low %v14339_v39, %v14355_v16  ;;  %v14396_v32 = vcombine.high %v14339_v39, %v14355_v16  ;;  %v21494_v12 = vrot.slane %v22479_v14, %v18883_v43 }
 0xce3   :  { %v12187_v1 = vpop.xlane.xlu0 %12186  ;;  %18134 = vrcp.f32 %v12190_v29  ;;  %v21442_v10 = vrot.slane %v14363_v19, %v18888_v52  ;;  %v21445_v53 = vrot.slane %v14364_v51, %v18888_v52  ;;  %v12163_v51 = vmul.f32 1.442695, %v12133_v17 }
 0xce4   :  { %17104 = vmatmul.mubr.msk.bf16.vlgmr.msra.gmra.mrb[148].mxu1 %vm6847_vm4, %v12252_v24  ;;  %18136 = vrcp.f32 %v12187_v1  ;;  %v21451_v30 = vrot.slane %v14395_v50, %v18888_v52  ;;  %v21454_v27 = vrot.slane %v14396_v32, %v18888_v52 }
 0xce5   :  { %17114 = vmatpush3.bf16.msra.mxu1 %v21355_v15  ;;  %17115 = vmatprep.mubr.msk.bf16.mxu1 %vm18513_vm0, %v22419_v36  ;;  %18138 = vpow2.f32 %v12163_v51 }
 0xce6   :  { %8501 = vrot.lane.b32.xlu0 %v22476_v2, %s18511_s15  ;;  %17125 = vmatprep.subr.bf16.mxu1 %v22419_v36  ;;  %v8484_v20 = vpop.permute.xlu1 %8483  ;;  %v14428_v28 = vcombine.high %v21442_v10, %v21451_v30  ;;  %v14427_v15 = vcombine.low %v21442_v10, %v21451_v30  ;;  %v14429_v23 = vcombine.low %v21445_v53, %v21454_v27  ;;  %v22504_v30 = vld [vmem:[#allocation50_spill] sm:$0xff] }
 0xce7   :  { %v8811_v7 = vcombine.low %v21380_v25, %v8484_v20  ;;  %v8812_v13 = vcombine.high %v21380_v25, %v8484_v20  ;;  %17098 = vmatmul.mubr.msk.bf16.vlgmr.msra.gmra.mrb[128].mxu0 %vm6847_vm4, %v12251_v8 }
 0xce8   :  { %17108 = vmatpush3.bf16.msra.mxu0 %v21353_v22  ;;  %17109 = vmatprep.mubr.msk.bf16.mxu0 %vm18513_vm0, %v22419_v36 }
 0xce9   :  { %v8819_v55 = vrot.slane %v8811_v7, %v18883_v43  ;;  %v8826_v25 = vrot.slane %v8812_v13, %v18883_v43  ;;  %17119 = vmatprep.subr.bf16.mxu0 %v22419_v36 }
 0xceb   :  { %v8859_v22 = vcombine.low %v8803_v38, %v8819_v55  ;;  %v8860_v62 = vcombine.high %v8803_v38, %v8819_v55  ;;  %v8875_v11 = vcombine.low %v8810_v54, %v8826_v25  ;;  %v8876_v58 = vcombine.high %v8810_v54, %v8826_v25 }
 0xced   :  { %v18135_v5 = vpop.eup %18134  ;;  %v8867_v56 = vrot.slane %v8859_v22, %v18888_v52  ;;  %v8874_v33 = vrot.slane %v8860_v62, %v18888_v52  ;;  %v8883_v48 = vrot.slane %v8875_v11, %v18888_v52  ;;  %v8890_v4 = vrot.slane %v8876_v58, %v18888_v52 }
 0xcee   :  { %v18137_v49 = vpop.eup %18136  ;;  %v12238_v61 = vmul.f32 %v18135_v5, %v21283_v60  ;;  %v8486_v5 = vpop.permute.xlu1 %8485 }
 0xcef   :  { %v12237_v26 = vmul.f32 %v18137_v49, %v21285_v3  ;;  %v16383_v39 = vcombine.low %v8867_v56, %v8874_v33  ;;  %v16385_v16 = vcombine.high %v8867_v56, %v8874_v33  ;;  %v16387_v24 = vcombine.low %v8883_v48, %v8890_v4 }
 0xcf0   :  { %v12193_v19 = vpop.xlane.xlu0 %12192  ;;  %v14075_v29 = vcombine.low %v21425_v21, %v12238_v61  ;;  %v14076_v50 = vcombine.high %v21425_v21, %v12238_v61  ;;  %v16389_v32 = vcombine.high %v8883_v48, %v8890_v4  ;;  %v12254_v59 = vpack.c.bf16 %v12238_v61, %v12238_v61 }
 0xcf1   :  { %v14059_v1 = vcombine.low %v21422_v18, %v12237_v26  ;;  %v14060_v0 = vcombine.high %v21422_v18, %v12237_v26  ;;  %v11007_v45 = vrot.slane %v16383_v39, %v18883_v43  ;;  %v11023_v60 = vrot.slane %v16385_v16, %v18883_v43 }
 0xcf2   :  { %v14083_v3 = vrot.slane %v14075_v29, %v18883_v43  ;;  %v14090_v8 = vrot.slane %v14076_v50, %v18883_v43  ;;  %v11039_v20 = vrot.slane %v16387_v24, %v18883_v43  ;;  %v11055_v7 = vrot.slane %v16389_v32, %v18883_v43  ;;  %17116 = vmatmul.mubr.msk.bf16.vlgmr.msra.gmra.mrb[152].mxu1 %vm6847_vm4, %v12254_v59 }
 0xcf3   :  { %v14067_v13 = vrot.slane %v14059_v1, %v18883_v43  ;;  %v14074_v21 = vrot.slane %v14060_v0, %v18883_v43  ;;  %v12253_v38 = vpack.c.bf16 %v12237_v26, %v12237_v26  ;;  %v11063_v18 = vcombine.low %v11007_v45, %v11023_v60  ;;  %17127 = vmatprep.mubr.msk.bf16.mxu1 %vm18513_vm0, %v22419_v36 }
 0xcf4   :  { %v12196_v44 = vpop.xlane.xlu0 %12195  ;;  %v11095_v54 = vcombine.low %v11039_v20, %v11055_v7  ;;  %v11064_v55 = vcombine.high %v11007_v45, %v11023_v60  ;;  %v11096_v25 = vcombine.high %v11039_v20, %v11055_v7  ;;  %18140 = vrcp.f32 %v12193_v19 }
 0xcf5   :  { %17110 = vmatmul.mubr.msk.bf16.vlgmr.msra.gmra.mrb[132].mxu0 %vm6847_vm4, %v12253_v38  ;;  %v14123_v22 = vcombine.low %v14067_v13, %v14083_v3  ;;  %v14124_v62 = vcombine.high %v14067_v13, %v14083_v3  ;;  %v21519_v11 = vrot.slane %v11063_v18, %v18888_v52  ;;  %v14139_v49 = vcombine.low %v14074_v21, %v14090_v8  ;;  %v21554_v13 = vpop.eup %18138 }
 0xcf6   :  { %v21522_v58 = vrot.slane %v11095_v54, %v18888_v52  ;;  %17121 = vmatprep.mubr.msk.bf16.mxu0 %vm18513_vm0, %v22419_v36  ;;  %v21529_v17 = vrot.slane %v11064_v55, %v18888_v52  ;;  %v21532_v33 = vrot.slane %v11096_v25, %v18888_v52  ;;  %v14140_v24 = vcombine.high %v14074_v21, %v14090_v8 }
 0xcf7   :  { %v14131_v48 = vrot.slane %v14123_v22, %v18888_v52  ;;  %v14138_v4 = vrot.slane %v14124_v62, %v18888_v52  ;;  %v14147_v19 = vrot.slane %v14139_v49, %v18888_v52  ;;  %18142 = vrcp.f32 %v12196_v44 }
 0xcf8   :  { %v8470_v56 = vpop.permute.xlu0 %8469  ;;  %v11127_v61 = vcombine.low %v21519_v11, %v21522_v58  ;;  %v11128_v26 = vcombine.high %v21519_v11, %v21522_v58  ;;  %v11129_v39 = vcombine.low %v21529_v17, %v21532_v33  ;;  %v11130_v16 = vcombine.high %v21529_v17, %v21532_v33 }
 0xcf9   :  { %v8947_v14 = vcombine.low %v8470_v56, %v8486_v5  ;;  %v8948_v47 = vcombine.high %v8470_v56, %v8486_v5  ;;  %v16512_v50 = vcombine.low %v14131_v48, %v14138_v4  ;;  %v16514_v32 = vcombine.high %v14131_v48, %v14138_v4 }
 0xcfa   :  { %v14154_v1 = vrot.slane %v14140_v24, %v18888_v52  ;;  %v12209_v5 = vsel %vm6847_vm4, %v21554_v13, 0.0 }
 0xcfb   :  { %v8955_v51 = vrot.slane %v8947_v14, %v18883_v43  ;;  %v8962_v29 = vrot.slane %v8948_v47, %v18883_v43  ;;  %v14314_v8 = vrot.slane %v16512_v50, %v18883_v43  ;;  %v14330_v20 = vrot.slane %v16514_v32, %v18883_v43 }
 0xcfc   :  { %v16516_v7 = vcombine.low %v14147_v19, %v14154_v1  ;;  %v16518_v18 = vcombine.high %v14147_v19, %v14154_v1 }
 0xcfd   :  { %v8995_v0 = vcombine.low %v21494_v12, %v8955_v51  ;;  %v8996_v45 = vcombine.high %v21494_v12, %v8955_v51  ;;  %v9011_v60 = vcombine.low %v21500_v42, %v8962_v29  ;;  %v9012_v3 = vcombine.high %v21500_v42, %v8962_v29 }
 0xcfe   :  { %v14346_v12 = vrot.slane %v16516_v7, %v18883_v43  ;;  %v14379_v54 = vcombine.low %v14314_v8, %v14330_v20  ;;  %v18141_v42 = vpop.eup %18140  ;;  %v14362_v56 = vrot.slane %v16518_v18, %v18883_v43  ;;  %v14380_v48 = vcombine.high %v14314_v8, %v14330_v20 }
 0xcff   :  { %v9003_v21 = vrot.slane %v8995_v0, %v18888_v52  ;;  %v9010_v44 = vrot.slane %v8996_v45, %v18888_v52  ;;  %v9019_v38 = vrot.slane %v9011_v60, %v18888_v52  ;;  %v9026_v59 = vrot.slane %v9012_v3, %v18888_v52 }
 0xd00   :  { %v21569_v24 = vrot.slane %v14379_v54, %v18888_v52  ;;  %v14411_v19 = vcombine.low %v14346_v12, %v14362_v56  ;;  %v21572_v51 = vrot.slane %v14380_v48, %v18888_v52  ;;  %v14412_v29 = vcombine.high %v14346_v12, %v14362_v56 }
 0xd01   :  { %v16391_v55 = vcombine.low %v9003_v21, %v9010_v44  ;;  %v16393_v25 = vcombine.high %v9003_v21, %v9010_v44  ;;  %v16395_v22 = vcombine.low %v9019_v38, %v9026_v59  ;;  %v16397_v62 = vcombine.high %v9019_v38, %v9026_v59  ;;  %v18143_v45 = vpop.eup %18142  ;;  %v17748_v59 = vld [vmem:[#allocation16 + $0x40] ss:$8 sps:$4 sm:$0xff]  }
 0xd02   :  { %v21575_v60 = vrot.slane %v14411_v19, %v18888_v52  ;;  %v21578_v3 = vrot.slane %v14412_v29, %v18888_v52 }
 0xd03   :  { %v11143_v4 = vrot.slane %v16391_v55, %v18883_v43  ;;  %v11159_v49 = vrot.slane %v16393_v25, %v18883_v43  ;;  %v11175_v14 = vrot.slane %v16395_v22, %v18883_v43  ;;  %v11191_v47 = vrot.slane %v16397_v62, %v18883_v43 }
 0xd04   :  { %v21593_v22 = vmul.f32 %v18141_v42, %v21317_v57  ;;  %v21596_v62 = vmul.f32 %v18143_v45, %v21323_v9  ;;  %v22481_v42 = vcombine.low %v22473_v6, %v22474_v34 }
 0xd05   :  { %12210 = vadd.xlane.f32.xlu0 %v12209_v5  ;;  %v11199_v50 = vcombine.low %v11143_v4, %v11159_v49  ;;  %v11231_v32 = vcombine.low %v11175_v14, %v11191_v47  ;;  %v11200_v1 = vcombine.high %v11143_v4, %v11159_v49  ;;  %v11232_v0 = vcombine.high %v11175_v14, %v11191_v47 }
 0xd06   :  { %v12255_v9 = vpack.c.bf16 %v21593_v22, %v21593_v22  ;;  %v8835_v4 = vrot.slane %v22481_v42, %v18883_v43  ;;  %v22482_v49 = vcombine.high %v22473_v6, %v22474_v34 }
 0xd07   :  { %v11207_v8 = vrot.slane %v11199_v50, %v18888_v52  ;;  %v11239_v20 = vrot.slane %v11231_v32, %v18888_v52  ;;  %v11214_v7 = vrot.slane %v11200_v1, %v18888_v52  ;;  %v11246_v21 = vrot.slane %v11232_v0, %v18888_v52 }
 0xd08   :  { %v8842_v14 = vrot.slane %v22482_v49, %v18883_v43 }
 0xd09   :  { %v11263_v18 = vcombine.low %v11207_v8, %v11239_v20  ;;  %v11264_v54 = vcombine.high %v11207_v8, %v11239_v20  ;;  %v11265_v55 = vcombine.low %v11214_v7, %v11246_v21  ;;  %v11266_v25 = vcombine.high %v11214_v7, %v11246_v21 }
 0xd0b   :  { %v12271_v5 = vpack.c.bf16 %v11263_v18, %v11127_v61  ;;  %v12272_v56 = vpack.c.bf16 %v11264_v54, %v11128_v26  ;;  %v12273_v48 = vpack.c.bf16 %v11265_v55, %v11129_v39  ;;  %v12274_v57 = vpack.c.bf16 %v11266_v25, %v11130_v16 }
 0xd0c   :  { %v12256_v61 = vpack.c.bf16 %v21596_v62, %v21596_v62 }
 0xd0d   :  { %17120 = vmatpush3.bf16.msra.mxu0 %v12271_v5  ;;  %17126 = vmatpush3.bf16.msra.mxu1 %v12272_v56 }
 0xd0e   :  { %17131 = vmatprep.subr.bf16.mxu0 %v22419_v36  ;;  %17137 = vmatprep.subr.bf16.mxu1 %v22419_v36 }
 0xd10   :  { %17122 = vmatmul.mubr.msk.bf16.vlgmr.msra.gmra.mrb[136].mxu0 %vm6847_vm4, %v12255_v9  ;;  %17128 = vmatmul.mubr.msk.bf16.vlgmr.msra.gmra.mrb[156].mxu1 %vm6847_vm4, %v12256_v61 }
 0xd11   :  { %17132 = vmatpush3.bf16.msra.mxu0 %v12273_v48  ;;  %17138 = vmatpush3.bf16.msra.mxu1 %v12274_v57 }
 0xd12   :  { %17139 = vmatprep.mubr.msk.bf16.mxu1 %vm18513_vm0, %v22419_v36  ;;  %17133 = vmatprep.mubr.msk.bf16.mxu0 %vm18513_vm0, %v22419_v36 }
 0xd13   :  { %17143 = vmatprep.subr.bf16.mxu0 %v22419_v36  ;;  %17149 = vmatprep.subr.bf16.mxu1 %v22419_v36 }
 0xd25   :  { %v12202_v11 = vpop.xlane.xlu1 %12201 }
 0xd26   :  { %18144 = vrcp.f32 %v12202_v11 }
 0xd29   :  { %v12199_v58 = vpop.xlane.xlu0 %12198  ;;  %v8500_v17 = vpop.permute.xlu1 %8499 }
 0xd2a   :  { %18146 = vrcp.f32 %v12199_v58 }
 0xd2d   :  { %v8516_v33 = vpop.permute.xlu1 %8515 }
 0xd2e   :  { %v8843_v26 = vcombine.low %v8500_v17, %v8516_v33  ;;  %v8844_v39 = vcombine.high %v8500_v17, %v8516_v33 }
 0xd30   :  { %v18145_v16 = vpop.eup %18144  ;;  %v8851_v47 = vrot.slane %v8843_v26, %v18883_v43  ;;  %v8858_v19 = vrot.slane %v8844_v39, %v18883_v43 }
 0xd31   :  { %v12242_v29 = vmul.f32 %v18145_v16, %v21362_v35 }
 0xd32   :  { %v8891_v50 = vcombine.low %v8835_v4, %v8851_v47  ;;  %v8892_v32 = vcombine.high %v8835_v4, %v8851_v47  ;;  %v8907_v1 = vcombine.low %v8842_v14, %v8858_v19  ;;  %v8908_v0 = vcombine.high %v8842_v14, %v8858_v19 }
 0xd33   :  { %v14179_v45 = vcombine.low %v21596_v62, %v12242_v29  ;;  %v14180_v8 = vcombine.high %v21596_v62, %v12242_v29  ;;  %v12258_v20 = vpack.c.bf16 %v12242_v29, %v12242_v29 }
 0xd34   :  { %v18147_v7 = vpop.eup %18146  ;;  %v8899_v21 = vrot.slane %v8891_v50, %v18888_v52  ;;  %v8906_v6 = vrot.slane %v8892_v32, %v18888_v52  ;;  %v8915_v34 = vrot.slane %v8907_v1, %v18888_v52  ;;  %v8922_v18 = vrot.slane %v8908_v0, %v18888_v52 }
 0xd35   :  { %v12241_v35 = vmul.f32 %v18147_v7, %v21366_v37  ;;  %17140 = vmatmul.mubr.msk.bf16.vlgmr.msra.gmra.mrb[160].mxu1 %vm6847_vm4, %v12258_v20  ;;  %v14187_v17 = vrot.slane %v14179_v45, %v18883_v43  ;;  %v14194_v33 = vrot.slane %v14180_v8, %v18883_v43 }
 0xd36   :  { %v16384_v54 = vcombine.low %v8899_v21, %v8906_v6  ;;  %v16386_v55 = vcombine.high %v8899_v21, %v8906_v6  ;;  %v16388_v25 = vcombine.low %v8915_v34, %v8922_v18  ;;  %v16390_v5 = vcombine.high %v8915_v34, %v8922_v18  ;;  %17151 = vmatprep.mubr.msk.bf16.mxu1 %vm18513_vm0, %v22419_v36 }
 0xd37   :  { %v14163_v62 = vcombine.low %v21593_v22, %v12241_v35  ;;  %v14164_v56 = vcombine.high %v21593_v22, %v12241_v35  ;;  %v12257_v48 = vpack.c.bf16 %v12241_v35, %v12241_v35 }
 0xd38   :  { %v11014_v57 = vrot.slane %v16384_v54, %v18883_v43  ;;  %v11030_v9 = vrot.slane %v16386_v55, %v18883_v43  ;;  %v11046_v37 = vrot.slane %v16388_v25, %v18883_v43  ;;  %v11062_v61 = vrot.slane %v16390_v5, %v18883_v43 }
 0xd39   :  { %17134 = vmatmul.mubr.msk.bf16.vlgmr.msra.gmra.mrb[140].mxu0 %vm6847_vm4, %v12257_v48  ;;  %v14171_v11 = vrot.slane %v14163_v62, %v18883_v43  ;;  %v14178_v58 = vrot.slane %v14164_v56, %v18883_v43 }
 0xd3a   :  { %v11079_v22 = vcombine.low %v11014_v57, %v11030_v9  ;;  %v11111_v26 = vcombine.low %v11046_v37, %v11062_v61  ;;  %17145 = vmatprep.mubr.msk.bf16.mxu0 %vm18513_vm0, %v22419_v36  ;;  %v11080_v39 = vcombine.high %v11014_v57, %v11030_v9  ;;  %v11112_v16 = vcombine.high %v11046_v37, %v11062_v61 }
 0xd3b   :  { %v14227_v42 = vcombine.low %v14171_v11, %v14187_v17  ;;  %v14228_v4 = vcombine.high %v14171_v11, %v14187_v17  ;;  %v14243_v49 = vcombine.low %v14178_v58, %v14194_v33  ;;  %v14244_v1 = vcombine.high %v14178_v58, %v14194_v33 }
 0xd3c   :  { %v21659_v14 = vrot.slane %v11079_v22, %v18888_v52  ;;  %v21662_v47 = vrot.slane %v11111_v26, %v18888_v52  ;;  %v21665_v19 = vrot.slane %v11080_v39, %v18888_v52  ;;  %v21668_v29 = vrot.slane %v11112_v16, %v18888_v52  ;;  %v12205_v26 = vpop.xlane.xlu0 %12204  ;;  %v8518_v16 = vpop.permute.xlu1 %8517 }
 0xd3d   :  { %v14235_v50 = vrot.slane %v14227_v42, %v18888_v52  ;;  %v14242_v32 = vrot.slane %v14228_v4, %v18888_v52  ;;  %v14251_v0 = vrot.slane %v14243_v49, %v18888_v52  ;;  %v14258_v21 = vrot.slane %v14244_v1, %v18888_v52 }
 0xd3e   :  { %v11131_v45 = vcombine.low %v21659_v14, %v21662_v47  ;;  %v11132_v8 = vcombine.high %v21659_v14, %v21662_v47  ;;  %v11133_v20 = vcombine.low %v21665_v19, %v21668_v29  ;;  %v11134_v7 = vcombine.high %v21665_v19, %v21668_v29 }
 0xd3f   :  { %v16519_v6 = vcombine.low %v14235_v50, %v14242_v32  ;;  %v16521_v34 = vcombine.high %v14235_v50, %v14242_v32  ;;  %v16523_v54 = vcombine.low %v14251_v0, %v14258_v21  ;;  %v16525_v55 = vcombine.high %v14251_v0, %v14258_v21 }
 0xd40   :  { %v22483_v32 = vcombine.low %v22476_v2, %v22475_v40  ;;  %v22484_v0 = vcombine.high %v22476_v2, %v22475_v40 }
 0xd41   :  { %v14443_v18 = vrot.slane %v16519_v6, %v18883_v43  ;;  %v14459_v35 = vrot.slane %v16521_v34, %v18883_v43  ;;  %v14475_v25 = vrot.slane %v16523_v54, %v18883_v43  ;;  %v14491_v5 = vrot.slane %v16525_v55, %v18883_v43 }
 0xd42   :  { %v8971_v1 = vrot.slane %v22483_v32, %v18883_v43  ;;  %v8978_v21 = vrot.slane %v22484_v0, %v18883_v43 }
 0xd43   :  { %v14499_v62 = vcombine.low %v14443_v18, %v14459_v35  ;;  %v14500_v56 = vcombine.high %v14443_v18, %v14459_v35  ;;  %v14531_v57 = vcombine.low %v14475_v25, %v14491_v5  ;;  %v14532_v37 = vcombine.high %v14475_v25, %v14491_v5 }
 0xd45   :  { %v21687_v48 = vrot.slane %v14499_v62, %v18888_v52  ;;  %v21690_v9 = vrot.slane %v14500_v56, %v18888_v52  ;;  %v21693_v61 = vrot.slane %v14531_v57, %v18888_v52  ;;  %v21696_v11 = vrot.slane %v14532_v37, %v18888_v52 }
 0xd47   :  { %v14564_v58 = vcombine.high %v21687_v48, %v21693_v61  ;;  %v14563_v17 = vcombine.low %v21687_v48, %v21693_v61  ;;  %v14565_v33 = vcombine.low %v21690_v9, %v21696_v11  ;;  %v17870_v61 = vld [vmem:[#allocation17 + $0x184] ss:$16 sps:$4 sm:$0xff]  }
 0xd5d   :  { %v12208_v39 = vpop.xlane.xlu0 %12207 }
 0xd5e   :  { %18148 = vrcp.f32 %v12208_v39 }
 0xd61   :  { %v8502_v42 = vpop.permute.xlu0 %8501 }
 0xd62   :  { %v8979_v4 = vcombine.low %v8502_v42, %v8518_v16  ;;  %v8980_v49 = vcombine.high %v8502_v42, %v8518_v16  ;;  %v12214_v50 = vpop.xlane.xlu1 %12213 }
 0xd63   :  { %18150 = vrcp.f32 %v12214_v50 }
 0xd64   :  { %v8987_v6 = vrot.slane %v8979_v4, %v18883_v43  ;;  %v8994_v34 = vrot.slane %v8980_v49, %v18883_v43  ;;  %18152 = vrcp.f32 %v12205_v26 }
 0xd66   :  { %v9027_v18 = vcombine.low %v8971_v1, %v8987_v6  ;;  %v9028_v35 = vcombine.high %v8971_v1, %v8987_v6  ;;  %v9043_v54 = vcombine.low %v8978_v21, %v8994_v34  ;;  %v9044_v55 = vcombine.high %v8978_v21, %v8994_v34 }
 0xd68   :  { %v9035_v25 = vrot.slane %v9027_v18, %v18888_v52  ;;  %v9042_v5 = vrot.slane %v9028_v35, %v18888_v52  ;;  %v9051_v62 = vrot.slane %v9043_v54, %v18888_v52  ;;  %v9058_v56 = vrot.slane %v9044_v55, %v18888_v52  ;;  %v18149_v57 = vpop.eup %18148 }
 0xd69   :  { %v12244_v50 = vmul.f32 %v18149_v57, %v21392_v63 }
 0xd6a   :  { %v16392_v40 = vcombine.low %v9035_v25, %v9042_v5  ;;  %v16394_v2 = vcombine.high %v9035_v25, %v9042_v5  ;;  %v16396_v37 = vcombine.low %v9051_v62, %v9058_v56  ;;  %v16398_v39 = vcombine.high %v9051_v62, %v9058_v56 }
 0xd6c   :  { %v11150_v16 = vrot.slane %v16392_v40, %v18883_v43  ;;  %v11166_v26 = vrot.slane %v16394_v2, %v18883_v43  ;;  %v11182_v42 = vrot.slane %v16396_v37, %v18883_v43  ;;  %v11198_v4 = vrot.slane %v16398_v39, %v18883_v43 }
 0xd6d   :  { %v18151_v49 = vpop.eup %18150 }
 0xd6e   :  { %v12246_v32 = vmul.f32 %v18151_v49, %v21397_v31  ;;  %v11215_v1 = vcombine.low %v11150_v16, %v11166_v26  ;;  %v11247_v0 = vcombine.low %v11182_v42, %v11198_v4  ;;  %v11216_v21 = vcombine.high %v11150_v16, %v11166_v26  ;;  %v18153_v6 = vpop.eup %18152 }
 0xd6f   :  { %v11248_v34 = vcombine.high %v11182_v42, %v11198_v4  ;;  %v12243_v63 = vmul.f32 %v18153_v6, %v21370_v41  ;;  %v12260_v16 = vpack.c.bf16 %v12244_v50, %v12244_v50 }
 0xd70   :  { %v14211_v18 = vcombine.low %v12244_v50, %v12246_v32  ;;  %v14212_v35 = vcombine.high %v12244_v50, %v12246_v32  ;;  %v11223_v54 = vrot.slane %v11215_v1, %v18888_v52  ;;  %v11255_v55 = vrot.slane %v11247_v0, %v18888_v52 }
 0xd71   :  { %v11230_v25 = vrot.slane %v11216_v21, %v18888_v52  ;;  %v11262_v5 = vrot.slane %v11248_v34, %v18888_v52  ;;  %v12259_v41 = vpack.c.bf16 %v12243_v63, %v12243_v63  ;;  %v12262_v14 = vpack.c.bf16 %v12246_v32, %v12246_v32 }
 0xd72   :  { %v11267_v62 = vcombine.low %v11223_v54, %v11255_v55  ;;  %v11268_v56 = vcombine.high %v11223_v54, %v11255_v55  ;;  %v14219_v49 = vrot.slane %v14211_v18, %v18883_v43  ;;  %v14226_v50 = vrot.slane %v14212_v35, %v18883_v43 }
 0xd73   :  { %v11269_v31 = vcombine.low %v11230_v25, %v11262_v5  ;;  %v11270_v57 = vcombine.high %v11230_v25, %v11262_v5 }
 0xd74   :  { %v12275_v40 = vpack.c.bf16 %v11267_v62, %v11131_v45  ;;  %v12276_v2 = vpack.c.bf16 %v11268_v56, %v11132_v8 }
 0xd75   :  { %v12277_v37 = vpack.c.bf16 %v11269_v31, %v11133_v20  ;;  %v12278_v39 = vpack.c.bf16 %v11270_v57, %v11134_v7 }
 0xd76   :  { %17144 = vmatpush3.bf16.msra.mxu0 %v12275_v40  ;;  %17150 = vmatpush3.bf16.msra.mxu1 %v12276_v2 }
 0xd77   :  { %17155 = vmatprep.subr.bf16.mxu0 %v22419_v36  ;;  %17161 = vmatprep.subr.bf16.mxu1 %v22419_v36 }
 0xd79   :  { %17146 = vmatmul.mubr.msk.bf16.vlgmr.msra.gmra.mrb[144].mxu0 %vm6847_vm4, %v12259_v41  ;;  %17152 = vmatmul.mubr.msk.bf16.vlgmr.msra.gmra.mrb[164].mxu1 %vm6847_vm4, %v12260_v16 }
 0xd7a   :  { %17156 = vmatpush3.bf16.msra.mxu0 %v12277_v37  ;;  %17162 = vmatpush3.bf16.msra.mxu1 %v12278_v39 }
 0xd7b   :  { %17163 = vmatprep.mubr.msk.bf16.mxu1 %vm18513_vm0, %v22419_v36  ;;  %17157 = vmatprep.mubr.msk.bf16.mxu0 %vm18513_vm0, %v22419_v36 }
 0xd81   :  { %17164 = vmatmul.mubr.msk.bf16.vlgmr.msra.gmra.mrb[168].mxu1 %vm6847_vm4, %v12262_v14 }
 0xd92   :  { %v12211_v47 = vpop.xlane.xlu0 %12210 }
 0xd93   :  { %18154 = vrcp.f32 %v12211_v47 }
 0xd96   :  { %v12359_v19 = vpop.f32.mrb[140].mxu1 }
 0xd97   :  { %v17081_v29 = vpop.f32.mrb[141].mxu1 }
 0xd98   :  { %v12362_v45 = vpop.f32.mrb[142].mxu1 }
 0xd99   :  { %v17082_v20 = vpop.f32.mrb[143].mxu1 }
 0xd9d   :  { %v18155_v8 = vpop.eup %18154 }
 0xd9e   :  { %v12245_v7 = vmul.f32 %v18155_v8, %v21554_v13 }
 0xda0   :  { %v14195_v26 = vcombine.low %v12243_v63, %v12245_v7  ;;  %v14196_v42 = vcombine.high %v12243_v63, %v12245_v7  ;;  %v12261_v4 = vpack.c.bf16 %v12245_v7, %v12245_v7 }
 0xda2   :  { %v14203_v36 = vrot.slane %v14195_v26, %v18883_v43  ;;  %v14210_v32 = vrot.slane %v14196_v42, %v18883_v43  ;;  %17158 = vmatmul.mubr.msk.bf16.vlgmr.msra.gmra.mrb[148].mxu0 %vm6847_vm4, %v12261_v4  ;;  %v12445_v34 = vpop.f32.mrb[144].mxu1 }
 0xda3   :  { %v12983_v54 = vcombine.low %v12359_v19, %v12445_v34  ;;  %v12984_v13 = vcombine.high %v12359_v19, %v12445_v34  ;;  %v17093_v55 = vpop.f32.mrb[145].mxu1 }
 0xda4   :  { %v14259_v1 = vcombine.low %v14203_v36, %v14219_v49  ;;  %v14260_v0 = vcombine.high %v14203_v36, %v14219_v49  ;;  %v14275_v21 = vcombine.low %v14210_v32, %v14226_v50  ;;  %v14276_v6 = vcombine.high %v14210_v32, %v14226_v50  ;;  %v12448_v5 = vpop.f32.mrb[146].mxu1  ;;  %v17759_v32 = vld [vmem:[#allocation16 + $0x74] ss:$8 sps:$4 sm:$0xff]  }
 0xda5   :  { %v17094_v56 = vpop.f32.mrb[147].mxu1  ;;  %v12991_v34 = vrot.slane %v12983_v54, %v18883_v43  ;;  %v12998_v55 = vrot.slane %v12984_v13, %v18883_v43  ;;  %v17771_v36 = vld [vmem:[#allocation16 + $0xb4] ss:$8 sps:$4 sm:$0xff]  }
 0xda6   :  { %v14267_v25 = vrot.slane %v14259_v1, %v18888_v52  ;;  %v14274_v18 = vrot.slane %v14260_v0, %v18888_v52  ;;  %v14283_v35 = vrot.slane %v14275_v21, %v18888_v52  ;;  %v14290_v62 = vrot.slane %v14276_v6, %v18888_v52 }
 0xda8   :  { %v16520_v63 = vcombine.low %v14267_v25, %v14274_v18  ;;  %v16522_v31 = vcombine.high %v14267_v25, %v14274_v18  ;;  %v16524_v57 = vcombine.low %v14283_v35, %v14290_v62  ;;  %v16526_v40 = vcombine.high %v14283_v35, %v14290_v62 }
 0xdaa   :  { %v14450_v2 = vrot.slane %v16520_v63, %v18883_v43  ;;  %v14466_v37 = vrot.slane %v16522_v31, %v18883_v43  ;;  %v12316_v39 = vpop.f32.mrb[120].mxu0  ;;  %v14482_v41 = vrot.slane %v16524_v57, %v18883_v43  ;;  %v14498_v16 = vrot.slane %v16526_v40, %v18883_v43 }
 0xdab   :  { %v17075_v14 = vpop.f32.mrb[121].mxu0 }
 0xdac   :  { %v14515_v47 = vcombine.low %v14450_v2, %v14466_v37  ;;  %v14516_v19 = vcombine.high %v14450_v2, %v14466_v37  ;;  %v12319_v29 = vpop.f32.mrb[122].mxu0  ;;  %v14547_v45 = vcombine.low %v14482_v41, %v14498_v16  ;;  %v14548_v8 = vcombine.high %v14482_v41, %v14498_v16 }
 0xdad   :  { %v17076_v20 = vpop.f32.mrb[123].mxu0 }
 0xdae   :  { %v21767_v7 = vrot.slane %v14515_v47, %v18888_v52  ;;  %v21770_v26 = vrot.slane %v14516_v19, %v18888_v52  ;;  %v21773_v42 = vrot.slane %v14547_v45, %v18888_v52  ;;  %v21776_v4 = vrot.slane %v14548_v8, %v18888_v52 }
 0xdb2   :  { %v12402_v1 = vpop.f32.mrb[124].mxu0 }
 0xdb3   :  { %v12967_v0 = vcombine.low %v12316_v39, %v12402_v1  ;;  %v12968_v21 = vcombine.high %v12316_v39, %v12402_v1  ;;  %v17087_v6 = vpop.f32.mrb[125].mxu0 }
 0xdb4   :  { %v12405_v25 = vpop.f32.mrb[126].mxu0 }
 0xdb5   :  { %v12975_v18 = vrot.slane %v12967_v0, %v18883_v43  ;;  %v12982_v5 = vrot.slane %v12968_v21, %v18883_v43  ;;  %v17088_v35 = vpop.f32.mrb[127].mxu0 }
 0xdb7   :  { %v12531_v62 = vpop.f32.mrb[148].mxu1  ;;  %v13031_v56 = vcombine.low %v12975_v18, %v12991_v34  ;;  %v13032_v63 = vcombine.high %v12975_v18, %v12991_v34  ;;  %v13047_v31 = vcombine.low %v12982_v5, %v12998_v55  ;;  %v13048_v57 = vcombine.high %v12982_v5, %v12998_v55 }
 0xdb8   :  { %v17105_v40 = vpop.f32.mrb[149].mxu1 }
 0xdb9   :  { %v12534_v2 = vpop.f32.mrb[150].mxu1  ;;  %v13039_v37 = vrot.slane %v13031_v56, %v18888_v52  ;;  %v13046_v39 = vrot.slane %v13032_v63, %v18888_v52  ;;  %v13055_v54 = vrot.slane %v13047_v31, %v18888_v52  ;;  %v13062_v13 = vrot.slane %v13048_v57, %v18888_v52 }
 0xdba   :  { %v17106_v41 = vpop.f32.mrb[151].mxu1  ;;  %v12488_v16 = vpop.f32.mrb[128].mxu0 }
 0xdbb   :  { %v16431_v14 = vcombine.low %v13039_v37, %v13046_v39  ;;  %v16433_v47 = vcombine.high %v13039_v37, %v13046_v39  ;;  %v16435_v19 = vcombine.low %v13055_v54, %v13062_v13  ;;  %v16437_v29 = vcombine.high %v13055_v54, %v13062_v13  ;;  %v17099_v45 = vpop.f32.mrb[129].mxu0 }
 0xdbc   :  { %v12491_v8 = vpop.f32.mrb[130].mxu0 }
 0xdbd   :  { %v13247_v20 = vrot.slane %v16431_v14, %v18883_v43  ;;  %v13263_v1 = vrot.slane %v16433_v47, %v18883_v43  ;;  %v13279_v0 = vrot.slane %v16435_v19, %v18883_v43  ;;  %v13295_v21 = vrot.slane %v16437_v29, %v18883_v43  ;;  %v17100_v6 = vpop.f32.mrb[131].mxu0 }
 0xdbf   :  { %v13304_v34 = vcombine.high %v13247_v20, %v13263_v1  ;;  %v13336_v55 = vcombine.high %v13279_v0, %v13295_v21  ;;  %v13303_v25 = vcombine.low %v13247_v20, %v13263_v1  ;;  %v13335_v18 = vcombine.low %v13279_v0, %v13295_v21 }
 0xdc1   :  { %v21799_v5 = vrot.slane %v13304_v34, %v18888_v52  ;;  %v21802_v35 = vrot.slane %v13336_v55, %v18888_v52  ;;  %v21805_v56 = vrot.slane %v13303_v25, %v18888_v52  ;;  %v21808_v63 = vrot.slane %v13335_v18, %v18888_v52 }
 0xdc3   :  { %v13370_v31 = vcombine.high %v21799_v5, %v21802_v35  ;;  %v13368_v57 = vcombine.high %v21805_v56, %v21808_v63  ;;  %v13367_v40 = vcombine.low %v21805_v56, %v21808_v63  ;;  %v13369_v2 = vcombine.low %v21799_v5, %v21802_v35  ;;  %v17787_v56 = vld [vmem:[#allocation16 + $0x110] ss:$8 sps:$4 sm:$0xff]   ;;  %v17792_v63 = vld [vmem:[#allocation16 + $0x124] ss:$8 sps:$4 sm:$0xff]   ;;  %v17795_v5 = vld [vmem:[#allocation16 + $0x134] ss:$8 sps:$4 sm:$0xff]  }
 0xdc4   :  { %v17793_v35 = vld [vmem:[#allocation16 + $0x130] ss:$8 sps:$4 sm:$0xff]  }
 0xdc5   :  { %v12617_v39 = vpop.f32.mrb[152].mxu1 }
 0xdc6   :  { %v13015_v14 = vcombine.low %v12531_v62, %v12617_v39  ;;  %v13016_v47 = vcombine.high %v12531_v62, %v12617_v39  ;;  %v17117_v19 = vpop.f32.mrb[153].mxu1 }
 0xdc7   :  { %v12620_v45 = vpop.f32.mrb[154].mxu1 }
 0xdc8   :  { %v12574_v37 = vpop.f32.mrb[132].mxu0  ;;  %v13023_v0 = vrot.slane %v13015_v14, %v18883_v43  ;;  %v13030_v21 = vrot.slane %v13016_v47, %v18883_v43  ;;  %v17118_v6 = vpop.f32.mrb[155].mxu1 }
 0xdc9   :  { %v12999_v54 = vcombine.low %v12488_v16, %v12574_v37  ;;  %v13000_v13 = vcombine.high %v12488_v16, %v12574_v37  ;;  %v17111_v41 = vpop.f32.mrb[133].mxu0  ;;  %v17738_v6 = vld [vmem:[#allocation16 + $0x4] ss:$8 sps:$4 sm:$0xff]  }
 0xdca   :  { %v12577_v29 = vpop.f32.mrb[134].mxu0  ;;  %13875 = vmatprep.subr.bf16.mxu0 %v17738_v6 }
 0xdcb   :  { %v13007_v8 = vrot.slane %v12999_v54, %v18883_v43  ;;  %v13014_v20 = vrot.slane %v13000_v13, %v18883_v43  ;;  %v17112_v1 = vpop.f32.mrb[135].mxu0 }
 0xdcd   :  { %v13063_v34 = vcombine.low %v13007_v8, %v13023_v0  ;;  %v13064_v55 = vcombine.high %v13007_v8, %v13023_v0  ;;  %v13079_v25 = vcombine.low %v13014_v20, %v13030_v21  ;;  %v13080_v16 = vcombine.high %v13014_v20, %v13030_v21  ;;  %v17736_v21 = vld [vmem:[#allocation16] ss:$8 sps:$4 sm:$0xff]  }
 0xdce   :  { %13876 = vmatpush1.bf16.msra.mxu0 %v17736_v21 }
 0xdcf   :  { %v13071_v18 = vrot.slane %v13063_v34, %v18888_v52  ;;  %v13078_v62 = vrot.slane %v13064_v55, %v18888_v52  ;;  %v13087_v37 = vrot.slane %v13079_v25, %v18888_v52  ;;  %v13094_v39 = vrot.slane %v13080_v16, %v18888_v52  ;;  %v17741_v34 = vld [vmem:[#allocation16 + $0x14] ss:$8 sps:$4 sm:$0xff]  }
 0xdd0   :  { %13877 = vmatprep.subr.bf16.mxu0 %v17741_v34  ;;  %v17753_v34 = vld [vmem:[#allocation16 + $0x54] ss:$8 sps:$4 sm:$0xff]  }
 0xdd1   :  { %v16432_v54 = vcombine.low %v13071_v18, %v13078_v62  ;;  %v16434_v13 = vcombine.high %v13071_v18, %v13078_v62  ;;  %v16436_v41 = vcombine.low %v13087_v37, %v13094_v39  ;;  %v16438_v19 = vcombine.high %v13087_v37, %v13094_v39  ;;  %v17739_v62 = vld [vmem:[#allocation16 + $0x10] ss:$8 sps:$4 sm:$0xff]  }
 0xdd2   :  { %13878 = vmatpush1.bf16.msra.mxu0 %v17739_v62  ;;  %v17751_v62 = vld [vmem:[#allocation16 + $0x50] ss:$8 sps:$4 sm:$0xff]  }
 0xdd3   :  { %v13254_v14 = vrot.slane %v16432_v54, %v18883_v43  ;;  %v13270_v47 = vrot.slane %v16434_v13, %v18883_v43  ;;  %v13286_v29 = vrot.slane %v16436_v41, %v18883_v43  ;;  %v13302_v45 = vrot.slane %v16438_v19, %v18883_v43  ;;  %v17744_v41 = vld [vmem:[#allocation16 + $0x24] ss:$8 sps:$4 sm:$0xff]   ;;  %v17742_v19 = vld [vmem:[#allocation16 + $0x20] ss:$8 sps:$4 sm:$0xff]  }
 0xdd4   :  { %13879 = vmatprep.subr.bf16.mxu0 %v17744_v41  ;;  %v17756_v41 = vld [vmem:[#allocation16 + $0x64] ss:$8 sps:$4 sm:$0xff]  }
 0xdd5   :  { %v13320_v8 = vcombine.high %v13254_v14, %v13270_v47  ;;  %v13352_v20 = vcombine.high %v13286_v29, %v13302_v45  ;;  %v13319_v1 = vcombine.low %v13254_v14, %v13270_v47  ;;  %v13351_v0 = vcombine.low %v13286_v29, %v13302_v45  ;;  %v17747_v14 = vld [vmem:[#allocation16 + $0x34] ss:$8 sps:$4 sm:$0xff]   ;;  %v17745_v47 = vld [vmem:[#allocation16 + $0x30] ss:$8 sps:$4 sm:$0xff]  }
 0xdd6   :  { %13880 = vmatpush1.bf16.msra.mxu0 %v17742_v19  ;;  %v17754_v19 = vld [vmem:[#allocation16 + $0x60] ss:$8 sps:$4 sm:$0xff]  }
 0xdd7   :  { %v21831_v55 = vrot.slane %v13320_v8, %v18888_v52  ;;  %v21834_v25 = vrot.slane %v13352_v20, %v18888_v52  ;;  %v21837_v16 = vrot.slane %v13319_v1, %v18888_v52  ;;  %v21840_v18 = vrot.slane %v13351_v0, %v18888_v52  ;;  %13881 = vmatprep.subr.bf16.mxu0 %v17747_v14  ;;  %v17750_v8 = vld [vmem:[#allocation16 + $0x44] ss:$8 sps:$4 sm:$0xff]   ;;  %v17757_v14 = vld [vmem:[#allocation16 + $0x70] ss:$8 sps:$4 sm:$0xff]  }
 0xdd9   :  { %v13374_v37 = vcombine.high %v21831_v55, %v21834_v25  ;;  %v13372_v39 = vcombine.high %v21837_v16, %v21840_v18  ;;  %v13371_v54 = vcombine.low %v21837_v16, %v21840_v18  ;;  %v13373_v13 = vcombine.low %v21831_v55, %v21834_v25  ;;  %v22486_v18 = vld [vmem:[#allocation52_spill] sm:$0xff] }
 0xdda   :  { %13882 = vmatpush1.bf16.msra.mxu0 %v17745_v47  ;;  %v17763_v47 = vld [vmem:[#allocation16 + $0x90] ss:$8 sps:$4 sm:$0xff]  }
 0xddb   :  { %13883 = vmatprep.subr.bf16.mxu0 %v17750_v8 }
 0xdde   :  { %13884 = vmatpush1.bf16.msra.mxu0 %v17748_v59  ;;  %v17768_v59 = vld [vmem:[#allocation16 + $0xa4] ss:$8 sps:$4 sm:$0xff]  }
 0xddf   :  { %13885 = vmatprep.subr.bf16.mxu0 %v17753_v34 }
 0xde2   :  { %13886 = vmatpush1.bf16.msra.mxu0 %v17751_v62 }
 0xde3   :  { %v12660_v29 = vpop.f32.mrb[136].mxu0  ;;  %v12703_v45 = vpop.f32.mrb[156].mxu1  ;;  %13887 = vmatprep.subr.bf16.mxu0 %v17756_v41  ;;  %v17766_v41 = vld [vmem:[#allocation16 + $0xa0] ss:$8 sps:$4 sm:$0xff]  }
 0xde4   :  { %v17123_v20 = vpop.f32.mrb[137].mxu0  ;;  %v17129_v1 = vpop.f32.mrb[157].mxu1 }
 0xde5   :  { %v12663_v0 = vpop.f32.mrb[138].mxu0  ;;  %v12706_v21 = vpop.f32.mrb[158].mxu1  ;;  %v17762_v20 = vld [vmem:[#allocation16 + $0x84] ss:$8 sps:$4 sm:$0xff]   ;;  %v17760_v1 = vld [vmem:[#allocation16 + $0x80] ss:$8 sps:$4 sm:$0xff]  }
 0xde6   :  { %v17124_v6 = vpop.f32.mrb[139].mxu0  ;;  %v17130_v12 = vpop.f32.mrb[159].mxu1  ;;  %13888 = vmatpush1.bf16.msra.mxu0 %v17754_v19 }
 0xde7   :  { %13889 = vmatprep.subr.bf16.mxu0 %v17759_v32  ;;  %v17765_v12 = vld [vmem:[#allocation16 + $0x94] ss:$8 sps:$4 sm:$0xff]  }
 0xdea   :  { %13890 = vmatpush1.bf16.msra.mxu0 %v17757_v14 }
 0xdeb   :  { %13891 = vmatprep.subr.bf16.mxu0 %v17762_v20 }
 0xdee   :  { %13892 = vmatpush1.bf16.msra.mxu0 %v17760_v1 }
 0xdef   :  { %13893 = vmatprep.subr.bf16.mxu0 %v17765_v12 }
 0xdf2   :  { %13894 = vmatpush1.bf16.msra.mxu0 %v17763_v47  ;;  %v17774_v47 = vld [vmem:[#allocation16 + $0xc4] ss:$8 sps:$4 sm:$0xff]  }
 0xdf3   :  { %13895 = vmatprep.subr.bf16.mxu0 %v17768_v59 }
 0xdf6   :  { %13896 = vmatpush1.bf16.msra.mxu0 %v17766_v41 }
 0xdf7   :  { %13897 = vmatprep.subr.bf16.mxu0 %v17771_v36 }
 0xe08   :  { %v12789_v8 = vpop.f32.mrb[160].mxu1 }
 0xe09   :  { %v13119_v0 = vcombine.low %v12703_v45, %v12789_v8  ;;  %v13120_v21 = vcombine.high %v12703_v45, %v12789_v8  ;;  %v17141_v6 = vpop.f32.mrb[161].mxu1 }
 0xe0a   :  { %v12792_v34 = vpop.f32.mrb[162].mxu1  ;;  %v17769_v6 = vld [vmem:[#allocation16 + $0xb0] ss:$8 sps:$4 sm:$0xff]  }
 0xe0b   :  { %v17142_v62 = vpop.f32.mrb[163].mxu1  ;;  %v13127_v1 = vrot.slane %v13119_v0, %v18883_v43  ;;  %v13134_v50 = vrot.slane %v13120_v21, %v18883_v43  ;;  %13898 = vmatpush1.bf16.msra.mxu0 %v17769_v6 }
 0xe0c   :  { %v12746_v19 = vpop.f32.mrb[140].mxu0  ;;  %13899 = vmatprep.subr.bf16.mxu0 %v17774_v47 }
 0xe0d   :  { %v13103_v32 = vcombine.low %v12660_v29, %v12746_v19  ;;  %v13104_v14 = vcombine.high %v12660_v29, %v12746_v19  ;;  %v17135_v38 = vpop.f32.mrb[141].mxu0  ;;  %v17772_v19 = vld [vmem:[#allocation16 + $0xc0] ss:$8 sps:$4 sm:$0xff]  }
 0xe0e   :  { %v12749_v20 = vpop.f32.mrb[142].mxu0 }
 0xe0f   :  { %v13111_v12 = vrot.slane %v13103_v32, %v18883_v43  ;;  %v13118_v45 = vrot.slane %v13104_v14, %v18883_v43  ;;  %v17136_v8 = vpop.f32.mrb[143].mxu0  ;;  %v17777_v32 = vld [vmem:[#allocation16 + $0xd4] ss:$8 sps:$4 sm:$0xff]   ;;  %13900 = vmatpush1.bf16.msra.mxu0 %v17772_v19 }
 0xe10   :  { %v17775_v8 = vld [vmem:[#allocation16 + $0xd0] ss:$8 sps:$4 sm:$0xff]   ;;  %13901 = vmatprep.subr.bf16.mxu0 %v17777_v32  ;;  %v17783_v19 = vld [vmem:[#allocation16 + $0xf4] ss:$8 sps:$4 sm:$0xff]  }
 0xe11   :  { %v13167_v34 = vcombine.low %v13111_v12, %v13127_v1  ;;  %v13168_v59 = vcombine.high %v13111_v12, %v13127_v1  ;;  %v13183_v62 = vcombine.low %v13118_v45, %v13134_v50  ;;  %v13184_v44 = vcombine.high %v13118_v45, %v13134_v50 }
 0xe13   :  { %v13175_v38 = vrot.slane %v13167_v34, %v18888_v52  ;;  %v13182_v29 = vrot.slane %v13168_v59, %v18888_v52  ;;  %v13191_v0 = vrot.slane %v13183_v62, %v18888_v52  ;;  %v13198_v21 = vrot.slane %v13184_v44, %v18888_v52  ;;  %v17780_v44 = vld [vmem:[#allocation16 + $0xe4] ss:$8 sps:$4 sm:$0xff]   ;;  %13902 = vmatpush1.bf16.msra.mxu0 %v17775_v8 }
 0xe14   :  { %13903 = vmatprep.subr.bf16.mxu0 %v17780_v44 }
 0xe15   :  { %v16439_v41 = vcombine.low %v13175_v38, %v13182_v29  ;;  %v16441_v14 = vcombine.high %v13175_v38, %v13182_v29  ;;  %v16443_v36 = vcombine.low %v13191_v0, %v13198_v21  ;;  %v16445_v20 = vcombine.high %v13191_v0, %v13198_v21  ;;  %v17778_v21 = vld [vmem:[#allocation16 + $0xe0] ss:$8 sps:$4 sm:$0xff]  }
 0xe17   :  { %v13383_v1 = vrot.slane %v16439_v41, %v18883_v43  ;;  %v13399_v50 = vrot.slane %v16441_v14, %v18883_v43  ;;  %v13415_v12 = vrot.slane %v16443_v36, %v18883_v43  ;;  %v13431_v45 = vrot.slane %v16445_v20, %v18883_v43  ;;  %13904 = vmatpush1.bf16.msra.mxu0 %v17778_v21 }
 0xe18   :  { %13905 = vmatprep.subr.bf16.mxu0 %v17783_v19 }
 0xe19   :  { %v13440_v6 = vcombine.high %v13383_v1, %v13399_v50  ;;  %v13472_v34 = vcombine.high %v13415_v12, %v13431_v45  ;;  %v13439_v47 = vcombine.low %v13383_v1, %v13399_v50  ;;  %v13471_v59 = vcombine.low %v13415_v12, %v13431_v45  ;;  %v17781_v50 = vld [vmem:[#allocation16 + $0xf0] ss:$8 sps:$4 sm:$0xff]   ;;  %v17786_v12 = vld [vmem:[#allocation16 + $0x104] ss:$8 sps:$4 sm:$0xff]  }
 0xe1b   :  { %v21863_v62 = vrot.slane %v13440_v6, %v18888_v52  ;;  %v21866_v38 = vrot.slane %v13472_v34, %v18888_v52  ;;  %v21869_v29 = vrot.slane %v13439_v47, %v18888_v52  ;;  %v21872_v0 = vrot.slane %v13471_v59, %v18888_v52  ;;  %13906 = vmatpush1.bf16.msra.mxu0 %v17781_v50 }
 0xe1c   :  { %13918 = vmatprep.subr.bf16.mxu0 %v17786_v12 }
 0xe1d   :  { %v13506_v32 = vcombine.high %v21863_v62, %v21866_v38  ;;  %v13504_v41 = vcombine.high %v21869_v29, %v21872_v0  ;;  %v13503_v14 = vcombine.low %v21869_v29, %v21872_v0  ;;  %v13505_v36 = vcombine.low %v21863_v62, %v21866_v38  ;;  %v17784_v29 = vld [vmem:[#allocation16 + $0x100] ss:$8 sps:$4 sm:$0xff]   ;;  %v17789_v0 = vld [vmem:[#allocation16 + $0x114] ss:$8 sps:$4 sm:$0xff]  }
 0xe1e   :  { %v17796_v62 = vld [vmem:[#allocation16 + $0x140] ss:$8 sps:$4 sm:$0xff]   ;;  %v17801_v38 = vld [vmem:[#allocation16 + $0x154] ss:$8 sps:$4 sm:$0xff]  }
 0xe1f   :  { %v17236_v20 = vpack.i.bf16 %v13506_v32, %v13370_v31  ;;  %v17241_v1 = vpack.i.bf16 %v13504_v41, %v13368_v57 }
 0xe21   :  { %17237 = vrot.lane.b32.xlu0 %v17236_v20, %s18511_s15  ;;  %17242 = vrot.lane.b32.xlu1 %v17241_v1, %s18511_s15 }
 0xe4c   :  { %v12832_v45 = vpop.f32.mrb[144].mxu0  ;;  %v12875_v8 = vpop.f32.mrb[164].mxu1 }
 0xe4d   :  { %v17147_v44 = vpop.f32.mrb[145].mxu0  ;;  %v17153_v6 = vpop.f32.mrb[165].mxu1 }
 0xe4e   :  { %v12835_v34 = vpop.f32.mrb[146].mxu0  ;;  %v12878_v31 = vpop.f32.mrb[166].mxu1 }
 0xe4f   :  { %v17148_v47 = vpop.f32.mrb[147].mxu0  ;;  %v17154_v59 = vpop.f32.mrb[167].mxu1 }
 0xe54   :  { %v12961_v32 = vpop.f32.mrb[168].mxu1 }
 0xe55   :  { %v13151_v57 = vcombine.low %v12875_v8, %v12961_v32  ;;  %v13152_v21 = vcombine.high %v12875_v8, %v12961_v32  ;;  %v17165_v41 = vpop.f32.mrb[169].mxu1 }
 0xe56   :  { %v12964_v19 = vpop.f32.mrb[170].mxu1 }
 0xe57   :  { %v17166_v49 = vpop.f32.mrb[171].mxu1  ;;  %v13159_v12 = vrot.slane %v13151_v57, %v18883_v43  ;;  %v13166_v44 = vrot.slane %v13152_v21, %v18883_v43 }
 0xe75   :  { %v12918_v46 = vpop.f32.mrb[148].mxu0 }
 0xe76   :  { %v13135_v20 = vcombine.low %v12832_v45, %v12918_v46  ;;  %v13136_v22 = vcombine.high %v12832_v45, %v12918_v46  ;;  %v17159_v1 = vpop.f32.mrb[149].mxu0 }
 0xe77   :  { %v12921_v50 = vpop.f32.mrb[150].mxu0 }
 0xe78   :  { %v13143_v6 = vrot.slane %v13135_v20, %v18883_v43  ;;  %v13150_v34 = vrot.slane %v13136_v22, %v18883_v43  ;;  %v17160_v31 = vpop.f32.mrb[151].mxu0 }
 0xe7a   :  { %v13199_v47 = vcombine.low %v13143_v6, %v13159_v12  ;;  %v13200_v59 = vcombine.high %v13143_v6, %v13159_v12  ;;  %v13215_v8 = vcombine.low %v13150_v34, %v13166_v44  ;;  %v13216_v32 = vcombine.high %v13150_v34, %v13166_v44 }
 0xe7c   :  { %v13207_v49 = vrot.slane %v13199_v47, %v18888_v52  ;;  %v13214_v41 = vrot.slane %v13200_v59, %v18888_v52  ;;  %v13223_v46 = vrot.slane %v13215_v8, %v18888_v52  ;;  %v13230_v45 = vrot.slane %v13216_v32, %v18888_v52 }
 0xe7e   :  { %v16440_v57 = vcombine.low %v13207_v49, %v13214_v41  ;;  %v16442_v19 = vcombine.high %v13207_v49, %v13214_v41  ;;  %v16444_v21 = vcombine.low %v13223_v46, %v13230_v45  ;;  %v16446_v1 = vcombine.high %v13223_v46, %v13230_v45 }
 0xe80   :  { %v13390_v20 = vrot.slane %v16440_v57, %v18883_v43  ;;  %v13406_v22 = vrot.slane %v16442_v19, %v18883_v43  ;;  %v13422_v50 = vrot.slane %v16444_v21, %v18883_v43  ;;  %v13438_v12 = vrot.slane %v16446_v1, %v18883_v43 }
 0xe82   :  { %v13456_v44 = vcombine.high %v13390_v20, %v13406_v22  ;;  %v13488_v6 = vcombine.high %v13422_v50, %v13438_v12  ;;  %v13455_v34 = vcombine.low %v13390_v20, %v13406_v22  ;;  %v13487_v31 = vcombine.low %v13422_v50, %v13438_v12 }
 0xe84   :  { %v21903_v47 = vrot.slane %v13456_v44, %v18888_v52  ;;  %v21906_v59 = vrot.slane %v13488_v6, %v18888_v52  ;;  %v21909_v8 = vrot.slane %v13455_v34, %v18888_v52  ;;  %v21912_v32 = vrot.slane %v13487_v31, %v18888_v52  ;;  %v17802_v34 = vld [vmem:[#allocation16 + $0x160] ss:$8 sps:$4 sm:$0xff]   ;;  %v17807_v31 = vld [vmem:[#allocation16 + $0x174] ss:$8 sps:$4 sm:$0xff]  }
 0xe86   :  { %v13510_v49 = vcombine.high %v21903_v47, %v21906_v59  ;;  %v13508_v43 = vcombine.high %v21909_v8, %v21912_v32  ;;  %v13507_v41 = vcombine.low %v21909_v8, %v21912_v32  ;;  %v13509_v46 = vcombine.low %v21903_v47, %v21906_v59  ;;  %v22485_v32 = vld [vmem:[#allocation51_spill] sm:$0xff]  ;;  %v22489_v59 = vld [vmem:[#allocation33_spill] sm:$0xff] }
 0xe88   :  { %v17246_v45 = vpack.i.bf16 %v13510_v49, %v13374_v37  ;;  %v17251_v52 = vpack.i.bf16 %v13508_v43, %v13372_v39  ;;  %v17805_v49 = vld [vmem:[#allocation16 + $0x170] ss:$8 sps:$4 sm:$0xff]   ;;  %v17810_v43 = vld [vmem:[#allocation16 + $0x184] ss:$8 sps:$4 sm:$0xff]  }
 0xe8a   :  { %17247 = vrot.lane.b32.xlu0 %v17246_v45, %s18511_s15  ;;  %17252 = vrot.lane.b32.xlu1 %v17251_v52, %s18511_s15  ;;  %v17808_v45 = vld [vmem:[#allocation16 + $0x180] ss:$8 sps:$4 sm:$0xff]   ;;  %v17813_v52 = vld [vmem:[#allocation16 + $0x194] ss:$8 sps:$4 sm:$0xff]  }
 0xe93   :  { %v17238_v57 = vpop.permute.xlu0 %17237  ;;  %v17243_v19 = vpop.permute.xlu1 %17242 }
 0xe94   :  { %v17240_v21 = vunpack.i.h.bf16 %v17238_v57  ;;  %v17239_v1 = vunpack.i.l.bf16 %v17238_v57  ;;  %v17245_v20 = vunpack.i.h.bf16 %v17243_v19  ;;  %v17244_v22 = vunpack.i.l.bf16 %v17243_v19  ;;  %v17811_v57 = vld [vmem:[#allocation16 + $0x190] ss:$8 sps:$4 sm:$0xff]   ;;  %v17816_v19 = vld [vmem:[#allocation16 + $0x1a4] ss:$8 sps:$4 sm:$0xff]  }
 0xe96   :  { %v13544_v50 = vsel %vm3469_vm1, %v13503_v14, %v17245_v20  ;;  %v13543_v37 = vsel %vm3469_vm1, %v13367_v40, %v17244_v22  ;;  %v13545_v39 = vsel %vm3469_vm1, %v13369_v2, %v17239_v1  ;;  %v13546_v12 = vsel %vm3469_vm1, %v13505_v36, %v17240_v21  ;;  %v17790_v40 = vld [vmem:[#allocation16 + $0x120] ss:$8 sps:$4 sm:$0xff]   ;;  %v17798_v2 = vld [vmem:[#allocation16 + $0x144] ss:$8 sps:$4 sm:$0xff]   ;;  %v17799_v14 = vld [vmem:[#allocation16 + $0x150] ss:$8 sps:$4 sm:$0xff]  }
 0xe97   :  { %v13551_v44 = vpack.c.bf16 %v13544_v50, %v13543_v37  ;;  %v13552_v6 = vpack.c.bf16 %v13546_v12, %v13545_v39  ;;  %v17804_v36 = vld [vmem:[#allocation16 + $0x164] ss:$8 sps:$4 sm:$0xff]   ;;  %v17814_v21 = vld [vmem:[#allocation16 + $0x1a0] ss:$8 sps:$4 sm:$0xff]   ;;  %v17819_v1 = vld [vmem:[#allocation16 + $0x1b4] ss:$8 sps:$4 sm:$0xff]  }
 0xe98   :  { %v17817_v20 = vld [vmem:[#allocation16 + $0x1b0] ss:$8 sps:$4 sm:$0xff]   ;;  %v17822_v22 = vld [vmem:[#allocation16 + $0x1c4] ss:$8 sps:$4 sm:$0xff]   ;;  %v17820_v50 = vld [vmem:[#allocation16 + $0x1c0] ss:$8 sps:$4 sm:$0xff]  }
 0xe99   :  { %13907 = vmatprep.mubr.bf16.mxu0 %v13552_v6  ;;  %v17825_v37 = vld [vmem:[#allocation16 + $0x1d4] ss:$8 sps:$4 sm:$0xff]   ;;  %v17823_v39 = vld [vmem:[#allocation16 + $0x1d0] ss:$8 sps:$4 sm:$0xff]   ;;  %v17828_v12 = vld [vmem:[#allocation16 + $0x1e4] ss:$8 sps:$4 sm:$0xff]  }
 0xe9a   :  { %13908 = vmatmul.mubr.bf16.vlgmr.msra.gmra.mrb[152].mxu0 %v13551_v44  ;;  %v17826_v44 = vld [vmem:[#allocation16 + $0x1e0] ss:$8 sps:$4 sm:$0xff]   ;;  %v17831_v6 = vld [vmem:[#allocation16 + $0x1f4] ss:$8 sps:$4 sm:$0xff]  }
 0xe9b   :  { %13919 = vmatpush1.bf16.msra.mxu0 %v17784_v29  ;;  %v17829_v29 = vld [vmem:[#allocation16 + $0x1f0] ss:$8 sps:$4 sm:$0xff]  }
 0xe9c   :  { %13920 = vmatprep.subr.bf16.mxu0 %v17789_v0 }
 0xe9f   :  { %13921 = vmatpush1.bf16.msra.mxu0 %v17787_v56 }
 0xea0   :  { %13922 = vmatprep.subr.bf16.mxu0 %v17792_v63 }
 0xea3   :  { %13923 = vmatpush1.bf16.msra.mxu0 %v17790_v40 }
 0xea4   :  { %13924 = vmatprep.subr.bf16.mxu0 %v17795_v5 }
 0xea7   :  { %13925 = vmatpush1.bf16.msra.mxu0 %v17793_v35 }
 0xea8   :  { %13926 = vmatprep.subr.bf16.mxu0 %v17798_v2 }
 0xeab   :  { %13927 = vmatpush1.bf16.msra.mxu0 %v17796_v62 }
 0xeac   :  { %13928 = vmatprep.subr.bf16.mxu0 %v17801_v38 }
 0xeaf   :  { %13929 = vmatpush1.bf16.msra.mxu0 %v17799_v14 }
 0xeb0   :  { %13930 = vmatprep.subr.bf16.mxu0 %v17804_v36 }
 0xeb3   :  { %13931 = vmatpush1.bf16.msra.mxu0 %v17802_v34 }
 0xeb4   :  { %13932 = vmatprep.subr.bf16.mxu0 %v17807_v31 }
 0xeb7   :  { %13933 = vmatpush1.bf16.msra.mxu0 %v17805_v49  ;;  %v22487_v49 = vld [vmem:[#allocation53_spill] sm:$0xff] }
 0xeb8   :  { %13934 = vmatprep.subr.bf16.mxu0 %v17810_v43  ;;  %v22488_v43 = vld [vmem:[#allocation54_spill] sm:$0xff] }
 0xebb   :  { %13935 = vmatpush1.bf16.msra.mxu0 %v17808_v45 }
 0xebc   :  { %13936 = vmatprep.subr.bf16.mxu0 %v17813_v52 }
 0xebf   :  { %13937 = vmatpush1.bf16.msra.mxu0 %v17811_v57  ;;  %v22492_v57 = vld [vmem:[#allocation34_spill] sm:$0xff] }
 0xec0   :  { %13938 = vmatprep.subr.bf16.mxu0 %v17816_v19  ;;  %v22493_v19 = vld [vmem:[#allocation36_spill] sm:$0xff] }
 0xec1   :  { %v22502_v48 = vcombine.high %v22492_v57, %v22493_v19 }
 0xec3   :  { %13939 = vmatpush1.bf16.msra.mxu0 %v17814_v21  ;;  %v22494_v21 = vcombine.low %v22492_v57, %v22493_v19  ;;  %v17928_v57 = vld [vmem:[#allocation19] ss:$8 sps:$4 sm:$0xff]   ;;  %v17930_v19 = vld [vmem:[#allocation19 + $0x4] ss:$8 sps:$4 sm:$0xff]  }
 0xec4   :  { %13940 = vmatprep.subr.bf16.mxu0 %v17819_v1  ;;  %v22495_v1 = vld [vmem:[#allocation41_spill] sm:$0xff] }
 0xec7   :  { %13941 = vmatpush1.bf16.msra.mxu0 %v17817_v20  ;;  %v22496_v20 = vld [vmem:[#allocation43_spill] sm:$0xff] }
 0xec8   :  { %13942 = vmatprep.subr.bf16.mxu0 %v17822_v22  ;;  %v22497_v22 = vcombine.low %v22495_v1, %v22496_v20 }
 0xecb   :  { %13943 = vmatpush1.bf16.msra.mxu0 %v17820_v50  ;;  %v22498_v50 = vcombine.high %v22495_v1, %v22496_v20 }
 0xecc   :  { %13944 = vmatprep.subr.bf16.mxu0 %v17825_v37  ;;  %v17832_v37 = vld [vmem:[#allocation17] ss:$16 sps:$4 sm:$0xff]  }
 0xecf   :  { %13945 = vmatpush1.bf16.msra.mxu0 %v17823_v39  ;;  %v17834_v39 = vld [vmem:[#allocation17 + $0x4] ss:$16 sps:$4 sm:$0xff]  }
 0xed0   :  { %13946 = vmatprep.subr.bf16.mxu0 %v17828_v12  ;;  %v17837_v12 = vld [vmem:[#allocation17 + $0x24] ss:$16 sps:$4 sm:$0xff]   ;;  %15054 = vmatprep.subr.bf16.mxu1 %v17834_v39 }
 0xed1   :  { %15055 = vmatpush1.bf16.msra.mxu1 %v17832_v37  ;;  %v22499_v37 = vld [vmem:[#allocation42_spill] sm:$0xff]  ;;  %v22500_v39 = vld [vmem:[#allocation44_spill] sm:$0xff] }
 0xed2   :  { %15056 = vmatprep.subr.bf16.mxu1 %v17837_v12  ;;  %v22501_v12 = vcombine.high %v22499_v37, %v22500_v39 }
 0xed3   :  { %13947 = vmatpush1.bf16.msra.mxu0 %v17826_v44  ;;  %v17835_v44 = vld [vmem:[#allocation17 + $0x20] ss:$16 sps:$4 sm:$0xff]  }
 0xed4   :  { %13948 = vmatprep.subr.bf16.mxu0 %v17831_v6  ;;  %v17840_v6 = vld [vmem:[#allocation17 + $0x44] ss:$16 sps:$4 sm:$0xff]  }
 0xed5   :  { %15057 = vmatpush1.bf16.msra.mxu1 %v17835_v44  ;;  %v17862_v44 = vld [vmem:[#allocation17 + $0x140] ss:$16 sps:$4 sm:$0xff]  }
 0xed6   :  { %15058 = vmatprep.subr.bf16.mxu1 %v17840_v6  ;;  %v17864_v6 = vld [vmem:[#allocation17 + $0x144] ss:$16 sps:$4 sm:$0xff]  }
 0xed7   :  { %13949 = vmatpush1.bf16.msra.mxu0 %v17829_v29  ;;  %v17838_v29 = vld [vmem:[#allocation17 + $0x40] ss:$16 sps:$4 sm:$0xff]  }
 0xed8   :  { %15548 = vmatprep.subr.bf16.mxu0 %v17930_v19  ;;  %v17969_v19 = vld [vmem:[#allocation19 + $0xd4] ss:$8 sps:$4 sm:$0xff]  }
 0xed9   :  { %15059 = vmatpush1.bf16.msra.mxu1 %v17838_v29  ;;  %v17865_v29 = vld [vmem:[#allocation17 + $0x160] ss:$16 sps:$4 sm:$0xff]  }
 0xefc   :  { %v17248_v0 = vpop.permute.xlu0 %17247  ;;  %v17253_v56 = vpop.permute.xlu1 %17252 }
 0xefd   :  { %v17250_v63 = vunpack.i.h.bf16 %v17248_v0  ;;  %v17249_v40 = vunpack.i.l.bf16 %v17248_v0  ;;  %v17255_v5 = vunpack.i.h.bf16 %v17253_v56  ;;  %v17254_v35 = vunpack.i.l.bf16 %v17253_v56  ;;  %v17843_v0 = vld [vmem:[#allocation17 + $0x64] ss:$16 sps:$4 sm:$0xff]  }
 0xefe   :  { %15060 = vmatprep.subr.bf16.mxu1 %v17843_v0  ;;  %v17846_v56 = vld [vmem:[#allocation17 + $0x84] ss:$16 sps:$4 sm:$0xff]  }
 0xeff   :  { %v13548_v2 = vsel %vm3469_vm1, %v13507_v41, %v17255_v5  ;;  %v13547_v62 = vsel %vm3469_vm1, %v13371_v54, %v17254_v35  ;;  %v13549_v38 = vsel %vm3469_vm1, %v13373_v13, %v17249_v40  ;;  %v13550_v14 = vsel %vm3469_vm1, %v13509_v46, %v17250_v63  ;;  %v22490_v46 = vld [vmem:[#allocation35_spill] sm:$0xff]  ;;  %v17844_v63 = vld [vmem:[#allocation17 + $0x80] ss:$16 sps:$4 sm:$0xff]   ;;  %v17849_v40 = vld [vmem:[#allocation17 + $0xa4] ss:$16 sps:$4 sm:$0xff]  }
 0xf00   :  { %v13553_v36 = vpack.c.bf16 %v13548_v2, %v13547_v62  ;;  %v13554_v34 = vpack.c.bf16 %v13550_v14, %v13549_v38  ;;  %v22491_v52 = vcombine.high %v22489_v59, %v22490_v46  ;;  %v17847_v5 = vld [vmem:[#allocation17 + $0xa0] ss:$16 sps:$4 sm:$0xff]   ;;  %v17852_v35 = vld [vmem:[#allocation17 + $0xc4] ss:$16 sps:$4 sm:$0xff]  }
 0xf01   :  { %v17850_v2 = vld [vmem:[#allocation17 + $0xc0] ss:$16 sps:$4 sm:$0xff]   ;;  %v17855_v62 = vld [vmem:[#allocation17 + $0xe4] ss:$16 sps:$4 sm:$0xff]  }
 0xf02   :  { %13950 = vmatprep.mubr.bf16.mxu0 %v13554_v34  ;;  %v17853_v38 = vld [vmem:[#allocation17 + $0xe0] ss:$16 sps:$4 sm:$0xff]   ;;  %v17858_v14 = vld [vmem:[#allocation17 + $0x104] ss:$16 sps:$4 sm:$0xff]  }
 0xf03   :  { %13951 = vmatmul.mubr.bf16.vlgmr.msra.gmra.mrb[152].mxu0 %v13553_v36  ;;  %v17856_v36 = vld [vmem:[#allocation17 + $0x100] ss:$16 sps:$4 sm:$0xff]   ;;  %v17861_v34 = vld [vmem:[#allocation17 + $0x124] ss:$16 sps:$4 sm:$0xff]  }
 0xf04   :  { %v17867_v0 = vld [vmem:[#allocation17 + $0x164] ss:$16 sps:$4 sm:$0xff]   ;;  %15549 = vmatpush1.bf16.msra.mxu0 %v17928_v57  ;;  %v9909_v57 = vld [vmem:[%s22274_s11] sm:$0x3] }
 0xfd6   :  { %v13952_v8 = vpop.f32.mrb[152].mxu0 }
 0xfd7   :  { %v13961_v41 = vadd.f32 %v13952_v8, %v22485_v32  ;;  %v13954_v16 = vpop.f32.mrb[153].mxu0  ;;  %v17859_v8 = vld [vmem:[#allocation17 + $0x120] ss:$16 sps:$4 sm:$0xff]  }
 0xfd8   :  { %v13962_v54 = vadd.f32 %v13954_v16, %v22486_v18  ;;  %v13956_v31 = vpop.f32.mrb[154].mxu0 }
 0xfd9   :  { %v13963_v55 = vadd.f32 %v13956_v31, %v22487_v49  ;;  %v13958_v25 = vpop.f32.mrb[155].mxu0 }
 0xfda   :  { %v13965_v13 = vadd.f32 %v13962_v54, %v13961_v41  ;;  %v13964_v45 = vadd.f32 %v13958_v25, %v22488_v43 }
 0xfdc   :  { %v13968_v47 = vadd.f32 %v13964_v45, %v13963_v55  ;;  %13966 = vadd.xlane.f32.xlu0 %v13965_v13 }
 0xfde   :  { %13969 = vadd.xlane.f32.xlu1 %v13968_v47 }
 0xfef   :  { %6791 = vrot.lane.b32.xlu1 %v22491_v52, %s22377_s3 }
 0xff3   :  { %6799 = vrot.lane.b32.xlu1 %v22494_v21, %s18494_s23 }
 0xff7   :  { %6801 = vrot.lane.b32.xlu1 %v22497_v22, %s18494_s23 }
 0xffb   :  { %14575 = vrot.lane.b32.xlu1 %v14564_v58, %s18494_s23  ;;  %v17841_v58 = vld [vmem:[#allocation17 + $0x60] ss:$16 sps:$4 sm:$0xff]  }
 0xffc   :  { %15061 = vmatpush1.bf16.msra.mxu1 %v17841_v58  ;;  %v17873_v58 = vld [vmem:[#allocation17 + $0x1a4] ss:$16 sps:$4 sm:$0xff]  }
 0xffd   :  { %15062 = vmatprep.subr.bf16.mxu1 %v17846_v56  ;;  %v17871_v56 = vld [vmem:[#allocation17 + $0x1a0] ss:$16 sps:$4 sm:$0xff]  }
 0xfff   :  { %6809 = vrot.lane.b32.xlu1 %v22498_v50, %s18516_s6 }
0x1000   :  { %15063 = vmatpush1.bf16.msra.mxu1 %v17844_v63  ;;  %v17876_v63 = vld [vmem:[#allocation17 + $0x1c4] ss:$16 sps:$4 sm:$0xff]  }
0x1001   :  { %15064 = vmatprep.subr.bf16.mxu1 %v17849_v40  ;;  %v17879_v40 = vld [vmem:[#allocation17 + $0x1e4] ss:$16 sps:$4 sm:$0xff]  }
0x1004   :  { %15065 = vmatpush1.bf16.msra.mxu1 %v17847_v5  ;;  %v17877_v5 = vld [vmem:[#allocation17 + $0x1e0] ss:$16 sps:$4 sm:$0xff]  }
0x1005   :  { %15066 = vmatprep.subr.bf16.mxu1 %v17852_v35  ;;  %v17882_v35 = vld [vmem:[#allocation17 + $0xc] ss:$16 sps:$4 sm:$0xff]  }
0x1008   :  { %15067 = vmatpush1.bf16.msra.mxu1 %v17850_v2  ;;  %v17933_v2 = vld [vmem:[#allocation19 + $0x14] ss:$8 sps:$4 sm:$0xff]  }
0x1009   :  { %15068 = vmatprep.subr.bf16.mxu1 %v17855_v62  ;;  %v17931_v62 = vld [vmem:[#allocation19 + $0x10] ss:$8 sps:$4 sm:$0xff]   ;;  %15550 = vmatprep.subr.bf16.mxu0 %v17933_v2 }
0x100a   :  { %15551 = vmatpush1.bf16.msra.mxu0 %v17931_v62 }
0x100c   :  { %15069 = vmatpush1.bf16.msra.mxu1 %v17853_v38  ;;  %v17936_v38 = vld [vmem:[#allocation19 + $0x24] ss:$8 sps:$4 sm:$0xff]  }
0x100d   :  { %15070 = vmatprep.subr.bf16.mxu1 %v17858_v14  ;;  %v17934_v14 = vld [vmem:[#allocation19 + $0x20] ss:$8 sps:$4 sm:$0xff]   ;;  %15552 = vmatprep.subr.bf16.mxu0 %v17936_v38 }
0x100e   :  { %15553 = vmatpush1.bf16.msra.mxu0 %v17934_v14  ;;  %v9910_v38 = vld [vmem:[%s22275_s12] sm:$0x3] }
0x1010   :  { %15071 = vmatpush1.bf16.msra.mxu1 %v17856_v36  ;;  %v17939_v36 = vld [vmem:[#allocation19 + $0x34] ss:$8 sps:$4 sm:$0xff]  }
0x1011   :  { %15072 = vmatprep.subr.bf16.mxu1 %v17861_v34  ;;  %v17937_v34 = vld [vmem:[#allocation19 + $0x30] ss:$8 sps:$4 sm:$0xff]   ;;  %15554 = vmatprep.subr.bf16.mxu0 %v17939_v36  ;;  %v22503_v36 = vld [vmem:[#allocation49_spill] sm:$0xff] }
0x1012   :  { %15555 = vmatpush1.bf16.msra.mxu0 %v17937_v34  ;;  %v14001_v10 = vrot.slane %v9909_v57, %v22503_v36  ;;  %v17967_v34 = vld [vmem:[#allocation19 + $0xd0] ss:$8 sps:$4 sm:$0xff]  }
0x1014   :  { %15073 = vmatpush1.bf16.msra.mxu1 %v17859_v8  ;;  %v17942_v8 = vld [vmem:[#allocation19 + $0x44] ss:$8 sps:$4 sm:$0xff]  }
0x1015   :  { %15074 = vmatprep.subr.bf16.mxu1 %v17864_v6  ;;  %15556 = vmatprep.subr.bf16.mxu0 %v17942_v8  ;;  %v17960_v6 = vld [vmem:[#allocation19 + $0xa4] ss:$8 sps:$4 sm:$0xff]  }
0x1018   :  { %15075 = vmatpush1.bf16.msra.mxu1 %v17862_v44 }
0x1019   :  { %15076 = vmatprep.subr.bf16.mxu1 %v17867_v0 }
0x101c   :  { %15077 = vmatpush1.bf16.msra.mxu1 %v17865_v29 }
0x101d   :  { %15078 = vmatprep.subr.bf16.mxu1 %v17870_v61 }
0x1069   :  { %v13967_v32 = vpop.xlane.xlu0 %13966 }
0x106a   :  { %v13971_v16 = vmul.f32 0.00390625, %v13967_v32  ;;  %v17940_v32 = vld [vmem:[#allocation19 + $0x40] ss:$8 sps:$4 sm:$0xff]  }
0x106b   :  { %v13970_v18 = vpop.xlane.xlu1 %13969  ;;  %15557 = vmatpush1.bf16.msra.mxu0 %v17940_v32  ;;  %v14016_v32 = vrot.slane %v9910_v38, %v22503_v36 }
0x106c   :  { %v21986_v31 = vsub.f32 %v13961_v41, %v13971_v16  ;;  %v21988_v49 = vsub.f32 %v13962_v54, %v13971_v16  ;;  %v13972_v25 = vmul.f32 0.00390625, %v13970_v18  ;;  %v17945_v16 = vld [vmem:[#allocation19 + $0x54] ss:$8 sps:$4 sm:$0xff]   ;;  %v17943_v18 = vld [vmem:[#allocation19 + $0x50] ss:$8 sps:$4 sm:$0xff]  }
0x106d   :  { %15558 = vmatprep.subr.bf16.mxu0 %v17945_v16  ;;  %v14020_v16 = vrot.slane %v9910_v38, %v22504_v30  ;;  %v17907_v38 = vld [vmem:[#allocation17 + $0x128] ss:$16 sps:$4 sm:$0xff]  }
0x106e   :  { %v13977_v13 = vmul.f32 %v21986_v31, %v21986_v31  ;;  %v13978_v43 = vmul.f32 %v21988_v49, %v21988_v49  ;;  %v21994_v47 = vsub.f32 %v13963_v55, %v13972_v25  ;;  %v21996_v52 = vsub.f32 %v13964_v45, %v13972_v25  ;;  %v17948_v25 = vld [vmem:[#allocation19 + $0x64] ss:$8 sps:$4 sm:$0xff]  }
0x106f   :  { %v21998_v21 = vpop.permute.xlu1 %6791  ;;  %15559 = vmatpush1.bf16.msra.mxu0 %v17943_v18 }
0x1070   :  { %v13979_v1 = vmul.f32 %v21994_v47, %v21994_v47  ;;  %v13980_v41 = vmul.f32 %v21996_v52, %v21996_v52  ;;  %v13981_v54 = vadd.f32 %v13978_v43, %v13977_v13  ;;  %v17946_v13 = vld [vmem:[#allocation19 + $0x60] ss:$8 sps:$4 sm:$0xff]   ;;  %15560 = vmatprep.subr.bf16.mxu0 %v17948_v25  ;;  %v17951_v43 = vld [vmem:[#allocation19 + $0x74] ss:$8 sps:$4 sm:$0xff]  }
0x1072   :  { %13982 = vadd.xlane.f32.xlu0 %v13981_v54  ;;  %v13984_v22 = vadd.f32 %v13980_v41, %v13979_v1  ;;  %v17949_v1 = vld [vmem:[#allocation19 + $0x70] ss:$8 sps:$4 sm:$0xff]   ;;  %v17954_v41 = vld [vmem:[#allocation19 + $0x84] ss:$8 sps:$4 sm:$0xff]   ;;  %v17952_v54 = vld [vmem:[#allocation19 + $0x80] ss:$8 sps:$4 sm:$0xff]  }
0x1073   :  { %v22004_v20 = vpop.permute.xlu1 %6799  ;;  %15561 = vmatpush1.bf16.msra.mxu0 %v17946_v13 }
0x1074   :  { %15562 = vmatprep.subr.bf16.mxu0 %v17951_v43 }
0x1076   :  { %13985 = vadd.xlane.f32.xlu0 %v13984_v22  ;;  %v17957_v22 = vld [vmem:[#allocation19 + $0x94] ss:$8 sps:$4 sm:$0xff]  }
0x1077   :  { %v22006_v50 = vpop.permute.xlu1 %6801  ;;  %15563 = vmatpush1.bf16.msra.mxu0 %v17949_v1 }
0x1078   :  { %15564 = vmatprep.subr.bf16.mxu0 %v17954_v41 }
0x107b   :  { %v14576_v55 = vpop.permute.xlu1 %14575  ;;  %15565 = vmatpush1.bf16.msra.mxu0 %v17952_v54 }
0x107c   :  { %v22012_v45 = vsel %vm6847_vm4, %v14563_v17, %v14576_v55  ;;  %v17868_v17 = vld [vmem:[#allocation17 + $0x180] ss:$16 sps:$4 sm:$0xff]   ;;  %15566 = vmatprep.subr.bf16.mxu0 %v17957_v22 }
0x107d   :  { %15079 = vmatpush1.bf16.msra.mxu1 %v17868_v17  ;;  %v17963_v17 = vld [vmem:[#allocation19 + $0xb4] ss:$8 sps:$4 sm:$0xff]  }
0x107e   :  { %15080 = vmatprep.subr.bf16.mxu1 %v17873_v58 }
0x1081   :  { %15081 = vmatpush1.bf16.msra.mxu1 %v17871_v56 }
0x1082   :  { %15082 = vmatprep.subr.bf16.mxu1 %v17876_v63  ;;  %v17961_v63 = vld [vmem:[#allocation19 + $0xb0] ss:$8 sps:$4 sm:$0xff]  }
0x108c   :  { %6793 = vrot.lane.b32.xlu0 %v22501_v12, %s22377_s3  ;;  %v17955_v12 = vld [vmem:[#allocation19 + $0x90] ss:$8 sps:$4 sm:$0xff]  }
0x108d   :  { %15567 = vmatpush1.bf16.msra.mxu0 %v17955_v12  ;;  %v17880_v12 = vld [vmem:[#allocation17 + $0x8] ss:$16 sps:$4 sm:$0xff]  }
0x108e   :  { %15568 = vmatprep.subr.bf16.mxu0 %v17960_v6  ;;  %v17888_v6 = vld [vmem:[#allocation17 + $0x4c] ss:$16 sps:$4 sm:$0xff]  }
0x1090   :  { %14573 = vrot.lane.b32.xlu0 %v14428_v28, %s18494_s23  ;;  %v17874_v28 = vld [vmem:[#allocation17 + $0x1c0] ss:$16 sps:$4 sm:$0xff]  }
0x1091   :  { %15083 = vmatpush1.bf16.msra.mxu1 %v17874_v28  ;;  %v17966_v28 = vld [vmem:[#allocation19 + $0xc4] ss:$8 sps:$4 sm:$0xff]  }
0x1092   :  { %15084 = vmatprep.subr.bf16.mxu1 %v17879_v40 }
0x1094   :  { %6807 = vrot.lane.b32.xlu0 %v22502_v48, %s18516_s6  ;;  %v17958_v48 = vld [vmem:[#allocation19 + $0xa0] ss:$8 sps:$4 sm:$0xff]  }
0x1095   :  { %15085 = vmatpush1.bf16.msra.mxu1 %v17877_v5  ;;  %15569 = vmatpush1.bf16.msra.mxu0 %v17958_v48  ;;  %v17964_v5 = vld [vmem:[#allocation19 + $0xc0] ss:$8 sps:$4 sm:$0xff]  }
0x1096   :  { %15097 = vmatprep.subr.bf16.mxu1 %v17882_v35  ;;  %15570 = vmatprep.subr.bf16.mxu0 %v17963_v17  ;;  %v17889_v48 = vld [vmem:[#allocation17 + $0x68] ss:$16 sps:$4 sm:$0xff]  }
0x1097   :  { %v17892_v17 = vld [vmem:[#allocation17 + $0x88] ss:$16 sps:$4 sm:$0xff]  }
0x1099   :  { %15571 = vmatpush1.bf16.msra.mxu0 %v17961_v63  ;;  %v17895_v63 = vld [vmem:[#allocation17 + $0xa8] ss:$16 sps:$4 sm:$0xff]  }
0x109a   :  { %15572 = vmatprep.subr.bf16.mxu0 %v17966_v28  ;;  %v17900_v28 = vld [vmem:[#allocation17 + $0xcc] ss:$16 sps:$4 sm:$0xff]  }
0x109d   :  { %15573 = vmatpush1.bf16.msra.mxu0 %v17964_v5  ;;  %v17903_v5 = vld [vmem:[#allocation17 + $0xec] ss:$16 sps:$4 sm:$0xff]  }
0x109e   :  { %15574 = vmatprep.subr.bf16.mxu0 %v17969_v19  ;;  %v17906_v19 = vld [vmem:[#allocation17 + $0x10c] ss:$16 sps:$4 sm:$0xff]  }
0x10a1   :  { %15575 = vmatpush1.bf16.msra.mxu0 %v17967_v34  ;;  %v17913_v34 = vld [vmem:[#allocation17 + $0x168] ss:$16 sps:$4 sm:$0xff]  }
0x10ff   :  { %v13983_v55 = vpop.xlane.xlu0 %13982 }
0x1100   :  { %v13987_v44 = vmul.f32 0.00390625, %v13983_v55 }
0x1102   :  { %v13989_v29 = vadd.f32 1e-05, %v13987_v44  ;;  %v17883_v44 = vld [vmem:[#allocation17 + $0x28] ss:$16 sps:$4 sm:$0xff]  }
0x1103   :  { %v13986_v0 = vpop.xlane.xlu0 %13985 }
0x1104   :  { %18156 = vrsqrt.f32 %v13989_v29  ;;  %v13988_v61 = vmul.f32 0.00390625, %v13986_v0  ;;  %v17886_v29 = vld [vmem:[#allocation17 + $0x48] ss:$16 sps:$4 sm:$0xff]   ;;  %v17891_v0 = vld [vmem:[#allocation17 + $0x6c] ss:$16 sps:$4 sm:$0xff]  }
0x1106   :  { %v13990_v58 = vadd.f32 1e-05, %v13988_v61  ;;  %v17894_v61 = vld [vmem:[#allocation17 + $0x8c] ss:$16 sps:$4 sm:$0xff]  }
0x1107   :  { %v22026_v56 = vpop.permute.xlu0 %6793 }
0x1108   :  { %18158 = vrsqrt.f32 %v13990_v58  ;;  %v17897_v58 = vld [vmem:[#allocation17 + $0xac] ss:$16 sps:$4 sm:$0xff]  }
0x110b   :  { %v14574_v40 = vpop.permute.xlu0 %14573 }
0x110c   :  { %v22032_v35 = vsel %vm6847_vm4, %v14427_v15, %v14574_v40  ;;  %v14005_v15 = vrot.slane %v9909_v57, %v22504_v30  ;;  %v17898_v40 = vld [vmem:[#allocation17 + $0xc8] ss:$16 sps:$4 sm:$0xff]  }
0x110d   :  { %v17901_v57 = vld [vmem:[#allocation17 + $0xe8] ss:$16 sps:$4 sm:$0xff]  }
0x110e   :  { %v18157_v2 = vpop.eup %18156 }
0x110f   :  { %v13993_v62 = vmul.f32 %v18157_v2, %v21986_v31  ;;  %v13994_v14 = vmul.f32 %v18157_v2, %v21988_v49  ;;  %v17904_v2 = vld [vmem:[#allocation17 + $0x108] ss:$16 sps:$4 sm:$0xff]  }
0x1111   :  { %v14009_v25 = vmul.f32 %v14005_v15, %v13994_v14  ;;  %v14008_v13 = vmul.f32 %v14001_v10, %v13993_v62  ;;  %v17909_v62 = vld [vmem:[#allocation17 + $0x12c] ss:$16 sps:$4 sm:$0xff]  }
0x1112   :  { %v18159_v8 = vpop.eup %18158  ;;  %v17912_v14 = vld [vmem:[#allocation17 + $0x14c] ss:$16 sps:$4 sm:$0xff]  }
0x1113   :  { %v13995_v31 = vmul.f32 %v18159_v8, %v21994_v47  ;;  %v13996_v18 = vmul.f32 %v18159_v8, %v21996_v52  ;;  %v22048_v1 = vadd.f32 %v14020_v16, %v14009_v25  ;;  %v22052_v54 = vadd.f32 %v14016_v32, %v14008_v13  ;;  %v17885_v52 = vld [vmem:[#allocation17 + $0x2c] ss:$16 sps:$4 sm:$0xff]   ;;  %v17922_v25 = vld [vmem:[#allocation17 + $0x1c8] ss:$16 sps:$4 sm:$0xff]  }
0x1114   :  { %v17918_v8 = vld [vmem:[#allocation17 + $0x18c] ss:$16 sps:$4 sm:$0xff]  }
0x1115   :  { %v14011_v49 = vmul.f32 %v14005_v15, %v13996_v18  ;;  %v14010_v43 = vmul.f32 %v14001_v10, %v13995_v31  ;;  %v17910_v10 = vld [vmem:[#allocation17 + $0x148] ss:$16 sps:$4 sm:$0xff]   ;;  %v17915_v15 = vld [vmem:[#allocation17 + $0x16c] ss:$16 sps:$4 sm:$0xff]  }
0x1116   :  { %v17919_v31 = vld [vmem:[#allocation17 + $0x1a8] ss:$16 sps:$4 sm:$0xff]   ;;  %v17924_v18 = vld [vmem:[#allocation17 + $0x1cc] ss:$16 sps:$4 sm:$0xff]  }
0x1117   :  { %v22050_v41 = vadd.f32 %v14020_v16, %v14011_v49  ;;  %v22054_v22 = vadd.f32 %v14016_v32, %v14010_v43  ;;  %v17916_v32 = vld [vmem:[#allocation17 + $0x188] ss:$16 sps:$4 sm:$0xff]   ;;  %v17921_v16 = vld [vmem:[#allocation17 + $0x1ac] ss:$16 sps:$4 sm:$0xff]  }
0x1118   :  { %v17927_v13 = vld [vmem:[#allocation17 + $0x1ec] ss:$16 sps:$4 sm:$0xff]   ;;  %v17925_v49 = vld [vmem:[#allocation17 + $0x1e8] ss:$16 sps:$4 sm:$0xff]  }
0x1119   :  { %v14647_v55 = vpack.c.bf16 %v22050_v41, %v22048_v1  ;;  %v22060_v47 = vpack.c.bf16 %v22054_v22, %v22052_v54  ;;  %v17970_v43 = vld [vmem:[#allocation19 + $0xe0] ss:$8 sps:$4 sm:$0xff]  }
0x111b   :  { %15086 = vmatprep.mubr.bf16.mxu1 %v14647_v55 }
0x111c   :  { %15087 = vmatmul.mubr.bf16.vlgmr.msra.gmra.mrb[172].mxu1 %v22060_v47 }
0x111d   :  { %15098 = vmatpush1.bf16.msra.mxu1 %v17880_v12  ;;  %15129 = vmatprep.mubr.bf16.mxu1 %v14647_v55  ;;  %v17972_v55 = vld [vmem:[#allocation19 + $0xe4] ss:$8 sps:$4 sm:$0xff]   ;;  %v17975_v12 = vld [vmem:[#allocation19 + $0xf4] ss:$8 sps:$4 sm:$0xff]  }
0x111e   :  { %15099 = vmatprep.subr.bf16.mxu1 %v17885_v52  ;;  %15576 = vmatprep.subr.bf16.mxu0 %v17972_v55  ;;  %v17973_v52 = vld [vmem:[#allocation19 + $0xf0] ss:$8 sps:$4 sm:$0xff]   ;;  %v17999_v55 = vld [vmem:[#allocation19 + $0x174] ss:$8 sps:$4 sm:$0xff]  }
0x111f   :  { %15577 = vmatpush1.bf16.msra.mxu0 %v17970_v43  ;;  %v17994_v43 = vld [vmem:[#allocation19 + $0x160] ss:$8 sps:$4 sm:$0xff]  }
0x1120   :  { %15578 = vmatprep.subr.bf16.mxu0 %v17975_v12  ;;  %v17997_v12 = vld [vmem:[#allocation19 + $0x170] ss:$8 sps:$4 sm:$0xff]  }
0x1121   :  { %15100 = vmatpush1.bf16.msra.mxu1 %v17883_v44  ;;  %v17978_v44 = vld [vmem:[#allocation19 + $0x104] ss:$8 sps:$4 sm:$0xff]  }
0x1122   :  { %15101 = vmatprep.subr.bf16.mxu1 %v17888_v6  ;;  %v22067_v6 = vld [vmem:[%s22277_s14] sm:$0xf] }
0x1123   :  { %15579 = vmatpush1.bf16.msra.mxu0 %v17973_v52  ;;  %v18002_v52 = vld [vmem:[#allocation19 + $0x184] ss:$8 sps:$4 sm:$0xff]  }
0x1124   :  { %15591 = vmatprep.subr.bf16.mxu0 %v17978_v44  ;;  %v18000_v44 = vld [vmem:[#allocation19 + $0x180] ss:$8 sps:$4 sm:$0xff]  }
0x1125   :  { %15102 = vmatpush1.bf16.msra.mxu1 %v17886_v29  ;;  %v14717_v29 = vrot.slane %v22067_v6, %v22503_v36 }
0x1126   :  { %15103 = vmatprep.subr.bf16.mxu1 %v17891_v0 }
0x1129   :  { %15104 = vmatpush1.bf16.msra.mxu1 %v17889_v48 }
0x112a   :  { %15105 = vmatprep.subr.bf16.mxu1 %v17894_v61 }
0x112d   :  { %15106 = vmatpush1.bf16.msra.mxu1 %v17892_v17 }
0x112e   :  { %15107 = vmatprep.subr.bf16.mxu1 %v17897_v58 }
0x1131   :  { %15108 = vmatpush1.bf16.msra.mxu1 %v17895_v63 }
0x1132   :  { %15109 = vmatprep.subr.bf16.mxu1 %v17900_v28 }
0x1135   :  { %15110 = vmatpush1.bf16.msra.mxu1 %v17898_v40 }
0x1136   :  { %15111 = vmatprep.subr.bf16.mxu1 %v17903_v5 }
0x1139   :  { %15112 = vmatpush1.bf16.msra.mxu1 %v17901_v57 }
0x113a   :  { %15113 = vmatprep.subr.bf16.mxu1 %v17906_v19 }
0x113d   :  { %15114 = vmatpush1.bf16.msra.mxu1 %v17904_v2 }
0x113e   :  { %15115 = vmatprep.subr.bf16.mxu1 %v17909_v62 }
0x1141   :  { %15116 = vmatpush1.bf16.msra.mxu1 %v17907_v38 }
0x1142   :  { %15117 = vmatprep.subr.bf16.mxu1 %v17912_v14  ;;  %v17976_v14 = vld [vmem:[#allocation19 + $0x100] ss:$8 sps:$4 sm:$0xff]  }
0x1145   :  { %15118 = vmatpush1.bf16.msra.mxu1 %v17910_v10  ;;  %v17981_v10 = vld [vmem:[#allocation19 + $0x114] ss:$8 sps:$4 sm:$0xff]  }
0x1146   :  { %15119 = vmatprep.subr.bf16.mxu1 %v17915_v15  ;;  %v17979_v15 = vld [vmem:[#allocation19 + $0x110] ss:$8 sps:$4 sm:$0xff]  }
0x1149   :  { %15120 = vmatpush1.bf16.msra.mxu1 %v17913_v34  ;;  %v17984_v34 = vld [vmem:[#allocation19 + $0x124] ss:$8 sps:$4 sm:$0xff]  }
0x114a   :  { %15121 = vmatprep.subr.bf16.mxu1 %v17918_v8  ;;  %v17982_v8 = vld [vmem:[#allocation19 + $0x120] ss:$8 sps:$4 sm:$0xff]  }
0x114d   :  { %15122 = vmatpush1.bf16.msra.mxu1 %v17916_v32  ;;  %v17987_v32 = vld [vmem:[#allocation19 + $0x134] ss:$8 sps:$4 sm:$0xff]  }
0x114e   :  { %15123 = vmatprep.subr.bf16.mxu1 %v17921_v16  ;;  %v17985_v16 = vld [vmem:[#allocation19 + $0x130] ss:$8 sps:$4 sm:$0xff]  }
0x1151   :  { %15124 = vmatpush1.bf16.msra.mxu1 %v17919_v31  ;;  %v17990_v31 = vld [vmem:[#allocation19 + $0x144] ss:$8 sps:$4 sm:$0xff]  }
0x1152   :  { %15125 = vmatprep.subr.bf16.mxu1 %v17924_v18  ;;  %v17988_v18 = vld [vmem:[#allocation19 + $0x140] ss:$8 sps:$4 sm:$0xff]  }
0x1155   :  { %15126 = vmatpush1.bf16.msra.mxu1 %v17922_v25  ;;  %v17993_v25 = vld [vmem:[#allocation19 + $0x154] ss:$8 sps:$4 sm:$0xff]  }
0x1156   :  { %15127 = vmatprep.subr.bf16.mxu1 %v17927_v13  ;;  %v17991_v13 = vld [vmem:[#allocation19 + $0x150] ss:$8 sps:$4 sm:$0xff]  }
0x1159   :  { %15128 = vmatpush1.bf16.msra.mxu1 %v17925_v49  ;;  %v17996_v49 = vld [vmem:[#allocation19 + $0x164] ss:$8 sps:$4 sm:$0xff]  }
0x115c   :  { %15130 = vmatmul.mubr.bf16.vlgmr.msra.gmra.mrb[176].mxu1 %v22060_v47  ;;  %v14721_v47 = vrot.slane %v22067_v6, %v22504_v30 }
0x11ef   :  { %v15088_v0 = vpop.f32.mrb[172].mxu1 }
0x11f0   :  { %v15089_v48 = vadd.f32 %v15088_v0, %v14717_v29  ;;  %v15090_v61 = vpop.f32.mrb[173].mxu1  ;;  %v18008_v0 = vld [vmem:[#allocation19 + $0x1a4] ss:$8 sps:$4 sm:$0xff]  }
0x11f1   :  { %v15091_v17 = vadd.f32 %v15090_v61, %v14721_v47  ;;  %v15092_v58 = vpop.f32.mrb[174].mxu1  ;;  %v18011_v61 = vld [vmem:[#allocation19 + $0x1b4] ss:$8 sps:$4 sm:$0xff]  }
0x11f2   :  { %v15093_v63 = vadd.f32 %v15092_v58, %v14717_v29  ;;  %v15094_v28 = vpop.f32.mrb[175].mxu1  ;;  %v15140_v5 = vmax.f32 %v15089_v48, 0.0  ;;  %v18005_v29 = vld [vmem:[#allocation19 + $0x194] ss:$8 sps:$4 sm:$0xff]   ;;  %v18006_v48 = vld [vmem:[#allocation19 + $0x1a0] ss:$8 sps:$4 sm:$0xff]  }
0x11f3   :  { %v15095_v40 = vadd.f32 %v15094_v28, %v14721_v47  ;;  %v15141_v19 = vmax.f32 %v15091_v17, 0.0  ;;  %v18003_v47 = vld [vmem:[#allocation19 + $0x190] ss:$8 sps:$4 sm:$0xff]   ;;  %v18014_v58 = vld [vmem:[#allocation19 + $0x1c4] ss:$8 sps:$4 sm:$0xff]  }
0x11f4   :  { %v15144_v57 = vmax.f32 %v15093_v63, 0.0  ;;  %v18009_v17 = vld [vmem:[#allocation19 + $0x1b0] ss:$8 sps:$4 sm:$0xff]   ;;  %v18012_v63 = vld [vmem:[#allocation19 + $0x1c0] ss:$8 sps:$4 sm:$0xff]  }
0x11f5   :  { %v15145_v2 = vmax.f32 %v15095_v40, 0.0  ;;  %v18017_v28 = vld [vmem:[#allocation19 + $0x1d4] ss:$8 sps:$4 sm:$0xff]   ;;  %v22505_v40 = vld [vmem:[#allocation32_spill] sm:$0xff] }
0x11f6   :  { %v15148_v62 = vpack.c.bf16 %v15144_v57, %v15140_v5  ;;  %v14724_v5 = vsub.s32 2, %v22505_v40  ;;  %v14728_v57 = vsub.s32 3, %v22505_v40 }
0x11f7   :  { %v15149_v38 = vpack.c.bf16 %v15145_v2, %v15141_v19  ;;  %v18015_v19 = vld [vmem:[#allocation19 + $0x1d0] ss:$8 sps:$4 sm:$0xff]  }
0x11f8   :  { %v14725_v2 = vrot.slane %v22067_v6, %v14724_v5 }
0x11f9   :  { %15580 = vmatprep.mubr.bf16.mxu0 %v15149_v38  ;;  %v14729_v38 = vrot.slane %v22067_v6, %v14728_v57 }
0x11fa   :  { %15581 = vmatmul.mubr.bf16.vlgmr.msra.gmra.mrb[156].mxu0 %v15148_v62  ;;  %v18020_v62 = vld [vmem:[#allocation19 + $0x1e4] ss:$8 sps:$4 sm:$0xff]  }
0x11fb   :  { %15592 = vmatpush1.bf16.msra.mxu0 %v17976_v14 }
0x11fc   :  { %15593 = vmatprep.subr.bf16.mxu0 %v17981_v10  ;;  %v18018_v10 = vld [vmem:[#allocation19 + $0x1e0] ss:$8 sps:$4 sm:$0xff]  }
0x11ff   :  { %15594 = vmatpush1.bf16.msra.mxu0 %v17979_v15 }
0x1200   :  { %15595 = vmatprep.subr.bf16.mxu0 %v17984_v34 }
0x1203   :  { %15596 = vmatpush1.bf16.msra.mxu0 %v17982_v8  ;;  %v18023_v8 = vld [vmem:[#allocation19 + $0x1f4] ss:$8 sps:$4 sm:$0xff]  }
0x1204   :  { %15597 = vmatprep.subr.bf16.mxu0 %v17987_v32 }
0x1207   :  { %15598 = vmatpush1.bf16.msra.mxu0 %v17985_v16 }
0x1208   :  { %15599 = vmatprep.subr.bf16.mxu0 %v17990_v31 }
0x120b   :  { %15600 = vmatpush1.bf16.msra.mxu0 %v17988_v18 }
0x120c   :  { %15601 = vmatprep.subr.bf16.mxu0 %v17993_v25 }
0x120f   :  { %15602 = vmatpush1.bf16.msra.mxu0 %v17991_v13  ;;  %v18021_v13 = vld [vmem:[#allocation19 + $0x1f0] ss:$8 sps:$4 sm:$0xff]  }
0x1210   :  { %15603 = vmatprep.subr.bf16.mxu0 %v17996_v49 }
0x1213   :  { %15604 = vmatpush1.bf16.msra.mxu0 %v17994_v43 }
0x1214   :  { %15605 = vmatprep.subr.bf16.mxu0 %v17999_v55 }
0x1217   :  { %15606 = vmatpush1.bf16.msra.mxu0 %v17997_v12 }
0x1218   :  { %15607 = vmatprep.subr.bf16.mxu0 %v18002_v52 }
0x121b   :  { %15608 = vmatpush1.bf16.msra.mxu0 %v18000_v44  ;;  %v15216_v44 = vld [vmem:[%s22279_s16] sm:$0x3]  ;;  %s22506_s16 = smov 32  }
0x121c   :  { %15609 = vmatprep.subr.bf16.mxu0 %v18005_v29  ;;  %v15221_v29 = vrot.slane %v15216_v44, %v22503_v36 }
0x121f   :  { %15610 = vmatpush1.bf16.msra.mxu0 %v18003_v47  ;;  %v15225_v47 = vrot.slane %v15216_v44, %v22504_v30 }
0x1220   :  { %15611 = vmatprep.subr.bf16.mxu0 %v18008_v0 }
0x1223   :  { %15612 = vmatpush1.bf16.msra.mxu0 %v18006_v48 }
0x1224   :  { %15613 = vmatprep.subr.bf16.mxu0 %v18011_v61 }
0x1227   :  { %15614 = vmatpush1.bf16.msra.mxu0 %v18009_v17 }
0x1228   :  { %15615 = vmatprep.subr.bf16.mxu0 %v18014_v58 }
0x122b   :  { %15616 = vmatpush1.bf16.msra.mxu0 %v18012_v63 }
0x122c   :  { %15617 = vmatprep.subr.bf16.mxu0 %v18017_v28 }
0x122f   :  { %v15131_v14 = vpop.f32.mrb[176].mxu1  ;;  %15618 = vmatpush1.bf16.msra.mxu0 %v18015_v19 }
0x1230   :  { %v15132_v15 = vadd.f32 %v15131_v14, %v14725_v2  ;;  %v15133_v34 = vpop.f32.mrb[177].mxu1  ;;  %15619 = vmatprep.subr.bf16.mxu0 %v18020_v62  ;;  %v22508_v14 = vld [vmem:[#allocation47_spill] sm:$0xff] }
0x1231   :  { %v15134_v32 = vadd.f32 %v15133_v34, %v14729_v38  ;;  %v15135_v16 = vpop.f32.mrb[178].mxu1  ;;  %v22515_v34 = vcombine.high %v21445_v53, %v21454_v27  ;;  %v22522_v53 = vcombine.high %v21767_v7, %v21773_v42  ;;  %v22523_v27 = vld [vmem:[#allocation38_spill] sm:$0xff] }
0x1232   :  { %v15136_v31 = vadd.f32 %v15135_v16, %v14725_v2  ;;  %v15137_v18 = vpop.f32.mrb[179].mxu1  ;;  %v15142_v49 = vmax.f32 %v15132_v15, 0.0  ;;  %v22521_v16 = vcombine.low %v21569_v24, %v21575_v60 }
0x1233   :  { %v15138_v25 = vadd.f32 %v15137_v18, %v14729_v38  ;;  %15620 = vmatpush1.bf16.msra.mxu0 %v18018_v10  ;;  %v15143_v55 = vmax.f32 %v15134_v32, 0.0 }
0x1234   :  { %v15146_v43 = vmax.f32 %v15136_v31, 0.0  ;;  %15621 = vmatprep.subr.bf16.mxu0 %v18023_v8  ;;  %v22519_v8 = vld [vmem:[#allocation48_spill] sm:$0xff] }
0x1235   :  { %v15147_v12 = vmax.f32 %v15138_v25, 0.0  ;;  %v22524_v31 = vld [vmem:[#allocation40_spill] sm:$0xff] }
0x1236   :  { %v15150_v6 = vpack.c.bf16 %v15146_v43, %v15142_v49  ;;  %v22525_v18 = vcombine.low %v22523_v27, %v22524_v31  ;;  %v22528_v49 = vcombine.high %v22523_v27, %v22524_v31 }
0x1237   :  { %v15151_v52 = vpack.c.bf16 %v15147_v12, %v15143_v55  ;;  %15622 = vmatpush1.bf16.msra.mxu0 %v18021_v13  ;;  %v22527_v13 = vcombine.high %v21569_v24, %v21575_v60 }
0x1239   :  { %15623 = vmatprep.mubr.bf16.mxu0 %v15151_v52 }
0x123a   :  { %15624 = vmatmul.mubr.bf16.vlgmr.msra.gmra.mrb[156].mxu0 %v15150_v6 }
0x130d   :  { %v15625_v0 = vpop.f32.mrb[156].mxu0 }
0x130e   :  { %v17167_v48 = vadd.f32 %v15625_v0, %v15221_v29  ;;  %v15627_v61 = vpop.f32.mrb[157].mxu0 }
0x130f   :  { %v17168_v17 = vadd.f32 %v15627_v61, %v15225_v47  ;;  %v15629_v58 = vpop.f32.mrb[158].mxu0 }
0x1310   :  { %v15634_v63 = vadd.f32 %v17167_v48, %v22052_v54  ;;  %v17169_v28 = vadd.f32 %v15629_v58, %v15221_v29  ;;  %v15631_v40 = vpop.f32.mrb[159].mxu0  ;;  %v22507_v54 = vld [vmem:[#allocation45_spill] sm:$0xff] }
0x1311   :  { %v15635_v5 = vadd.f32 %v17168_v17, %v22048_v1  ;;  %v17170_v57 = vadd.f32 %v15631_v40, %v15225_v47  ;;  %v22509_v10 = vcombine.low %v22507_v54, %v22508_v14  ;;  %v22510_v1 = vcombine.high %v21690_v9, %v21696_v11  ;;  %v22518_v11 = vld [vmem:[#allocation46_spill] sm:$0xff] }
0x1312   :  { %v15636_v19 = vadd.f32 %v17169_v28, %v22054_v22  ;;  %v22512_v22 = vld [vmem:[#allocation39_spill] sm:$0xff]  ;;  %v22520_v32 = vcombine.low %v22518_v11, %v22519_v8  ;;  %v22526_v25 = vcombine.high %v22518_v11, %v22519_v8 }
0x1313   :  { %v15637_v2 = vadd.f32 %v17170_v57, %v22050_v41  ;;  %v15640_v62 = vadd.f32 %v15635_v5, %v15634_v63  ;;  %v22511_v41 = vld [vmem:[#allocation37_spill] sm:$0xff] }
0x1314   :  { %v22513_v15 = vcombine.low %v22511_v41, %v22512_v22  ;;  %v22517_v9 = vcombine.high %v22511_v41, %v22512_v22 }
0x1315   :  { %15641 = vadd.xlane.f32.xlu1 %v15640_v62  ;;  %v15643_v38 = vadd.f32 %v15637_v2, %v15636_v19 }
0x1317   :  { %15644 = vadd.xlane.f32.xlu0 %v15643_v38 }
0x1326   :  { %14583 = vrot.lane.b32.xlu1 %v14565_v33, %s22506_s16  ;;  %v22514_v33 = vcombine.high %v22507_v54, %v22508_v14 }
0x132a   :  { %6817 = vrot.lane.b32.xlu1 %v22509_v10, %s22506_s16 }
0x132d   :  { %14581 = vrot.lane.b32.xlu0 %v14429_v23, %s22506_s16  ;;  %v22516_v23 = vcombine.low %v21767_v7, %v21773_v42  ;;  %v6810_v7 = vpop.permute.xlu1 %6809  ;;  %v6808_v42 = vpop.permute.xlu0 %6807 }
0x132e   :  { %14591 = vrot.lane.b32.xlu1 %v22510_v1, %s18507_s4 }
0x1331   :  { %6815 = vrot.lane.b32.xlu0 %v22513_v15, %s22506_s16 }
0x1332   :  { %6825 = vrot.lane.b32.xlu1 %v22514_v33, %s18517_s25 }
0x1335   :  { %14589 = vrot.lane.b32.xlu0 %v22515_v34, %s18507_s4 }
0x1336   :  { %14599 = vrot.lane.b32.xlu1 %v22516_v23, %s18511_s15  ;;  %v22530_v23 = vcombine.low %v21770_v26, %v21776_v4 }
0x1339   :  { %6823 = vrot.lane.b32.xlu0 %v22517_v9, %s18517_s25 }
0x133a   :  { %6833 = vrot.lane.b32.xlu1 %v22520_v32, %s18507_s4 }
0x133d   :  { %14597 = vrot.lane.b32.xlu0 %v22521_v16, %s18511_s15  ;;  %v22532_v16 = vcombine.high %v21770_v26, %v21776_v4 }
0x133e   :  { %14607 = vrot.lane.b32.xlu1 %v22522_v53, %s18518_s27 }
0x1341   :  { %6831 = vrot.lane.b32.xlu0 %v22525_v18, %s18507_s4  ;;  %s18520_s4 = smov 96  }
0x1342   :  { %6841 = vrot.lane.b32.xlu1 %v22526_v25, %s18519_s13  ;;  %v22533_v25 = vcombine.low %v21572_v51, %v21578_v3 }
0x1345   :  { %14605 = vrot.lane.b32.xlu0 %v22527_v13, %s18518_s27 }
0x1349   :  { %6839 = vrot.lane.b32.xlu0 %v22528_v49, %s18519_s13  ;;  %v22534_v49 = vcombine.high %v21572_v51, %v21578_v3 }
0x13a2   :  { %v15642_v43 = vpop.xlane.xlu1 %15641 }
0x13a3   :  { %v15646_v55 = vmul.f32 0.00390625, %v15642_v43 }
0x13a4   :  { %v15645_v12 = vpop.xlane.xlu0 %15644 }
0x13a5   :  { %v22144_v6 = vsub.f32 %v15634_v63, %v15646_v55  ;;  %v22146_v52 = vsub.f32 %v15635_v5, %v15646_v55  ;;  %v15647_v44 = vmul.f32 0.00390625, %v15645_v12 }
0x13a6   :  { %v14584_v29 = vpop.permute.xlu1 %14583 }
0x13a7   :  { %v15652_v24 = vmul.f32 %v22144_v6, %v22144_v6  ;;  %v15653_v60 = vmul.f32 %v22146_v52, %v22146_v52  ;;  %v22152_v47 = vsub.f32 %v15636_v19, %v15647_v44  ;;  %v22154_v0 = vsub.f32 %v15637_v2, %v15647_v44 }
0x13a8   :  { %v14630_v48 = vsel %vm6853_vm5, %v22012_v45, %v14584_v29  ;;  %v14582_v61 = vpop.permute.xlu0 %14581 }
0x13a9   :  { %v15654_v17 = vmul.f32 %v22152_v47, %v22152_v47  ;;  %v15655_v58 = vmul.f32 %v22154_v0, %v22154_v0  ;;  %v14629_v63 = vsel %vm6853_vm5, %v22032_v35, %v14582_v61  ;;  %v15656_v28 = vadd.f32 %v15653_v60, %v15652_v24 }
0x13aa   :  { %v6818_v40 = vpop.permute.xlu1 %6817  ;;  %v22529_v35 = vcombine.low %v22499_v37, %v22500_v39  ;;  %v22531_v37 = vcombine.low %v22489_v59, %v22490_v46 }
0x13ab   :  { %15657 = vadd.xlane.f32.xlu1 %v15656_v28  ;;  %v15659_v5 = vadd.f32 %v15655_v58, %v15654_v17 }
0x13ac   :  { %v6816_v57 = vpop.permute.xlu0 %6815  ;;  %v6846_v41 = vsel %vm4238_vm3, %v22529_v35, %v22026_v56  ;;  %v6845_v39 = vsel %vm4238_vm3, %v22531_v37, %v21998_v21 }
0x13ad   :  { %15660 = vadd.xlane.f32.xlu0 %v15659_v5  ;;  %v6849_v33 = vsel %vm6847_vm4, %v6846_v41, %v22006_v50  ;;  %v6848_v50 = vsel %vm6847_vm4, %v6845_v39, %v22004_v20 }
0x13ae   :  { %v14592_v19 = vpop.permute.xlu1 %14591  ;;  %v6852_v56 = vsel %vm6850_vm7, %v6849_v33, %v6810_v7  ;;  %v6851_v53 = vsel %vm6850_vm7, %v6848_v50, %v6808_v42 }
0x13af   :  { %v14632_v45 = vsel %vm6859_vm6, %v14630_v48, %v14592_v19  ;;  %v6855_v8 = vsel %vm6853_vm5, %v6852_v56, %v6818_v40  ;;  %v6854_v21 = vsel %vm6853_vm5, %v6851_v53, %v6816_v57 }
0x13b0   :  { %v14590_v2 = vpop.permute.xlu0 %14589 }
0x13b1   :  { %v14631_v62 = vsel %vm6859_vm6, %v14629_v63, %v14590_v2 }
0x13b2   :  { %v6826_v38 = vpop.permute.xlu1 %6825 }
0x13b3   :  { %v6858_v59 = vsel %vm6856_vm9, %v6855_v8, %v6826_v38 }
0x13b4   :  { %v6824_v54 = vpop.permute.xlu0 %6823 }
0x13b5   :  { %v6857_v20 = vsel %vm6856_vm9, %v6854_v21, %v6824_v54 }
0x13b6   :  { %v14600_v14 = vpop.permute.xlu1 %14599 }
0x13b7   :  { %v14634_v10 = vsel %vm3469_vm1, %v14632_v45, %v14600_v14 }
0x13b8   :  { %v14598_v1 = vpop.permute.xlu0 %14597 }
0x13b9   :  { %v14633_v22 = vsel %vm3469_vm1, %v14631_v62, %v14598_v1 }
0x13ba   :  { %v6834_v15 = vpop.permute.xlu1 %6833 }
0x13bb   :  { %v6861_v27 = vsel %vm6859_vm6, %v6858_v59, %v6834_v15 }
0x13bc   :  { %v6832_v34 = vpop.permute.xlu0 %6831  ;;  %14615 = vrot.lane.b32.xlu1 %v22530_v23, %s18520_s4 }
0x13bd   :  { %v6860_v26 = vsel %vm6859_vm6, %v6857_v20, %v6832_v34 }
0x13be   :  { %v14608_v9 = vpop.permute.xlu1 %14607 }
0x13bf   :  { %v14637_v11 = vsel %vm14635_vm8, %v14634_v10, %v14608_v9 }
0x13c0   :  { %v14606_v32 = vpop.permute.xlu0 %14605  ;;  %14623 = vrot.lane.b32.xlu1 %v22532_v16, %s18521_s18 }
0x13c1   :  { %v14636_v46 = vsel %vm14635_vm8, %v14633_v22, %v14606_v32 }
0x13c2   :  { %v6842_v31 = vpop.permute.xlu1 %6841 }
0x13c3   :  { %v6864_v18 = vsel %vm6862_vm10, %v6861_v27, %v6842_v31  ;;  %14613 = vrot.lane.b32.xlu0 %v22533_v25, %s18520_s4 }
0x13c4   :  { %6866 = vst.msk [vmem:[#allocation21 + $0x8] sm:$0xff] %vm3469_vm1, %v6864_v18  ;;  %v6840_v4 = vpop.permute.xlu0 %6839 }
0x13c5   :  { %v6863_v13 = vsel %vm6862_vm10, %v6860_v26, %v6840_v4 }
0x13c6   :  { %6865 = vst.msk [vmem:[#allocation21] sm:$0xff] %vm3469_vm1, %v6863_v13 }
0x13c7   :  { %14621 = vrot.lane.b32.xlu0 %v22534_v49, %s18521_s18 }
0x13c8   :  { %18421 = shalt.err (!%p18418_p8)
}
0x13c9   :  { %s18422_s15 = scalar_lea.hbm %s22283_s20, 256 }
0x13ca   :  { %p18423_p9 = scmp.ne.s32.totalorder %s22283_s20, %s18422_s15  ;;  %p18426_p10 = scmp.lt.u32.totalorder %s18422_s15, %s22283_s20 }
0x13cc   :  { %p18428_p11 = pnand %p18426_p10, %p18423_p9 }
0x13ce   :  { %18431 = shalt.err (!%p18428_p11)
}
0x13cf   :  { %15729 = dma.vmem_to_hbm [thread:$0]  %s15724_s2, 256, %s22283_s20, [#allocation22], %s22378_s30, %s22378_s30, %s22377_s3   ;;  %vm14638_vm11 = vcmask 785408   ;;  %vm14641_vm12 = vcmask 916480  }
0x13d0   :  { %s18523_s5 = smov [#allocation23]   ;;  %v15638_v58 = vld [vmem:[%s22280_s17] sm:$0x3]  ;;  %s22535_s14 = sld [smem:[#allocation70_spill]] }
0x13d1   :  { %s15735_s29 = sshll.u32 %s18523_s5, 4  ;;  %s15736_s29 = int_to_ptr.vmem [resolvable:$true] %s15735_s29 }
0x13d2   :  { %s18432_s24 = scalar_lea.vmem %s15736_s29, 256  ;;  %p18437_p13 = scmp.lt.s32.totalorder %s15736_s29, %s15736_s29 }
0x13d3   :  { %p18433_p12 = scmp.ne.s32.totalorder %s15736_s29, %s18432_s24  ;;  %p18438_p0 = scmp.lt.s32.totalorder %s18432_s24, %s18432_s24 }
0x13d5   :  { %p18439_p1 = por %p18438_p0, %p18437_p13 }
0x13d6   :  { %v15639_v63 = vld [vmem:[%s22535_s14] sm:$0x3] }
0x13d7   :  { %p18440_p2 = pnand %p18439_p1, %p18433_p12 }
0x1438   :  { %v15658_v51 = vpop.xlane.xlu1 %15657 }
0x1439   :  { %v15662_v3 = vmul.f32 0.00390625, %v15658_v51 }
0x143a   :  { %v15661_v7 = vpop.xlane.xlu0 %15660 }
0x143b   :  { %v15664_v42 = vadd.f32 1e-05, %v15662_v3  ;;  %v15663_v43 = vmul.f32 0.00390625, %v15661_v7 }
0x143c   :  { %v14616_v55 = vpop.permute.xlu1 %14615 }
0x143d   :  { %18160 = vrsqrt.f32 %v15664_v42  ;;  %v15665_v12 = vadd.f32 1e-05, %v15663_v43  ;;  %v14640_v29 = vsel %vm14638_vm11, %v14637_v11, %v14616_v55 }
0x143e   :  { %v14614_v44 = vpop.permute.xlu0 %14613 }
0x143f   :  { %18162 = vrsqrt.f32 %v15665_v12  ;;  %v14639_v48 = vsel %vm14638_vm11, %v14636_v46, %v14614_v44 }
0x1440   :  { %v14624_v24 = vpop.permute.xlu1 %14623 }
0x1441   :  { %v14643_v60 = vsel %vm14641_vm12, %v14640_v29, %v14624_v24 }
0x1442   :  { %14645 = vst [vmem:[#allocation23 + $0x8] sm:$0xff] %v14643_v60  ;;  %v14622_v61 = vpop.permute.xlu0 %14621 }
0x1443   :  { %v14642_v17 = vsel %vm14641_vm12, %v14639_v48, %v14622_v61 }
0x1444   :  { %14644 = vst [vmem:[#allocation23] sm:$0xff] %v14642_v17 }
0x1445   :  { %18443 = shalt.err (!%p18440_p2)
}
0x1446   :  { %s22536_s27 = sld [smem:[#allocation72_spill]] }
0x144c   :  { %s18444_s13 = scalar_lea.hbm %s22536_s27, 256 }
0x144d   :  { %p18445_p3 = scmp.ne.s32.totalorder %s22536_s27, %s18444_s13  ;;  %p18448_p4 = scmp.lt.u32.totalorder %s18444_s13, %s22536_s27 }
0x144f   :  { %p18450_p5 = pnand %p18448_p4, %p18445_p3 }
0x1451   :  { %18453 = shalt.err (!%p18450_p5)
}
0x1452   :  { %15741 = dma.vmem_to_hbm [thread:$0]  %s15736_s29, 256, %s22536_s27, [#allocation22], %s22378_s30, %s22378_s30, %s22377_s3   ;;  %v15676_v28 = vrot.slane %v15638_v58, %v22503_v36  ;;  %v15680_v40 = vrot.slane %v15638_v58, %v22504_v30  ;;  %v18161_v5 = vpop.eup %18160  ;;  %v15691_v45 = vrot.slane %v15639_v63, %v22503_v36  ;;  %v15695_v2 = vrot.slane %v15639_v63, %v22504_v30 }
0x1453   :  { %v15668_v57 = vmul.f32 %v18161_v5, %v22144_v6  ;;  %v15669_v19 = vmul.f32 %v18161_v5, %v22146_v52  ;;  %v18163_v62 = vpop.eup %18162  ;;  %s18524_s3 = smov [#allocation20]  }
0x1454   :  { %v15670_v38 = vmul.f32 %v18163_v62, %v22152_v47  ;;  %v15671_v54 = vmul.f32 %v18163_v62, %v22154_v0  ;;  %s15711_s30 = sshll.u32 %s18524_s3, 4  ;;  %s15712_s30 = int_to_ptr.vmem [resolvable:$true] %s15711_s30 }
0x1455   :  { %v15683_v14 = vmul.f32 %v15676_v28, %v15668_v57  ;;  %v15684_v10 = vmul.f32 %v15680_v40, %v15669_v19  ;;  %s18454_s10 = scalar_lea.vmem %s15712_s30, 512  ;;  %p18459_p7 = scmp.lt.s32.totalorder %s15712_s30, %s15712_s30 }
0x1456   :  { %v15685_v1 = vmul.f32 %v15676_v28, %v15670_v38  ;;  %v15686_v35 = vmul.f32 %v15680_v40, %v15671_v54  ;;  %p18455_p6 = scmp.ne.s32.totalorder %s15712_s30, %s18454_s10  ;;  %p18460_p8 = scmp.lt.s32.totalorder %s18454_s10, %s18454_s10 }
0x1457   :  { %v15698_v41 = vadd.f32 %v15691_v45, %v15683_v14  ;;  %v15699_v22 = vadd.f32 %v15695_v2, %v15684_v10 }
0x1458   :  { %v15700_v6 = vadd.f32 %v15691_v45, %v15685_v1  ;;  %v15701_v15 = vadd.f32 %v15695_v2, %v15686_v35  ;;  %p18461_p9 = por %p18460_p8, %p18459_p7 }
0x1459   :  { %15702 = vst [vmem:[#allocation20] sm:$0xff] %v15698_v41  ;;  %15703 = vst [vmem:[#allocation20 + $0x8] sm:$0xff] %v15699_v22 }
0x145a   :  { %15704 = vst [vmem:[#allocation20 + $0x10] sm:$0xff] %v15700_v6  ;;  %15705 = vst [vmem:[#allocation20 + $0x18] sm:$0xff] %v15701_v15  ;;  %p18462_p10 = pnand %p18461_p9, %p18455_p6 }
0x145c   :  { %18465 = shalt.err (!%p18462_p10)
}
0x145d   :  { %s22537_s1 = sld [smem:[#allocation71_spill]] }
0x1463   :  { %s18466_s19 = scalar_lea.hbm %s22537_s1, 512 }
0x1464   :  { %p18467_p11 = scmp.ne.s32.totalorder %s22537_s1, %s18466_s19  ;;  %p18470_p12 = scmp.lt.u32.totalorder %s18466_s19, %s22537_s1 }
0x1466   :  { %p18472_p13 = pnand %p18470_p12, %p18467_p11 }
0x1468   :  { %18475 = shalt.err (!%p18472_p13)
}
0x1469   :  { %15717 = dma.vmem_to_hbm [thread:$0]  %s15712_s30, 512, %s22537_s1, [#allocation4], %s22380_s28, %s22380_s28, %s18494_s23  }
0x146a   :  { %18488 = dma.done.wait [#allocation4], 512  }
0x146b   :  { %18489 = vsyncadd [#allocation4], 4294966784 }
0x146c   :  { %18490 = dma.done.wait [#allocation22], 512  }
0x146d   :  { %18491 = vsyncadd [#allocation22], 4294966784 }
0x146e   :  { %15751 = vsyncpa [#allocation3], 1 }
0x146f   :  { %15752 = vsyncpa [#allocation6], 1 }
0x1470   :  { %15753 = vsyncpa [#allocation9], 1 }
0x1471   :  { %15754 = vsyncpa [#allocation12], 1 }
0x1472   :  { %15755 = vsyncpa [#allocation15], 1 }
0x1473   :  { %15756 = vsyncpa [#allocation18], 1 }
0x1474   :  { %15757 = vsyncpa [#allocation4], 1 }
0x1475   :  { %15758 = vsyncpa [#allocation22], 1 }

</bundles_post_ra>
